<compile_context>
chip_gen: v7x
topology: tpu7x:2x2x1
jax: 0.10.0
libtpu: 0.0.40
codegen_flags: <defaults>
</compile_context>

<pallas_src>
import math

import jax
import jax.numpy as jnp
from jax.experimental import pallas as pl
from jax.experimental.pallas import tpu as pltpu

IMG_STACK = 4      # args.img_stack in the reference script
ACTION_DIM = 5     # action_dim passed to Net(...)

# (in_c, out_c, kernel, stride) -- static config (never traced).
CONV_CFG = (
    (IMG_STACK, 8, 4, 2),
    (8, 16, 3, 2),
    (16, 32, 3, 2),
    (32, 64, 3, 2),
    (64, 128, 3, 1),
    (128, 256, 3, 1),
)

_VMEM_LIMIT = 32 * 1024 * 1024   # conservative: safe on v5e/v6e (128 MiB) and v7x (64 MiB)


# ----------------------------------------------------------------------------
# Pallas kernel 1: M-tiled fused Y = relu(X @ W + b)   (conv layers via im2col)
# ----------------------------------------------------------------------------
def _mm_bias_relu_kernel(x_ref, w_ref, b_ref, o_ref):
    y = jnp.dot(x_ref[...], w_ref[...], preferred_element_type=jnp.float32)
    y = y + b_ref[...]                       # bias broadcast over rows
    o_ref[...] = jnp.maximum(y, 0.0).astype(o_ref.dtype)


def matmul_bias_relu(x, w, b, *, tm_max=1024):
    """x: (M, K) f32, w: (K, N) f32, b: (1, N) f32 -> relu(x @ w + b) : (M, N) f32."""
    M, K = x.shape
    Kw, N = w.shape
    assert Kw == K and b.shape == (1, N)
    if M <= tm_max:
        tm = M                   # single full block (full-dim blocks are always legal)
    else:
        tm = tm_max              # multiple of 8; ragged last block -> masked stores
    grid = (pl.cdiv(M, tm),)
    return pl.pallas_call(
        _mm_bias_relu_kernel,
        out_shape=jax.ShapeDtypeStruct((M, N), jnp.float32),
        grid=grid,
        in_specs=[
            pl.BlockSpec((tm, K), lambda i: (i, 0)),   # X: tiled over M (double-buffered)
            pl.BlockSpec((K, N), lambda i: (0, 0)),    # W: VMEM-resident across the grid
            pl.BlockSpec((1, N), lambda i: (0, 0)),    # bias: VMEM-resident
        ],
        out_specs=pl.BlockSpec((tm, N), lambda i: (i, 0)),
        compiler_params=pltpu.CompilerParams(
            dimension_semantics=("parallel",),         # 2-TC sharding on v7x, harmless elsewhere
            vmem_limit_bytes=_VMEM_LIMIT,
        ),
    )(x, w, b)


# ----------------------------------------------------------------------------
# Pallas kernel 2: fused network tail
#   conv6 (1x1 spatial output) + value head + actor head + softmax, ONE call.
# ----------------------------------------------------------------------------
def _tail_kernel(p6_ref, w6_ref, b6_ref, wh1_ref, bh1_ref,
                 wv2_ref, bv2_ref, wa2_ref, ba2_ref,
                 probs_ref, v_ref):
    # conv6: (B, 1152) @ (1152, 256) + b, ReLU   ==  x.view(-1, 256) features
    feat = jnp.dot(p6_ref[...], w6_ref[...], preferred_element_type=jnp.float32)
    feat = jnp.maximum(feat + b6_ref[...], 0.0)

    # packed first Linear of BOTH heads: cols [0,100) value, [128,228) actor, rest 0
    h = jnp.dot(feat, wh1_ref[...], preferred_element_type=jnp.float32)
    h = jnp.maximum(h + bh1_ref[...], 0.0)
    h_v = h[:, :128]           # lane-aligned split; padding columns are exactly 0
    h_a = h[:, 128:]

    # value head second Linear (weights zero-padded to 128 input rows)
    v = jnp.dot(h_v, wv2_ref[...], preferred_element_type=jnp.float32) + bv2_ref[...]

    # actor head second Linear + stable softmax
    logits = jnp.dot(h_a, wa2_ref[...], preferred_element_type=jnp.float32) + ba2_ref[...]
    m = jnp.max(logits, axis=-1, keepdims=True)
    e = jnp.exp(logits - m)
    denom = jnp.sum(e, axis=-1, keepdims=True)
    probs = e * pl.reciprocal(denom, approx=True)   # EUP reciprocal (free slot)

    probs_ref[...] = probs.astype(probs_ref.dtype)
    v_ref[...] = v.astype(v_ref.dtype)


def tail_fused(p6, params):
    B = p6.shape[0]
    return pl.pallas_call(
        _tail_kernel,
        out_shape=(jax.ShapeDtypeStruct((B, ACTION_DIM), jnp.float32),
                   jax.ShapeDtypeStruct((B, 1), jnp.float32)),
        compiler_params=pltpu.CompilerParams(vmem_limit_bytes=_VMEM_LIMIT),
    )(p6, params["conv_w"][5], params["conv_b"][5],
      params["wh1"], params["bh1"],
      params["wv2"], params["bv2"],
      params["wa2"], params["ba2"])


# ----------------------------------------------------------------------------
# im2col glue (static slices only; strides are Python ints from CONV_CFG)
# ----------------------------------------------------------------------------
def _im2col(x_nhwc, k, stride):
    B, H, W, C = x_nhwc.shape
    oh = (H - k) // stride + 1
    ow = (W - k) // stride + 1
    patches = []
    for i in range(k):
        for j in range(k):
            patches.append(
                x_nhwc[:, i:i + stride * oh:stride, j:j + stride * ow:stride, :])
    # per output pixel: (kh, kw, C) minor-order -> matches weight (2,3,1,0) reshape
    p = jnp.concatenate(patches, axis=-1).reshape(B * oh * ow, k * k * C)
    return p, oh, ow
    # TODO(synk): move im2col inside the Pallas kernel (kh*kw shifted sub-matmuls
    # accumulated in VMEM) to avoid materializing the patch matrix in HBM.


# ----------------------------------------------------------------------------
# Deterministic parameter init (matches module's __init__ shapes & init scheme)
# ----------------------------------------------------------------------------
def init_params(key):
    params = {"conv_w": [], "conv_b": []}
    gain = math.sqrt(2.0)  # nn.init.calculate_gain('relu')
    for (ci, co, k, _s) in CONV_CFG:
        key, kk = jax.random.split(key)
        fan_in, fan_out = ci * k * k, co * k * k
        limit = gain * math.sqrt(6.0 / (fan_in + fan_out))  # xavier_uniform_
        w = jax.random.uniform(kk, (co, ci, k, k), jnp.float32, -limit, limit)
        # pre-transpose once: (O, C, kh, kw) -> (kh, kw, C, O) -> (kh*kw*C, O)
        w_mat = jnp.transpose(w, (2, 3, 1, 0)).reshape(k * k * ci, co)
        b = jnp.full((1, co), 0.1, jnp.float32)              # constant_(bias, 0.1)
        params["conv_w"].append(w_mat)
        params["conv_b"].append(b)

    def linear(key, fin, fout):
        k1, k2 = jax.random.split(key)
        bound = 1.0 / math.sqrt(fin)  # PyTorch default Linear init bound
        w = jax.random.uniform(k1, (fin, fout), jnp.float32, -bound, bound)
        b = jax.random.uniform(k2, (fout,), jnp.float32, -bound, bound)
        return w, b

    key, k1, k2, k3, k4 = jax.random.split(key, 5)
    v1_w, v1_b = linear(k1, 256, 100)
    v2_w, v2_b = linear(k2, 100, 1)
    a1_w, a1_b = linear(k3, 256, 100)
    a2_w, a2_b = linear(k4, 100, ACTION_DIM)

    # Pack both head first-layers into a lane-aligned (256, 256) weight:
    # cols [0,100) -> value hidden, cols [128,228) -> actor hidden, rest zero.
    wh1 = jnp.zeros((256, 256), jnp.float32)
    wh1 = wh1.at[:, 0:100].set(v1_w).at[:, 128:228].set(a1_w)
    bh1 = jnp.zeros((1, 256), jnp.float32)
    bh1 = bh1.at[0, 0:100].set(v1_b).at[0, 128:228].set(a1_b)
    # Second layers zero-padded to 128 input rows (padded hidden units are exactly 0).
    wv2 = jnp.zeros((128, 1), jnp.float32).at[0:100, :].set(v2_w)
    wa2 = jnp.zeros((128, ACTION_DIM), jnp.float32).at[0:100, :].set(a2_w)

    params.update(dict(
        wh1=wh1, bh1=bh1,
        wv2=wv2, bv2=v2_b.reshape(1, 1),
        wa2=wa2, ba2=a2_b.reshape(1, ACTION_DIM),
    ))
    return params


# ----------------------------------------------------------------------------
# Full forward pass (returns (probs, v) like the PyTorch module)
# ----------------------------------------------------------------------------
def net_forward(x_nchw, params):
    B, C, H, W = x_nchw.shape
    # The conv tower must reduce 96x96 -> 1x1 spatial for x.view(-1, 256).
    assert (C, H, W) == (IMG_STACK, 96, 96), "Net requires (img_stack, 96, 96) inputs"
    x = jnp.transpose(x_nchw, (0, 2, 3, 1))  # NCHW -> NHWC

    # conv1..conv5: im2col (JAX glue) + Pallas fused matmul+bias+ReLU
    for (w_mat, b, (ci, co, k, s)) in zip(params["conv_w"][:5],
                                          params["conv_b"][:5],
                                          CONV_CFG[:5]):
        p, oh, ow = _im2col(x, k, s)
        y = matmul_bias_relu(p, w_mat, b)
        x = y.reshape(B, oh, ow, co)

    # conv6 has 3x3 input and 1x1 output -> its patch matrix is just the flattened
    # (3, 3, 128) NHWC block, which matches the (kh, kw, C) weight-row ordering.
    p6 = x.reshape(B, -1)                    # (B, 1152)
    probs, v = tail_fused(p6, params)        # fused conv6 + both heads + softmax
    return probs, v


if __name__ == "__main__":
    key = jax.random.PRNGKey(0)
    kp, kx = jax.random.split(key)
    params = init_params(kp)
    # CarRacing observation stack: (batch, img_stack, 96, 96); 96x96 is required
    # by x.view(-1, 256) (the conv tower reduces 96 -> 1x1 spatial).
    x = jax.random.normal(kx, (2, IMG_STACK, 96, 96), jnp.float32)

    probs, v = jax.jit(net_forward)(x, params)
    probs = jax.block_until_ready(probs)
    v = jax.block_until_ready(v)

    assert probs.shape == (2, ACTION_DIM)
    assert v.shape == (2, 1)
    assert bool(jnp.all(probs >= 0.0))
    assert bool(jnp.all(jnp.abs(jnp.sum(probs, axis=-1) - 1.0) < 1e-2))
    print("KERNEL_OK")
</pallas_src>

<mosaic_0001>
module attributes {stable_mosaic.version = 11 : i64} {
  func.func @_mm_bias_relu_kernel(%arg0: i32, %arg1: memref<1024x64xf32, #tpu.memory_space<vmem>>, %arg2: memref<64x8xf32, #tpu.memory_space<vmem>>, %arg3: memref<1x8xf32, #tpu.memory_space<vmem>>, %arg4: memref<1024x8xf32, #tpu.memory_space<vmem>>) attributes {dimension_semantics = [#tpu.dimension_semantics<parallel>], iteration_bounds = array<i64: 5>, scalar_prefetch = 0 : i64, scratch_operands = 0 : i64, tpu.core_type = #tpu.core_type<tc>, window_params = [{transform_indices = @transform_0, window_bounds = array<i64: 1024, 64>}, {pipeline_mode = #tpu.pipeline_mode<synchronous>, transform_indices = @transform_1, window_bounds = array<i64: 64, 8>}, {pipeline_mode = #tpu.pipeline_mode<synchronous>, transform_indices = @transform_2, window_bounds = array<i64: 1, 8>}, {transform_indices = @transform_3, window_bounds = array<i64: 1024, 8>}]} {
    %c0 = arith.constant 0 : index
    %c0_0 = arith.constant 0 : index
    %0 = vector.load %arg1[%c0, %c0_0] : memref<1024x64xf32, #tpu.memory_space<vmem>>, vector<1024x64xf32>
    %c0_1 = arith.constant 0 : index
    %c0_2 = arith.constant 0 : index
    %1 = vector.load %arg2[%c0_1, %c0_2] : memref<64x8xf32, #tpu.memory_space<vmem>>, vector<64x8xf32>
    %cst = arith.constant dense<0.000000e+00> : vector<1024x8xf32>
    %2 = tpu.matmul %0, %1, %cst {dimension_numbers = #tpu.dot_dimension_numbers<[1], [0], [0], [1], [0, 0, 1, 1], [], []>} : vector<1024x64xf32>, vector<64x8xf32>, vector<1024x8xf32> -> vector<1024x8xf32>
    %c0_3 = arith.constant 0 : index
    %c0_4 = arith.constant 0 : index
    %3 = vector.load %arg3[%c0_3, %c0_4] : memref<1x8xf32, #tpu.memory_space<vmem>>, vector<1x8xf32>
    %4 = vector.broadcast %3 : vector<1x8xf32> to vector<1024x8xf32>
    %5 = arith.addf %2, %4 : vector<1024x8xf32>
    %cst_5 = arith.constant 0.000000e+00 : f32
    %6 = vector.broadcast %cst_5 : f32 to vector<1024x8xf32>
    %7 = arith.maximumf %5, %6 : vector<1024x8xf32>
    %c0_6 = arith.constant 0 : index
    %c0_7 = arith.constant 0 : index
    %8 = vector.load %arg4[%c0_6, %c0_7] : memref<1024x8xf32, #tpu.memory_space<vmem>>, vector<1024x8xf32>
    tpu.vector_store %arg4[%c0_6, %c0_7], %7 {strides = array<i32>} : memref<1024x8xf32, #tpu.memory_space<vmem>>, vector<1024x8xf32>,
    return
  }
  func.func @transform_0(%arg0: i32) -> (i32, i32) {
    %c0_i32 = arith.constant 0 : i32
    %c0_i32_0 = arith.constant 0 : i32
    return %arg0, %c0_i32 : i32, i32
  }
  func.func @transform_1(%arg0: i32) -> (i32, i32) {
    %c0_i32 = arith.constant 0 : i32
    %c0_i32_0 = arith.constant 0 : i32
    %c0_i32_1 = arith.constant 0 : i32
    return %c0_i32, %c0_i32_0 : i32, i32
  }
  func.func @transform_2(%arg0: i32) -> (i32, i32) {
    %c0_i32 = arith.constant 0 : i32
    %c0_i32_0 = arith.constant 0 : i32
    %c0_i32_1 = arith.constant 0 : i32
    return %c0_i32, %c0_i32_0 : i32, i32
  }
  func.func @transform_3(%arg0: i32) -> (i32, i32) {
    %c0_i32 = arith.constant 0 : i32
    %c0_i32_0 = arith.constant 0 : i32
    return %arg0, %c0_i32 : i32, i32
  }
}

module attributes {stable_mosaic.version = 11 : i64} {
  func.func @_mm_bias_relu_kernel(%arg0: i32, %arg1: memref<1024x72xf32, #tpu.memory_space<vmem>>, %arg2: memref<72x16xf32, #tpu.memory_space<vmem>>, %arg3: memref<1x16xf32, #tpu.memory_space<vmem>>, %arg4: memref<1024x16xf32, #tpu.memory_space<vmem>>) attributes {dimension_semantics = [#tpu.dimension_semantics<parallel>], iteration_bounds = array<i64: 2>, scalar_prefetch = 0 : i64, scratch_operands = 0 : i64, tpu.core_type = #tpu.core_type<tc>, window_params = [{transform_indices = @transform_0, window_bounds = array<i64: 1024, 72>}, {pipeline_mode = #tpu.pipeline_mode<synchronous>, transform_indices = @transform_1, window_bounds = array<i64: 72, 16>}, {pipeline_mode = #tpu.pipeline_mode<synchronous>, transform_indices = @transform_2, window_bounds = array<i64: 1, 16>}, {transform_indices = @transform_3, window_bounds = array<i64: 1024, 16>}]} {
    %c0 = arith.constant 0 : index
    %c0_0 = arith.constant 0 : index
    %0 = vector.load %arg1[%c0, %c0_0] : memref<1024x72xf32, #tpu.memory_space<vmem>>, vector<1024x72xf32>
    %c0_1 = arith.constant 0 : index
    %c0_2 = arith.constant 0 : index
    %1 = vector.load %arg2[%c0_1, %c0_2] : memref<72x16xf32, #tpu.memory_space<vmem>>, vector<72x16xf32>
    %cst = arith.constant dense<0.000000e+00> : vector<1024x16xf32>
    %2 = tpu.matmul %0, %1, %cst {dimension_numbers = #tpu.dot_dimension_numbers<[1], [0], [0], [1], [0, 0, 1, 1], [], []>} : vector<1024x72xf32>, vector<72x16xf32>, vector<1024x16xf32> -> vector<1024x16xf32>
    %c0_3 = arith.constant 0 : index
    %c0_4 = arith.constant 0 : index
    %3 = vector.load %arg3[%c0_3, %c0_4] : memref<1x16xf32, #tpu.memory_space<vmem>>, vector<1x16xf32>
    %4 = vector.broadcast %3 : vector<1x16xf32> to vector<1024x16xf32>
    %5 = arith.addf %2, %4 : vector<1024x16xf32>
    %cst_5 = arith.constant 0.000000e+00 : f32
    %6 = vector.broadcast %cst_5 : f32 to vector<1024x16xf32>
    %7 = arith.maximumf %5, %6 : vector<1024x16xf32>
    %c0_6 = arith.constant 0 : index
    %c0_7 = arith.constant 0 : index
    %8 = vector.load %arg4[%c0_6, %c0_7] : memref<1024x16xf32, #tpu.memory_space<vmem>>, vector<1024x16xf32>
    tpu.vector_store %arg4[%c0_6, %c0_7], %7 {strides = array<i32>} : memref<1024x16xf32, #tpu.memory_space<vmem>>, vector<1024x16xf32>,
    return
  }
  func.func @transform_0(%arg0: i32) -> (i32, i32) {
    %c0_i32 = arith.constant 0 : i32
    %c0_i32_0 = arith.constant 0 : i32
    return %arg0, %c0_i32 : i32, i32
  }
  func.func @transform_1(%arg0: i32) -> (i32, i32) {
    %c0_i32 = arith.constant 0 : i32
    %c0_i32_0 = arith.constant 0 : i32
    %c0_i32_1 = arith.constant 0 : i32
    return %c0_i32, %c0_i32_0 : i32, i32
  }
  func.func @transform_2(%arg0: i32) -> (i32, i32) {
    %c0_i32 = arith.constant 0 : i32
    %c0_i32_0 = arith.constant 0 : i32
    %c0_i32_1 = arith.constant 0 : i32
    return %c0_i32, %c0_i32_0 : i32, i32
  }
  func.func @transform_3(%arg0: i32) -> (i32, i32) {
    %c0_i32 = arith.constant 0 : i32
    %c0_i32_0 = arith.constant 0 : i32
    return %arg0, %c0_i32 : i32, i32
  }
}

module attributes {stable_mosaic.version = 11 : i64} {
  func.func @_mm_bias_relu_kernel(%arg0: i32, %arg1: memref<242x144xf32, #tpu.memory_space<vmem>>, %arg2: memref<144x32xf32, #tpu.memory_space<vmem>>, %arg3: memref<1x32xf32, #tpu.memory_space<vmem>>, %arg4: memref<242x32xf32, #tpu.memory_space<vmem>>) attributes {dimension_semantics = [#tpu.dimension_semantics<parallel>], iteration_bounds = array<i64: 1>, scalar_prefetch = 0 : i64, scratch_operands = 0 : i64, tpu.core_type = #tpu.core_type<tc>, window_params = [{transform_indices = @transform_0, window_bounds = array<i64: 242, 144>}, {pipeline_mode = #tpu.pipeline_mode<synchronous>, transform_indices = @transform_1, window_bounds = array<i64: 144, 32>}, {pipeline_mode = #tpu.pipeline_mode<synchronous>, transform_indices = @transform_2, window_bounds = array<i64: 1, 32>}, {transform_indices = @transform_3, window_bounds = array<i64: 242, 32>}]} {
    %c0 = arith.constant 0 : index
    %c0_0 = arith.constant 0 : index
    %0 = vector.load %arg1[%c0, %c0_0] : memref<242x144xf32, #tpu.memory_space<vmem>>, vector<242x144xf32>
    %c0_1 = arith.constant 0 : index
    %c0_2 = arith.constant 0 : index
    %1 = vector.load %arg2[%c0_1, %c0_2] : memref<144x32xf32, #tpu.memory_space<vmem>>, vector<144x32xf32>
    %cst = arith.constant dense<0.000000e+00> : vector<242x32xf32>
    %2 = tpu.matmul %0, %1, %cst {dimension_numbers = #tpu.dot_dimension_numbers<[1], [0], [0], [1], [0, 0, 1, 1], [], []>} : vector<242x144xf32>, vector<144x32xf32>, vector<242x32xf32> -> vector<242x32xf32>
    %c0_3 = arith.constant 0 : index
    %c0_4 = arith.constant 0 : index
    %3 = vector.load %arg3[%c0_3, %c0_4] : memref<1x32xf32, #tpu.memory_space<vmem>>, vector<1x32xf32>
    %4 = vector.broadcast %3 : vector<1x32xf32> to vector<242x32xf32>
    %5 = arith.addf %2, %4 : vector<242x32xf32>
    %cst_5 = arith.constant 0.000000e+00 : f32
    %6 = vector.broadcast %cst_5 : f32 to vector<242x32xf32>
    %7 = arith.maximumf %5, %6 : vector<242x32xf32>
    %c0_6 = arith.constant 0 : index
    %c0_7 = arith.constant 0 : index
    %8 = vector.load %arg4[%c0_6, %c0_7] : memref<242x32xf32, #tpu.memory_space<vmem>>, vector<242x32xf32>
    tpu.vector_store %arg4[%c0_6, %c0_7], %7 {strides = array<i32>} : memref<242x32xf32, #tpu.memory_space<vmem>>, vector<242x32xf32>,
    return
  }
  func.func @transform_0(%arg0: i32) -> (i32, i32) {
    %c0_i32 = arith.constant 0 : i32
    %c0_i32_0 = arith.constant 0 : i32
    return %arg0, %c0_i32 : i32, i32
  }
  func.func @transform_1(%arg0: i32) -> (i32, i32) {
    %c0_i32 = arith.constant 0 : i32
    %c0_i32_0 = arith.constant 0 : i32
    %c0_i32_1 = arith.constant 0 : i32
    return %c0_i32, %c0_i32_0 : i32, i32
  }
  func.func @transform_2(%arg0: i32) -> (i32, i32) {
    %c0_i32 = arith.constant 0 : i32
    %c0_i32_0 = arith.constant 0 : i32
    %c0_i32_1 = arith.constant 0 : i32
    return %c0_i32, %c0_i32_0 : i32, i32
  }
  func.func @transform_3(%arg0: i32) -> (i32, i32) {
    %c0_i32 = arith.constant 0 : i32
    %c0_i32_0 = arith.constant 0 : i32
    return %arg0, %c0_i32 : i32, i32
  }
}

module attributes {stable_mosaic.version = 11 : i64} {
  func.func @_mm_bias_relu_kernel(%arg0: i32, %arg1: memref<50x288xf32, #tpu.memory_space<vmem>>, %arg2: memref<288x64xf32, #tpu.memory_space<vmem>>, %arg3: memref<1x64xf32, #tpu.memory_space<vmem>>, %arg4: memref<50x64xf32, #tpu.memory_space<vmem>>) attributes {dimension_semantics = [#tpu.dimension_semantics<parallel>], iteration_bounds = array<i64: 1>, scalar_prefetch = 0 : i64, scratch_operands = 0 : i64, tpu.core_type = #tpu.core_type<tc>, window_params = [{transform_indices = @transform_0, window_bounds = array<i64: 50, 288>}, {pipeline_mode = #tpu.pipeline_mode<synchronous>, transform_indices = @transform_1, window_bounds = array<i64: 288, 64>}, {pipeline_mode = #tpu.pipeline_mode<synchronous>, transform_indices = @transform_2, window_bounds = array<i64: 1, 64>}, {transform_indices = @transform_3, window_bounds = array<i64: 50, 64>}]} {
    %c0 = arith.constant 0 : index
    %c0_0 = arith.constant 0 : index
    %0 = vector.load %arg1[%c0, %c0_0] : memref<50x288xf32, #tpu.memory_space<vmem>>, vector<50x288xf32>
    %c0_1 = arith.constant 0 : index
    %c0_2 = arith.constant 0 : index
    %1 = vector.load %arg2[%c0_1, %c0_2] : memref<288x64xf32, #tpu.memory_space<vmem>>, vector<288x64xf32>
    %cst = arith.constant dense<0.000000e+00> : vector<50x64xf32>
    %2 = tpu.matmul %0, %1, %cst {dimension_numbers = #tpu.dot_dimension_numbers<[1], [0], [0], [1], [0, 0, 1, 1], [], []>} : vector<50x288xf32>, vector<288x64xf32>, vector<50x64xf32> -> vector<50x64xf32>
    %c0_3 = arith.constant 0 : index
    %c0_4 = arith.constant 0 : index
    %3 = vector.load %arg3[%c0_3, %c0_4] : memref<1x64xf32, #tpu.memory_space<vmem>>, vector<1x64xf32>
    %4 = vector.broadcast %3 : vector<1x64xf32> to vector<50x64xf32>
    %5 = arith.addf %2, %4 : vector<50x64xf32>
    %cst_5 = arith.constant 0.000000e+00 : f32
    %6 = vector.broadcast %cst_5 : f32 to vector<50x64xf32>
    %7 = arith.maximumf %5, %6 : vector<50x64xf32>
    %c0_6 = arith.constant 0 : index
    %c0_7 = arith.constant 0 : index
    %8 = vector.load %arg4[%c0_6, %c0_7] : memref<50x64xf32, #tpu.memory_space<vmem>>, vector<50x64xf32>
    tpu.vector_store %arg4[%c0_6, %c0_7], %7 {strides = array<i32>} : memref<50x64xf32, #tpu.memory_space<vmem>>, vector<50x64xf32>,
    return
  }
  func.func @transform_0(%arg0: i32) -> (i32, i32) {
    %c0_i32 = arith.constant 0 : i32
    %c0_i32_0 = arith.constant 0 : i32
    return %arg0, %c0_i32 : i32, i32
  }
  func.func @transform_1(%arg0: i32) -> (i32, i32) {
    %c0_i32 = arith.constant 0 : i32
    %c0_i32_0 = arith.constant 0 : i32
    %c0_i32_1 = arith.constant 0 : i32
    return %c0_i32, %c0_i32_0 : i32, i32
  }
  func.func @transform_2(%arg0: i32) -> (i32, i32) {
    %c0_i32 = arith.constant 0 : i32
    %c0_i32_0 = arith.constant 0 : i32
    %c0_i32_1 = arith.constant 0 : i32
    return %c0_i32, %c0_i32_0 : i32, i32
  }
  func.func @transform_3(%arg0: i32) -> (i32, i32) {
    %c0_i32 = arith.constant 0 : i32
    %c0_i32_0 = arith.constant 0 : i32
    return %arg0, %c0_i32 : i32, i32
  }
}

module attributes {stable_mosaic.version = 11 : i64} {
  func.func @_mm_bias_relu_kernel(%arg0: i32, %arg1: memref<18x576xf32, #tpu.memory_space<vmem>>, %arg2: memref<576x128xf32, #tpu.memory_space<vmem>>, %arg3: memref<1x128xf32, #tpu.memory_space<vmem>>, %arg4: memref<18x128xf32, #tpu.memory_space<vmem>>) attributes {dimension_semantics = [#tpu.dimension_semantics<parallel>], iteration_bounds = array<i64: 1>, scalar_prefetch = 0 : i64, scratch_operands = 0 : i64, tpu.core_type = #tpu.core_type<tc>, window_params = [{transform_indices = @transform_0, window_bounds = array<i64: 18, 576>}, {pipeline_mode = #tpu.pipeline_mode<synchronous>, transform_indices = @transform_1, window_bounds = array<i64: 576, 128>}, {pipeline_mode = #tpu.pipeline_mode<synchronous>, transform_indices = @transform_2, window_bounds = array<i64: 1, 128>}, {transform_indices = @transform_3, window_bounds = array<i64: 18, 128>}]} {
    %c0 = arith.constant 0 : index
    %c0_0 = arith.constant 0 : index
    %0 = vector.load %arg1[%c0, %c0_0] : memref<18x576xf32, #tpu.memory_space<vmem>>, vector<18x576xf32>
    %c0_1 = arith.constant 0 : index
    %c0_2 = arith.constant 0 : index
    %1 = vector.load %arg2[%c0_1, %c0_2] : memref<576x128xf32, #tpu.memory_space<vmem>>, vector<576x128xf32>
    %cst = arith.constant dense<0.000000e+00> : vector<18x128xf32>
    %2 = tpu.matmul %0, %1, %cst {dimension_numbers = #tpu.dot_dimension_numbers<[1], [0], [0], [1], [0, 0, 1, 1], [], []>} : vector<18x576xf32>, vector<576x128xf32>, vector<18x128xf32> -> vector<18x128xf32>
    %c0_3 = arith.constant 0 : index
    %c0_4 = arith.constant 0 : index
    %3 = vector.load %arg3[%c0_3, %c0_4] : memref<1x128xf32, #tpu.memory_space<vmem>>, vector<1x128xf32>
    %4 = vector.broadcast %3 : vector<1x128xf32> to vector<18x128xf32>
    %5 = arith.addf %2, %4 : vector<18x128xf32>
    %cst_5 = arith.constant 0.000000e+00 : f32
    %6 = vector.broadcast %cst_5 : f32 to vector<18x128xf32>
    %7 = arith.maximumf %5, %6 : vector<18x128xf32>
    %c0_6 = arith.constant 0 : index
    %c0_7 = arith.constant 0 : index
    %8 = vector.load %arg4[%c0_6, %c0_7] : memref<18x128xf32, #tpu.memory_space<vmem>>, vector<18x128xf32>
    tpu.vector_store %arg4[%c0_6, %c0_7], %7 {strides = array<i32>} : memref<18x128xf32, #tpu.memory_space<vmem>>, vector<18x128xf32>,
    return
  }
  func.func @transform_0(%arg0: i32) -> (i32, i32) {
    %c0_i32 = arith.constant 0 : i32
    %c0_i32_0 = arith.constant 0 : i32
    return %arg0, %c0_i32 : i32, i32
  }
  func.func @transform_1(%arg0: i32) -> (i32, i32) {
    %c0_i32 = arith.constant 0 : i32
    %c0_i32_0 = arith.constant 0 : i32
    %c0_i32_1 = arith.constant 0 : i32
    return %c0_i32, %c0_i32_0 : i32, i32
  }
  func.func @transform_2(%arg0: i32) -> (i32, i32) {
    %c0_i32 = arith.constant 0 : i32
    %c0_i32_0 = arith.constant 0 : i32
    %c0_i32_1 = arith.constant 0 : i32
    return %c0_i32, %c0_i32_0 : i32, i32
  }
  func.func @transform_3(%arg0: i32) -> (i32, i32) {
    %c0_i32 = arith.constant 0 : i32
    %c0_i32_0 = arith.constant 0 : i32
    return %arg0, %c0_i32 : i32, i32
  }
}

module attributes {stable_mosaic.version = 11 : i64} {
  func.func @_tail_kernel(%arg0: memref<2x1152xf32, #tpu.memory_space<vmem>>, %arg1: memref<1152x256xf32, #tpu.memory_space<vmem>>, %arg2: memref<1x256xf32, #tpu.memory_space<vmem>>, %arg3: memref<256x256xf32, #tpu.memory_space<vmem>>, %arg4: memref<1x256xf32, #tpu.memory_space<vmem>>, %arg5: memref<128x1xf32, #tpu.memory_space<vmem>>, %arg6: memref<1x1xf32, #tpu.memory_space<vmem>>, %arg7: memref<128x5xf32, #tpu.memory_space<vmem>>, %arg8: memref<1x5xf32, #tpu.memory_space<vmem>>, %arg9: memref<2x5xf32, #tpu.memory_space<vmem>>, %arg10: memref<2x1xf32, #tpu.memory_space<vmem>>) attributes {dimension_semantics = [], scalar_prefetch = 0 : i64, scratch_operands = 0 : i64, tpu.core_type = #tpu.core_type<tc>} {
    %c0 = arith.constant 0 : index
    %c0_0 = arith.constant 0 : index
    %0 = vector.load %arg0[%c0, %c0_0] : memref<2x1152xf32, #tpu.memory_space<vmem>>, vector<2x1152xf32>
    %c0_1 = arith.constant 0 : index
    %c0_2 = arith.constant 0 : index
    %1 = vector.load %arg1[%c0_1, %c0_2] : memref<1152x256xf32, #tpu.memory_space<vmem>>, vector<1152x256xf32>
    %cst = arith.constant dense<0.000000e+00> : vector<2x256xf32>
    %2 = tpu.matmul %0, %1, %cst {dimension_numbers = #tpu.dot_dimension_numbers<[1], [0], [0], [1], [0, 0, 1, 1], [], []>} : vector<2x1152xf32>, vector<1152x256xf32>, vector<2x256xf32> -> vector<2x256xf32>
    %c0_3 = arith.constant 0 : index
    %c0_4 = arith.constant 0 : index
    %3 = vector.load %arg2[%c0_3, %c0_4] : memref<1x256xf32, #tpu.memory_space<vmem>>, vector<1x256xf32>
    %4 = vector.broadcast %3 : vector<1x256xf32> to vector<2x256xf32>
    %5 = arith.addf %2, %4 : vector<2x256xf32>
    %cst_5 = arith.constant 0.000000e+00 : f32
    %6 = vector.broadcast %cst_5 : f32 to vector<2x256xf32>
    %7 = arith.maximumf %5, %6 : vector<2x256xf32>
    %c0_6 = arith.constant 0 : index
    %c0_7 = arith.constant 0 : index
    %8 = vector.load %arg3[%c0_6, %c0_7] : memref<256x256xf32, #tpu.memory_space<vmem>>, vector<256x256xf32>
    %cst_8 = arith.constant dense<0.000000e+00> : vector<2x256xf32>
    %9 = tpu.matmul %7, %8, %cst_8 {dimension_numbers = #tpu.dot_dimension_numbers<[1], [0], [0], [1], [0, 0, 1, 1], [], []>} : vector<2x256xf32>, vector<256x256xf32>, vector<2x256xf32> -> vector<2x256xf32>
    %c0_9 = arith.constant 0 : index
    %c0_10 = arith.constant 0 : index
    %10 = vector.load %arg4[%c0_9, %c0_10] : memref<1x256xf32, #tpu.memory_space<vmem>>, vector<1x256xf32>
    %11 = vector.broadcast %10 : vector<1x256xf32> to vector<2x256xf32>
    %12 = arith.addf %9, %11 : vector<2x256xf32>
    %cst_11 = arith.constant 0.000000e+00 : f32
    %13 = vector.broadcast %cst_11 : f32 to vector<2x256xf32>
    %14 = arith.maximumf %12, %13 : vector<2x256xf32>
    %15 = vector.extract_strided_slice %14 {offsets = [0, 0], sizes = [2, 128], strides = [1, 1]} : vector<2x256xf32> to vector<2x128xf32>
    %16 = vector.extract_strided_slice %14 {offsets = [0, 128], sizes = [2, 128], strides = [1, 1]} : vector<2x256xf32> to vector<2x128xf32>
    %c0_12 = arith.constant 0 : index
    %c0_13 = arith.constant 0 : index
    %17 = vector.load %arg5[%c0_12, %c0_13] : memref<128x1xf32, #tpu.memory_space<vmem>>, vector<128x1xf32>
    %cst_14 = arith.constant dense<0.000000e+00> : vector<2x1xf32>
    %18 = tpu.matmul %15, %17, %cst_14 {dimension_numbers = #tpu.dot_dimension_numbers<[1], [0], [0], [1], [0, 0, 1, 1], [], []>} : vector<2x128xf32>, vector<128x1xf32>, vector<2x1xf32> -> vector<2x1xf32>
    %c0_15 = arith.constant 0 : index
    %c0_16 = arith.constant 0 : index
    %19 = vector.load %arg6[%c0_15, %c0_16] : memref<1x1xf32, #tpu.memory_space<vmem>>, vector<1x1xf32>
    %20 = vector.broadcast %19 : vector<1x1xf32> to vector<2x1xf32>
    %21 = arith.addf %18, %20 : vector<2x1xf32>
    %c0_17 = arith.constant 0 : index
    %c0_18 = arith.constant 0 : index
    %22 = vector.load %arg7[%c0_17, %c0_18] : memref<128x5xf32, #tpu.memory_space<vmem>>, vector<128x5xf32>
    %cst_19 = arith.constant dense<0.000000e+00> : vector<2x5xf32>
    %23 = tpu.matmul %16, %22, %cst_19 {dimension_numbers = #tpu.dot_dimension_numbers<[1], [0], [0], [1], [0, 0, 1, 1], [], []>} : vector<2x128xf32>, vector<128x5xf32>, vector<2x5xf32> -> vector<2x5xf32>
    %c0_20 = arith.constant 0 : index
    %c0_21 = arith.constant 0 : index
    %24 = vector.load %arg8[%c0_20, %c0_21] : memref<1x5xf32, #tpu.memory_space<vmem>>, vector<1x5xf32>
    %25 = vector.broadcast %24 : vector<1x5xf32> to vector<2x5xf32>
    %26 = arith.addf %23, %25 : vector<2x5xf32>
    %cst_22 = arith.constant dense<0xFF800000> : vector<2xf32>
    %27 = vector.multi_reduction <maximumf>, %26, %cst_22 [1] : vector<2x5xf32> to vector<2xf32>
    %28 = vector.shape_cast %27 : vector<2xf32> to vector<2x1xf32>
    %29 = vector.broadcast %28 : vector<2x1xf32> to vector<2x5xf32>
    %30 = arith.subf %26, %29 : vector<2x5xf32>
    %31 = math.exp %30 : vector<2x5xf32>
    %cst_23 = arith.constant dense<0.000000e+00> : vector<2xf32>
    %32 = vector.multi_reduction <add>, %31, %cst_23 [1] : vector<2x5xf32> to vector<2xf32>
    %33 = vector.shape_cast %32 : vector<2xf32> to vector<2x1xf32>
    %34 = tpu.reciprocal %33 {approx = true} : vector<2x1xf32> -> vector<2x1xf32>
    %35 = vector.broadcast %34 : vector<2x1xf32> to vector<2x5xf32>
    %36 = arith.mulf %31, %35 : vector<2x5xf32>
    %c0_24 = arith.constant 0 : index
    %c0_25 = arith.constant 0 : index
    %37 = vector.load %arg9[%c0_24, %c0_25] : memref<2x5xf32, #tpu.memory_space<vmem>>, vector<2x5xf32>
    tpu.vector_store %arg9[%c0_24, %c0_25], %36 {strides = array<i32>} : memref<2x5xf32, #tpu.memory_space<vmem>>, vector<2x5xf32>,
    %c0_26 = arith.constant 0 : index
    %c0_27 = arith.constant 0 : index
    %38 = vector.load %arg10[%c0_26, %c0_27] : memref<2x1xf32, #tpu.memory_space<vmem>>, vector<2x1xf32>
    tpu.vector_store %arg10[%c0_26, %c0_27], %21 {strides = array<i32>} : memref<2x1xf32, #tpu.memory_space<vmem>>, vector<2x1xf32>,
    return
  }
}

</mosaic_0001>

<bundles_post_ra>
// kernel: net_forward.6
= control target key start
LH: loop header
LB: loop body
LE: loop exit
PB: predicated region body
PF: predicated region fallthrough
CT: control target
= control target key end

     0   :  { %s2869_s12 = smov 0   ;;  %s2871_s13 = smov 0   ;;  %s3786_s0 = inlined_call_operand.vmem [shape: f32[4418,64], index: 0, kind: input, shape index: {}]   ;;  %s3787_s1 = inlined_call_operand.vmem [shape: f32[64,8], index: 1, kind: input, shape index: {}]   ;;  %s3788_s2 = inlined_call_operand.vmem [shape: f32[1,8], index: 2, kind: input, shape index: {}]   ;;  %s3789_s3 = inlined_call_operand.vmem [shape: f32[4418,8], index: 3, kind: output, shape index: {}]  }
   0x1   :  { %s2873_s14 = smov 0  }
   0x2 LB: > { %s2882_s15 = sadd.s32 4294967295, %s2815_s14   ;;  %s2884_s16 = sadd.s32 1, %s2815_s14   ;;  %s2815_s14 = sphi %s2873_s14, %s3798_s14   ;;  %s2811_s13 = sphi %s2871_s13, %s3797_s13   ;;  %s2807_s12 = sphi %s2869_s12, %s3796_s12  }
   0x3   : > { %s85_s17 = ssub.s32 %s2815_s14, %s2884_s16  ;;  %s88_s18 = sadd.s32 1, %s2811_s13 }
   0x4   : > { %p86_p0 = scmp.eq.s32.totalorder %s85_s17, 0  ;;  %p98_p1 = scmp.ne.s32.totalorder %s2811_s13, %s2807_s12 }
   0x5   : > { %p99_p2 = scmp.eq.s32.totalorder %s2882_s15, 4  ;;  %p2152_p3 = scmp.ge.s32.totalorder %s2815_s14, 1 }
   0x6   : > { %s2892_s19 = scalar_select %p86_p0, %s2811_s13, %s88_s18  }
   0x7   : > { %p2894_p4 = por %p99_p2, %p98_p1  ;;  %p146_p5 = scmp.lt.s32.totalorder %s2815_s14, 6 }
   0x9   : > { %p147_p6 = pnand %p2152_p3, %p146_p5 }
   0xa   : > { %v320_v0 = vld [vmem:[%s3787_s1] sm:$0xff] (!%p147_p6)  ;;  %v321_v1 = vld [vmem:[%s3787_s1 + $0x8] sm:$0xff] (!%p147_p6)  ;;  %v322_v2 = vld [vmem:[%s3787_s1 + $0x10] sm:$0xff] (!%p147_p6)  ;;  %s2908_s27 = sshll.u32 (!%p147_p6), %s2882_s15, 7  ;;  %vm335_vm0 = vcmask (!%p147_p6), 523264   ;;  %s170_s22 = sand.u32 (!%p147_p6), 1, %s2807_s12  }
   0xb   : > { %150 = sbr.rel (%p147_p6) target bundleno = 443 (0x1bb), region = 32  ;;  %v2649_v3 = vpack.c.bf16 (!%p147_p6), %v321_v1, %v320_v0  ;;  %v323_v4 = vld [vmem:[%s3787_s1 + $0x18] sm:$0xff] (!%p147_p6)  ;;  %p178_p7 = scmp.lt.s32.totalorder (!%p147_p6), %s2908_s27, 552  ;;  %v324_v6 = vld [vmem:[%s3787_s1 + $0x20] sm:$0xff] (!%p147_p6)  ;;  %v325_v7 = vld [vmem:[%s3787_s1 + $0x28] sm:$0xff] (!%p147_p6)  ;;  %vm1553_vm1 = vcmask (!%p147_p6), 64512  }
   0xc   : > { %v2653_v5 = vpack.c.bf16 (!%p147_p6), %v323_v4, %v322_v2  ;;  %v2657_v8 = vpack.c.bf16 (!%p147_p6), %v325_v7, %v324_v6  ;;  %v326_v9 = vld [vmem:[%s3787_s1 + $0x30] sm:$0xff] (!%p147_p6)  ;;  %v327_v10 = vld [vmem:[%s3787_s1 + $0x38] sm:$0xff] (!%p147_p6)  ;;  %s2153_s25 = sshll.u32 (!%p147_p6), %s170_s22, 10 }
   0xd   : > { %2650 = vmatprep.subr.bf16.mxu0 (!%p147_p6), %v2649_v3  ;;  %2665 = vmatprep.subr.bf16.mxu1 (!%p147_p6), %v2649_v3  ;;  %v2661_v13 = vpack.c.bf16 (!%p147_p6), %v327_v10, %v326_v9  ;;  %s3198_s12 = scalar_lea.vmem (!%p147_p6), [#allocation2], %s2153_s25  }
   0xe   : > { %2652 = vmatpush3.bf16.msra.mxu0 (!%p147_p6), %v2649_v3  ;;  %2669 = vmatpush3.bf16.msra.mxu1 (!%p147_p6), %v2649_v3 }
   0xf   : > { %2654 = vmatprep.subr.bf16.mxu0 (!%p147_p6), %v2653_v5  ;;  %2666 = vmatprep.subr.bf16.mxu1 (!%p147_p6), %v2653_v5 }
  0x12   : > { %s179_s7 = scalar_select %p178_p7, %s2908_s27, 552  ;;  %2656 = vmatpush3.bf16.msra.mxu0 %v2653_v5  ;;  %2670 = vmatpush3.bf16.msra.mxu1 %v2653_v5 }
  0x13   : > { %2658 = vmatprep.subr.bf16.mxu0 %v2657_v8  ;;  %2667 = vmatprep.subr.bf16.mxu1 %v2657_v8  ;;  %s1690_s26 = ssub.s32 (%p2894_p4), 553, %s2908_s27  ;;  %s2302_s28 = sshll.u32 (%p2894_p4), %s2882_s15, 10 }
  0x14   : > { %s2155_s8 = sshll.u32 %s179_s7, 3  ;;  %p1691_p8 = scmp.lt.s32.totalorder (%p2894_p4), %s1690_s26, 128 }
  0x15   : > { %s2930_s21 = scalar_lea.vmem %s3786_s0, %s2155_s8  ;;  %s3587_s4 = scalar_lea.vmem (%p2894_p4), %s3789_s3, %s2302_s28  }
  0x16   : > { %v192_v11 = vld [vmem:[%s2930_s21] sm:$0xff]  ;;  %2660 = vmatpush3.bf16.msra.mxu0 %v2657_v8  ;;  %2671 = vmatpush3.bf16.msra.mxu1 %v2657_v8  ;;  %v193_v14 = vld [vmem:[%s2930_s21 + $0x8] sm:$0xff]  ;;  %v194_v16 = vld [vmem:[%s2930_s21 + $0x10] sm:$0xff] }
  0x17   : > { %v256_v12 = vld [vmem:[%s2930_s21 + $0x200] sm:$0xff]  ;;  %2457 = vmatprep.mubr.msk.f32.mxu0 %vm335_vm0, %v192_v11  ;;  %2662 = vmatprep.subr.bf16.mxu0 %v2661_v13  ;;  %v257_v15 = vld [vmem:[%s2930_s21 + $0x208] sm:$0xff]  ;;  %v258_v17 = vld [vmem:[%s2930_s21 + $0x210] sm:$0xff] }
  0x18   : > { %2553 = vmatprep.mubr.msk.f32.mxu1 %vm335_vm0, %v256_v12  ;;  %2668 = vmatprep.subr.bf16.mxu1 %v2661_v13  ;;  %v195_v18 = vld [vmem:[%s2930_s21 + $0x18] sm:$0xff]  ;;  %v196_v20 = vld [vmem:[%s2930_s21 + $0x20] sm:$0xff]  ;;  %v197_v22 = vld [vmem:[%s2930_s21 + $0x28] sm:$0xff] }
  0x19   : > { %v259_v19 = vld [vmem:[%s2930_s21 + $0x218] sm:$0xff]  ;;  %v260_v21 = vld [vmem:[%s2930_s21 + $0x220] sm:$0xff]  ;;  %v261_v23 = vld [vmem:[%s2930_s21 + $0x228] sm:$0xff] }
  0x1a   : > { %2664 = vmatpush3.bf16.msra.mxu0 %v2661_v13  ;;  %2672 = vmatpush3.bf16.msra.mxu1 %v2661_v13  ;;  %v198_v24 = vld [vmem:[%s2930_s21 + $0x30] sm:$0xff]  ;;  %v199_v26 = vld [vmem:[%s2930_s21 + $0x38] sm:$0xff]  ;;  %v200_v28 = vld [vmem:[%s2930_s21 + $0x40] sm:$0xff] }
  0x1b   : > { %v262_v25 = vld [vmem:[%s2930_s21 + $0x230] sm:$0xff]  ;;  %v263_v27 = vld [vmem:[%s2930_s21 + $0x238] sm:$0xff]  ;;  %v264_v29 = vld [vmem:[%s2930_s21 + $0x240] sm:$0xff] }
  0x1c   : > { %v201_v30 = vld [vmem:[%s2930_s21 + $0x48] sm:$0xff]  ;;  %v202_v32 = vld [vmem:[%s2930_s21 + $0x50] sm:$0xff]  ;;  %v203_v34 = vld [vmem:[%s2930_s21 + $0x58] sm:$0xff] }
  0x1d   : > { %2458 = vmatmul.mubr.msk.f32.vlgmr.msra.gmra.mrb[0].mxu0 %vm335_vm0, %v193_v14  ;;  %2554 = vmatmul.mubr.msk.f32.vlgmr.msra.gmra.mrb[0].mxu1 %vm335_vm0, %v257_v15  ;;  %v265_v31 = vld [vmem:[%s2930_s21 + $0x248] sm:$0xff]  ;;  %v266_v33 = vld [vmem:[%s2930_s21 + $0x250] sm:$0xff]  ;;  %v267_v35 = vld [vmem:[%s2930_s21 + $0x258] sm:$0xff] }
  0x1e   : > { %2460 = vmatprep.mubr.msk.f32.mxu0 %vm335_vm0, %v194_v16  ;;  %2556 = vmatprep.mubr.msk.f32.mxu1 %vm335_vm0, %v258_v17  ;;  %v204_v36 = vld [vmem:[%s2930_s21 + $0x60] sm:$0xff]  ;;  %v205_v38 = vld [vmem:[%s2930_s21 + $0x68] sm:$0xff]  ;;  %v206_v40 = vld [vmem:[%s2930_s21 + $0x70] sm:$0xff] }
  0x1f   : > { %v268_v37 = vld [vmem:[%s2930_s21 + $0x260] sm:$0xff]  ;;  %v269_v39 = vld [vmem:[%s2930_s21 + $0x268] sm:$0xff]  ;;  %v270_v41 = vld [vmem:[%s2930_s21 + $0x270] sm:$0xff] }
  0x20   : > { %v207_v42 = vld [vmem:[%s2930_s21 + $0x78] sm:$0xff]  ;;  %v208_v44 = vld [vmem:[%s2930_s21 + $0x80] sm:$0xff]  ;;  %v209_v46 = vld [vmem:[%s2930_s21 + $0x88] sm:$0xff] }
  0x21   : > { %2461 = vmatmul.mubr.msk.f32.gmra.mrb[2].mxu0 %vm335_vm0, %v195_v18  ;;  %2557 = vmatmul.mubr.msk.f32.gmra.mrb[2].mxu1 %vm335_vm0, %v259_v19  ;;  %v271_v43 = vld [vmem:[%s2930_s21 + $0x278] sm:$0xff]  ;;  %v272_v45 = vld [vmem:[%s2930_s21 + $0x280] sm:$0xff]  ;;  %v273_v47 = vld [vmem:[%s2930_s21 + $0x288] sm:$0xff] }
  0x22   : > { %2463 = vmatprep.mubr.msk.f32.mxu0 %vm335_vm0, %v196_v20  ;;  %2559 = vmatprep.mubr.msk.f32.mxu1 %vm335_vm0, %v260_v21  ;;  %v210_v48 = vld [vmem:[%s2930_s21 + $0x90] sm:$0xff]  ;;  %v211_v50 = vld [vmem:[%s2930_s21 + $0x98] sm:$0xff]  ;;  %v212_v52 = vld [vmem:[%s2930_s21 + $0xa0] sm:$0xff] }
  0x23   : > { %v274_v49 = vld [vmem:[%s2930_s21 + $0x290] sm:$0xff]  ;;  %v275_v51 = vld [vmem:[%s2930_s21 + $0x298] sm:$0xff]  ;;  %v276_v53 = vld [vmem:[%s2930_s21 + $0x2a0] sm:$0xff] }
  0x24   : > { %v213_v54 = vld [vmem:[%s2930_s21 + $0xa8] sm:$0xff]  ;;  %v214_v56 = vld [vmem:[%s2930_s21 + $0xb0] sm:$0xff]  ;;  %v215_v58 = vld [vmem:[%s2930_s21 + $0xb8] sm:$0xff] }
  0x25   : > { %2464 = vmatmul.mubr.msk.f32.gmra.mrb[4].mxu0 %vm335_vm0, %v197_v22  ;;  %2560 = vmatmul.mubr.msk.f32.gmra.mrb[4].mxu1 %vm335_vm0, %v261_v23  ;;  %v277_v55 = vld [vmem:[%s2930_s21 + $0x2a8] sm:$0xff]  ;;  %v278_v57 = vld [vmem:[%s2930_s21 + $0x2b0] sm:$0xff]  ;;  %v279_v59 = vld [vmem:[%s2930_s21 + $0x2b8] sm:$0xff] }
  0x26   : > { %2466 = vmatprep.mubr.msk.f32.mxu0 %vm335_vm0, %v198_v24  ;;  %2562 = vmatprep.mubr.msk.f32.mxu1 %vm335_vm0, %v262_v25  ;;  %v216_v60 = vld [vmem:[%s2930_s21 + $0xc0] sm:$0xff]  ;;  %v217_v62 = vld [vmem:[%s2930_s21 + $0xc8] sm:$0xff]  ;;  %v218_v0 = vld [vmem:[%s2930_s21 + $0xd0] sm:$0xff] }
  0x27   : > { %v280_v61 = vld [vmem:[%s2930_s21 + $0x2c0] sm:$0xff]  ;;  %v281_v63 = vld [vmem:[%s2930_s21 + $0x2c8] sm:$0xff]  ;;  %v282_v1 = vld [vmem:[%s2930_s21 + $0x2d0] sm:$0xff] }
  0x28   : > { %v219_v2 = vld [vmem:[%s2930_s21 + $0xd8] sm:$0xff]  ;;  %v220_v4 = vld [vmem:[%s2930_s21 + $0xe0] sm:$0xff]  ;;  %v221_v6 = vld [vmem:[%s2930_s21 + $0xe8] sm:$0xff] }
  0x29   : > { %2467 = vmatmul.mubr.msk.f32.gmra.mrb[6].mxu0 %vm335_vm0, %v199_v26  ;;  %2563 = vmatmul.mubr.msk.f32.gmra.mrb[6].mxu1 %vm335_vm0, %v263_v27  ;;  %v283_v3 = vld [vmem:[%s2930_s21 + $0x2d8] sm:$0xff]  ;;  %v284_v5 = vld [vmem:[%s2930_s21 + $0x2e0] sm:$0xff]  ;;  %v285_v7 = vld [vmem:[%s2930_s21 + $0x2e8] sm:$0xff] }
  0x2a   : > { %2469 = vmatprep.mubr.msk.f32.mxu0 %vm335_vm0, %v200_v28  ;;  %2565 = vmatprep.mubr.msk.f32.mxu1 %vm335_vm0, %v264_v29  ;;  %v222_v8 = vld [vmem:[%s2930_s21 + $0xf0] sm:$0xff]  ;;  %v223_v10 = vld [vmem:[%s2930_s21 + $0xf8] sm:$0xff]  ;;  %v224_v12 = vld [vmem:[%s2930_s21 + $0x100] sm:$0xff] }
  0x2b   : > { %v286_v9 = vld [vmem:[%s2930_s21 + $0x2f0] sm:$0xff]  ;;  %v287_v11 = vld [vmem:[%s2930_s21 + $0x2f8] sm:$0xff]  ;;  %v288_v13 = vld [vmem:[%s2930_s21 + $0x300] sm:$0xff] }
  0x2c   : > { %v225_v14 = vld [vmem:[%s2930_s21 + $0x108] sm:$0xff]  ;;  %v226_v16 = vld [vmem:[%s2930_s21 + $0x110] sm:$0xff]  ;;  %v227_v18 = vld [vmem:[%s2930_s21 + $0x118] sm:$0xff] }
  0x2d   : > { %2470 = vmatmul.mubr.msk.f32.gmra.mrb[8].mxu0 %vm335_vm0, %v201_v30  ;;  %2566 = vmatmul.mubr.msk.f32.gmra.mrb[8].mxu1 %vm335_vm0, %v265_v31  ;;  %v289_v15 = vld [vmem:[%s2930_s21 + $0x308] sm:$0xff]  ;;  %v290_v17 = vld [vmem:[%s2930_s21 + $0x310] sm:$0xff]  ;;  %v291_v19 = vld [vmem:[%s2930_s21 + $0x318] sm:$0xff] }
  0x2e   : > { %2472 = vmatprep.mubr.msk.f32.mxu0 %vm335_vm0, %v202_v32  ;;  %2568 = vmatprep.mubr.msk.f32.mxu1 %vm335_vm0, %v266_v33  ;;  %v228_v20 = vld [vmem:[%s2930_s21 + $0x120] sm:$0xff]  ;;  %v229_v22 = vld [vmem:[%s2930_s21 + $0x128] sm:$0xff]  ;;  %v230_v24 = vld [vmem:[%s2930_s21 + $0x130] sm:$0xff] }
  0x2f   : > { %v292_v21 = vld [vmem:[%s2930_s21 + $0x320] sm:$0xff]  ;;  %v293_v23 = vld [vmem:[%s2930_s21 + $0x328] sm:$0xff]  ;;  %v294_v25 = vld [vmem:[%s2930_s21 + $0x330] sm:$0xff] }
  0x30   : > { %v231_v26 = vld [vmem:[%s2930_s21 + $0x138] sm:$0xff]  ;;  %v232_v28 = vld [vmem:[%s2930_s21 + $0x140] sm:$0xff]  ;;  %v233_v30 = vld [vmem:[%s2930_s21 + $0x148] sm:$0xff] }
  0x31   : > { %2473 = vmatmul.mubr.msk.f32.gmra.mrb[10].mxu0 %vm335_vm0, %v203_v34  ;;  %2569 = vmatmul.mubr.msk.f32.gmra.mrb[10].mxu1 %vm335_vm0, %v267_v35  ;;  %v295_v27 = vld [vmem:[%s2930_s21 + $0x338] sm:$0xff]  ;;  %v296_v29 = vld [vmem:[%s2930_s21 + $0x340] sm:$0xff]  ;;  %v297_v31 = vld [vmem:[%s2930_s21 + $0x348] sm:$0xff] }
  0x32   : > { %2475 = vmatprep.mubr.msk.f32.mxu0 %vm335_vm0, %v204_v36  ;;  %2571 = vmatprep.mubr.msk.f32.mxu1 %vm335_vm0, %v268_v37  ;;  %v234_v32 = vld [vmem:[%s2930_s21 + $0x150] sm:$0xff]  ;;  %v235_v34 = vld [vmem:[%s2930_s21 + $0x158] sm:$0xff]  ;;  %v236_v36 = vld [vmem:[%s2930_s21 + $0x160] sm:$0xff] }
  0x33   : > { %v298_v33 = vld [vmem:[%s2930_s21 + $0x350] sm:$0xff]  ;;  %v299_v35 = vld [vmem:[%s2930_s21 + $0x358] sm:$0xff]  ;;  %v300_v37 = vld [vmem:[%s2930_s21 + $0x360] sm:$0xff] }
  0x35   : > { %2476 = vmatmul.mubr.msk.f32.gmra.mrb[12].mxu0 %vm335_vm0, %v205_v38  ;;  %2572 = vmatmul.mubr.msk.f32.gmra.mrb[12].mxu1 %vm335_vm0, %v269_v39  ;;  %v237_v38 = vld [vmem:[%s2930_s21 + $0x168] sm:$0xff] }
  0x36   : > { %2478 = vmatprep.mubr.msk.f32.mxu0 %vm335_vm0, %v206_v40  ;;  %2574 = vmatprep.mubr.msk.f32.mxu1 %vm335_vm0, %v270_v41  ;;  %v301_v39 = vld [vmem:[%s2930_s21 + $0x368] sm:$0xff]  ;;  %v238_v40 = vld [vmem:[%s2930_s21 + $0x170] sm:$0xff] }
  0x37   : > { %v302_v41 = vld [vmem:[%s2930_s21 + $0x370] sm:$0xff] }
  0x39   : > { %2479 = vmatmul.mubr.msk.f32.gmra.mrb[14].mxu0 %vm335_vm0, %v207_v42  ;;  %2575 = vmatmul.mubr.msk.f32.gmra.mrb[14].mxu1 %vm335_vm0, %v271_v43  ;;  %v239_v42 = vld [vmem:[%s2930_s21 + $0x178] sm:$0xff] }
  0x3a   : > { %2481 = vmatprep.mubr.msk.f32.mxu0 %vm335_vm0, %v208_v44  ;;  %2577 = vmatprep.mubr.msk.f32.mxu1 %vm335_vm0, %v272_v45  ;;  %v303_v43 = vld [vmem:[%s2930_s21 + $0x378] sm:$0xff]  ;;  %v240_v44 = vld [vmem:[%s2930_s21 + $0x180] sm:$0xff] }
  0x3b   : > { %v304_v45 = vld [vmem:[%s2930_s21 + $0x380] sm:$0xff] }
  0x3d   : > { %2482 = vmatmul.mubr.msk.f32.gmra.mrb[16].mxu0 %vm335_vm0, %v209_v46  ;;  %2578 = vmatmul.mubr.msk.f32.gmra.mrb[16].mxu1 %vm335_vm0, %v273_v47  ;;  %v241_v46 = vld [vmem:[%s2930_s21 + $0x188] sm:$0xff] }
  0x3e   : > { %2484 = vmatprep.mubr.msk.f32.mxu0 %vm335_vm0, %v210_v48  ;;  %2580 = vmatprep.mubr.msk.f32.mxu1 %vm335_vm0, %v274_v49  ;;  %v305_v47 = vld [vmem:[%s2930_s21 + $0x388] sm:$0xff]  ;;  %v242_v48 = vld [vmem:[%s2930_s21 + $0x190] sm:$0xff] }
  0x3f   : > { %v306_v49 = vld [vmem:[%s2930_s21 + $0x390] sm:$0xff] }
  0x41   : > { %2485 = vmatmul.mubr.msk.f32.gmra.mrb[18].mxu0 %vm335_vm0, %v211_v50  ;;  %2581 = vmatmul.mubr.msk.f32.gmra.mrb[18].mxu1 %vm335_vm0, %v275_v51  ;;  %v243_v50 = vld [vmem:[%s2930_s21 + $0x198] sm:$0xff] }
  0x42   : > { %2487 = vmatprep.mubr.msk.f32.mxu0 %vm335_vm0, %v212_v52  ;;  %2583 = vmatprep.mubr.msk.f32.mxu1 %vm335_vm0, %v276_v53  ;;  %v307_v51 = vld [vmem:[%s2930_s21 + $0x398] sm:$0xff]  ;;  %v244_v52 = vld [vmem:[%s2930_s21 + $0x1a0] sm:$0xff] }
  0x43   : > { %v308_v53 = vld [vmem:[%s2930_s21 + $0x3a0] sm:$0xff] }
  0x45   : > { %2488 = vmatmul.mubr.msk.f32.gmra.mrb[20].mxu0 %vm335_vm0, %v213_v54  ;;  %2584 = vmatmul.mubr.msk.f32.gmra.mrb[20].mxu1 %vm335_vm0, %v277_v55  ;;  %v245_v54 = vld [vmem:[%s2930_s21 + $0x1a8] sm:$0xff] }
  0x46   : > { %2490 = vmatprep.mubr.msk.f32.mxu0 %vm335_vm0, %v214_v56  ;;  %2586 = vmatprep.mubr.msk.f32.mxu1 %vm335_vm0, %v278_v57  ;;  %v309_v55 = vld [vmem:[%s2930_s21 + $0x3a8] sm:$0xff]  ;;  %v246_v56 = vld [vmem:[%s2930_s21 + $0x1b0] sm:$0xff] }
  0x47   : > { %v310_v57 = vld [vmem:[%s2930_s21 + $0x3b0] sm:$0xff] }
  0x49   : > { %2491 = vmatmul.mubr.msk.f32.gmra.mrb[22].mxu0 %vm335_vm0, %v215_v58  ;;  %2587 = vmatmul.mubr.msk.f32.gmra.mrb[22].mxu1 %vm335_vm0, %v279_v59  ;;  %v247_v58 = vld [vmem:[%s2930_s21 + $0x1b8] sm:$0xff] }
  0x4a   : > { %2493 = vmatprep.mubr.msk.f32.mxu0 %vm335_vm0, %v216_v60  ;;  %2589 = vmatprep.mubr.msk.f32.mxu1 %vm335_vm0, %v280_v61  ;;  %v311_v59 = vld [vmem:[%s2930_s21 + $0x3b8] sm:$0xff]  ;;  %v248_v60 = vld [vmem:[%s2930_s21 + $0x1c0] sm:$0xff] }
  0x4b   : > { %v312_v61 = vld [vmem:[%s2930_s21 + $0x3c0] sm:$0xff] }
  0x4d   : > { %2494 = vmatmul.mubr.msk.f32.gmra.mrb[24].mxu0 %vm335_vm0, %v217_v62  ;;  %2590 = vmatmul.mubr.msk.f32.gmra.mrb[24].mxu1 %vm335_vm0, %v281_v63  ;;  %v249_v62 = vld [vmem:[%s2930_s21 + $0x1c8] sm:$0xff] }
  0x4e   : > { %2496 = vmatprep.mubr.msk.f32.mxu0 %vm335_vm0, %v218_v0  ;;  %2592 = vmatprep.mubr.msk.f32.mxu1 %vm335_vm0, %v282_v1  ;;  %v313_v63 = vld [vmem:[%s2930_s21 + $0x3c8] sm:$0xff]  ;;  %v250_v0 = vld [vmem:[%s2930_s21 + $0x1d0] sm:$0xff] }
  0x4f   : > { %v314_v1 = vld [vmem:[%s2930_s21 + $0x3d0] sm:$0xff] }
  0x51   : > { %2497 = vmatmul.mubr.msk.f32.gmra.mrb[26].mxu0 %vm335_vm0, %v219_v2  ;;  %2593 = vmatmul.mubr.msk.f32.gmra.mrb[26].mxu1 %vm335_vm0, %v283_v3  ;;  %v251_v2 = vld [vmem:[%s2930_s21 + $0x1d8] sm:$0xff] }
  0x52   : > { %2499 = vmatprep.mubr.msk.f32.mxu0 %vm335_vm0, %v220_v4  ;;  %2595 = vmatprep.mubr.msk.f32.mxu1 %vm335_vm0, %v284_v5  ;;  %v315_v3 = vld [vmem:[%s2930_s21 + $0x3d8] sm:$0xff]  ;;  %v252_v4 = vld [vmem:[%s2930_s21 + $0x1e0] sm:$0xff] }
  0x53   : > { %v316_v5 = vld [vmem:[%s2930_s21 + $0x3e0] sm:$0xff] }
  0x55   : > { %2500 = vmatmul.mubr.msk.f32.gmra.mrb[28].mxu0 %vm335_vm0, %v221_v6  ;;  %2596 = vmatmul.mubr.msk.f32.gmra.mrb[28].mxu1 %vm335_vm0, %v285_v7  ;;  %v253_v6 = vld [vmem:[%s2930_s21 + $0x1e8] sm:$0xff] }
  0x56   : > { %2502 = vmatprep.mubr.msk.f32.mxu0 %vm335_vm0, %v222_v8  ;;  %2598 = vmatprep.mubr.msk.f32.mxu1 %vm335_vm0, %v286_v9  ;;  %v317_v7 = vld [vmem:[%s2930_s21 + $0x3e8] sm:$0xff]  ;;  %v254_v8 = vld [vmem:[%s2930_s21 + $0x1f0] sm:$0xff] }
  0x57   : > { %v318_v9 = vld [vmem:[%s2930_s21 + $0x3f0] sm:$0xff] }
  0x59   : > { %2503 = vmatmul.mubr.msk.f32.gmra.mrb[30].mxu0 %vm335_vm0, %v223_v10  ;;  %2599 = vmatmul.mubr.msk.f32.gmra.mrb[30].mxu1 %vm335_vm0, %v287_v11  ;;  %v255_v10 = vld [vmem:[%s2930_s21 + $0x1f8] sm:$0xff] }
  0x5a   : > { %2505 = vmatprep.mubr.msk.f32.mxu0 %vm335_vm0, %v224_v12  ;;  %2601 = vmatprep.mubr.msk.f32.mxu1 %vm335_vm0, %v288_v13  ;;  %v319_v11 = vld [vmem:[%s2930_s21 + $0x3f8] sm:$0xff]  ;;  %v3192_v12 = vld [vmem:[%s3788_s2] ss:$0 sm:$0xff] }
  0x5d   : > { %2506 = vmatmul.mubr.msk.f32.gmra.mrb[32].mxu0 %vm335_vm0, %v225_v14  ;;  %2602 = vmatmul.mubr.msk.f32.gmra.mrb[32].mxu1 %vm335_vm0, %v289_v15 }
  0x5e   : > { %2508 = vmatprep.mubr.msk.f32.mxu0 %vm335_vm0, %v226_v16  ;;  %2604 = vmatprep.mubr.msk.f32.mxu1 %vm335_vm0, %v290_v17 }
  0x61   : > { %2509 = vmatmul.mubr.msk.f32.gmra.mrb[34].mxu0 %vm335_vm0, %v227_v18  ;;  %2605 = vmatmul.mubr.msk.f32.gmra.mrb[34].mxu1 %vm335_vm0, %v291_v19 }
  0x62   : > { %2511 = vmatprep.mubr.msk.f32.mxu0 %vm335_vm0, %v228_v20  ;;  %2607 = vmatprep.mubr.msk.f32.mxu1 %vm335_vm0, %v292_v21 }
  0x65   : > { %2512 = vmatmul.mubr.msk.f32.gmra.mrb[36].mxu0 %vm335_vm0, %v229_v22  ;;  %2608 = vmatmul.mubr.msk.f32.gmra.mrb[36].mxu1 %vm335_vm0, %v293_v23 }
  0x66   : > { %2514 = vmatprep.mubr.msk.f32.mxu0 %vm335_vm0, %v230_v24  ;;  %2610 = vmatprep.mubr.msk.f32.mxu1 %vm335_vm0, %v294_v25 }
  0x69   : > { %2515 = vmatmul.mubr.msk.f32.gmra.mrb[38].mxu0 %vm335_vm0, %v231_v26  ;;  %2611 = vmatmul.mubr.msk.f32.gmra.mrb[38].mxu1 %vm335_vm0, %v295_v27 }
  0x6a   : > { %2517 = vmatprep.mubr.msk.f32.mxu0 %vm335_vm0, %v232_v28  ;;  %2613 = vmatprep.mubr.msk.f32.mxu1 %vm335_vm0, %v296_v29 }
  0x6d   : > { %2518 = vmatmul.mubr.msk.f32.gmra.mrb[40].mxu0 %vm335_vm0, %v233_v30  ;;  %2614 = vmatmul.mubr.msk.f32.gmra.mrb[40].mxu1 %vm335_vm0, %v297_v31 }
  0x6e   : > { %2520 = vmatprep.mubr.msk.f32.mxu0 %vm335_vm0, %v234_v32  ;;  %2616 = vmatprep.mubr.msk.f32.mxu1 %vm335_vm0, %v298_v33 }
  0x71   : > { %2521 = vmatmul.mubr.msk.f32.gmra.mrb[42].mxu0 %vm335_vm0, %v235_v34  ;;  %2617 = vmatmul.mubr.msk.f32.gmra.mrb[42].mxu1 %vm335_vm0, %v299_v35 }
  0x72   : > { %2523 = vmatprep.mubr.msk.f32.mxu0 %vm335_vm0, %v236_v36  ;;  %2619 = vmatprep.mubr.msk.f32.mxu1 %vm335_vm0, %v300_v37 }
  0x75   : > { %2524 = vmatmul.mubr.msk.f32.gmra.mrb[44].mxu0 %vm335_vm0, %v237_v38  ;;  %2620 = vmatmul.mubr.msk.f32.gmra.mrb[44].mxu1 %vm335_vm0, %v301_v39 }
  0x76   : > { %2526 = vmatprep.mubr.msk.f32.mxu0 %vm335_vm0, %v238_v40  ;;  %2622 = vmatprep.mubr.msk.f32.mxu1 %vm335_vm0, %v302_v41 }
  0x79   : > { %2527 = vmatmul.mubr.msk.f32.gmra.mrb[46].mxu0 %vm335_vm0, %v239_v42  ;;  %2623 = vmatmul.mubr.msk.f32.gmra.mrb[46].mxu1 %vm335_vm0, %v303_v43 }
  0x7a   : > { %2529 = vmatprep.mubr.msk.f32.mxu0 %vm335_vm0, %v240_v44  ;;  %2625 = vmatprep.mubr.msk.f32.mxu1 %vm335_vm0, %v304_v45 }
  0x7d   : > { %2530 = vmatmul.mubr.msk.f32.gmra.mrb[48].mxu0 %vm335_vm0, %v241_v46  ;;  %2626 = vmatmul.mubr.msk.f32.gmra.mrb[48].mxu1 %vm335_vm0, %v305_v47 }
  0x7e   : > { %2532 = vmatprep.mubr.msk.f32.mxu0 %vm335_vm0, %v242_v48  ;;  %2628 = vmatprep.mubr.msk.f32.mxu1 %vm335_vm0, %v306_v49 }
  0x81   : > { %2533 = vmatmul.mubr.msk.f32.gmra.mrb[50].mxu0 %vm335_vm0, %v243_v50  ;;  %2629 = vmatmul.mubr.msk.f32.gmra.mrb[50].mxu1 %vm335_vm0, %v307_v51 }
  0x82   : > { %2535 = vmatprep.mubr.msk.f32.mxu0 %vm335_vm0, %v244_v52  ;;  %2631 = vmatprep.mubr.msk.f32.mxu1 %vm335_vm0, %v308_v53 }
  0x85   : > { %2536 = vmatmul.mubr.msk.f32.gmra.mrb[52].mxu0 %vm335_vm0, %v245_v54  ;;  %2632 = vmatmul.mubr.msk.f32.gmra.mrb[52].mxu1 %vm335_vm0, %v309_v55 }
  0x86   : > { %2538 = vmatprep.mubr.msk.f32.mxu0 %vm335_vm0, %v246_v56  ;;  %2634 = vmatprep.mubr.msk.f32.mxu1 %vm335_vm0, %v310_v57 }
  0x89   : > { %2539 = vmatmul.mubr.msk.f32.gmra.mrb[54].mxu0 %vm335_vm0, %v247_v58  ;;  %2635 = vmatmul.mubr.msk.f32.gmra.mrb[54].mxu1 %vm335_vm0, %v311_v59 }
  0x8a   : > { %2541 = vmatprep.mubr.msk.f32.mxu0 %vm335_vm0, %v248_v60  ;;  %2637 = vmatprep.mubr.msk.f32.mxu1 %vm335_vm0, %v312_v61 }
  0x8d   : > { %2542 = vmatmul.mubr.msk.f32.gmra.mrb[56].mxu0 %vm335_vm0, %v249_v62  ;;  %2638 = vmatmul.mubr.msk.f32.gmra.mrb[56].mxu1 %vm335_vm0, %v313_v63 }
  0x8e   : > { %2544 = vmatprep.mubr.msk.f32.mxu0 %vm335_vm0, %v250_v0  ;;  %2640 = vmatprep.mubr.msk.f32.mxu1 %vm335_vm0, %v314_v1 }
  0x91   : > { %2545 = vmatmul.mubr.msk.f32.gmra.mrb[58].mxu0 %vm335_vm0, %v251_v2  ;;  %2641 = vmatmul.mubr.msk.f32.gmra.mrb[58].mxu1 %vm335_vm0, %v315_v3 }
  0x92   : > { %2547 = vmatprep.mubr.msk.f32.mxu0 %vm335_vm0, %v252_v4  ;;  %2643 = vmatprep.mubr.msk.f32.mxu1 %vm335_vm0, %v316_v5 }
  0x95   : > { %2548 = vmatmul.mubr.msk.f32.gmra.mrb[60].mxu0 %vm335_vm0, %v253_v6  ;;  %2644 = vmatmul.mubr.msk.f32.gmra.mrb[60].mxu1 %vm335_vm0, %v317_v7 }
  0x96   : > { %2550 = vmatprep.mubr.msk.f32.mxu0 %vm335_vm0, %v254_v8  ;;  %2646 = vmatprep.mubr.msk.f32.mxu1 %vm335_vm0, %v318_v9 }
  0x99   : > { %2551 = vmatmul.mubr.msk.f32.gmra.mrb[62].mxu0 %vm335_vm0, %v255_v10  ;;  %2647 = vmatmul.mubr.msk.f32.gmra.mrb[62].mxu1 %vm335_vm0, %v319_v11 }
  0xf0   : > { %v2459_v13 = vpop.f32.mrb[0].mxu0  ;;  %v2555_v14 = vpop.f32.mrb[0].mxu1 }
  0xf1   : > { %v792_v15 = vadd.f32 %v2459_v13, %v3192_v12  ;;  %v1112_v16 = vadd.f32 %v2555_v14, %v3192_v12  ;;  %v786_v17 = vpop.f32.mrb[1].mxu0  ;;  %v1106_v18 = vpop.f32.mrb[1].mxu1 }
  0xf2   : > { %v787_v19 = vadd.f32 %v3192_v12, %v786_v17  ;;  %v1107_v20 = vadd.f32 %v3192_v12, %v1106_v18 }
  0xf3   : > { %v1426_v21 = vmax.f32 %v792_v15, 0.0  ;;  %v1490_v22 = vmax.f32 %v1112_v16, 0.0 }
  0xf4   : > { %v1425_v23 = vmax.f32 %v787_v19, 0.0  ;;  %v1489_v24 = vmax.f32 %v1107_v20, 0.0  ;;  %v2462_v25 = vpop.f32.mrb[2].mxu0  ;;  %v2558_v26 = vpop.f32.mrb[2].mxu1 }
  0xf5   : > { %1555 = vst.msk [vmem:[%s3198_s12 + $0x8] sm:$0xff] %vm1553_vm1, %v1426_v21  ;;  %1619 = vst.msk [vmem:[%s3198_s12 + $0x208] sm:$0xff] %vm1553_vm1, %v1490_v22  ;;  %v802_v27 = vadd.f32 %v2462_v25, %v3192_v12  ;;  %v1122_v28 = vadd.f32 %v2558_v26, %v3192_v12  ;;  %v796_v29 = vpop.f32.mrb[3].mxu0  ;;  %v1116_v30 = vpop.f32.mrb[3].mxu1 }
  0xf6   : > { %1554 = vst.msk [vmem:[%s3198_s12] sm:$0xff] %vm1553_vm1, %v1425_v23  ;;  %1618 = vst.msk [vmem:[%s3198_s12 + $0x200] sm:$0xff] %vm1553_vm1, %v1489_v24  ;;  %v797_v31 = vadd.f32 %v3192_v12, %v796_v29  ;;  %v1117_v32 = vadd.f32 %v3192_v12, %v1116_v30 }
  0xf7   : > { %v1428_v33 = vmax.f32 %v802_v27, 0.0  ;;  %v1492_v34 = vmax.f32 %v1122_v28, 0.0 }
  0xf8   : > { %v1427_v35 = vmax.f32 %v797_v31, 0.0  ;;  %v1491_v36 = vmax.f32 %v1117_v32, 0.0  ;;  %v2465_v37 = vpop.f32.mrb[4].mxu0  ;;  %v2561_v38 = vpop.f32.mrb[4].mxu1 }
  0xf9   : > { %1557 = vst.msk [vmem:[%s3198_s12 + $0x18] sm:$0xff] %vm1553_vm1, %v1428_v33  ;;  %1621 = vst.msk [vmem:[%s3198_s12 + $0x218] sm:$0xff] %vm1553_vm1, %v1492_v34  ;;  %v812_v39 = vadd.f32 %v2465_v37, %v3192_v12  ;;  %v1132_v40 = vadd.f32 %v2561_v38, %v3192_v12  ;;  %v806_v41 = vpop.f32.mrb[5].mxu0  ;;  %v1126_v42 = vpop.f32.mrb[5].mxu1 }
  0xfa   : > { %1556 = vst.msk [vmem:[%s3198_s12 + $0x10] sm:$0xff] %vm1553_vm1, %v1427_v35  ;;  %1620 = vst.msk [vmem:[%s3198_s12 + $0x210] sm:$0xff] %vm1553_vm1, %v1491_v36  ;;  %v807_v43 = vadd.f32 %v3192_v12, %v806_v41  ;;  %v1127_v44 = vadd.f32 %v3192_v12, %v1126_v42 }
  0xfb   : > { %v1430_v45 = vmax.f32 %v812_v39, 0.0  ;;  %v1494_v46 = vmax.f32 %v1132_v40, 0.0 }
  0xfc   : > { %v1429_v47 = vmax.f32 %v807_v43, 0.0  ;;  %v1493_v48 = vmax.f32 %v1127_v44, 0.0  ;;  %v2468_v49 = vpop.f32.mrb[6].mxu0  ;;  %v2564_v50 = vpop.f32.mrb[6].mxu1 }
  0xfd   : > { %1559 = vst.msk [vmem:[%s3198_s12 + $0x28] sm:$0xff] %vm1553_vm1, %v1430_v45  ;;  %1623 = vst.msk [vmem:[%s3198_s12 + $0x228] sm:$0xff] %vm1553_vm1, %v1494_v46  ;;  %v822_v51 = vadd.f32 %v2468_v49, %v3192_v12  ;;  %v1142_v52 = vadd.f32 %v2564_v50, %v3192_v12  ;;  %v816_v53 = vpop.f32.mrb[7].mxu0  ;;  %v1136_v54 = vpop.f32.mrb[7].mxu1 }
  0xfe   : > { %1558 = vst.msk [vmem:[%s3198_s12 + $0x20] sm:$0xff] %vm1553_vm1, %v1429_v47  ;;  %1622 = vst.msk [vmem:[%s3198_s12 + $0x220] sm:$0xff] %vm1553_vm1, %v1493_v48  ;;  %v817_v55 = vadd.f32 %v3192_v12, %v816_v53  ;;  %v1137_v56 = vadd.f32 %v3192_v12, %v1136_v54 }
  0xff   : > { %v1432_v57 = vmax.f32 %v822_v51, 0.0  ;;  %v1496_v58 = vmax.f32 %v1142_v52, 0.0 }
 0x100   : > { %v1431_v59 = vmax.f32 %v817_v55, 0.0  ;;  %v1495_v60 = vmax.f32 %v1137_v56, 0.0  ;;  %v2471_v61 = vpop.f32.mrb[8].mxu0  ;;  %v2567_v62 = vpop.f32.mrb[8].mxu1 }
 0x101   : > { %1561 = vst.msk [vmem:[%s3198_s12 + $0x38] sm:$0xff] %vm1553_vm1, %v1432_v57  ;;  %1625 = vst.msk [vmem:[%s3198_s12 + $0x238] sm:$0xff] %vm1553_vm1, %v1496_v58  ;;  %v832_v63 = vadd.f32 %v2471_v61, %v3192_v12  ;;  %v1152_v0 = vadd.f32 %v2567_v62, %v3192_v12  ;;  %v826_v1 = vpop.f32.mrb[9].mxu0  ;;  %v1146_v2 = vpop.f32.mrb[9].mxu1 }
 0x102   : > { %1560 = vst.msk [vmem:[%s3198_s12 + $0x30] sm:$0xff] %vm1553_vm1, %v1431_v59  ;;  %1624 = vst.msk [vmem:[%s3198_s12 + $0x230] sm:$0xff] %vm1553_vm1, %v1495_v60  ;;  %v827_v3 = vadd.f32 %v3192_v12, %v826_v1  ;;  %v1147_v4 = vadd.f32 %v3192_v12, %v1146_v2 }
 0x103   : > { %v1434_v5 = vmax.f32 %v832_v63, 0.0  ;;  %v1498_v6 = vmax.f32 %v1152_v0, 0.0 }
 0x104   : > { %v1433_v7 = vmax.f32 %v827_v3, 0.0  ;;  %v1497_v8 = vmax.f32 %v1147_v4, 0.0  ;;  %v2474_v9 = vpop.f32.mrb[10].mxu0  ;;  %v2570_v10 = vpop.f32.mrb[10].mxu1 }
 0x105   : > { %1563 = vst.msk [vmem:[%s3198_s12 + $0x48] sm:$0xff] %vm1553_vm1, %v1434_v5  ;;  %1627 = vst.msk [vmem:[%s3198_s12 + $0x248] sm:$0xff] %vm1553_vm1, %v1498_v6  ;;  %v842_v11 = vadd.f32 %v2474_v9, %v3192_v12  ;;  %v1162_v13 = vadd.f32 %v2570_v10, %v3192_v12  ;;  %v836_v14 = vpop.f32.mrb[11].mxu0  ;;  %v1156_v15 = vpop.f32.mrb[11].mxu1 }
 0x106   : > { %1562 = vst.msk [vmem:[%s3198_s12 + $0x40] sm:$0xff] %vm1553_vm1, %v1433_v7  ;;  %1626 = vst.msk [vmem:[%s3198_s12 + $0x240] sm:$0xff] %vm1553_vm1, %v1497_v8  ;;  %v837_v16 = vadd.f32 %v3192_v12, %v836_v14  ;;  %v1157_v17 = vadd.f32 %v3192_v12, %v1156_v15 }
 0x107   : > { %v1436_v18 = vmax.f32 %v842_v11, 0.0  ;;  %v1500_v19 = vmax.f32 %v1162_v13, 0.0 }
 0x108   : > { %v1435_v20 = vmax.f32 %v837_v16, 0.0  ;;  %v1499_v21 = vmax.f32 %v1157_v17, 0.0  ;;  %v2477_v22 = vpop.f32.mrb[12].mxu0  ;;  %v2573_v23 = vpop.f32.mrb[12].mxu1 }
 0x109   : > { %1565 = vst.msk [vmem:[%s3198_s12 + $0x58] sm:$0xff] %vm1553_vm1, %v1436_v18  ;;  %1629 = vst.msk [vmem:[%s3198_s12 + $0x258] sm:$0xff] %vm1553_vm1, %v1500_v19  ;;  %v852_v24 = vadd.f32 %v2477_v22, %v3192_v12  ;;  %v1172_v25 = vadd.f32 %v2573_v23, %v3192_v12  ;;  %v846_v26 = vpop.f32.mrb[13].mxu0  ;;  %v1166_v27 = vpop.f32.mrb[13].mxu1 }
 0x10a   : > { %1564 = vst.msk [vmem:[%s3198_s12 + $0x50] sm:$0xff] %vm1553_vm1, %v1435_v20  ;;  %1628 = vst.msk [vmem:[%s3198_s12 + $0x250] sm:$0xff] %vm1553_vm1, %v1499_v21  ;;  %v847_v28 = vadd.f32 %v3192_v12, %v846_v26  ;;  %v1167_v29 = vadd.f32 %v3192_v12, %v1166_v27 }
 0x10b   : > { %v1438_v30 = vmax.f32 %v852_v24, 0.0  ;;  %v1502_v31 = vmax.f32 %v1172_v25, 0.0 }
 0x10c   : > { %v1437_v32 = vmax.f32 %v847_v28, 0.0  ;;  %v1501_v33 = vmax.f32 %v1167_v29, 0.0  ;;  %v2480_v34 = vpop.f32.mrb[14].mxu0  ;;  %v2576_v35 = vpop.f32.mrb[14].mxu1 }
 0x10d   : > { %1567 = vst.msk [vmem:[%s3198_s12 + $0x68] sm:$0xff] %vm1553_vm1, %v1438_v30  ;;  %1631 = vst.msk [vmem:[%s3198_s12 + $0x268] sm:$0xff] %vm1553_vm1, %v1502_v31  ;;  %v862_v36 = vadd.f32 %v2480_v34, %v3192_v12  ;;  %v1182_v37 = vadd.f32 %v2576_v35, %v3192_v12  ;;  %v856_v38 = vpop.f32.mrb[15].mxu0  ;;  %v1176_v39 = vpop.f32.mrb[15].mxu1 }
 0x10e   : > { %1566 = vst.msk [vmem:[%s3198_s12 + $0x60] sm:$0xff] %vm1553_vm1, %v1437_v32  ;;  %1630 = vst.msk [vmem:[%s3198_s12 + $0x260] sm:$0xff] %vm1553_vm1, %v1501_v33  ;;  %v857_v40 = vadd.f32 %v3192_v12, %v856_v38  ;;  %v1177_v41 = vadd.f32 %v3192_v12, %v1176_v39 }
 0x10f   : > { %v1440_v42 = vmax.f32 %v862_v36, 0.0  ;;  %v1504_v43 = vmax.f32 %v1182_v37, 0.0 }
 0x110   : > { %v1439_v44 = vmax.f32 %v857_v40, 0.0  ;;  %v1503_v45 = vmax.f32 %v1177_v41, 0.0  ;;  %v2483_v46 = vpop.f32.mrb[16].mxu0  ;;  %v2579_v47 = vpop.f32.mrb[16].mxu1 }
 0x111   : > { %1569 = vst.msk [vmem:[%s3198_s12 + $0x78] sm:$0xff] %vm1553_vm1, %v1440_v42  ;;  %1633 = vst.msk [vmem:[%s3198_s12 + $0x278] sm:$0xff] %vm1553_vm1, %v1504_v43  ;;  %v872_v48 = vadd.f32 %v2483_v46, %v3192_v12  ;;  %v1192_v49 = vadd.f32 %v2579_v47, %v3192_v12  ;;  %v866_v50 = vpop.f32.mrb[17].mxu0  ;;  %v1186_v51 = vpop.f32.mrb[17].mxu1 }
 0x112   : > { %1568 = vst.msk [vmem:[%s3198_s12 + $0x70] sm:$0xff] %vm1553_vm1, %v1439_v44  ;;  %1632 = vst.msk [vmem:[%s3198_s12 + $0x270] sm:$0xff] %vm1553_vm1, %v1503_v45  ;;  %v867_v52 = vadd.f32 %v3192_v12, %v866_v50  ;;  %v1187_v53 = vadd.f32 %v3192_v12, %v1186_v51 }
 0x113   : > { %v1442_v54 = vmax.f32 %v872_v48, 0.0  ;;  %v1506_v55 = vmax.f32 %v1192_v49, 0.0 }
 0x114   : > { %v1441_v56 = vmax.f32 %v867_v52, 0.0  ;;  %v1505_v57 = vmax.f32 %v1187_v53, 0.0  ;;  %v2486_v58 = vpop.f32.mrb[18].mxu0  ;;  %v2582_v59 = vpop.f32.mrb[18].mxu1 }
 0x115   : > { %1571 = vst.msk [vmem:[%s3198_s12 + $0x88] sm:$0xff] %vm1553_vm1, %v1442_v54  ;;  %1635 = vst.msk [vmem:[%s3198_s12 + $0x288] sm:$0xff] %vm1553_vm1, %v1506_v55  ;;  %v882_v60 = vadd.f32 %v2486_v58, %v3192_v12  ;;  %v1202_v61 = vadd.f32 %v2582_v59, %v3192_v12  ;;  %v876_v62 = vpop.f32.mrb[19].mxu0  ;;  %v1196_v63 = vpop.f32.mrb[19].mxu1 }
 0x116   : > { %1570 = vst.msk [vmem:[%s3198_s12 + $0x80] sm:$0xff] %vm1553_vm1, %v1441_v56  ;;  %1634 = vst.msk [vmem:[%s3198_s12 + $0x280] sm:$0xff] %vm1553_vm1, %v1505_v57  ;;  %v877_v0 = vadd.f32 %v3192_v12, %v876_v62  ;;  %v1197_v1 = vadd.f32 %v3192_v12, %v1196_v63 }
 0x117   : > { %v1444_v2 = vmax.f32 %v882_v60, 0.0  ;;  %v1508_v3 = vmax.f32 %v1202_v61, 0.0 }
 0x118   : > { %v1443_v4 = vmax.f32 %v877_v0, 0.0  ;;  %v1507_v5 = vmax.f32 %v1197_v1, 0.0  ;;  %v2489_v6 = vpop.f32.mrb[20].mxu0  ;;  %v2585_v7 = vpop.f32.mrb[20].mxu1 }
 0x119   : > { %1573 = vst.msk [vmem:[%s3198_s12 + $0x98] sm:$0xff] %vm1553_vm1, %v1444_v2  ;;  %1637 = vst.msk [vmem:[%s3198_s12 + $0x298] sm:$0xff] %vm1553_vm1, %v1508_v3  ;;  %v892_v8 = vadd.f32 %v2489_v6, %v3192_v12  ;;  %v1212_v9 = vadd.f32 %v2585_v7, %v3192_v12  ;;  %v886_v10 = vpop.f32.mrb[21].mxu0  ;;  %v1206_v11 = vpop.f32.mrb[21].mxu1 }
 0x11a   : > { %1572 = vst.msk [vmem:[%s3198_s12 + $0x90] sm:$0xff] %vm1553_vm1, %v1443_v4  ;;  %1636 = vst.msk [vmem:[%s3198_s12 + $0x290] sm:$0xff] %vm1553_vm1, %v1507_v5  ;;  %v887_v13 = vadd.f32 %v3192_v12, %v886_v10  ;;  %v1207_v14 = vadd.f32 %v3192_v12, %v1206_v11 }
 0x11b   : > { %v1446_v15 = vmax.f32 %v892_v8, 0.0  ;;  %v1510_v16 = vmax.f32 %v1212_v9, 0.0 }
 0x11c   : > { %v1445_v17 = vmax.f32 %v887_v13, 0.0  ;;  %v1509_v18 = vmax.f32 %v1207_v14, 0.0  ;;  %v2492_v19 = vpop.f32.mrb[22].mxu0  ;;  %v2588_v20 = vpop.f32.mrb[22].mxu1 }
 0x11d   : > { %1575 = vst.msk [vmem:[%s3198_s12 + $0xa8] sm:$0xff] %vm1553_vm1, %v1446_v15  ;;  %1639 = vst.msk [vmem:[%s3198_s12 + $0x2a8] sm:$0xff] %vm1553_vm1, %v1510_v16  ;;  %v902_v21 = vadd.f32 %v2492_v19, %v3192_v12  ;;  %v1222_v22 = vadd.f32 %v2588_v20, %v3192_v12  ;;  %v896_v23 = vpop.f32.mrb[23].mxu0  ;;  %v1216_v24 = vpop.f32.mrb[23].mxu1 }
 0x11e   : > { %1574 = vst.msk [vmem:[%s3198_s12 + $0xa0] sm:$0xff] %vm1553_vm1, %v1445_v17  ;;  %1638 = vst.msk [vmem:[%s3198_s12 + $0x2a0] sm:$0xff] %vm1553_vm1, %v1509_v18  ;;  %v897_v25 = vadd.f32 %v3192_v12, %v896_v23  ;;  %v1217_v26 = vadd.f32 %v3192_v12, %v1216_v24 }
 0x11f   : > { %v1448_v27 = vmax.f32 %v902_v21, 0.0  ;;  %v1512_v28 = vmax.f32 %v1222_v22, 0.0 }
 0x120   : > { %v1447_v29 = vmax.f32 %v897_v25, 0.0  ;;  %v1511_v30 = vmax.f32 %v1217_v26, 0.0  ;;  %v2495_v31 = vpop.f32.mrb[24].mxu0  ;;  %v2591_v32 = vpop.f32.mrb[24].mxu1 }
 0x121   : > { %1577 = vst.msk [vmem:[%s3198_s12 + $0xb8] sm:$0xff] %vm1553_vm1, %v1448_v27  ;;  %1641 = vst.msk [vmem:[%s3198_s12 + $0x2b8] sm:$0xff] %vm1553_vm1, %v1512_v28  ;;  %v912_v33 = vadd.f32 %v2495_v31, %v3192_v12  ;;  %v1232_v34 = vadd.f32 %v2591_v32, %v3192_v12  ;;  %v906_v35 = vpop.f32.mrb[25].mxu0  ;;  %v1226_v36 = vpop.f32.mrb[25].mxu1 }
 0x122   : > { %1576 = vst.msk [vmem:[%s3198_s12 + $0xb0] sm:$0xff] %vm1553_vm1, %v1447_v29  ;;  %1640 = vst.msk [vmem:[%s3198_s12 + $0x2b0] sm:$0xff] %vm1553_vm1, %v1511_v30  ;;  %v907_v37 = vadd.f32 %v3192_v12, %v906_v35  ;;  %v1227_v38 = vadd.f32 %v3192_v12, %v1226_v36 }
 0x123   : > { %v1450_v39 = vmax.f32 %v912_v33, 0.0  ;;  %v1514_v40 = vmax.f32 %v1232_v34, 0.0 }
 0x124   : > { %v1449_v41 = vmax.f32 %v907_v37, 0.0  ;;  %v1513_v42 = vmax.f32 %v1227_v38, 0.0  ;;  %v2498_v43 = vpop.f32.mrb[26].mxu0  ;;  %v2594_v44 = vpop.f32.mrb[26].mxu1 }
 0x125   : > { %1579 = vst.msk [vmem:[%s3198_s12 + $0xc8] sm:$0xff] %vm1553_vm1, %v1450_v39  ;;  %1643 = vst.msk [vmem:[%s3198_s12 + $0x2c8] sm:$0xff] %vm1553_vm1, %v1514_v40  ;;  %v922_v45 = vadd.f32 %v2498_v43, %v3192_v12  ;;  %v1242_v46 = vadd.f32 %v2594_v44, %v3192_v12  ;;  %v916_v47 = vpop.f32.mrb[27].mxu0  ;;  %v1236_v48 = vpop.f32.mrb[27].mxu1 }
 0x126   : > { %1578 = vst.msk [vmem:[%s3198_s12 + $0xc0] sm:$0xff] %vm1553_vm1, %v1449_v41  ;;  %1642 = vst.msk [vmem:[%s3198_s12 + $0x2c0] sm:$0xff] %vm1553_vm1, %v1513_v42  ;;  %v917_v49 = vadd.f32 %v3192_v12, %v916_v47  ;;  %v1237_v50 = vadd.f32 %v3192_v12, %v1236_v48 }
 0x127   : > { %v1452_v51 = vmax.f32 %v922_v45, 0.0  ;;  %v1516_v52 = vmax.f32 %v1242_v46, 0.0 }
 0x128   : > { %v1451_v53 = vmax.f32 %v917_v49, 0.0  ;;  %v1515_v54 = vmax.f32 %v1237_v50, 0.0  ;;  %v2501_v55 = vpop.f32.mrb[28].mxu0  ;;  %v2597_v56 = vpop.f32.mrb[28].mxu1 }
 0x129   : > { %1581 = vst.msk [vmem:[%s3198_s12 + $0xd8] sm:$0xff] %vm1553_vm1, %v1452_v51  ;;  %1645 = vst.msk [vmem:[%s3198_s12 + $0x2d8] sm:$0xff] %vm1553_vm1, %v1516_v52  ;;  %v932_v57 = vadd.f32 %v2501_v55, %v3192_v12  ;;  %v1252_v58 = vadd.f32 %v2597_v56, %v3192_v12  ;;  %v926_v59 = vpop.f32.mrb[29].mxu0  ;;  %v1246_v60 = vpop.f32.mrb[29].mxu1 }
 0x12a   : > { %1580 = vst.msk [vmem:[%s3198_s12 + $0xd0] sm:$0xff] %vm1553_vm1, %v1451_v53  ;;  %1644 = vst.msk [vmem:[%s3198_s12 + $0x2d0] sm:$0xff] %vm1553_vm1, %v1515_v54  ;;  %v927_v61 = vadd.f32 %v3192_v12, %v926_v59  ;;  %v1247_v62 = vadd.f32 %v3192_v12, %v1246_v60 }
 0x12b   : > { %v1454_v63 = vmax.f32 %v932_v57, 0.0  ;;  %v1518_v0 = vmax.f32 %v1252_v58, 0.0 }
 0x12c   : > { %v1453_v1 = vmax.f32 %v927_v61, 0.0  ;;  %v1517_v2 = vmax.f32 %v1247_v62, 0.0  ;;  %v2504_v3 = vpop.f32.mrb[30].mxu0  ;;  %v2600_v4 = vpop.f32.mrb[30].mxu1 }
 0x12d   : > { %1583 = vst.msk [vmem:[%s3198_s12 + $0xe8] sm:$0xff] %vm1553_vm1, %v1454_v63  ;;  %1647 = vst.msk [vmem:[%s3198_s12 + $0x2e8] sm:$0xff] %vm1553_vm1, %v1518_v0  ;;  %v942_v5 = vadd.f32 %v2504_v3, %v3192_v12  ;;  %v1262_v6 = vadd.f32 %v2600_v4, %v3192_v12  ;;  %v936_v7 = vpop.f32.mrb[31].mxu0  ;;  %v1256_v8 = vpop.f32.mrb[31].mxu1 }
 0x12e   : > { %1582 = vst.msk [vmem:[%s3198_s12 + $0xe0] sm:$0xff] %vm1553_vm1, %v1453_v1  ;;  %1646 = vst.msk [vmem:[%s3198_s12 + $0x2e0] sm:$0xff] %vm1553_vm1, %v1517_v2  ;;  %v937_v9 = vadd.f32 %v3192_v12, %v936_v7  ;;  %v1257_v10 = vadd.f32 %v3192_v12, %v1256_v8 }
 0x12f   : > { %v1456_v11 = vmax.f32 %v942_v5, 0.0  ;;  %v1520_v13 = vmax.f32 %v1262_v6, 0.0 }
 0x130   : > { %v1455_v14 = vmax.f32 %v937_v9, 0.0  ;;  %v1519_v15 = vmax.f32 %v1257_v10, 0.0  ;;  %v2507_v16 = vpop.f32.mrb[32].mxu0  ;;  %v2603_v17 = vpop.f32.mrb[32].mxu1 }
 0x131   : > { %1585 = vst.msk [vmem:[%s3198_s12 + $0xf8] sm:$0xff] %vm1553_vm1, %v1456_v11  ;;  %1649 = vst.msk [vmem:[%s3198_s12 + $0x2f8] sm:$0xff] %vm1553_vm1, %v1520_v13  ;;  %v952_v18 = vadd.f32 %v2507_v16, %v3192_v12  ;;  %v1272_v19 = vadd.f32 %v2603_v17, %v3192_v12  ;;  %v946_v20 = vpop.f32.mrb[33].mxu0  ;;  %v1266_v21 = vpop.f32.mrb[33].mxu1 }
 0x132   : > { %1584 = vst.msk [vmem:[%s3198_s12 + $0xf0] sm:$0xff] %vm1553_vm1, %v1455_v14  ;;  %1648 = vst.msk [vmem:[%s3198_s12 + $0x2f0] sm:$0xff] %vm1553_vm1, %v1519_v15  ;;  %v947_v22 = vadd.f32 %v3192_v12, %v946_v20  ;;  %v1267_v23 = vadd.f32 %v3192_v12, %v1266_v21 }
 0x133   : > { %v1458_v24 = vmax.f32 %v952_v18, 0.0  ;;  %v1522_v25 = vmax.f32 %v1272_v19, 0.0 }
 0x134   : > { %v1457_v26 = vmax.f32 %v947_v22, 0.0  ;;  %v1521_v27 = vmax.f32 %v1267_v23, 0.0  ;;  %v2510_v28 = vpop.f32.mrb[34].mxu0  ;;  %v2606_v29 = vpop.f32.mrb[34].mxu1 }
 0x135   : > { %1587 = vst.msk [vmem:[%s3198_s12 + $0x108] sm:$0xff] %vm1553_vm1, %v1458_v24  ;;  %1651 = vst.msk [vmem:[%s3198_s12 + $0x308] sm:$0xff] %vm1553_vm1, %v1522_v25  ;;  %v962_v30 = vadd.f32 %v2510_v28, %v3192_v12  ;;  %v1282_v31 = vadd.f32 %v2606_v29, %v3192_v12  ;;  %v956_v32 = vpop.f32.mrb[35].mxu0  ;;  %v1276_v33 = vpop.f32.mrb[35].mxu1 }
 0x136   : > { %1586 = vst.msk [vmem:[%s3198_s12 + $0x100] sm:$0xff] %vm1553_vm1, %v1457_v26  ;;  %1650 = vst.msk [vmem:[%s3198_s12 + $0x300] sm:$0xff] %vm1553_vm1, %v1521_v27  ;;  %v957_v34 = vadd.f32 %v3192_v12, %v956_v32  ;;  %v1277_v35 = vadd.f32 %v3192_v12, %v1276_v33 }
 0x137   : > { %v1460_v36 = vmax.f32 %v962_v30, 0.0  ;;  %v1524_v37 = vmax.f32 %v1282_v31, 0.0 }
 0x138   : > { %v1459_v38 = vmax.f32 %v957_v34, 0.0  ;;  %v1523_v39 = vmax.f32 %v1277_v35, 0.0  ;;  %v2513_v40 = vpop.f32.mrb[36].mxu0  ;;  %v2609_v41 = vpop.f32.mrb[36].mxu1 }
 0x139   : > { %1589 = vst.msk [vmem:[%s3198_s12 + $0x118] sm:$0xff] %vm1553_vm1, %v1460_v36  ;;  %1653 = vst.msk [vmem:[%s3198_s12 + $0x318] sm:$0xff] %vm1553_vm1, %v1524_v37  ;;  %v972_v42 = vadd.f32 %v2513_v40, %v3192_v12  ;;  %v1292_v43 = vadd.f32 %v2609_v41, %v3192_v12  ;;  %v966_v44 = vpop.f32.mrb[37].mxu0  ;;  %v1286_v45 = vpop.f32.mrb[37].mxu1 }
 0x13a   : > { %1588 = vst.msk [vmem:[%s3198_s12 + $0x110] sm:$0xff] %vm1553_vm1, %v1459_v38  ;;  %1652 = vst.msk [vmem:[%s3198_s12 + $0x310] sm:$0xff] %vm1553_vm1, %v1523_v39  ;;  %v967_v46 = vadd.f32 %v3192_v12, %v966_v44  ;;  %v1287_v47 = vadd.f32 %v3192_v12, %v1286_v45 }
 0x13b   : > { %v1462_v48 = vmax.f32 %v972_v42, 0.0  ;;  %v1526_v49 = vmax.f32 %v1292_v43, 0.0 }
 0x13c   : > { %v1461_v50 = vmax.f32 %v967_v46, 0.0  ;;  %v1525_v51 = vmax.f32 %v1287_v47, 0.0  ;;  %v2516_v52 = vpop.f32.mrb[38].mxu0  ;;  %v2612_v53 = vpop.f32.mrb[38].mxu1 }
 0x13d   : > { %1591 = vst.msk [vmem:[%s3198_s12 + $0x128] sm:$0xff] %vm1553_vm1, %v1462_v48  ;;  %1655 = vst.msk [vmem:[%s3198_s12 + $0x328] sm:$0xff] %vm1553_vm1, %v1526_v49  ;;  %v982_v54 = vadd.f32 %v2516_v52, %v3192_v12  ;;  %v1302_v55 = vadd.f32 %v2612_v53, %v3192_v12  ;;  %v976_v56 = vpop.f32.mrb[39].mxu0  ;;  %v1296_v57 = vpop.f32.mrb[39].mxu1 }
 0x13e   : > { %1590 = vst.msk [vmem:[%s3198_s12 + $0x120] sm:$0xff] %vm1553_vm1, %v1461_v50  ;;  %1654 = vst.msk [vmem:[%s3198_s12 + $0x320] sm:$0xff] %vm1553_vm1, %v1525_v51  ;;  %v977_v58 = vadd.f32 %v3192_v12, %v976_v56  ;;  %v1297_v59 = vadd.f32 %v3192_v12, %v1296_v57 }
 0x13f   : > { %v1464_v60 = vmax.f32 %v982_v54, 0.0  ;;  %v1528_v61 = vmax.f32 %v1302_v55, 0.0 }
 0x140   : > { %v1463_v62 = vmax.f32 %v977_v58, 0.0  ;;  %v1527_v63 = vmax.f32 %v1297_v59, 0.0  ;;  %v2519_v0 = vpop.f32.mrb[40].mxu0  ;;  %v2615_v1 = vpop.f32.mrb[40].mxu1 }
 0x141   : > { %1593 = vst.msk [vmem:[%s3198_s12 + $0x138] sm:$0xff] %vm1553_vm1, %v1464_v60  ;;  %1657 = vst.msk [vmem:[%s3198_s12 + $0x338] sm:$0xff] %vm1553_vm1, %v1528_v61  ;;  %v992_v2 = vadd.f32 %v2519_v0, %v3192_v12  ;;  %v1312_v3 = vadd.f32 %v2615_v1, %v3192_v12  ;;  %v986_v4 = vpop.f32.mrb[41].mxu0  ;;  %v1306_v5 = vpop.f32.mrb[41].mxu1 }
 0x142   : > { %1592 = vst.msk [vmem:[%s3198_s12 + $0x130] sm:$0xff] %vm1553_vm1, %v1463_v62  ;;  %1656 = vst.msk [vmem:[%s3198_s12 + $0x330] sm:$0xff] %vm1553_vm1, %v1527_v63  ;;  %v987_v6 = vadd.f32 %v3192_v12, %v986_v4  ;;  %v1307_v7 = vadd.f32 %v3192_v12, %v1306_v5 }
 0x143   : > { %v1466_v8 = vmax.f32 %v992_v2, 0.0  ;;  %v1530_v9 = vmax.f32 %v1312_v3, 0.0 }
 0x144   : > { %v1465_v10 = vmax.f32 %v987_v6, 0.0  ;;  %v1529_v11 = vmax.f32 %v1307_v7, 0.0  ;;  %v2522_v13 = vpop.f32.mrb[42].mxu0  ;;  %v2618_v14 = vpop.f32.mrb[42].mxu1 }
 0x145   : > { %1595 = vst.msk [vmem:[%s3198_s12 + $0x148] sm:$0xff] %vm1553_vm1, %v1466_v8  ;;  %1659 = vst.msk [vmem:[%s3198_s12 + $0x348] sm:$0xff] %vm1553_vm1, %v1530_v9  ;;  %v1002_v15 = vadd.f32 %v2522_v13, %v3192_v12  ;;  %v1322_v16 = vadd.f32 %v2618_v14, %v3192_v12  ;;  %v996_v17 = vpop.f32.mrb[43].mxu0  ;;  %v1316_v18 = vpop.f32.mrb[43].mxu1 }
 0x146   : > { %1594 = vst.msk [vmem:[%s3198_s12 + $0x140] sm:$0xff] %vm1553_vm1, %v1465_v10  ;;  %1658 = vst.msk [vmem:[%s3198_s12 + $0x340] sm:$0xff] %vm1553_vm1, %v1529_v11  ;;  %v997_v19 = vadd.f32 %v3192_v12, %v996_v17  ;;  %v1317_v20 = vadd.f32 %v3192_v12, %v1316_v18 }
 0x147   : > { %v1468_v21 = vmax.f32 %v1002_v15, 0.0  ;;  %v1532_v22 = vmax.f32 %v1322_v16, 0.0 }
 0x148   : > { %v1467_v23 = vmax.f32 %v997_v19, 0.0  ;;  %v1531_v24 = vmax.f32 %v1317_v20, 0.0  ;;  %v2525_v25 = vpop.f32.mrb[44].mxu0  ;;  %v2621_v26 = vpop.f32.mrb[44].mxu1 }
 0x149   : > { %1597 = vst.msk [vmem:[%s3198_s12 + $0x158] sm:$0xff] %vm1553_vm1, %v1468_v21  ;;  %1661 = vst.msk [vmem:[%s3198_s12 + $0x358] sm:$0xff] %vm1553_vm1, %v1532_v22  ;;  %v1012_v27 = vadd.f32 %v2525_v25, %v3192_v12  ;;  %v1332_v28 = vadd.f32 %v2621_v26, %v3192_v12  ;;  %v1006_v29 = vpop.f32.mrb[45].mxu0  ;;  %v1326_v30 = vpop.f32.mrb[45].mxu1 }
 0x14a   : > { %1596 = vst.msk [vmem:[%s3198_s12 + $0x150] sm:$0xff] %vm1553_vm1, %v1467_v23  ;;  %1660 = vst.msk [vmem:[%s3198_s12 + $0x350] sm:$0xff] %vm1553_vm1, %v1531_v24  ;;  %v1007_v31 = vadd.f32 %v3192_v12, %v1006_v29  ;;  %v1327_v32 = vadd.f32 %v3192_v12, %v1326_v30 }
 0x14b   : > { %v1470_v33 = vmax.f32 %v1012_v27, 0.0  ;;  %v1534_v34 = vmax.f32 %v1332_v28, 0.0 }
 0x14c   : > { %v1469_v35 = vmax.f32 %v1007_v31, 0.0  ;;  %v1533_v36 = vmax.f32 %v1327_v32, 0.0  ;;  %v2528_v37 = vpop.f32.mrb[46].mxu0  ;;  %v2624_v38 = vpop.f32.mrb[46].mxu1 }
 0x14d   : > { %1599 = vst.msk [vmem:[%s3198_s12 + $0x168] sm:$0xff] %vm1553_vm1, %v1470_v33  ;;  %1663 = vst.msk [vmem:[%s3198_s12 + $0x368] sm:$0xff] %vm1553_vm1, %v1534_v34  ;;  %v1022_v39 = vadd.f32 %v2528_v37, %v3192_v12  ;;  %v1342_v40 = vadd.f32 %v2624_v38, %v3192_v12  ;;  %v1016_v41 = vpop.f32.mrb[47].mxu0  ;;  %v1336_v42 = vpop.f32.mrb[47].mxu1 }
 0x14e   : > { %1598 = vst.msk [vmem:[%s3198_s12 + $0x160] sm:$0xff] %vm1553_vm1, %v1469_v35  ;;  %1662 = vst.msk [vmem:[%s3198_s12 + $0x360] sm:$0xff] %vm1553_vm1, %v1533_v36  ;;  %v1017_v43 = vadd.f32 %v3192_v12, %v1016_v41  ;;  %v1337_v44 = vadd.f32 %v3192_v12, %v1336_v42 }
 0x14f   : > { %v1472_v45 = vmax.f32 %v1022_v39, 0.0  ;;  %v1536_v46 = vmax.f32 %v1342_v40, 0.0 }
 0x150   : > { %v1471_v47 = vmax.f32 %v1017_v43, 0.0  ;;  %v1535_v48 = vmax.f32 %v1337_v44, 0.0  ;;  %v2531_v49 = vpop.f32.mrb[48].mxu0  ;;  %v2627_v50 = vpop.f32.mrb[48].mxu1 }
 0x151   : > { %1601 = vst.msk [vmem:[%s3198_s12 + $0x178] sm:$0xff] %vm1553_vm1, %v1472_v45  ;;  %1665 = vst.msk [vmem:[%s3198_s12 + $0x378] sm:$0xff] %vm1553_vm1, %v1536_v46  ;;  %v1032_v51 = vadd.f32 %v2531_v49, %v3192_v12  ;;  %v1352_v52 = vadd.f32 %v2627_v50, %v3192_v12  ;;  %v1026_v53 = vpop.f32.mrb[49].mxu0  ;;  %v1346_v54 = vpop.f32.mrb[49].mxu1 }
 0x152   : > { %1600 = vst.msk [vmem:[%s3198_s12 + $0x170] sm:$0xff] %vm1553_vm1, %v1471_v47  ;;  %1664 = vst.msk [vmem:[%s3198_s12 + $0x370] sm:$0xff] %vm1553_vm1, %v1535_v48  ;;  %v1027_v55 = vadd.f32 %v3192_v12, %v1026_v53  ;;  %v1347_v56 = vadd.f32 %v3192_v12, %v1346_v54 }
 0x153   : > { %v1474_v57 = vmax.f32 %v1032_v51, 0.0  ;;  %v1538_v58 = vmax.f32 %v1352_v52, 0.0 }
 0x154   : > { %v1473_v59 = vmax.f32 %v1027_v55, 0.0  ;;  %v1537_v60 = vmax.f32 %v1347_v56, 0.0  ;;  %v2534_v61 = vpop.f32.mrb[50].mxu0  ;;  %v2630_v62 = vpop.f32.mrb[50].mxu1 }
 0x155   : > { %1603 = vst.msk [vmem:[%s3198_s12 + $0x188] sm:$0xff] %vm1553_vm1, %v1474_v57  ;;  %1667 = vst.msk [vmem:[%s3198_s12 + $0x388] sm:$0xff] %vm1553_vm1, %v1538_v58  ;;  %v1042_v63 = vadd.f32 %v2534_v61, %v3192_v12  ;;  %v1362_v0 = vadd.f32 %v2630_v62, %v3192_v12  ;;  %v1036_v1 = vpop.f32.mrb[51].mxu0  ;;  %v1356_v2 = vpop.f32.mrb[51].mxu1 }
 0x156   : > { %1602 = vst.msk [vmem:[%s3198_s12 + $0x180] sm:$0xff] %vm1553_vm1, %v1473_v59  ;;  %1666 = vst.msk [vmem:[%s3198_s12 + $0x380] sm:$0xff] %vm1553_vm1, %v1537_v60  ;;  %v1037_v3 = vadd.f32 %v3192_v12, %v1036_v1  ;;  %v1357_v4 = vadd.f32 %v3192_v12, %v1356_v2 }
 0x157   : > { %v1476_v5 = vmax.f32 %v1042_v63, 0.0  ;;  %v1540_v6 = vmax.f32 %v1362_v0, 0.0 }
 0x158   : > { %v1475_v7 = vmax.f32 %v1037_v3, 0.0  ;;  %v1539_v8 = vmax.f32 %v1357_v4, 0.0  ;;  %v2537_v9 = vpop.f32.mrb[52].mxu0  ;;  %v2633_v10 = vpop.f32.mrb[52].mxu1 }
 0x159   : > { %1605 = vst.msk [vmem:[%s3198_s12 + $0x198] sm:$0xff] %vm1553_vm1, %v1476_v5  ;;  %1669 = vst.msk [vmem:[%s3198_s12 + $0x398] sm:$0xff] %vm1553_vm1, %v1540_v6  ;;  %v1052_v11 = vadd.f32 %v2537_v9, %v3192_v12  ;;  %v1372_v13 = vadd.f32 %v2633_v10, %v3192_v12  ;;  %v1046_v14 = vpop.f32.mrb[53].mxu0  ;;  %v1366_v15 = vpop.f32.mrb[53].mxu1 }
 0x15a   : > { %1604 = vst.msk [vmem:[%s3198_s12 + $0x190] sm:$0xff] %vm1553_vm1, %v1475_v7  ;;  %1668 = vst.msk [vmem:[%s3198_s12 + $0x390] sm:$0xff] %vm1553_vm1, %v1539_v8  ;;  %v1047_v16 = vadd.f32 %v3192_v12, %v1046_v14  ;;  %v1367_v17 = vadd.f32 %v3192_v12, %v1366_v15 }
 0x15b   : > { %v1478_v18 = vmax.f32 %v1052_v11, 0.0  ;;  %v1542_v19 = vmax.f32 %v1372_v13, 0.0 }
 0x15c   : > { %v1477_v20 = vmax.f32 %v1047_v16, 0.0  ;;  %v1541_v21 = vmax.f32 %v1367_v17, 0.0  ;;  %v2540_v22 = vpop.f32.mrb[54].mxu0  ;;  %v2636_v23 = vpop.f32.mrb[54].mxu1 }
 0x15d   : > { %1607 = vst.msk [vmem:[%s3198_s12 + $0x1a8] sm:$0xff] %vm1553_vm1, %v1478_v18  ;;  %1671 = vst.msk [vmem:[%s3198_s12 + $0x3a8] sm:$0xff] %vm1553_vm1, %v1542_v19  ;;  %v1062_v24 = vadd.f32 %v2540_v22, %v3192_v12  ;;  %v1382_v25 = vadd.f32 %v2636_v23, %v3192_v12  ;;  %v1056_v26 = vpop.f32.mrb[55].mxu0  ;;  %v1376_v27 = vpop.f32.mrb[55].mxu1 }
 0x15e   : > { %1606 = vst.msk [vmem:[%s3198_s12 + $0x1a0] sm:$0xff] %vm1553_vm1, %v1477_v20  ;;  %1670 = vst.msk [vmem:[%s3198_s12 + $0x3a0] sm:$0xff] %vm1553_vm1, %v1541_v21  ;;  %v1057_v28 = vadd.f32 %v3192_v12, %v1056_v26  ;;  %v1377_v29 = vadd.f32 %v3192_v12, %v1376_v27 }
 0x15f   : > { %v1480_v30 = vmax.f32 %v1062_v24, 0.0  ;;  %v1544_v31 = vmax.f32 %v1382_v25, 0.0 }
 0x160   : > { %v1479_v32 = vmax.f32 %v1057_v28, 0.0  ;;  %v1543_v33 = vmax.f32 %v1377_v29, 0.0  ;;  %v2543_v34 = vpop.f32.mrb[56].mxu0  ;;  %v2639_v35 = vpop.f32.mrb[56].mxu1 }
 0x161   : > { %1609 = vst.msk [vmem:[%s3198_s12 + $0x1b8] sm:$0xff] %vm1553_vm1, %v1480_v30  ;;  %1673 = vst.msk [vmem:[%s3198_s12 + $0x3b8] sm:$0xff] %vm1553_vm1, %v1544_v31  ;;  %v1072_v36 = vadd.f32 %v2543_v34, %v3192_v12  ;;  %v1392_v37 = vadd.f32 %v2639_v35, %v3192_v12  ;;  %v1066_v38 = vpop.f32.mrb[57].mxu0  ;;  %v1386_v39 = vpop.f32.mrb[57].mxu1 }
 0x162   : > { %1608 = vst.msk [vmem:[%s3198_s12 + $0x1b0] sm:$0xff] %vm1553_vm1, %v1479_v32  ;;  %1672 = vst.msk [vmem:[%s3198_s12 + $0x3b0] sm:$0xff] %vm1553_vm1, %v1543_v33  ;;  %v1067_v40 = vadd.f32 %v3192_v12, %v1066_v38  ;;  %v1387_v41 = vadd.f32 %v3192_v12, %v1386_v39 }
 0x163   : > { %v1482_v42 = vmax.f32 %v1072_v36, 0.0  ;;  %v1546_v43 = vmax.f32 %v1392_v37, 0.0 }
 0x164   : > { %v1481_v44 = vmax.f32 %v1067_v40, 0.0  ;;  %v1545_v45 = vmax.f32 %v1387_v41, 0.0  ;;  %v2546_v46 = vpop.f32.mrb[58].mxu0  ;;  %v2642_v47 = vpop.f32.mrb[58].mxu1 }
 0x165   : > { %1611 = vst.msk [vmem:[%s3198_s12 + $0x1c8] sm:$0xff] %vm1553_vm1, %v1482_v42  ;;  %1675 = vst.msk [vmem:[%s3198_s12 + $0x3c8] sm:$0xff] %vm1553_vm1, %v1546_v43  ;;  %v1082_v48 = vadd.f32 %v2546_v46, %v3192_v12  ;;  %v1402_v49 = vadd.f32 %v2642_v47, %v3192_v12  ;;  %v1076_v50 = vpop.f32.mrb[59].mxu0  ;;  %v1396_v51 = vpop.f32.mrb[59].mxu1 }
 0x166   : > { %1610 = vst.msk [vmem:[%s3198_s12 + $0x1c0] sm:$0xff] %vm1553_vm1, %v1481_v44  ;;  %1674 = vst.msk [vmem:[%s3198_s12 + $0x3c0] sm:$0xff] %vm1553_vm1, %v1545_v45  ;;  %v1077_v52 = vadd.f32 %v3192_v12, %v1076_v50  ;;  %v1397_v53 = vadd.f32 %v3192_v12, %v1396_v51 }
 0x167   : > { %v1484_v54 = vmax.f32 %v1082_v48, 0.0  ;;  %v1548_v55 = vmax.f32 %v1402_v49, 0.0 }
 0x168   : > { %v1483_v56 = vmax.f32 %v1077_v52, 0.0  ;;  %v1547_v57 = vmax.f32 %v1397_v53, 0.0  ;;  %v2549_v58 = vpop.f32.mrb[60].mxu0  ;;  %v2645_v59 = vpop.f32.mrb[60].mxu1 }
 0x169   : > { %1613 = vst.msk [vmem:[%s3198_s12 + $0x1d8] sm:$0xff] %vm1553_vm1, %v1484_v54  ;;  %1677 = vst.msk [vmem:[%s3198_s12 + $0x3d8] sm:$0xff] %vm1553_vm1, %v1548_v55  ;;  %v1092_v60 = vadd.f32 %v2549_v58, %v3192_v12  ;;  %v1412_v61 = vadd.f32 %v2645_v59, %v3192_v12  ;;  %v1086_v62 = vpop.f32.mrb[61].mxu0  ;;  %v1406_v63 = vpop.f32.mrb[61].mxu1 }
 0x16a   : > { %1612 = vst.msk [vmem:[%s3198_s12 + $0x1d0] sm:$0xff] %vm1553_vm1, %v1483_v56  ;;  %1676 = vst.msk [vmem:[%s3198_s12 + $0x3d0] sm:$0xff] %vm1553_vm1, %v1547_v57  ;;  %v1087_v0 = vadd.f32 %v3192_v12, %v1086_v62  ;;  %v1407_v1 = vadd.f32 %v3192_v12, %v1406_v63 }
 0x16b   : > { %v1486_v2 = vmax.f32 %v1092_v60, 0.0  ;;  %v1550_v3 = vmax.f32 %v1412_v61, 0.0 }
 0x16c   : > { %v1485_v4 = vmax.f32 %v1087_v0, 0.0  ;;  %v1549_v5 = vmax.f32 %v1407_v1, 0.0  ;;  %v2552_v6 = vpop.f32.mrb[62].mxu0  ;;  %v2648_v7 = vpop.f32.mrb[62].mxu1  ;;  %1688 = sbr.rel (!%p2894_p4) target bundleno = 443 (0x1bb), region = 36 }
 0x16d   : > { %1615 = vst.msk [vmem:[%s3198_s12 + $0x1e8] sm:$0xff] %vm1553_vm1, %v1486_v2  ;;  %1679 = vst.msk [vmem:[%s3198_s12 + $0x3e8] sm:$0xff] %vm1553_vm1, %v1550_v3  ;;  %v1102_v8 = vadd.f32 %v2552_v6, %v3192_v12  ;;  %v1422_v9 = vadd.f32 %v2648_v7, %v3192_v12  ;;  %v1096_v10 = vpop.f32.mrb[63].mxu0  ;;  %v1416_v11 = vpop.f32.mrb[63].mxu1 }
 0x16e   : > { %1614 = vst.msk [vmem:[%s3198_s12 + $0x1e0] sm:$0xff] %vm1553_vm1, %v1485_v4  ;;  %1678 = vst.msk [vmem:[%s3198_s12 + $0x3e0] sm:$0xff] %vm1553_vm1, %v1549_v5  ;;  %v1097_v13 = vadd.f32 %v3192_v12, %v1096_v10  ;;  %v1417_v14 = vadd.f32 %v3192_v12, %v1416_v11 }
 0x16f   : > { %v1488_v15 = vmax.f32 %v1102_v8, 0.0  ;;  %v1552_v16 = vmax.f32 %v1422_v9, 0.0 }
 0x170   : > { %v1487_v17 = vmax.f32 %v1097_v13, 0.0  ;;  %v1551_v18 = vmax.f32 %v1417_v14, 0.0 }
 0x171   : > { %1617 = vst.msk [vmem:[%s3198_s12 + $0x1f8] sm:$0xff] %vm1553_vm1, %v1488_v15  ;;  %1681 = vst.msk [vmem:[%s3198_s12 + $0x3f8] sm:$0xff] %vm1553_vm1, %v1552_v16 }
 0x172   : > { %1616 = vst.msk [vmem:[%s3198_s12 + $0x1f0] sm:$0xff] %vm1553_vm1, %v1487_v17  ;;  %1680 = vst.msk [vmem:[%s3198_s12 + $0x3f0] sm:$0xff] %vm1553_vm1, %v1551_v18 }
 0x173   : > { %s3800_s26 = smov (!%p1691_p8, %s1690_s26), 128 }
 0x174   : > { %s2287_s5 = sshll.u32 %s3800_s26, 7 }
 0x175   : > { %p2290_p9 = scmp.eq.s32.totalorder %s2287_s5, 0 }
 0x176   : > { %s3593_s6 = sshrl.u32 (!%p2290_p9), %s3800_s26, 6 }
 0x177   : > { %1699 = sbr.rel (%p2290_p9) target bundleno = 443 (0x1bb), region = 40  ;;  %p2291_p10 = scmp.le.s32.totalorder (!%p2290_p9), %s3593_s6, 0 }
 0x17e   : > { %2105 = sbr.rel (%p2291_p10) target bundleno = 422 (0x1a6), region = 116  ;;  %s3791_s15 = smov (!%p2291_p10), %s3587_s4 }
 0x17f   : > { %s3792_s20 = smov (!%p2291_p10), %s3198_s12  ;;  %s3602_s27 = smov (!%p2291_p10), 0  }
 0x180   : > { %s3604_s7 = smov (!%p2291_p10), 0  }
 0x185 LB: >> { %v1887_v12 = vld [vmem:[%s2823_s20] sm:$0xff]  ;;  %v1889_v19 = vld [vmem:[%s2823_s20 + $0x8] sm:$0xff]  ;;  %v1891_v20 = vld [vmem:[%s2823_s20 + $0x10] sm:$0xff]  ;;  %s2015_s8 = sadd.s32 1, %s2827_s27  ;;  %s1881_s7 = sadd.s32 1, %s2831_s7   ;;  %s2831_s7 = sphi %s3604_s7, %s1881_s7   ;;  %s2827_s27 = sphi %s3602_s27, %s3795_s27   ;;  %s2823_s20 = sphi %s3792_s20, %s3794_s20   ;;  %s2819_s15 = sphi %s3791_s15, %s3793_s15  }
 0x186   : >> { %1888 = vst [vmem:[%s2819_s15] sm:$0xff] %v1887_v12  ;;  %1890 = vst [vmem:[%s2819_s15 + $0x8] sm:$0xff] %v1889_v19  ;;  %v1893_v21 = vld [vmem:[%s2823_s20 + $0x18] sm:$0xff]  ;;  %v1895_v22 = vld [vmem:[%s2823_s20 + $0x20] sm:$0xff]  ;;  %p2016_p11 = scmp.ge.s32.totalorder %s2015_s8, %s3593_s6  ;;  %p1880_p12 = scmp.ge.s32.totalorder %s1881_s7, %s3593_s6 }
 0x187   : >> { %1892 = vst [vmem:[%s2819_s15 + $0x10] sm:$0xff] %v1891_v20  ;;  %v1897_v23 = vld [vmem:[%s2823_s20 + $0x28] sm:$0xff]  ;;  %1894 = vst [vmem:[%s2819_s15 + $0x18] sm:$0xff] %v1893_v21  ;;  %v1899_v24 = vld [vmem:[%s2823_s20 + $0x30] sm:$0xff] }
 0x188   : >> { %1896 = vst [vmem:[%s2819_s15 + $0x20] sm:$0xff] %v1895_v22  ;;  %1898 = vst [vmem:[%s2819_s15 + $0x28] sm:$0xff] %v1897_v23  ;;  %v1901_v25 = vld [vmem:[%s2823_s20 + $0x38] sm:$0xff]  ;;  %v1903_v26 = vld [vmem:[%s2823_s20 + $0x40] sm:$0xff]  ;;  %s3802_s8 = smov (%p2016_p11, %s2015_s8), 0 }
 0x189   : >> { %1900 = vst [vmem:[%s2819_s15 + $0x30] sm:$0xff] %v1899_v24  ;;  %1902 = vst [vmem:[%s2819_s15 + $0x38] sm:$0xff] %v1901_v25  ;;  %v1905_v27 = vld [vmem:[%s2823_s20 + $0x48] sm:$0xff]  ;;  %v1907_v28 = vld [vmem:[%s2823_s20 + $0x50] sm:$0xff]  ;;  %s2292_s9 = sshll.u32 %s3802_s8, 9  ;;  %s3795_s27 = smov %s3802_s8 }
 0x18a   : >> { %1904 = vst [vmem:[%s2819_s15 + $0x40] sm:$0xff] %v1903_v26  ;;  %v1909_v29 = vld [vmem:[%s2823_s20 + $0x58] sm:$0xff]  ;;  %1906 = vst [vmem:[%s2819_s15 + $0x48] sm:$0xff] %v1905_v27  ;;  %v1911_v30 = vld [vmem:[%s2823_s20 + $0x60] sm:$0xff]  ;;  %s3660_s10 = scalar_lea.vmem %s3198_s12, %s2292_s9 [#allocation2]   ;;  %s3663_s11 = scalar_lea.vmem %s3587_s4, %s2292_s9  }
 0x18b   : >> { %1908 = vst [vmem:[%s2819_s15 + $0x50] sm:$0xff] %v1907_v28  ;;  %1910 = vst [vmem:[%s2819_s15 + $0x58] sm:$0xff] %v1909_v29  ;;  %v1913_v31 = vld [vmem:[%s2823_s20 + $0x68] sm:$0xff]  ;;  %v1915_v32 = vld [vmem:[%s2823_s20 + $0x70] sm:$0xff] }
 0x18c   : >> { %1912 = vst [vmem:[%s2819_s15 + $0x60] sm:$0xff] %v1911_v30  ;;  %1914 = vst [vmem:[%s2819_s15 + $0x68] sm:$0xff] %v1913_v31  ;;  %v1917_v33 = vld [vmem:[%s2823_s20 + $0x78] sm:$0xff]  ;;  %v1919_v34 = vld [vmem:[%s2823_s20 + $0x80] sm:$0xff] }
 0x18d   : >> { %1916 = vst [vmem:[%s2819_s15 + $0x70] sm:$0xff] %v1915_v32  ;;  %v1921_v35 = vld [vmem:[%s2823_s20 + $0x88] sm:$0xff]  ;;  %1918 = vst [vmem:[%s2819_s15 + $0x78] sm:$0xff] %v1917_v33  ;;  %v1923_v36 = vld [vmem:[%s2823_s20 + $0x90] sm:$0xff] }
 0x18e   : >> { %1920 = vst [vmem:[%s2819_s15 + $0x80] sm:$0xff] %v1919_v34  ;;  %1922 = vst [vmem:[%s2819_s15 + $0x88] sm:$0xff] %v1921_v35  ;;  %v1925_v37 = vld [vmem:[%s2823_s20 + $0x98] sm:$0xff]  ;;  %v1927_v38 = vld [vmem:[%s2823_s20 + $0xa0] sm:$0xff] }
 0x18f   : >> { %1924 = vst [vmem:[%s2819_s15 + $0x90] sm:$0xff] %v1923_v36  ;;  %1926 = vst [vmem:[%s2819_s15 + $0x98] sm:$0xff] %v1925_v37  ;;  %v1929_v39 = vld [vmem:[%s2823_s20 + $0xa8] sm:$0xff]  ;;  %v1931_v40 = vld [vmem:[%s2823_s20 + $0xb0] sm:$0xff] }
 0x190   : >> { %1928 = vst [vmem:[%s2819_s15 + $0xa0] sm:$0xff] %v1927_v38  ;;  %v1933_v41 = vld [vmem:[%s2823_s20 + $0xb8] sm:$0xff]  ;;  %1930 = vst [vmem:[%s2819_s15 + $0xa8] sm:$0xff] %v1929_v39  ;;  %v1935_v42 = vld [vmem:[%s2823_s20 + $0xc0] sm:$0xff] }
 0x191   : >> { %1932 = vst [vmem:[%s2819_s15 + $0xb0] sm:$0xff] %v1931_v40  ;;  %1934 = vst [vmem:[%s2819_s15 + $0xb8] sm:$0xff] %v1933_v41  ;;  %v1937_v43 = vld [vmem:[%s2823_s20 + $0xc8] sm:$0xff]  ;;  %v1939_v44 = vld [vmem:[%s2823_s20 + $0xd0] sm:$0xff] }
 0x192   : >> { %1936 = vst [vmem:[%s2819_s15 + $0xc0] sm:$0xff] %v1935_v42  ;;  %1938 = vst [vmem:[%s2819_s15 + $0xc8] sm:$0xff] %v1937_v43  ;;  %v1941_v45 = vld [vmem:[%s2823_s20 + $0xd8] sm:$0xff]  ;;  %v1943_v46 = vld [vmem:[%s2823_s20 + $0xe0] sm:$0xff] }
 0x193   : >> { %1940 = vst [vmem:[%s2819_s15 + $0xd0] sm:$0xff] %v1939_v44  ;;  %v1945_v47 = vld [vmem:[%s2823_s20 + $0xe8] sm:$0xff]  ;;  %1942 = vst [vmem:[%s2819_s15 + $0xd8] sm:$0xff] %v1941_v45  ;;  %v1947_v48 = vld [vmem:[%s2823_s20 + $0xf0] sm:$0xff] }
 0x194   : >> { %1944 = vst [vmem:[%s2819_s15 + $0xe0] sm:$0xff] %v1943_v46  ;;  %1946 = vst [vmem:[%s2819_s15 + $0xe8] sm:$0xff] %v1945_v47  ;;  %v1949_v49 = vld [vmem:[%s2823_s20 + $0xf8] sm:$0xff]  ;;  %v1951_v50 = vld [vmem:[%s2823_s20 + $0x100] sm:$0xff] }
 0x195   : >> { %1948 = vst [vmem:[%s2819_s15 + $0xf0] sm:$0xff] %v1947_v48  ;;  %1950 = vst [vmem:[%s2819_s15 + $0xf8] sm:$0xff] %v1949_v49  ;;  %v1953_v51 = vld [vmem:[%s2823_s20 + $0x108] sm:$0xff]  ;;  %v1955_v52 = vld [vmem:[%s2823_s20 + $0x110] sm:$0xff] }
 0x196   : >> { %1952 = vst [vmem:[%s2819_s15 + $0x100] sm:$0xff] %v1951_v50  ;;  %v1957_v53 = vld [vmem:[%s2823_s20 + $0x118] sm:$0xff]  ;;  %1954 = vst [vmem:[%s2819_s15 + $0x108] sm:$0xff] %v1953_v51  ;;  %v1959_v54 = vld [vmem:[%s2823_s20 + $0x120] sm:$0xff] }
 0x197   : >> { %1956 = vst [vmem:[%s2819_s15 + $0x110] sm:$0xff] %v1955_v52  ;;  %1958 = vst [vmem:[%s2819_s15 + $0x118] sm:$0xff] %v1957_v53  ;;  %v1961_v55 = vld [vmem:[%s2823_s20 + $0x128] sm:$0xff]  ;;  %v1963_v56 = vld [vmem:[%s2823_s20 + $0x130] sm:$0xff] }
 0x198   : >> { %1960 = vst [vmem:[%s2819_s15 + $0x120] sm:$0xff] %v1959_v54  ;;  %1962 = vst [vmem:[%s2819_s15 + $0x128] sm:$0xff] %v1961_v55  ;;  %v1965_v57 = vld [vmem:[%s2823_s20 + $0x138] sm:$0xff]  ;;  %v1967_v58 = vld [vmem:[%s2823_s20 + $0x140] sm:$0xff] }
 0x199   : >> { %1964 = vst [vmem:[%s2819_s15 + $0x130] sm:$0xff] %v1963_v56  ;;  %v1969_v59 = vld [vmem:[%s2823_s20 + $0x148] sm:$0xff]  ;;  %1966 = vst [vmem:[%s2819_s15 + $0x138] sm:$0xff] %v1965_v57  ;;  %v1971_v60 = vld [vmem:[%s2823_s20 + $0x150] sm:$0xff] }
 0x19a   : >> { %1968 = vst [vmem:[%s2819_s15 + $0x140] sm:$0xff] %v1967_v58  ;;  %1970 = vst [vmem:[%s2819_s15 + $0x148] sm:$0xff] %v1969_v59  ;;  %v1973_v61 = vld [vmem:[%s2823_s20 + $0x158] sm:$0xff]  ;;  %v1975_v62 = vld [vmem:[%s2823_s20 + $0x160] sm:$0xff] }
 0x19b   : >> { %1972 = vst [vmem:[%s2819_s15 + $0x150] sm:$0xff] %v1971_v60  ;;  %1974 = vst [vmem:[%s2819_s15 + $0x158] sm:$0xff] %v1973_v61  ;;  %v1977_v63 = vld [vmem:[%s2823_s20 + $0x168] sm:$0xff]  ;;  %v1979_v0 = vld [vmem:[%s2823_s20 + $0x170] sm:$0xff] }
 0x19c   : >> { %1976 = vst [vmem:[%s2819_s15 + $0x160] sm:$0xff] %v1975_v62  ;;  %v1981_v1 = vld [vmem:[%s2823_s20 + $0x178] sm:$0xff]  ;;  %1978 = vst [vmem:[%s2819_s15 + $0x168] sm:$0xff] %v1977_v63  ;;  %v1983_v2 = vld [vmem:[%s2823_s20 + $0x180] sm:$0xff] }
 0x19d   : >> { %1980 = vst [vmem:[%s2819_s15 + $0x170] sm:$0xff] %v1979_v0  ;;  %1982 = vst [vmem:[%s2819_s15 + $0x178] sm:$0xff] %v1981_v1  ;;  %v1985_v3 = vld [vmem:[%s2823_s20 + $0x188] sm:$0xff]  ;;  %v1987_v4 = vld [vmem:[%s2823_s20 + $0x190] sm:$0xff] }
 0x19e   : >> { %1984 = vst [vmem:[%s2819_s15 + $0x180] sm:$0xff] %v1983_v2  ;;  %1986 = vst [vmem:[%s2819_s15 + $0x188] sm:$0xff] %v1985_v3  ;;  %v1989_v5 = vld [vmem:[%s2823_s20 + $0x198] sm:$0xff]  ;;  %v1991_v6 = vld [vmem:[%s2823_s20 + $0x1a0] sm:$0xff] }
 0x19f   : >> { %1988 = vst [vmem:[%s2819_s15 + $0x190] sm:$0xff] %v1987_v4  ;;  %v1993_v7 = vld [vmem:[%s2823_s20 + $0x1a8] sm:$0xff]  ;;  %1990 = vst [vmem:[%s2819_s15 + $0x198] sm:$0xff] %v1989_v5  ;;  %v1995_v8 = vld [vmem:[%s2823_s20 + $0x1b0] sm:$0xff]  ;;  %1883 = sbr.rel (!%p1880_p12) target bundleno = 389 (0x185), region = 122 }
 0x1a0   : >> { %1992 = vst [vmem:[%s2819_s15 + $0x1a0] sm:$0xff] %v1991_v6  ;;  %1994 = vst [vmem:[%s2819_s15 + $0x1a8] sm:$0xff] %v1993_v7  ;;  %v1997_v9 = vld [vmem:[%s2823_s20 + $0x1b8] sm:$0xff]  ;;  %v1999_v10 = vld [vmem:[%s2823_s20 + $0x1c0] sm:$0xff] }
 0x1a1   : >> { %1996 = vst [vmem:[%s2819_s15 + $0x1b0] sm:$0xff] %v1995_v8  ;;  %1998 = vst [vmem:[%s2819_s15 + $0x1b8] sm:$0xff] %v1997_v9  ;;  %v2001_v11 = vld [vmem:[%s2823_s20 + $0x1c8] sm:$0xff]  ;;  %v2003_v13 = vld [vmem:[%s2823_s20 + $0x1d0] sm:$0xff] }
 0x1a2   : >> { %2000 = vst [vmem:[%s2819_s15 + $0x1c0] sm:$0xff] %v1999_v10  ;;  %v2005_v14 = vld [vmem:[%s2823_s20 + $0x1d8] sm:$0xff]  ;;  %2002 = vst [vmem:[%s2819_s15 + $0x1c8] sm:$0xff] %v2001_v11  ;;  %v2007_v15 = vld [vmem:[%s2823_s20 + $0x1e0] sm:$0xff] }
 0x1a3   : >> { %2004 = vst [vmem:[%s2819_s15 + $0x1d0] sm:$0xff] %v2003_v13  ;;  %2006 = vst [vmem:[%s2819_s15 + $0x1d8] sm:$0xff] %v2005_v14  ;;  %v2009_v16 = vld [vmem:[%s2823_s20 + $0x1e8] sm:$0xff]  ;;  %v2011_v17 = vld [vmem:[%s2823_s20 + $0x1f0] sm:$0xff] }
 0x1a4   : >> { %2008 = vst [vmem:[%s2819_s15 + $0x1e0] sm:$0xff] %v2007_v15  ;;  %2010 = vst [vmem:[%s2819_s15 + $0x1e8] sm:$0xff] %v2009_v16  ;;  %v2013_v18 = vld [vmem:[%s2823_s20 + $0x1f8] sm:$0xff]  ;;  %s3794_s20 = smov %s3660_s10 }
 0x1a5   : >> { %2012 = vst [vmem:[%s2819_s15 + $0x1f0] sm:$0xff] %v2011_v17  ;;  %2014 = vst [vmem:[%s2819_s15 + $0x1f8] sm:$0xff] %v2013_v18  ;;  %s3793_s15 = smov %s3663_s11 }
 0x1a6 PF: > { %s3768_s14 = sand.u32 63, %s3800_s26   ;;  %s2303_s17 = sshll.u32 %s3593_s6, 9 }
 0x1a7   : > { %s2026_s18 = scalar_lea.vmem %s3198_s12, %s2303_s17 [#allocation2]   ;;  %s2028_s21 = scalar_lea.vmem %s3587_s4, %s2303_s17  }
 0x1a8   : > { %p2297_p13 = scmp.le.s32.totalorder %s3768_s14, 0 }
 0x1a9   : > { %s2833_s22 = smov (!%p2297_p13), %s2028_s21   ;;  %s2837_s23 = smov (!%p2297_p13), %s2026_s18  }
 0x1aa   : > { %2119 = sbr.rel (%p2297_p13) target bundleno = 443 (0x1bb), region = 127  ;;  %s2841_s24 = smov (!%p2297_p13), 0  }
 0x1ab   : > { %s2845_s25 = smov (!%p2297_p13), 0  }
 0x1b1 LB: >> { %v2038_v12 = vld [vmem:[%s2839_s23] sm:$0xff]  ;;  %s2040_s26 = sadd.s32 1, %s2843_s24  ;;  %s2032_s25 = sadd.s32 1, %s2847_s25   ;;  %s2847_s25 = sphi %s2845_s25, %s2032_s25   ;;  %s2843_s24 = sphi %s2841_s24, %s2842_s24   ;;  %s2839_s23 = sphi %s2837_s23, %s2045_s23   ;;  %s2835_s22 = sphi %s2833_s22, %s2046_s22  }
 0x1b2   : >> { %2039 = vst [vmem:[%s2835_s22] sm:$0xff] %v2038_v12  ;;  %p2041_p0 = scmp.ge.s32.totalorder %s2040_s26, %s3768_s14  ;;  %p2031_p1 = scmp.ge.s32.totalorder %s2032_s25, %s3768_s14 }
 0x1b4   : >> { %s3804_s26 = smov (%p2041_p0, %s2040_s26), 0  ;;  %2034 = sbr.rel (!%p2031_p1) target bundleno = 433 (0x1b1), region = 133 }
 0x1b5   : >> { %s2298_s12 = sshll.u32 %s3804_s26, 3  ;;  %s2842_s24 = smov %s3804_s26  }
 0x1b6   : >> { %s2045_s23 = scalar_lea.vmem %s2026_s18, %s2298_s12 [#allocation2]   ;;  %s2046_s22 = scalar_lea.vmem %s2028_s21, %s2298_s12  }
 0x1bb PF: > { %p10_p2 = scmp.ge.s32.totalorder %s2884_s16, 7   ;;  %s3796_s12 = smov %s2811_s13 }
 0x1bc   : > { %s3797_s13 = smov %s2892_s19  ;;  %s3798_s14 = smov %s2884_s16 }
 0x1bd   :  { %12 = sbr.rel (!%p10_p2) target bundleno = 2 (0x2), region = 144 }

// kernel: net_forward.7
= control target key start
LH: loop header
LB: loop body
LE: loop exit
PB: predicated region body
PF: predicated region fallthrough
CT: control target
= control target key end

     0   :  { %s2875_s12 = smov 0   ;;  %s2877_s13 = smov 0   ;;  %s3795_s0 = inlined_call_operand.vmem [shape: f32[1058,72], index: 0, kind: input, shape index: {}]   ;;  %s3796_s1 = inlined_call_operand.vmem [shape: f32[72,16], index: 1, kind: input, shape index: {}]   ;;  %s3797_s2 = inlined_call_operand.vmem [shape: f32[1,16], index: 2, kind: input, shape index: {}]   ;;  %s3798_s3 = inlined_call_operand.vmem [shape: f32[1058,16], index: 3, kind: output, shape index: {}]  }
   0x1   :  { %s2879_s14 = smov 0  }
   0x2 LB: > { %s2888_s15 = sadd.s32 4294967295, %s2821_s14   ;;  %s2890_s16 = sadd.s32 1, %s2821_s14   ;;  %s2821_s14 = sphi %s2879_s14, %s3807_s14   ;;  %s2817_s13 = sphi %s2877_s13, %s3806_s13   ;;  %s2813_s12 = sphi %s2875_s12, %s3805_s12  }
   0x3   : > { %s85_s17 = ssub.s32 %s2821_s14, %s2890_s16  ;;  %s88_s18 = sadd.s32 1, %s2817_s13 }
   0x4   : > { %p86_p0 = scmp.eq.s32.totalorder %s85_s17, 0  ;;  %p98_p1 = scmp.ne.s32.totalorder %s2817_s13, %s2813_s12 }
   0x5   : > { %p99_p2 = scmp.eq.s32.totalorder %s2888_s15, 1  ;;  %p2153_p3 = scmp.ge.s32.totalorder %s2821_s14, 1 }
   0x6   : > { %s2898_s19 = scalar_select %p86_p0, %s2817_s13, %s88_s18  }
   0x7   : > { %p2900_p4 = por %p99_p2, %p98_p1  ;;  %p146_p5 = scmp.lt.s32.totalorder %s2821_s14, 3 }
   0x9   : > { %p147_p6 = pnand %p2153_p3, %p146_p5 }
   0xa   : > { %v320_v0 = vld [vmem:[%s3796_s1] sm:$0xff] (!%p147_p6)  ;;  %v321_v1 = vld [vmem:[%s3796_s1 + $0x8] sm:$0xff] (!%p147_p6)  ;;  %v322_v2 = vld [vmem:[%s3796_s1 + $0x10] sm:$0xff] (!%p147_p6)  ;;  %s2914_s27 = sshll.u32 (!%p147_p6), %s2888_s15, 7  ;;  %vm336_vm0 = vcmask (!%p147_p6), 588800   ;;  %s170_s24 = sand.u32 (!%p147_p6), 1, %s2813_s12  }
   0xb   : > { %150 = sbr.rel (%p147_p6) target bundleno = 445 (0x1bd), region = 32  ;;  %v2653_v3 = vpack.c.bf16 (!%p147_p6), %v321_v1, %v320_v0  ;;  %v323_v4 = vld [vmem:[%s3796_s1 + $0x18] sm:$0xff] (!%p147_p6)  ;;  %p178_p7 = scmp.lt.s32.totalorder (!%p147_p6), %s2914_s27, 132  ;;  %v324_v6 = vld [vmem:[%s3796_s1 + $0x20] sm:$0xff] (!%p147_p6)  ;;  %v325_v7 = vld [vmem:[%s3796_s1 + $0x28] sm:$0xff] (!%p147_p6)  ;;  %vm1554_vm1 = vcmask (!%p147_p6), 130048  }
   0xc   : > { %v2657_v5 = vpack.c.bf16 (!%p147_p6), %v323_v4, %v322_v2  ;;  %v2661_v8 = vpack.c.bf16 (!%p147_p6), %v325_v7, %v324_v6  ;;  %v326_v9 = vld [vmem:[%s3796_s1 + $0x30] sm:$0xff] (!%p147_p6)  ;;  %v327_v10 = vld [vmem:[%s3796_s1 + $0x38] sm:$0xff] (!%p147_p6)  ;;  %v328_v14 = vld [vmem:[%s3796_s1 + $0x40] sm:$0xff] (!%p147_p6)  ;;  %s2154_s28 = sshll.u32 (!%p147_p6), %s170_s24, 10 }
   0xd   : > { %2654 = vmatprep.subr.bf16.mxu0 (!%p147_p6), %v2653_v3  ;;  %2669 = vmatprep.subr.bf16.mxu1 (!%p147_p6), %v2653_v3  ;;  %v2665_v13 = vpack.c.bf16 (!%p147_p6), %v327_v10, %v326_v9  ;;  %s3207_s12 = scalar_lea.vmem (!%p147_p6), [#allocation2], %s2154_s28  }
   0xe   : > { %2656 = vmatpush3.bf16.msra.mxu0 (!%p147_p6), %v2653_v3  ;;  %2674 = vmatpush3.bf16.msra.mxu1 (!%p147_p6), %v2653_v3 }
   0xf   : > { %2658 = vmatprep.subr.bf16.mxu0 (!%p147_p6), %v2657_v5  ;;  %2670 = vmatprep.subr.bf16.mxu1 (!%p147_p6), %v2657_v5 }
  0x12   : > { %s179_s7 = scalar_select %p178_p7, %s2914_s27, 132  ;;  %2660 = vmatpush3.bf16.msra.mxu0 %v2657_v5  ;;  %2675 = vmatpush3.bf16.msra.mxu1 %v2657_v5 }
  0x13   : > { %2662 = vmatprep.subr.bf16.mxu0 %v2661_v8  ;;  %2671 = vmatprep.subr.bf16.mxu1 %v2661_v8  ;;  %s1691_s29 = ssub.s32 (%p2900_p4), 133, %s2914_s27  ;;  %s2303_s30 = sshll.u32 (%p2900_p4), %s2888_s15, 10 }
  0x14   : > { %s2156_s8 = sshll.u32 %s179_s7, 3  ;;  %p1692_p8 = scmp.lt.s32.totalorder (%p2900_p4), %s1691_s29, 128 }
  0x15   : > { %s2936_s21 = scalar_lea.vmem %s3795_s0, %s2156_s8  ;;  %s3596_s6 = scalar_lea.vmem (%p2900_p4), %s3798_s3, %s2303_s30  }
  0x16   : > { %v192_v11 = vld [vmem:[%s2936_s21] sm:$0xff]  ;;  %2664 = vmatpush3.bf16.msra.mxu0 %v2661_v8  ;;  %2676 = vmatpush3.bf16.msra.mxu1 %v2661_v8  ;;  %v193_v15 = vld [vmem:[%s2936_s21 + $0x8] sm:$0xff]  ;;  %v194_v17 = vld [vmem:[%s2936_s21 + $0x10] sm:$0xff] }
  0x17   : > { %v256_v12 = vld [vmem:[%s2936_s21 + $0x200] sm:$0xff]  ;;  %2461 = vmatprep.mubr.msk.f32.mxu0 %vm336_vm0, %v192_v11  ;;  %2666 = vmatprep.subr.bf16.mxu0 %v2665_v13  ;;  %v257_v16 = vld [vmem:[%s2936_s21 + $0x208] sm:$0xff]  ;;  %v258_v18 = vld [vmem:[%s2936_s21 + $0x210] sm:$0xff] }
  0x18   : > { %2557 = vmatprep.mubr.msk.f32.mxu1 %vm336_vm0, %v256_v12  ;;  %2672 = vmatprep.subr.bf16.mxu1 %v2665_v13  ;;  %v195_v19 = vld [vmem:[%s2936_s21 + $0x18] sm:$0xff]  ;;  %v196_v21 = vld [vmem:[%s2936_s21 + $0x20] sm:$0xff]  ;;  %v197_v23 = vld [vmem:[%s2936_s21 + $0x28] sm:$0xff] }
  0x19   : > { %v259_v20 = vld [vmem:[%s2936_s21 + $0x218] sm:$0xff]  ;;  %v260_v22 = vld [vmem:[%s2936_s21 + $0x220] sm:$0xff]  ;;  %v261_v24 = vld [vmem:[%s2936_s21 + $0x228] sm:$0xff] }
  0x1a   : > { %2668 = vmatpush3.bf16.msra.mxu0 %v2665_v13  ;;  %2677 = vmatpush3.bf16.msra.mxu1 %v2665_v13  ;;  %v198_v25 = vld [vmem:[%s2936_s21 + $0x30] sm:$0xff]  ;;  %v199_v27 = vld [vmem:[%s2936_s21 + $0x38] sm:$0xff]  ;;  %v200_v29 = vld [vmem:[%s2936_s21 + $0x40] sm:$0xff] }
  0x1b   : > { %2459 = vmatprep.subr.mxu0 %v328_v14  ;;  %2673 = vmatprep.subr.mxu1 %v328_v14  ;;  %v262_v26 = vld [vmem:[%s2936_s21 + $0x230] sm:$0xff]  ;;  %v263_v28 = vld [vmem:[%s2936_s21 + $0x238] sm:$0xff]  ;;  %v264_v30 = vld [vmem:[%s2936_s21 + $0x240] sm:$0xff] }
  0x1c   : > { %v201_v31 = vld [vmem:[%s2936_s21 + $0x48] sm:$0xff]  ;;  %v202_v33 = vld [vmem:[%s2936_s21 + $0x50] sm:$0xff]  ;;  %v203_v35 = vld [vmem:[%s2936_s21 + $0x58] sm:$0xff] }
  0x1d   : > { %v265_v32 = vld [vmem:[%s2936_s21 + $0x248] sm:$0xff]  ;;  %v266_v34 = vld [vmem:[%s2936_s21 + $0x250] sm:$0xff]  ;;  %v267_v36 = vld [vmem:[%s2936_s21 + $0x258] sm:$0xff] }
  0x1e   : > { %2460 = vmatpush3.msra.mxu0 %v328_v14  ;;  %2678 = vmatpush3.msra.mxu1 %v328_v14  ;;  %v204_v37 = vld [vmem:[%s2936_s21 + $0x60] sm:$0xff]  ;;  %v205_v39 = vld [vmem:[%s2936_s21 + $0x68] sm:$0xff]  ;;  %v206_v41 = vld [vmem:[%s2936_s21 + $0x70] sm:$0xff] }
  0x1f   : > { %2462 = vmatmul.mubr.msk.f32.vlgmr.msra.gmra.mrb[0].mxu0 %vm336_vm0, %v193_v15  ;;  %2558 = vmatmul.mubr.msk.f32.vlgmr.msra.gmra.mrb[0].mxu1 %vm336_vm0, %v257_v16  ;;  %v268_v38 = vld [vmem:[%s2936_s21 + $0x260] sm:$0xff]  ;;  %v269_v40 = vld [vmem:[%s2936_s21 + $0x268] sm:$0xff]  ;;  %v270_v42 = vld [vmem:[%s2936_s21 + $0x270] sm:$0xff] }
  0x20   : > { %2464 = vmatprep.mubr.msk.f32.mxu0 %vm336_vm0, %v194_v17  ;;  %2560 = vmatprep.mubr.msk.f32.mxu1 %vm336_vm0, %v258_v18  ;;  %v207_v43 = vld [vmem:[%s2936_s21 + $0x78] sm:$0xff]  ;;  %v208_v45 = vld [vmem:[%s2936_s21 + $0x80] sm:$0xff]  ;;  %v209_v47 = vld [vmem:[%s2936_s21 + $0x88] sm:$0xff] }
  0x21   : > { %v271_v44 = vld [vmem:[%s2936_s21 + $0x278] sm:$0xff]  ;;  %v272_v46 = vld [vmem:[%s2936_s21 + $0x280] sm:$0xff]  ;;  %v273_v48 = vld [vmem:[%s2936_s21 + $0x288] sm:$0xff] }
  0x22   : > { %v210_v49 = vld [vmem:[%s2936_s21 + $0x90] sm:$0xff]  ;;  %v211_v51 = vld [vmem:[%s2936_s21 + $0x98] sm:$0xff]  ;;  %v212_v53 = vld [vmem:[%s2936_s21 + $0xa0] sm:$0xff] }
  0x23   : > { %2465 = vmatmul.mubr.msk.f32.gmra.mrb[2].mxu0 %vm336_vm0, %v195_v19  ;;  %2561 = vmatmul.mubr.msk.f32.gmra.mrb[2].mxu1 %vm336_vm0, %v259_v20  ;;  %v274_v50 = vld [vmem:[%s2936_s21 + $0x290] sm:$0xff]  ;;  %v275_v52 = vld [vmem:[%s2936_s21 + $0x298] sm:$0xff]  ;;  %v276_v54 = vld [vmem:[%s2936_s21 + $0x2a0] sm:$0xff] }
  0x24   : > { %2467 = vmatprep.mubr.msk.f32.mxu0 %vm336_vm0, %v196_v21  ;;  %2563 = vmatprep.mubr.msk.f32.mxu1 %vm336_vm0, %v260_v22  ;;  %v213_v55 = vld [vmem:[%s2936_s21 + $0xa8] sm:$0xff]  ;;  %v214_v57 = vld [vmem:[%s2936_s21 + $0xb0] sm:$0xff]  ;;  %v215_v59 = vld [vmem:[%s2936_s21 + $0xb8] sm:$0xff] }
  0x25   : > { %v277_v56 = vld [vmem:[%s2936_s21 + $0x2a8] sm:$0xff]  ;;  %v278_v58 = vld [vmem:[%s2936_s21 + $0x2b0] sm:$0xff]  ;;  %v279_v60 = vld [vmem:[%s2936_s21 + $0x2b8] sm:$0xff] }
  0x26   : > { %v216_v61 = vld [vmem:[%s2936_s21 + $0xc0] sm:$0xff]  ;;  %v217_v63 = vld [vmem:[%s2936_s21 + $0xc8] sm:$0xff]  ;;  %v218_v1 = vld [vmem:[%s2936_s21 + $0xd0] sm:$0xff] }
  0x27   : > { %2468 = vmatmul.mubr.msk.f32.gmra.mrb[4].mxu0 %vm336_vm0, %v197_v23  ;;  %2564 = vmatmul.mubr.msk.f32.gmra.mrb[4].mxu1 %vm336_vm0, %v261_v24  ;;  %v280_v62 = vld [vmem:[%s2936_s21 + $0x2c0] sm:$0xff]  ;;  %v281_v0 = vld [vmem:[%s2936_s21 + $0x2c8] sm:$0xff]  ;;  %v282_v2 = vld [vmem:[%s2936_s21 + $0x2d0] sm:$0xff] }
  0x28   : > { %2470 = vmatprep.mubr.msk.f32.mxu0 %vm336_vm0, %v198_v25  ;;  %2566 = vmatprep.mubr.msk.f32.mxu1 %vm336_vm0, %v262_v26  ;;  %v219_v3 = vld [vmem:[%s2936_s21 + $0xd8] sm:$0xff]  ;;  %v220_v5 = vld [vmem:[%s2936_s21 + $0xe0] sm:$0xff]  ;;  %v221_v7 = vld [vmem:[%s2936_s21 + $0xe8] sm:$0xff] }
  0x29   : > { %v283_v4 = vld [vmem:[%s2936_s21 + $0x2d8] sm:$0xff]  ;;  %v284_v6 = vld [vmem:[%s2936_s21 + $0x2e0] sm:$0xff]  ;;  %v285_v8 = vld [vmem:[%s2936_s21 + $0x2e8] sm:$0xff] }
  0x2a   : > { %v222_v9 = vld [vmem:[%s2936_s21 + $0xf0] sm:$0xff]  ;;  %v223_v11 = vld [vmem:[%s2936_s21 + $0xf8] sm:$0xff]  ;;  %v224_v13 = vld [vmem:[%s2936_s21 + $0x100] sm:$0xff] }
  0x2b   : > { %2471 = vmatmul.mubr.msk.f32.gmra.mrb[6].mxu0 %vm336_vm0, %v199_v27  ;;  %2567 = vmatmul.mubr.msk.f32.gmra.mrb[6].mxu1 %vm336_vm0, %v263_v28  ;;  %v286_v10 = vld [vmem:[%s2936_s21 + $0x2f0] sm:$0xff]  ;;  %v287_v12 = vld [vmem:[%s2936_s21 + $0x2f8] sm:$0xff]  ;;  %v288_v14 = vld [vmem:[%s2936_s21 + $0x300] sm:$0xff] }
  0x2c   : > { %2473 = vmatprep.mubr.msk.f32.mxu0 %vm336_vm0, %v200_v29  ;;  %2569 = vmatprep.mubr.msk.f32.mxu1 %vm336_vm0, %v264_v30  ;;  %v225_v15 = vld [vmem:[%s2936_s21 + $0x108] sm:$0xff]  ;;  %v226_v17 = vld [vmem:[%s2936_s21 + $0x110] sm:$0xff]  ;;  %v227_v19 = vld [vmem:[%s2936_s21 + $0x118] sm:$0xff] }
  0x2d   : > { %v289_v16 = vld [vmem:[%s2936_s21 + $0x308] sm:$0xff]  ;;  %v290_v18 = vld [vmem:[%s2936_s21 + $0x310] sm:$0xff]  ;;  %v291_v20 = vld [vmem:[%s2936_s21 + $0x318] sm:$0xff] }
  0x2e   : > { %v228_v21 = vld [vmem:[%s2936_s21 + $0x120] sm:$0xff]  ;;  %v229_v23 = vld [vmem:[%s2936_s21 + $0x128] sm:$0xff]  ;;  %v230_v25 = vld [vmem:[%s2936_s21 + $0x130] sm:$0xff] }
  0x2f   : > { %2474 = vmatmul.mubr.msk.f32.gmra.mrb[8].mxu0 %vm336_vm0, %v201_v31  ;;  %2570 = vmatmul.mubr.msk.f32.gmra.mrb[8].mxu1 %vm336_vm0, %v265_v32  ;;  %v292_v22 = vld [vmem:[%s2936_s21 + $0x320] sm:$0xff]  ;;  %v293_v24 = vld [vmem:[%s2936_s21 + $0x328] sm:$0xff]  ;;  %v294_v26 = vld [vmem:[%s2936_s21 + $0x330] sm:$0xff] }
  0x30   : > { %2476 = vmatprep.mubr.msk.f32.mxu0 %vm336_vm0, %v202_v33  ;;  %2572 = vmatprep.mubr.msk.f32.mxu1 %vm336_vm0, %v266_v34  ;;  %v231_v27 = vld [vmem:[%s2936_s21 + $0x138] sm:$0xff]  ;;  %v232_v29 = vld [vmem:[%s2936_s21 + $0x140] sm:$0xff]  ;;  %v233_v31 = vld [vmem:[%s2936_s21 + $0x148] sm:$0xff] }
  0x31   : > { %v295_v28 = vld [vmem:[%s2936_s21 + $0x338] sm:$0xff]  ;;  %v296_v30 = vld [vmem:[%s2936_s21 + $0x340] sm:$0xff]  ;;  %v297_v32 = vld [vmem:[%s2936_s21 + $0x348] sm:$0xff] }
  0x32   : > { %v234_v33 = vld [vmem:[%s2936_s21 + $0x150] sm:$0xff] }
  0x33   : > { %2477 = vmatmul.mubr.msk.f32.gmra.mrb[10].mxu0 %vm336_vm0, %v203_v35  ;;  %2573 = vmatmul.mubr.msk.f32.gmra.mrb[10].mxu1 %vm336_vm0, %v267_v36  ;;  %v298_v34 = vld [vmem:[%s2936_s21 + $0x350] sm:$0xff]  ;;  %v235_v35 = vld [vmem:[%s2936_s21 + $0x158] sm:$0xff] }
  0x34   : > { %2479 = vmatprep.mubr.msk.f32.mxu0 %vm336_vm0, %v204_v37  ;;  %2575 = vmatprep.mubr.msk.f32.mxu1 %vm336_vm0, %v268_v38  ;;  %v299_v36 = vld [vmem:[%s2936_s21 + $0x358] sm:$0xff]  ;;  %v236_v37 = vld [vmem:[%s2936_s21 + $0x160] sm:$0xff] }
  0x35   : > { %v300_v38 = vld [vmem:[%s2936_s21 + $0x360] sm:$0xff] }
  0x37   : > { %2480 = vmatmul.mubr.msk.f32.gmra.mrb[12].mxu0 %vm336_vm0, %v205_v39  ;;  %2576 = vmatmul.mubr.msk.f32.gmra.mrb[12].mxu1 %vm336_vm0, %v269_v40  ;;  %v237_v39 = vld [vmem:[%s2936_s21 + $0x168] sm:$0xff] }
  0x38   : > { %2482 = vmatprep.mubr.msk.f32.mxu0 %vm336_vm0, %v206_v41  ;;  %2578 = vmatprep.mubr.msk.f32.mxu1 %vm336_vm0, %v270_v42  ;;  %v301_v40 = vld [vmem:[%s2936_s21 + $0x368] sm:$0xff]  ;;  %v238_v41 = vld [vmem:[%s2936_s21 + $0x170] sm:$0xff] }
  0x39   : > { %v302_v42 = vld [vmem:[%s2936_s21 + $0x370] sm:$0xff] }
  0x3b   : > { %2483 = vmatmul.mubr.msk.f32.gmra.mrb[14].mxu0 %vm336_vm0, %v207_v43  ;;  %2579 = vmatmul.mubr.msk.f32.gmra.mrb[14].mxu1 %vm336_vm0, %v271_v44  ;;  %v239_v43 = vld [vmem:[%s2936_s21 + $0x178] sm:$0xff] }
  0x3c   : > { %2485 = vmatprep.mubr.msk.f32.mxu0 %vm336_vm0, %v208_v45  ;;  %2581 = vmatprep.mubr.msk.f32.mxu1 %vm336_vm0, %v272_v46  ;;  %v303_v44 = vld [vmem:[%s2936_s21 + $0x378] sm:$0xff]  ;;  %v240_v45 = vld [vmem:[%s2936_s21 + $0x180] sm:$0xff] }
  0x3d   : > { %v304_v46 = vld [vmem:[%s2936_s21 + $0x380] sm:$0xff] }
  0x3f   : > { %2486 = vmatmul.mubr.msk.f32.gmra.mrb[16].mxu0 %vm336_vm0, %v209_v47  ;;  %2582 = vmatmul.mubr.msk.f32.gmra.mrb[16].mxu1 %vm336_vm0, %v273_v48  ;;  %v241_v47 = vld [vmem:[%s2936_s21 + $0x188] sm:$0xff] }
  0x40   : > { %2488 = vmatprep.mubr.msk.f32.mxu0 %vm336_vm0, %v210_v49  ;;  %2584 = vmatprep.mubr.msk.f32.mxu1 %vm336_vm0, %v274_v50  ;;  %v305_v48 = vld [vmem:[%s2936_s21 + $0x388] sm:$0xff]  ;;  %v242_v49 = vld [vmem:[%s2936_s21 + $0x190] sm:$0xff] }
  0x41   : > { %v306_v50 = vld [vmem:[%s2936_s21 + $0x390] sm:$0xff] }
  0x43   : > { %2489 = vmatmul.mubr.msk.f32.gmra.mrb[18].mxu0 %vm336_vm0, %v211_v51  ;;  %2585 = vmatmul.mubr.msk.f32.gmra.mrb[18].mxu1 %vm336_vm0, %v275_v52  ;;  %v243_v51 = vld [vmem:[%s2936_s21 + $0x198] sm:$0xff] }
  0x44   : > { %2491 = vmatprep.mubr.msk.f32.mxu0 %vm336_vm0, %v212_v53  ;;  %2587 = vmatprep.mubr.msk.f32.mxu1 %vm336_vm0, %v276_v54  ;;  %v307_v52 = vld [vmem:[%s2936_s21 + $0x398] sm:$0xff]  ;;  %v244_v53 = vld [vmem:[%s2936_s21 + $0x1a0] sm:$0xff] }
  0x45   : > { %v308_v54 = vld [vmem:[%s2936_s21 + $0x3a0] sm:$0xff] }
  0x47   : > { %2492 = vmatmul.mubr.msk.f32.gmra.mrb[20].mxu0 %vm336_vm0, %v213_v55  ;;  %2588 = vmatmul.mubr.msk.f32.gmra.mrb[20].mxu1 %vm336_vm0, %v277_v56  ;;  %v245_v55 = vld [vmem:[%s2936_s21 + $0x1a8] sm:$0xff] }
  0x48   : > { %2494 = vmatprep.mubr.msk.f32.mxu0 %vm336_vm0, %v214_v57  ;;  %2590 = vmatprep.mubr.msk.f32.mxu1 %vm336_vm0, %v278_v58  ;;  %v309_v56 = vld [vmem:[%s2936_s21 + $0x3a8] sm:$0xff]  ;;  %v246_v57 = vld [vmem:[%s2936_s21 + $0x1b0] sm:$0xff] }
  0x49   : > { %v310_v58 = vld [vmem:[%s2936_s21 + $0x3b0] sm:$0xff] }
  0x4b   : > { %2495 = vmatmul.mubr.msk.f32.gmra.mrb[22].mxu0 %vm336_vm0, %v215_v59  ;;  %2591 = vmatmul.mubr.msk.f32.gmra.mrb[22].mxu1 %vm336_vm0, %v279_v60  ;;  %v247_v59 = vld [vmem:[%s2936_s21 + $0x1b8] sm:$0xff] }
  0x4c   : > { %2497 = vmatprep.mubr.msk.f32.mxu0 %vm336_vm0, %v216_v61  ;;  %2593 = vmatprep.mubr.msk.f32.mxu1 %vm336_vm0, %v280_v62  ;;  %v311_v60 = vld [vmem:[%s2936_s21 + $0x3b8] sm:$0xff]  ;;  %v248_v61 = vld [vmem:[%s2936_s21 + $0x1c0] sm:$0xff] }
  0x4d   : > { %v312_v62 = vld [vmem:[%s2936_s21 + $0x3c0] sm:$0xff] }
  0x4f   : > { %2498 = vmatmul.mubr.msk.f32.gmra.mrb[24].mxu0 %vm336_vm0, %v217_v63  ;;  %2594 = vmatmul.mubr.msk.f32.gmra.mrb[24].mxu1 %vm336_vm0, %v281_v0  ;;  %v249_v63 = vld [vmem:[%s2936_s21 + $0x1c8] sm:$0xff] }
  0x50   : > { %2500 = vmatprep.mubr.msk.f32.mxu0 %vm336_vm0, %v218_v1  ;;  %2596 = vmatprep.mubr.msk.f32.mxu1 %vm336_vm0, %v282_v2  ;;  %v313_v0 = vld [vmem:[%s2936_s21 + $0x3c8] sm:$0xff]  ;;  %v250_v1 = vld [vmem:[%s2936_s21 + $0x1d0] sm:$0xff] }
  0x51   : > { %v314_v2 = vld [vmem:[%s2936_s21 + $0x3d0] sm:$0xff] }
  0x53   : > { %2501 = vmatmul.mubr.msk.f32.gmra.mrb[26].mxu0 %vm336_vm0, %v219_v3  ;;  %2597 = vmatmul.mubr.msk.f32.gmra.mrb[26].mxu1 %vm336_vm0, %v283_v4  ;;  %v251_v3 = vld [vmem:[%s2936_s21 + $0x1d8] sm:$0xff] }
  0x54   : > { %2503 = vmatprep.mubr.msk.f32.mxu0 %vm336_vm0, %v220_v5  ;;  %2599 = vmatprep.mubr.msk.f32.mxu1 %vm336_vm0, %v284_v6  ;;  %v315_v4 = vld [vmem:[%s2936_s21 + $0x3d8] sm:$0xff]  ;;  %v252_v5 = vld [vmem:[%s2936_s21 + $0x1e0] sm:$0xff] }
  0x55   : > { %v316_v6 = vld [vmem:[%s2936_s21 + $0x3e0] sm:$0xff] }
  0x57   : > { %2504 = vmatmul.mubr.msk.f32.gmra.mrb[28].mxu0 %vm336_vm0, %v221_v7  ;;  %2600 = vmatmul.mubr.msk.f32.gmra.mrb[28].mxu1 %vm336_vm0, %v285_v8  ;;  %v253_v7 = vld [vmem:[%s2936_s21 + $0x1e8] sm:$0xff] }
  0x58   : > { %2506 = vmatprep.mubr.msk.f32.mxu0 %vm336_vm0, %v222_v9  ;;  %2602 = vmatprep.mubr.msk.f32.mxu1 %vm336_vm0, %v286_v10  ;;  %v317_v8 = vld [vmem:[%s2936_s21 + $0x3e8] sm:$0xff]  ;;  %v254_v9 = vld [vmem:[%s2936_s21 + $0x1f0] sm:$0xff] }
  0x59   : > { %v318_v10 = vld [vmem:[%s2936_s21 + $0x3f0] sm:$0xff] }
  0x5b   : > { %2507 = vmatmul.mubr.msk.f32.gmra.mrb[30].mxu0 %vm336_vm0, %v223_v11  ;;  %2603 = vmatmul.mubr.msk.f32.gmra.mrb[30].mxu1 %vm336_vm0, %v287_v12  ;;  %v255_v11 = vld [vmem:[%s2936_s21 + $0x1f8] sm:$0xff] }
  0x5c   : > { %2509 = vmatprep.mubr.msk.f32.mxu0 %vm336_vm0, %v224_v13  ;;  %2605 = vmatprep.mubr.msk.f32.mxu1 %vm336_vm0, %v288_v14  ;;  %v319_v12 = vld [vmem:[%s2936_s21 + $0x3f8] sm:$0xff]  ;;  %v3201_v13 = vld [vmem:[%s3797_s2] ss:$0 sm:$0xff] }
  0x5f   : > { %2510 = vmatmul.mubr.msk.f32.gmra.mrb[32].mxu0 %vm336_vm0, %v225_v15  ;;  %2606 = vmatmul.mubr.msk.f32.gmra.mrb[32].mxu1 %vm336_vm0, %v289_v16 }
  0x60   : > { %2512 = vmatprep.mubr.msk.f32.mxu0 %vm336_vm0, %v226_v17  ;;  %2608 = vmatprep.mubr.msk.f32.mxu1 %vm336_vm0, %v290_v18 }
  0x63   : > { %2513 = vmatmul.mubr.msk.f32.gmra.mrb[34].mxu0 %vm336_vm0, %v227_v19  ;;  %2609 = vmatmul.mubr.msk.f32.gmra.mrb[34].mxu1 %vm336_vm0, %v291_v20 }
  0x64   : > { %2515 = vmatprep.mubr.msk.f32.mxu0 %vm336_vm0, %v228_v21  ;;  %2611 = vmatprep.mubr.msk.f32.mxu1 %vm336_vm0, %v292_v22 }
  0x67   : > { %2516 = vmatmul.mubr.msk.f32.gmra.mrb[36].mxu0 %vm336_vm0, %v229_v23  ;;  %2612 = vmatmul.mubr.msk.f32.gmra.mrb[36].mxu1 %vm336_vm0, %v293_v24 }
  0x68   : > { %2518 = vmatprep.mubr.msk.f32.mxu0 %vm336_vm0, %v230_v25  ;;  %2614 = vmatprep.mubr.msk.f32.mxu1 %vm336_vm0, %v294_v26 }
  0x6b   : > { %2519 = vmatmul.mubr.msk.f32.gmra.mrb[38].mxu0 %vm336_vm0, %v231_v27  ;;  %2615 = vmatmul.mubr.msk.f32.gmra.mrb[38].mxu1 %vm336_vm0, %v295_v28 }
  0x6c   : > { %2521 = vmatprep.mubr.msk.f32.mxu0 %vm336_vm0, %v232_v29  ;;  %2617 = vmatprep.mubr.msk.f32.mxu1 %vm336_vm0, %v296_v30 }
  0x6f   : > { %2522 = vmatmul.mubr.msk.f32.gmra.mrb[40].mxu0 %vm336_vm0, %v233_v31  ;;  %2618 = vmatmul.mubr.msk.f32.gmra.mrb[40].mxu1 %vm336_vm0, %v297_v32 }
  0x70   : > { %2524 = vmatprep.mubr.msk.f32.mxu0 %vm336_vm0, %v234_v33  ;;  %2620 = vmatprep.mubr.msk.f32.mxu1 %vm336_vm0, %v298_v34 }
  0x73   : > { %2525 = vmatmul.mubr.msk.f32.gmra.mrb[42].mxu0 %vm336_vm0, %v235_v35  ;;  %2621 = vmatmul.mubr.msk.f32.gmra.mrb[42].mxu1 %vm336_vm0, %v299_v36 }
  0x74   : > { %2527 = vmatprep.mubr.msk.f32.mxu0 %vm336_vm0, %v236_v37  ;;  %2623 = vmatprep.mubr.msk.f32.mxu1 %vm336_vm0, %v300_v38 }
  0x77   : > { %2528 = vmatmul.mubr.msk.f32.gmra.mrb[44].mxu0 %vm336_vm0, %v237_v39  ;;  %2624 = vmatmul.mubr.msk.f32.gmra.mrb[44].mxu1 %vm336_vm0, %v301_v40 }
  0x78   : > { %2530 = vmatprep.mubr.msk.f32.mxu0 %vm336_vm0, %v238_v41  ;;  %2626 = vmatprep.mubr.msk.f32.mxu1 %vm336_vm0, %v302_v42 }
  0x7b   : > { %2531 = vmatmul.mubr.msk.f32.gmra.mrb[46].mxu0 %vm336_vm0, %v239_v43  ;;  %2627 = vmatmul.mubr.msk.f32.gmra.mrb[46].mxu1 %vm336_vm0, %v303_v44 }
  0x7c   : > { %2533 = vmatprep.mubr.msk.f32.mxu0 %vm336_vm0, %v240_v45  ;;  %2629 = vmatprep.mubr.msk.f32.mxu1 %vm336_vm0, %v304_v46 }
  0x7f   : > { %2534 = vmatmul.mubr.msk.f32.gmra.mrb[48].mxu0 %vm336_vm0, %v241_v47  ;;  %2630 = vmatmul.mubr.msk.f32.gmra.mrb[48].mxu1 %vm336_vm0, %v305_v48 }
  0x80   : > { %2536 = vmatprep.mubr.msk.f32.mxu0 %vm336_vm0, %v242_v49  ;;  %2632 = vmatprep.mubr.msk.f32.mxu1 %vm336_vm0, %v306_v50 }
  0x83   : > { %2537 = vmatmul.mubr.msk.f32.gmra.mrb[50].mxu0 %vm336_vm0, %v243_v51  ;;  %2633 = vmatmul.mubr.msk.f32.gmra.mrb[50].mxu1 %vm336_vm0, %v307_v52 }
  0x84   : > { %2539 = vmatprep.mubr.msk.f32.mxu0 %vm336_vm0, %v244_v53  ;;  %2635 = vmatprep.mubr.msk.f32.mxu1 %vm336_vm0, %v308_v54 }
  0x87   : > { %2540 = vmatmul.mubr.msk.f32.gmra.mrb[52].mxu0 %vm336_vm0, %v245_v55  ;;  %2636 = vmatmul.mubr.msk.f32.gmra.mrb[52].mxu1 %vm336_vm0, %v309_v56 }
  0x88   : > { %2542 = vmatprep.mubr.msk.f32.mxu0 %vm336_vm0, %v246_v57  ;;  %2638 = vmatprep.mubr.msk.f32.mxu1 %vm336_vm0, %v310_v58 }
  0x8b   : > { %2543 = vmatmul.mubr.msk.f32.gmra.mrb[54].mxu0 %vm336_vm0, %v247_v59  ;;  %2639 = vmatmul.mubr.msk.f32.gmra.mrb[54].mxu1 %vm336_vm0, %v311_v60 }
  0x8c   : > { %2545 = vmatprep.mubr.msk.f32.mxu0 %vm336_vm0, %v248_v61  ;;  %2641 = vmatprep.mubr.msk.f32.mxu1 %vm336_vm0, %v312_v62 }
  0x8f   : > { %2546 = vmatmul.mubr.msk.f32.gmra.mrb[56].mxu0 %vm336_vm0, %v249_v63  ;;  %2642 = vmatmul.mubr.msk.f32.gmra.mrb[56].mxu1 %vm336_vm0, %v313_v0 }
  0x90   : > { %2548 = vmatprep.mubr.msk.f32.mxu0 %vm336_vm0, %v250_v1  ;;  %2644 = vmatprep.mubr.msk.f32.mxu1 %vm336_vm0, %v314_v2 }
  0x93   : > { %2549 = vmatmul.mubr.msk.f32.gmra.mrb[58].mxu0 %vm336_vm0, %v251_v3  ;;  %2645 = vmatmul.mubr.msk.f32.gmra.mrb[58].mxu1 %vm336_vm0, %v315_v4 }
  0x94   : > { %2551 = vmatprep.mubr.msk.f32.mxu0 %vm336_vm0, %v252_v5  ;;  %2647 = vmatprep.mubr.msk.f32.mxu1 %vm336_vm0, %v316_v6 }
  0x97   : > { %2552 = vmatmul.mubr.msk.f32.gmra.mrb[60].mxu0 %vm336_vm0, %v253_v7  ;;  %2648 = vmatmul.mubr.msk.f32.gmra.mrb[60].mxu1 %vm336_vm0, %v317_v8 }
  0x98   : > { %2554 = vmatprep.mubr.msk.f32.mxu0 %vm336_vm0, %v254_v9  ;;  %2650 = vmatprep.mubr.msk.f32.mxu1 %vm336_vm0, %v318_v10 }
  0x9b   : > { %2555 = vmatmul.mubr.msk.f32.gmra.mrb[62].mxu0 %vm336_vm0, %v255_v11  ;;  %2651 = vmatmul.mubr.msk.f32.gmra.mrb[62].mxu1 %vm336_vm0, %v319_v12 }
  0xf2   : > { %v2463_v14 = vpop.f32.mrb[0].mxu0  ;;  %v2559_v15 = vpop.f32.mrb[0].mxu1 }
  0xf3   : > { %v793_v16 = vadd.f32 %v2463_v14, %v3201_v13  ;;  %v1113_v17 = vadd.f32 %v2559_v15, %v3201_v13  ;;  %v787_v18 = vpop.f32.mrb[1].mxu0  ;;  %v1107_v19 = vpop.f32.mrb[1].mxu1 }
  0xf4   : > { %v788_v20 = vadd.f32 %v3201_v13, %v787_v18  ;;  %v1108_v21 = vadd.f32 %v3201_v13, %v1107_v19 }
  0xf5   : > { %v1427_v22 = vmax.f32 %v793_v16, 0.0  ;;  %v1491_v23 = vmax.f32 %v1113_v17, 0.0 }
  0xf6   : > { %v1426_v24 = vmax.f32 %v788_v20, 0.0  ;;  %v1490_v25 = vmax.f32 %v1108_v21, 0.0  ;;  %v2466_v26 = vpop.f32.mrb[2].mxu0  ;;  %v2562_v27 = vpop.f32.mrb[2].mxu1 }
  0xf7   : > { %1556 = vst.msk [vmem:[%s3207_s12 + $0x8] sm:$0xff] %vm1554_vm1, %v1427_v22  ;;  %1620 = vst.msk [vmem:[%s3207_s12 + $0x208] sm:$0xff] %vm1554_vm1, %v1491_v23  ;;  %v803_v28 = vadd.f32 %v2466_v26, %v3201_v13  ;;  %v1123_v29 = vadd.f32 %v2562_v27, %v3201_v13  ;;  %v797_v30 = vpop.f32.mrb[3].mxu0  ;;  %v1117_v31 = vpop.f32.mrb[3].mxu1 }
  0xf8   : > { %1555 = vst.msk [vmem:[%s3207_s12] sm:$0xff] %vm1554_vm1, %v1426_v24  ;;  %1619 = vst.msk [vmem:[%s3207_s12 + $0x200] sm:$0xff] %vm1554_vm1, %v1490_v25  ;;  %v798_v32 = vadd.f32 %v3201_v13, %v797_v30  ;;  %v1118_v33 = vadd.f32 %v3201_v13, %v1117_v31 }
  0xf9   : > { %v1429_v34 = vmax.f32 %v803_v28, 0.0  ;;  %v1493_v35 = vmax.f32 %v1123_v29, 0.0 }
  0xfa   : > { %v1428_v36 = vmax.f32 %v798_v32, 0.0  ;;  %v1492_v37 = vmax.f32 %v1118_v33, 0.0  ;;  %v2469_v38 = vpop.f32.mrb[4].mxu0  ;;  %v2565_v39 = vpop.f32.mrb[4].mxu1 }
  0xfb   : > { %1558 = vst.msk [vmem:[%s3207_s12 + $0x18] sm:$0xff] %vm1554_vm1, %v1429_v34  ;;  %1622 = vst.msk [vmem:[%s3207_s12 + $0x218] sm:$0xff] %vm1554_vm1, %v1493_v35  ;;  %v813_v40 = vadd.f32 %v2469_v38, %v3201_v13  ;;  %v1133_v41 = vadd.f32 %v2565_v39, %v3201_v13  ;;  %v807_v42 = vpop.f32.mrb[5].mxu0  ;;  %v1127_v43 = vpop.f32.mrb[5].mxu1 }
  0xfc   : > { %1557 = vst.msk [vmem:[%s3207_s12 + $0x10] sm:$0xff] %vm1554_vm1, %v1428_v36  ;;  %1621 = vst.msk [vmem:[%s3207_s12 + $0x210] sm:$0xff] %vm1554_vm1, %v1492_v37  ;;  %v808_v44 = vadd.f32 %v3201_v13, %v807_v42  ;;  %v1128_v45 = vadd.f32 %v3201_v13, %v1127_v43 }
  0xfd   : > { %v1431_v46 = vmax.f32 %v813_v40, 0.0  ;;  %v1495_v47 = vmax.f32 %v1133_v41, 0.0 }
  0xfe   : > { %v1430_v48 = vmax.f32 %v808_v44, 0.0  ;;  %v1494_v49 = vmax.f32 %v1128_v45, 0.0  ;;  %v2472_v50 = vpop.f32.mrb[6].mxu0  ;;  %v2568_v51 = vpop.f32.mrb[6].mxu1 }
  0xff   : > { %1560 = vst.msk [vmem:[%s3207_s12 + $0x28] sm:$0xff] %vm1554_vm1, %v1431_v46  ;;  %1624 = vst.msk [vmem:[%s3207_s12 + $0x228] sm:$0xff] %vm1554_vm1, %v1495_v47  ;;  %v823_v52 = vadd.f32 %v2472_v50, %v3201_v13  ;;  %v1143_v53 = vadd.f32 %v2568_v51, %v3201_v13  ;;  %v817_v54 = vpop.f32.mrb[7].mxu0  ;;  %v1137_v55 = vpop.f32.mrb[7].mxu1 }
 0x100   : > { %1559 = vst.msk [vmem:[%s3207_s12 + $0x20] sm:$0xff] %vm1554_vm1, %v1430_v48  ;;  %1623 = vst.msk [vmem:[%s3207_s12 + $0x220] sm:$0xff] %vm1554_vm1, %v1494_v49  ;;  %v818_v56 = vadd.f32 %v3201_v13, %v817_v54  ;;  %v1138_v57 = vadd.f32 %v3201_v13, %v1137_v55 }
 0x101   : > { %v1433_v58 = vmax.f32 %v823_v52, 0.0  ;;  %v1497_v59 = vmax.f32 %v1143_v53, 0.0 }
 0x102   : > { %v1432_v60 = vmax.f32 %v818_v56, 0.0  ;;  %v1496_v61 = vmax.f32 %v1138_v57, 0.0  ;;  %v2475_v62 = vpop.f32.mrb[8].mxu0  ;;  %v2571_v63 = vpop.f32.mrb[8].mxu1 }
 0x103   : > { %1562 = vst.msk [vmem:[%s3207_s12 + $0x38] sm:$0xff] %vm1554_vm1, %v1433_v58  ;;  %1626 = vst.msk [vmem:[%s3207_s12 + $0x238] sm:$0xff] %vm1554_vm1, %v1497_v59  ;;  %v833_v0 = vadd.f32 %v2475_v62, %v3201_v13  ;;  %v1153_v1 = vadd.f32 %v2571_v63, %v3201_v13  ;;  %v827_v2 = vpop.f32.mrb[9].mxu0  ;;  %v1147_v3 = vpop.f32.mrb[9].mxu1 }
 0x104   : > { %1561 = vst.msk [vmem:[%s3207_s12 + $0x30] sm:$0xff] %vm1554_vm1, %v1432_v60  ;;  %1625 = vst.msk [vmem:[%s3207_s12 + $0x230] sm:$0xff] %vm1554_vm1, %v1496_v61  ;;  %v828_v4 = vadd.f32 %v3201_v13, %v827_v2  ;;  %v1148_v5 = vadd.f32 %v3201_v13, %v1147_v3 }
 0x105   : > { %v1435_v6 = vmax.f32 %v833_v0, 0.0  ;;  %v1499_v7 = vmax.f32 %v1153_v1, 0.0 }
 0x106   : > { %v1434_v8 = vmax.f32 %v828_v4, 0.0  ;;  %v1498_v9 = vmax.f32 %v1148_v5, 0.0  ;;  %v2478_v10 = vpop.f32.mrb[10].mxu0  ;;  %v2574_v11 = vpop.f32.mrb[10].mxu1 }
 0x107   : > { %1564 = vst.msk [vmem:[%s3207_s12 + $0x48] sm:$0xff] %vm1554_vm1, %v1435_v6  ;;  %1628 = vst.msk [vmem:[%s3207_s12 + $0x248] sm:$0xff] %vm1554_vm1, %v1499_v7  ;;  %v843_v12 = vadd.f32 %v2478_v10, %v3201_v13  ;;  %v1163_v14 = vadd.f32 %v2574_v11, %v3201_v13  ;;  %v837_v15 = vpop.f32.mrb[11].mxu0  ;;  %v1157_v16 = vpop.f32.mrb[11].mxu1 }
 0x108   : > { %1563 = vst.msk [vmem:[%s3207_s12 + $0x40] sm:$0xff] %vm1554_vm1, %v1434_v8  ;;  %1627 = vst.msk [vmem:[%s3207_s12 + $0x240] sm:$0xff] %vm1554_vm1, %v1498_v9  ;;  %v838_v17 = vadd.f32 %v3201_v13, %v837_v15  ;;  %v1158_v18 = vadd.f32 %v3201_v13, %v1157_v16 }
 0x109   : > { %v1437_v19 = vmax.f32 %v843_v12, 0.0  ;;  %v1501_v20 = vmax.f32 %v1163_v14, 0.0 }
 0x10a   : > { %v1436_v21 = vmax.f32 %v838_v17, 0.0  ;;  %v1500_v22 = vmax.f32 %v1158_v18, 0.0  ;;  %v2481_v23 = vpop.f32.mrb[12].mxu0  ;;  %v2577_v24 = vpop.f32.mrb[12].mxu1 }
 0x10b   : > { %1566 = vst.msk [vmem:[%s3207_s12 + $0x58] sm:$0xff] %vm1554_vm1, %v1437_v19  ;;  %1630 = vst.msk [vmem:[%s3207_s12 + $0x258] sm:$0xff] %vm1554_vm1, %v1501_v20  ;;  %v853_v25 = vadd.f32 %v2481_v23, %v3201_v13  ;;  %v1173_v26 = vadd.f32 %v2577_v24, %v3201_v13  ;;  %v847_v27 = vpop.f32.mrb[13].mxu0  ;;  %v1167_v28 = vpop.f32.mrb[13].mxu1 }
 0x10c   : > { %1565 = vst.msk [vmem:[%s3207_s12 + $0x50] sm:$0xff] %vm1554_vm1, %v1436_v21  ;;  %1629 = vst.msk [vmem:[%s3207_s12 + $0x250] sm:$0xff] %vm1554_vm1, %v1500_v22  ;;  %v848_v29 = vadd.f32 %v3201_v13, %v847_v27  ;;  %v1168_v30 = vadd.f32 %v3201_v13, %v1167_v28 }
 0x10d   : > { %v1439_v31 = vmax.f32 %v853_v25, 0.0  ;;  %v1503_v32 = vmax.f32 %v1173_v26, 0.0 }
 0x10e   : > { %v1438_v33 = vmax.f32 %v848_v29, 0.0  ;;  %v1502_v34 = vmax.f32 %v1168_v30, 0.0  ;;  %v2484_v35 = vpop.f32.mrb[14].mxu0  ;;  %v2580_v36 = vpop.f32.mrb[14].mxu1 }
 0x10f   : > { %1568 = vst.msk [vmem:[%s3207_s12 + $0x68] sm:$0xff] %vm1554_vm1, %v1439_v31  ;;  %1632 = vst.msk [vmem:[%s3207_s12 + $0x268] sm:$0xff] %vm1554_vm1, %v1503_v32  ;;  %v863_v37 = vadd.f32 %v2484_v35, %v3201_v13  ;;  %v1183_v38 = vadd.f32 %v2580_v36, %v3201_v13  ;;  %v857_v39 = vpop.f32.mrb[15].mxu0  ;;  %v1177_v40 = vpop.f32.mrb[15].mxu1 }
 0x110   : > { %1567 = vst.msk [vmem:[%s3207_s12 + $0x60] sm:$0xff] %vm1554_vm1, %v1438_v33  ;;  %1631 = vst.msk [vmem:[%s3207_s12 + $0x260] sm:$0xff] %vm1554_vm1, %v1502_v34  ;;  %v858_v41 = vadd.f32 %v3201_v13, %v857_v39  ;;  %v1178_v42 = vadd.f32 %v3201_v13, %v1177_v40 }
 0x111   : > { %v1441_v43 = vmax.f32 %v863_v37, 0.0  ;;  %v1505_v44 = vmax.f32 %v1183_v38, 0.0 }
 0x112   : > { %v1440_v45 = vmax.f32 %v858_v41, 0.0  ;;  %v1504_v46 = vmax.f32 %v1178_v42, 0.0  ;;  %v2487_v47 = vpop.f32.mrb[16].mxu0  ;;  %v2583_v48 = vpop.f32.mrb[16].mxu1 }
 0x113   : > { %1570 = vst.msk [vmem:[%s3207_s12 + $0x78] sm:$0xff] %vm1554_vm1, %v1441_v43  ;;  %1634 = vst.msk [vmem:[%s3207_s12 + $0x278] sm:$0xff] %vm1554_vm1, %v1505_v44  ;;  %v873_v49 = vadd.f32 %v2487_v47, %v3201_v13  ;;  %v1193_v50 = vadd.f32 %v2583_v48, %v3201_v13  ;;  %v867_v51 = vpop.f32.mrb[17].mxu0  ;;  %v1187_v52 = vpop.f32.mrb[17].mxu1 }
 0x114   : > { %1569 = vst.msk [vmem:[%s3207_s12 + $0x70] sm:$0xff] %vm1554_vm1, %v1440_v45  ;;  %1633 = vst.msk [vmem:[%s3207_s12 + $0x270] sm:$0xff] %vm1554_vm1, %v1504_v46  ;;  %v868_v53 = vadd.f32 %v3201_v13, %v867_v51  ;;  %v1188_v54 = vadd.f32 %v3201_v13, %v1187_v52 }
 0x115   : > { %v1443_v55 = vmax.f32 %v873_v49, 0.0  ;;  %v1507_v56 = vmax.f32 %v1193_v50, 0.0 }
 0x116   : > { %v1442_v57 = vmax.f32 %v868_v53, 0.0  ;;  %v1506_v58 = vmax.f32 %v1188_v54, 0.0  ;;  %v2490_v59 = vpop.f32.mrb[18].mxu0  ;;  %v2586_v60 = vpop.f32.mrb[18].mxu1 }
 0x117   : > { %1572 = vst.msk [vmem:[%s3207_s12 + $0x88] sm:$0xff] %vm1554_vm1, %v1443_v55  ;;  %1636 = vst.msk [vmem:[%s3207_s12 + $0x288] sm:$0xff] %vm1554_vm1, %v1507_v56  ;;  %v883_v61 = vadd.f32 %v2490_v59, %v3201_v13  ;;  %v1203_v62 = vadd.f32 %v2586_v60, %v3201_v13  ;;  %v877_v63 = vpop.f32.mrb[19].mxu0  ;;  %v1197_v0 = vpop.f32.mrb[19].mxu1 }
 0x118   : > { %1571 = vst.msk [vmem:[%s3207_s12 + $0x80] sm:$0xff] %vm1554_vm1, %v1442_v57  ;;  %1635 = vst.msk [vmem:[%s3207_s12 + $0x280] sm:$0xff] %vm1554_vm1, %v1506_v58  ;;  %v878_v1 = vadd.f32 %v3201_v13, %v877_v63  ;;  %v1198_v2 = vadd.f32 %v3201_v13, %v1197_v0 }
 0x119   : > { %v1445_v3 = vmax.f32 %v883_v61, 0.0  ;;  %v1509_v4 = vmax.f32 %v1203_v62, 0.0 }
 0x11a   : > { %v1444_v5 = vmax.f32 %v878_v1, 0.0  ;;  %v1508_v6 = vmax.f32 %v1198_v2, 0.0  ;;  %v2493_v7 = vpop.f32.mrb[20].mxu0  ;;  %v2589_v8 = vpop.f32.mrb[20].mxu1 }
 0x11b   : > { %1574 = vst.msk [vmem:[%s3207_s12 + $0x98] sm:$0xff] %vm1554_vm1, %v1445_v3  ;;  %1638 = vst.msk [vmem:[%s3207_s12 + $0x298] sm:$0xff] %vm1554_vm1, %v1509_v4  ;;  %v893_v9 = vadd.f32 %v2493_v7, %v3201_v13  ;;  %v1213_v10 = vadd.f32 %v2589_v8, %v3201_v13  ;;  %v887_v11 = vpop.f32.mrb[21].mxu0  ;;  %v1207_v12 = vpop.f32.mrb[21].mxu1 }
 0x11c   : > { %1573 = vst.msk [vmem:[%s3207_s12 + $0x90] sm:$0xff] %vm1554_vm1, %v1444_v5  ;;  %1637 = vst.msk [vmem:[%s3207_s12 + $0x290] sm:$0xff] %vm1554_vm1, %v1508_v6  ;;  %v888_v14 = vadd.f32 %v3201_v13, %v887_v11  ;;  %v1208_v15 = vadd.f32 %v3201_v13, %v1207_v12 }
 0x11d   : > { %v1447_v16 = vmax.f32 %v893_v9, 0.0  ;;  %v1511_v17 = vmax.f32 %v1213_v10, 0.0 }
 0x11e   : > { %v1446_v18 = vmax.f32 %v888_v14, 0.0  ;;  %v1510_v19 = vmax.f32 %v1208_v15, 0.0  ;;  %v2496_v20 = vpop.f32.mrb[22].mxu0  ;;  %v2592_v21 = vpop.f32.mrb[22].mxu1 }
 0x11f   : > { %1576 = vst.msk [vmem:[%s3207_s12 + $0xa8] sm:$0xff] %vm1554_vm1, %v1447_v16  ;;  %1640 = vst.msk [vmem:[%s3207_s12 + $0x2a8] sm:$0xff] %vm1554_vm1, %v1511_v17  ;;  %v903_v22 = vadd.f32 %v2496_v20, %v3201_v13  ;;  %v1223_v23 = vadd.f32 %v2592_v21, %v3201_v13  ;;  %v897_v24 = vpop.f32.mrb[23].mxu0  ;;  %v1217_v25 = vpop.f32.mrb[23].mxu1 }
 0x120   : > { %1575 = vst.msk [vmem:[%s3207_s12 + $0xa0] sm:$0xff] %vm1554_vm1, %v1446_v18  ;;  %1639 = vst.msk [vmem:[%s3207_s12 + $0x2a0] sm:$0xff] %vm1554_vm1, %v1510_v19  ;;  %v898_v26 = vadd.f32 %v3201_v13, %v897_v24  ;;  %v1218_v27 = vadd.f32 %v3201_v13, %v1217_v25 }
 0x121   : > { %v1449_v28 = vmax.f32 %v903_v22, 0.0  ;;  %v1513_v29 = vmax.f32 %v1223_v23, 0.0 }
 0x122   : > { %v1448_v30 = vmax.f32 %v898_v26, 0.0  ;;  %v1512_v31 = vmax.f32 %v1218_v27, 0.0  ;;  %v2499_v32 = vpop.f32.mrb[24].mxu0  ;;  %v2595_v33 = vpop.f32.mrb[24].mxu1 }
 0x123   : > { %1578 = vst.msk [vmem:[%s3207_s12 + $0xb8] sm:$0xff] %vm1554_vm1, %v1449_v28  ;;  %1642 = vst.msk [vmem:[%s3207_s12 + $0x2b8] sm:$0xff] %vm1554_vm1, %v1513_v29  ;;  %v913_v34 = vadd.f32 %v2499_v32, %v3201_v13  ;;  %v1233_v35 = vadd.f32 %v2595_v33, %v3201_v13  ;;  %v907_v36 = vpop.f32.mrb[25].mxu0  ;;  %v1227_v37 = vpop.f32.mrb[25].mxu1 }
 0x124   : > { %1577 = vst.msk [vmem:[%s3207_s12 + $0xb0] sm:$0xff] %vm1554_vm1, %v1448_v30  ;;  %1641 = vst.msk [vmem:[%s3207_s12 + $0x2b0] sm:$0xff] %vm1554_vm1, %v1512_v31  ;;  %v908_v38 = vadd.f32 %v3201_v13, %v907_v36  ;;  %v1228_v39 = vadd.f32 %v3201_v13, %v1227_v37 }
 0x125   : > { %v1451_v40 = vmax.f32 %v913_v34, 0.0  ;;  %v1515_v41 = vmax.f32 %v1233_v35, 0.0 }
 0x126   : > { %v1450_v42 = vmax.f32 %v908_v38, 0.0  ;;  %v1514_v43 = vmax.f32 %v1228_v39, 0.0  ;;  %v2502_v44 = vpop.f32.mrb[26].mxu0  ;;  %v2598_v45 = vpop.f32.mrb[26].mxu1 }
 0x127   : > { %1580 = vst.msk [vmem:[%s3207_s12 + $0xc8] sm:$0xff] %vm1554_vm1, %v1451_v40  ;;  %1644 = vst.msk [vmem:[%s3207_s12 + $0x2c8] sm:$0xff] %vm1554_vm1, %v1515_v41  ;;  %v923_v46 = vadd.f32 %v2502_v44, %v3201_v13  ;;  %v1243_v47 = vadd.f32 %v2598_v45, %v3201_v13  ;;  %v917_v48 = vpop.f32.mrb[27].mxu0  ;;  %v1237_v49 = vpop.f32.mrb[27].mxu1 }
 0x128   : > { %1579 = vst.msk [vmem:[%s3207_s12 + $0xc0] sm:$0xff] %vm1554_vm1, %v1450_v42  ;;  %1643 = vst.msk [vmem:[%s3207_s12 + $0x2c0] sm:$0xff] %vm1554_vm1, %v1514_v43  ;;  %v918_v50 = vadd.f32 %v3201_v13, %v917_v48  ;;  %v1238_v51 = vadd.f32 %v3201_v13, %v1237_v49 }
 0x129   : > { %v1453_v52 = vmax.f32 %v923_v46, 0.0  ;;  %v1517_v53 = vmax.f32 %v1243_v47, 0.0 }
 0x12a   : > { %v1452_v54 = vmax.f32 %v918_v50, 0.0  ;;  %v1516_v55 = vmax.f32 %v1238_v51, 0.0  ;;  %v2505_v56 = vpop.f32.mrb[28].mxu0  ;;  %v2601_v57 = vpop.f32.mrb[28].mxu1 }
 0x12b   : > { %1582 = vst.msk [vmem:[%s3207_s12 + $0xd8] sm:$0xff] %vm1554_vm1, %v1453_v52  ;;  %1646 = vst.msk [vmem:[%s3207_s12 + $0x2d8] sm:$0xff] %vm1554_vm1, %v1517_v53  ;;  %v933_v58 = vadd.f32 %v2505_v56, %v3201_v13  ;;  %v1253_v59 = vadd.f32 %v2601_v57, %v3201_v13  ;;  %v927_v60 = vpop.f32.mrb[29].mxu0  ;;  %v1247_v61 = vpop.f32.mrb[29].mxu1 }
 0x12c   : > { %1581 = vst.msk [vmem:[%s3207_s12 + $0xd0] sm:$0xff] %vm1554_vm1, %v1452_v54  ;;  %1645 = vst.msk [vmem:[%s3207_s12 + $0x2d0] sm:$0xff] %vm1554_vm1, %v1516_v55  ;;  %v928_v62 = vadd.f32 %v3201_v13, %v927_v60  ;;  %v1248_v63 = vadd.f32 %v3201_v13, %v1247_v61 }
 0x12d   : > { %v1455_v0 = vmax.f32 %v933_v58, 0.0  ;;  %v1519_v1 = vmax.f32 %v1253_v59, 0.0 }
 0x12e   : > { %v1454_v2 = vmax.f32 %v928_v62, 0.0  ;;  %v1518_v3 = vmax.f32 %v1248_v63, 0.0  ;;  %v2508_v4 = vpop.f32.mrb[30].mxu0  ;;  %v2604_v5 = vpop.f32.mrb[30].mxu1 }
 0x12f   : > { %1584 = vst.msk [vmem:[%s3207_s12 + $0xe8] sm:$0xff] %vm1554_vm1, %v1455_v0  ;;  %1648 = vst.msk [vmem:[%s3207_s12 + $0x2e8] sm:$0xff] %vm1554_vm1, %v1519_v1  ;;  %v943_v6 = vadd.f32 %v2508_v4, %v3201_v13  ;;  %v1263_v7 = vadd.f32 %v2604_v5, %v3201_v13  ;;  %v937_v8 = vpop.f32.mrb[31].mxu0  ;;  %v1257_v9 = vpop.f32.mrb[31].mxu1 }
 0x130   : > { %1583 = vst.msk [vmem:[%s3207_s12 + $0xe0] sm:$0xff] %vm1554_vm1, %v1454_v2  ;;  %1647 = vst.msk [vmem:[%s3207_s12 + $0x2e0] sm:$0xff] %vm1554_vm1, %v1518_v3  ;;  %v938_v10 = vadd.f32 %v3201_v13, %v937_v8  ;;  %v1258_v11 = vadd.f32 %v3201_v13, %v1257_v9 }
 0x131   : > { %v1457_v12 = vmax.f32 %v943_v6, 0.0  ;;  %v1521_v14 = vmax.f32 %v1263_v7, 0.0 }
 0x132   : > { %v1456_v15 = vmax.f32 %v938_v10, 0.0  ;;  %v1520_v16 = vmax.f32 %v1258_v11, 0.0  ;;  %v2511_v17 = vpop.f32.mrb[32].mxu0  ;;  %v2607_v18 = vpop.f32.mrb[32].mxu1 }
 0x133   : > { %1586 = vst.msk [vmem:[%s3207_s12 + $0xf8] sm:$0xff] %vm1554_vm1, %v1457_v12  ;;  %1650 = vst.msk [vmem:[%s3207_s12 + $0x2f8] sm:$0xff] %vm1554_vm1, %v1521_v14  ;;  %v953_v19 = vadd.f32 %v2511_v17, %v3201_v13  ;;  %v1273_v20 = vadd.f32 %v2607_v18, %v3201_v13  ;;  %v947_v21 = vpop.f32.mrb[33].mxu0  ;;  %v1267_v22 = vpop.f32.mrb[33].mxu1 }
 0x134   : > { %1585 = vst.msk [vmem:[%s3207_s12 + $0xf0] sm:$0xff] %vm1554_vm1, %v1456_v15  ;;  %1649 = vst.msk [vmem:[%s3207_s12 + $0x2f0] sm:$0xff] %vm1554_vm1, %v1520_v16  ;;  %v948_v23 = vadd.f32 %v3201_v13, %v947_v21  ;;  %v1268_v24 = vadd.f32 %v3201_v13, %v1267_v22 }
 0x135   : > { %v1459_v25 = vmax.f32 %v953_v19, 0.0  ;;  %v1523_v26 = vmax.f32 %v1273_v20, 0.0 }
 0x136   : > { %v1458_v27 = vmax.f32 %v948_v23, 0.0  ;;  %v1522_v28 = vmax.f32 %v1268_v24, 0.0  ;;  %v2514_v29 = vpop.f32.mrb[34].mxu0  ;;  %v2610_v30 = vpop.f32.mrb[34].mxu1 }
 0x137   : > { %1588 = vst.msk [vmem:[%s3207_s12 + $0x108] sm:$0xff] %vm1554_vm1, %v1459_v25  ;;  %1652 = vst.msk [vmem:[%s3207_s12 + $0x308] sm:$0xff] %vm1554_vm1, %v1523_v26  ;;  %v963_v31 = vadd.f32 %v2514_v29, %v3201_v13  ;;  %v1283_v32 = vadd.f32 %v2610_v30, %v3201_v13  ;;  %v957_v33 = vpop.f32.mrb[35].mxu0  ;;  %v1277_v34 = vpop.f32.mrb[35].mxu1 }
 0x138   : > { %1587 = vst.msk [vmem:[%s3207_s12 + $0x100] sm:$0xff] %vm1554_vm1, %v1458_v27  ;;  %1651 = vst.msk [vmem:[%s3207_s12 + $0x300] sm:$0xff] %vm1554_vm1, %v1522_v28  ;;  %v958_v35 = vadd.f32 %v3201_v13, %v957_v33  ;;  %v1278_v36 = vadd.f32 %v3201_v13, %v1277_v34 }
 0x139   : > { %v1461_v37 = vmax.f32 %v963_v31, 0.0  ;;  %v1525_v38 = vmax.f32 %v1283_v32, 0.0 }
 0x13a   : > { %v1460_v39 = vmax.f32 %v958_v35, 0.0  ;;  %v1524_v40 = vmax.f32 %v1278_v36, 0.0  ;;  %v2517_v41 = vpop.f32.mrb[36].mxu0  ;;  %v2613_v42 = vpop.f32.mrb[36].mxu1 }
 0x13b   : > { %1590 = vst.msk [vmem:[%s3207_s12 + $0x118] sm:$0xff] %vm1554_vm1, %v1461_v37  ;;  %1654 = vst.msk [vmem:[%s3207_s12 + $0x318] sm:$0xff] %vm1554_vm1, %v1525_v38  ;;  %v973_v43 = vadd.f32 %v2517_v41, %v3201_v13  ;;  %v1293_v44 = vadd.f32 %v2613_v42, %v3201_v13  ;;  %v967_v45 = vpop.f32.mrb[37].mxu0  ;;  %v1287_v46 = vpop.f32.mrb[37].mxu1 }
 0x13c   : > { %1589 = vst.msk [vmem:[%s3207_s12 + $0x110] sm:$0xff] %vm1554_vm1, %v1460_v39  ;;  %1653 = vst.msk [vmem:[%s3207_s12 + $0x310] sm:$0xff] %vm1554_vm1, %v1524_v40  ;;  %v968_v47 = vadd.f32 %v3201_v13, %v967_v45  ;;  %v1288_v48 = vadd.f32 %v3201_v13, %v1287_v46 }
 0x13d   : > { %v1463_v49 = vmax.f32 %v973_v43, 0.0  ;;  %v1527_v50 = vmax.f32 %v1293_v44, 0.0 }
 0x13e   : > { %v1462_v51 = vmax.f32 %v968_v47, 0.0  ;;  %v1526_v52 = vmax.f32 %v1288_v48, 0.0  ;;  %v2520_v53 = vpop.f32.mrb[38].mxu0  ;;  %v2616_v54 = vpop.f32.mrb[38].mxu1 }
 0x13f   : > { %1592 = vst.msk [vmem:[%s3207_s12 + $0x128] sm:$0xff] %vm1554_vm1, %v1463_v49  ;;  %1656 = vst.msk [vmem:[%s3207_s12 + $0x328] sm:$0xff] %vm1554_vm1, %v1527_v50  ;;  %v983_v55 = vadd.f32 %v2520_v53, %v3201_v13  ;;  %v1303_v56 = vadd.f32 %v2616_v54, %v3201_v13  ;;  %v977_v57 = vpop.f32.mrb[39].mxu0  ;;  %v1297_v58 = vpop.f32.mrb[39].mxu1 }
 0x140   : > { %1591 = vst.msk [vmem:[%s3207_s12 + $0x120] sm:$0xff] %vm1554_vm1, %v1462_v51  ;;  %1655 = vst.msk [vmem:[%s3207_s12 + $0x320] sm:$0xff] %vm1554_vm1, %v1526_v52  ;;  %v978_v59 = vadd.f32 %v3201_v13, %v977_v57  ;;  %v1298_v60 = vadd.f32 %v3201_v13, %v1297_v58 }
 0x141   : > { %v1465_v61 = vmax.f32 %v983_v55, 0.0  ;;  %v1529_v62 = vmax.f32 %v1303_v56, 0.0 }
 0x142   : > { %v1464_v63 = vmax.f32 %v978_v59, 0.0  ;;  %v1528_v0 = vmax.f32 %v1298_v60, 0.0  ;;  %v2523_v1 = vpop.f32.mrb[40].mxu0  ;;  %v2619_v2 = vpop.f32.mrb[40].mxu1 }
 0x143   : > { %1594 = vst.msk [vmem:[%s3207_s12 + $0x138] sm:$0xff] %vm1554_vm1, %v1465_v61  ;;  %1658 = vst.msk [vmem:[%s3207_s12 + $0x338] sm:$0xff] %vm1554_vm1, %v1529_v62  ;;  %v993_v3 = vadd.f32 %v2523_v1, %v3201_v13  ;;  %v1313_v4 = vadd.f32 %v2619_v2, %v3201_v13  ;;  %v987_v5 = vpop.f32.mrb[41].mxu0  ;;  %v1307_v6 = vpop.f32.mrb[41].mxu1 }
 0x144   : > { %1593 = vst.msk [vmem:[%s3207_s12 + $0x130] sm:$0xff] %vm1554_vm1, %v1464_v63  ;;  %1657 = vst.msk [vmem:[%s3207_s12 + $0x330] sm:$0xff] %vm1554_vm1, %v1528_v0  ;;  %v988_v7 = vadd.f32 %v3201_v13, %v987_v5  ;;  %v1308_v8 = vadd.f32 %v3201_v13, %v1307_v6 }
 0x145   : > { %v1467_v9 = vmax.f32 %v993_v3, 0.0  ;;  %v1531_v10 = vmax.f32 %v1313_v4, 0.0 }
 0x146   : > { %v1466_v11 = vmax.f32 %v988_v7, 0.0  ;;  %v1530_v12 = vmax.f32 %v1308_v8, 0.0  ;;  %v2526_v14 = vpop.f32.mrb[42].mxu0  ;;  %v2622_v15 = vpop.f32.mrb[42].mxu1 }
 0x147   : > { %1596 = vst.msk [vmem:[%s3207_s12 + $0x148] sm:$0xff] %vm1554_vm1, %v1467_v9  ;;  %1660 = vst.msk [vmem:[%s3207_s12 + $0x348] sm:$0xff] %vm1554_vm1, %v1531_v10  ;;  %v1003_v16 = vadd.f32 %v2526_v14, %v3201_v13  ;;  %v1323_v17 = vadd.f32 %v2622_v15, %v3201_v13  ;;  %v997_v18 = vpop.f32.mrb[43].mxu0  ;;  %v1317_v19 = vpop.f32.mrb[43].mxu1 }
 0x148   : > { %1595 = vst.msk [vmem:[%s3207_s12 + $0x140] sm:$0xff] %vm1554_vm1, %v1466_v11  ;;  %1659 = vst.msk [vmem:[%s3207_s12 + $0x340] sm:$0xff] %vm1554_vm1, %v1530_v12  ;;  %v998_v20 = vadd.f32 %v3201_v13, %v997_v18  ;;  %v1318_v21 = vadd.f32 %v3201_v13, %v1317_v19 }
 0x149   : > { %v1469_v22 = vmax.f32 %v1003_v16, 0.0  ;;  %v1533_v23 = vmax.f32 %v1323_v17, 0.0 }
 0x14a   : > { %v1468_v24 = vmax.f32 %v998_v20, 0.0  ;;  %v1532_v25 = vmax.f32 %v1318_v21, 0.0  ;;  %v2529_v26 = vpop.f32.mrb[44].mxu0  ;;  %v2625_v27 = vpop.f32.mrb[44].mxu1 }
 0x14b   : > { %1598 = vst.msk [vmem:[%s3207_s12 + $0x158] sm:$0xff] %vm1554_vm1, %v1469_v22  ;;  %1662 = vst.msk [vmem:[%s3207_s12 + $0x358] sm:$0xff] %vm1554_vm1, %v1533_v23  ;;  %v1013_v28 = vadd.f32 %v2529_v26, %v3201_v13  ;;  %v1333_v29 = vadd.f32 %v2625_v27, %v3201_v13  ;;  %v1007_v30 = vpop.f32.mrb[45].mxu0  ;;  %v1327_v31 = vpop.f32.mrb[45].mxu1 }
 0x14c   : > { %1597 = vst.msk [vmem:[%s3207_s12 + $0x150] sm:$0xff] %vm1554_vm1, %v1468_v24  ;;  %1661 = vst.msk [vmem:[%s3207_s12 + $0x350] sm:$0xff] %vm1554_vm1, %v1532_v25  ;;  %v1008_v32 = vadd.f32 %v3201_v13, %v1007_v30  ;;  %v1328_v33 = vadd.f32 %v3201_v13, %v1327_v31 }
 0x14d   : > { %v1471_v34 = vmax.f32 %v1013_v28, 0.0  ;;  %v1535_v35 = vmax.f32 %v1333_v29, 0.0 }
 0x14e   : > { %v1470_v36 = vmax.f32 %v1008_v32, 0.0  ;;  %v1534_v37 = vmax.f32 %v1328_v33, 0.0  ;;  %v2532_v38 = vpop.f32.mrb[46].mxu0  ;;  %v2628_v39 = vpop.f32.mrb[46].mxu1 }
 0x14f   : > { %1600 = vst.msk [vmem:[%s3207_s12 + $0x168] sm:$0xff] %vm1554_vm1, %v1471_v34  ;;  %1664 = vst.msk [vmem:[%s3207_s12 + $0x368] sm:$0xff] %vm1554_vm1, %v1535_v35  ;;  %v1023_v40 = vadd.f32 %v2532_v38, %v3201_v13  ;;  %v1343_v41 = vadd.f32 %v2628_v39, %v3201_v13  ;;  %v1017_v42 = vpop.f32.mrb[47].mxu0  ;;  %v1337_v43 = vpop.f32.mrb[47].mxu1 }
 0x150   : > { %1599 = vst.msk [vmem:[%s3207_s12 + $0x160] sm:$0xff] %vm1554_vm1, %v1470_v36  ;;  %1663 = vst.msk [vmem:[%s3207_s12 + $0x360] sm:$0xff] %vm1554_vm1, %v1534_v37  ;;  %v1018_v44 = vadd.f32 %v3201_v13, %v1017_v42  ;;  %v1338_v45 = vadd.f32 %v3201_v13, %v1337_v43 }
 0x151   : > { %v1473_v46 = vmax.f32 %v1023_v40, 0.0  ;;  %v1537_v47 = vmax.f32 %v1343_v41, 0.0 }
 0x152   : > { %v1472_v48 = vmax.f32 %v1018_v44, 0.0  ;;  %v1536_v49 = vmax.f32 %v1338_v45, 0.0  ;;  %v2535_v50 = vpop.f32.mrb[48].mxu0  ;;  %v2631_v51 = vpop.f32.mrb[48].mxu1 }
 0x153   : > { %1602 = vst.msk [vmem:[%s3207_s12 + $0x178] sm:$0xff] %vm1554_vm1, %v1473_v46  ;;  %1666 = vst.msk [vmem:[%s3207_s12 + $0x378] sm:$0xff] %vm1554_vm1, %v1537_v47  ;;  %v1033_v52 = vadd.f32 %v2535_v50, %v3201_v13  ;;  %v1353_v53 = vadd.f32 %v2631_v51, %v3201_v13  ;;  %v1027_v54 = vpop.f32.mrb[49].mxu0  ;;  %v1347_v55 = vpop.f32.mrb[49].mxu1 }
 0x154   : > { %1601 = vst.msk [vmem:[%s3207_s12 + $0x170] sm:$0xff] %vm1554_vm1, %v1472_v48  ;;  %1665 = vst.msk [vmem:[%s3207_s12 + $0x370] sm:$0xff] %vm1554_vm1, %v1536_v49  ;;  %v1028_v56 = vadd.f32 %v3201_v13, %v1027_v54  ;;  %v1348_v57 = vadd.f32 %v3201_v13, %v1347_v55 }
 0x155   : > { %v1475_v58 = vmax.f32 %v1033_v52, 0.0  ;;  %v1539_v59 = vmax.f32 %v1353_v53, 0.0 }
 0x156   : > { %v1474_v60 = vmax.f32 %v1028_v56, 0.0  ;;  %v1538_v61 = vmax.f32 %v1348_v57, 0.0  ;;  %v2538_v62 = vpop.f32.mrb[50].mxu0  ;;  %v2634_v63 = vpop.f32.mrb[50].mxu1 }
 0x157   : > { %1604 = vst.msk [vmem:[%s3207_s12 + $0x188] sm:$0xff] %vm1554_vm1, %v1475_v58  ;;  %1668 = vst.msk [vmem:[%s3207_s12 + $0x388] sm:$0xff] %vm1554_vm1, %v1539_v59  ;;  %v1043_v0 = vadd.f32 %v2538_v62, %v3201_v13  ;;  %v1363_v1 = vadd.f32 %v2634_v63, %v3201_v13  ;;  %v1037_v2 = vpop.f32.mrb[51].mxu0  ;;  %v1357_v3 = vpop.f32.mrb[51].mxu1 }
 0x158   : > { %1603 = vst.msk [vmem:[%s3207_s12 + $0x180] sm:$0xff] %vm1554_vm1, %v1474_v60  ;;  %1667 = vst.msk [vmem:[%s3207_s12 + $0x380] sm:$0xff] %vm1554_vm1, %v1538_v61  ;;  %v1038_v4 = vadd.f32 %v3201_v13, %v1037_v2  ;;  %v1358_v5 = vadd.f32 %v3201_v13, %v1357_v3 }
 0x159   : > { %v1477_v6 = vmax.f32 %v1043_v0, 0.0  ;;  %v1541_v7 = vmax.f32 %v1363_v1, 0.0 }
 0x15a   : > { %v1476_v8 = vmax.f32 %v1038_v4, 0.0  ;;  %v1540_v9 = vmax.f32 %v1358_v5, 0.0  ;;  %v2541_v10 = vpop.f32.mrb[52].mxu0  ;;  %v2637_v11 = vpop.f32.mrb[52].mxu1 }
 0x15b   : > { %1606 = vst.msk [vmem:[%s3207_s12 + $0x198] sm:$0xff] %vm1554_vm1, %v1477_v6  ;;  %1670 = vst.msk [vmem:[%s3207_s12 + $0x398] sm:$0xff] %vm1554_vm1, %v1541_v7  ;;  %v1053_v12 = vadd.f32 %v2541_v10, %v3201_v13  ;;  %v1373_v14 = vadd.f32 %v2637_v11, %v3201_v13  ;;  %v1047_v15 = vpop.f32.mrb[53].mxu0  ;;  %v1367_v16 = vpop.f32.mrb[53].mxu1 }
 0x15c   : > { %1605 = vst.msk [vmem:[%s3207_s12 + $0x190] sm:$0xff] %vm1554_vm1, %v1476_v8  ;;  %1669 = vst.msk [vmem:[%s3207_s12 + $0x390] sm:$0xff] %vm1554_vm1, %v1540_v9  ;;  %v1048_v17 = vadd.f32 %v3201_v13, %v1047_v15  ;;  %v1368_v18 = vadd.f32 %v3201_v13, %v1367_v16 }
 0x15d   : > { %v1479_v19 = vmax.f32 %v1053_v12, 0.0  ;;  %v1543_v20 = vmax.f32 %v1373_v14, 0.0 }
 0x15e   : > { %v1478_v21 = vmax.f32 %v1048_v17, 0.0  ;;  %v1542_v22 = vmax.f32 %v1368_v18, 0.0  ;;  %v2544_v23 = vpop.f32.mrb[54].mxu0  ;;  %v2640_v24 = vpop.f32.mrb[54].mxu1 }
 0x15f   : > { %1608 = vst.msk [vmem:[%s3207_s12 + $0x1a8] sm:$0xff] %vm1554_vm1, %v1479_v19  ;;  %1672 = vst.msk [vmem:[%s3207_s12 + $0x3a8] sm:$0xff] %vm1554_vm1, %v1543_v20  ;;  %v1063_v25 = vadd.f32 %v2544_v23, %v3201_v13  ;;  %v1383_v26 = vadd.f32 %v2640_v24, %v3201_v13  ;;  %v1057_v27 = vpop.f32.mrb[55].mxu0  ;;  %v1377_v28 = vpop.f32.mrb[55].mxu1 }
 0x160   : > { %1607 = vst.msk [vmem:[%s3207_s12 + $0x1a0] sm:$0xff] %vm1554_vm1, %v1478_v21  ;;  %1671 = vst.msk [vmem:[%s3207_s12 + $0x3a0] sm:$0xff] %vm1554_vm1, %v1542_v22  ;;  %v1058_v29 = vadd.f32 %v3201_v13, %v1057_v27  ;;  %v1378_v30 = vadd.f32 %v3201_v13, %v1377_v28 }
 0x161   : > { %v1481_v31 = vmax.f32 %v1063_v25, 0.0  ;;  %v1545_v32 = vmax.f32 %v1383_v26, 0.0 }
 0x162   : > { %v1480_v33 = vmax.f32 %v1058_v29, 0.0  ;;  %v1544_v34 = vmax.f32 %v1378_v30, 0.0  ;;  %v2547_v35 = vpop.f32.mrb[56].mxu0  ;;  %v2643_v36 = vpop.f32.mrb[56].mxu1 }
 0x163   : > { %1610 = vst.msk [vmem:[%s3207_s12 + $0x1b8] sm:$0xff] %vm1554_vm1, %v1481_v31  ;;  %1674 = vst.msk [vmem:[%s3207_s12 + $0x3b8] sm:$0xff] %vm1554_vm1, %v1545_v32  ;;  %v1073_v37 = vadd.f32 %v2547_v35, %v3201_v13  ;;  %v1393_v38 = vadd.f32 %v2643_v36, %v3201_v13  ;;  %v1067_v39 = vpop.f32.mrb[57].mxu0  ;;  %v1387_v40 = vpop.f32.mrb[57].mxu1 }
 0x164   : > { %1609 = vst.msk [vmem:[%s3207_s12 + $0x1b0] sm:$0xff] %vm1554_vm1, %v1480_v33  ;;  %1673 = vst.msk [vmem:[%s3207_s12 + $0x3b0] sm:$0xff] %vm1554_vm1, %v1544_v34  ;;  %v1068_v41 = vadd.f32 %v3201_v13, %v1067_v39  ;;  %v1388_v42 = vadd.f32 %v3201_v13, %v1387_v40 }
 0x165   : > { %v1483_v43 = vmax.f32 %v1073_v37, 0.0  ;;  %v1547_v44 = vmax.f32 %v1393_v38, 0.0 }
 0x166   : > { %v1482_v45 = vmax.f32 %v1068_v41, 0.0  ;;  %v1546_v46 = vmax.f32 %v1388_v42, 0.0  ;;  %v2550_v47 = vpop.f32.mrb[58].mxu0  ;;  %v2646_v48 = vpop.f32.mrb[58].mxu1 }
 0x167   : > { %1612 = vst.msk [vmem:[%s3207_s12 + $0x1c8] sm:$0xff] %vm1554_vm1, %v1483_v43  ;;  %1676 = vst.msk [vmem:[%s3207_s12 + $0x3c8] sm:$0xff] %vm1554_vm1, %v1547_v44  ;;  %v1083_v49 = vadd.f32 %v2550_v47, %v3201_v13  ;;  %v1403_v50 = vadd.f32 %v2646_v48, %v3201_v13  ;;  %v1077_v51 = vpop.f32.mrb[59].mxu0  ;;  %v1397_v52 = vpop.f32.mrb[59].mxu1 }
 0x168   : > { %1611 = vst.msk [vmem:[%s3207_s12 + $0x1c0] sm:$0xff] %vm1554_vm1, %v1482_v45  ;;  %1675 = vst.msk [vmem:[%s3207_s12 + $0x3c0] sm:$0xff] %vm1554_vm1, %v1546_v46  ;;  %v1078_v53 = vadd.f32 %v3201_v13, %v1077_v51  ;;  %v1398_v54 = vadd.f32 %v3201_v13, %v1397_v52 }
 0x169   : > { %v1485_v55 = vmax.f32 %v1083_v49, 0.0  ;;  %v1549_v56 = vmax.f32 %v1403_v50, 0.0 }
 0x16a   : > { %v1484_v57 = vmax.f32 %v1078_v53, 0.0  ;;  %v1548_v58 = vmax.f32 %v1398_v54, 0.0  ;;  %v2553_v59 = vpop.f32.mrb[60].mxu0  ;;  %v2649_v60 = vpop.f32.mrb[60].mxu1 }
 0x16b   : > { %1614 = vst.msk [vmem:[%s3207_s12 + $0x1d8] sm:$0xff] %vm1554_vm1, %v1485_v55  ;;  %1678 = vst.msk [vmem:[%s3207_s12 + $0x3d8] sm:$0xff] %vm1554_vm1, %v1549_v56  ;;  %v1093_v61 = vadd.f32 %v2553_v59, %v3201_v13  ;;  %v1413_v62 = vadd.f32 %v2649_v60, %v3201_v13  ;;  %v1087_v63 = vpop.f32.mrb[61].mxu0  ;;  %v1407_v0 = vpop.f32.mrb[61].mxu1 }
 0x16c   : > { %1613 = vst.msk [vmem:[%s3207_s12 + $0x1d0] sm:$0xff] %vm1554_vm1, %v1484_v57  ;;  %1677 = vst.msk [vmem:[%s3207_s12 + $0x3d0] sm:$0xff] %vm1554_vm1, %v1548_v58  ;;  %v1088_v1 = vadd.f32 %v3201_v13, %v1087_v63  ;;  %v1408_v2 = vadd.f32 %v3201_v13, %v1407_v0 }
 0x16d   : > { %v1487_v3 = vmax.f32 %v1093_v61, 0.0  ;;  %v1551_v4 = vmax.f32 %v1413_v62, 0.0 }
 0x16e   : > { %v1486_v5 = vmax.f32 %v1088_v1, 0.0  ;;  %v1550_v6 = vmax.f32 %v1408_v2, 0.0  ;;  %v2556_v7 = vpop.f32.mrb[62].mxu0  ;;  %v2652_v8 = vpop.f32.mrb[62].mxu1  ;;  %1689 = sbr.rel (!%p2900_p4) target bundleno = 445 (0x1bd), region = 36 }
 0x16f   : > { %1616 = vst.msk [vmem:[%s3207_s12 + $0x1e8] sm:$0xff] %vm1554_vm1, %v1487_v3  ;;  %1680 = vst.msk [vmem:[%s3207_s12 + $0x3e8] sm:$0xff] %vm1554_vm1, %v1551_v4  ;;  %v1103_v9 = vadd.f32 %v2556_v7, %v3201_v13  ;;  %v1423_v10 = vadd.f32 %v2652_v8, %v3201_v13  ;;  %v1097_v11 = vpop.f32.mrb[63].mxu0  ;;  %v1417_v12 = vpop.f32.mrb[63].mxu1 }
 0x170   : > { %1615 = vst.msk [vmem:[%s3207_s12 + $0x1e0] sm:$0xff] %vm1554_vm1, %v1486_v5  ;;  %1679 = vst.msk [vmem:[%s3207_s12 + $0x3e0] sm:$0xff] %vm1554_vm1, %v1550_v6  ;;  %v1098_v14 = vadd.f32 %v3201_v13, %v1097_v11  ;;  %v1418_v15 = vadd.f32 %v3201_v13, %v1417_v12 }
 0x171   : > { %v1489_v16 = vmax.f32 %v1103_v9, 0.0  ;;  %v1553_v17 = vmax.f32 %v1423_v10, 0.0 }
 0x172   : > { %v1488_v18 = vmax.f32 %v1098_v14, 0.0  ;;  %v1552_v19 = vmax.f32 %v1418_v15, 0.0 }
 0x173   : > { %1618 = vst.msk [vmem:[%s3207_s12 + $0x1f8] sm:$0xff] %vm1554_vm1, %v1489_v16  ;;  %1682 = vst.msk [vmem:[%s3207_s12 + $0x3f8] sm:$0xff] %vm1554_vm1, %v1553_v17 }
 0x174   : > { %1617 = vst.msk [vmem:[%s3207_s12 + $0x1f0] sm:$0xff] %vm1554_vm1, %v1488_v18  ;;  %1681 = vst.msk [vmem:[%s3207_s12 + $0x3f0] sm:$0xff] %vm1554_vm1, %v1552_v19 }
 0x175   : > { %s3809_s29 = smov (!%p1692_p8, %s1691_s29), 128 }
 0x176   : > { %s2288_s7 = sshll.u32 %s3809_s29, 7 }
 0x177   : > { %p2291_p9 = scmp.eq.s32.totalorder %s2288_s7, 0 }
 0x178   : > { %s3602_s8 = sshrl.u32 (!%p2291_p9), %s3809_s29, 6 }
 0x179   : > { %1700 = sbr.rel (%p2291_p9) target bundleno = 445 (0x1bd), region = 40  ;;  %p2292_p10 = scmp.le.s32.totalorder (!%p2291_p9), %s3602_s8, 0 }
 0x180   : > { %2106 = sbr.rel (%p2292_p10) target bundleno = 424 (0x1a8), region = 116  ;;  %s3800_s15 = smov (!%p2292_p10), %s3596_s6 }
 0x181   : > { %s3801_s20 = smov (!%p2292_p10), %s3207_s12  ;;  %s3611_s27 = smov (!%p2292_p10), 0  }
 0x182   : > { %s3613_s9 = smov (!%p2292_p10), 0  }
 0x187 LB: >> { %v1888_v13 = vld [vmem:[%s2829_s20] sm:$0xff]  ;;  %v1890_v20 = vld [vmem:[%s2829_s20 + $0x8] sm:$0xff]  ;;  %v1892_v21 = vld [vmem:[%s2829_s20 + $0x10] sm:$0xff]  ;;  %s2016_s10 = sadd.s32 1, %s2833_s27  ;;  %s1882_s9 = sadd.s32 1, %s2837_s9   ;;  %s2837_s9 = sphi %s3613_s9, %s1882_s9   ;;  %s2833_s27 = sphi %s3611_s27, %s3804_s27   ;;  %s2829_s20 = sphi %s3801_s20, %s3803_s20   ;;  %s2825_s15 = sphi %s3800_s15, %s3802_s15  }
 0x188   : >> { %1889 = vst [vmem:[%s2825_s15] sm:$0xff] %v1888_v13  ;;  %1891 = vst [vmem:[%s2825_s15 + $0x8] sm:$0xff] %v1890_v20  ;;  %v1894_v22 = vld [vmem:[%s2829_s20 + $0x18] sm:$0xff]  ;;  %v1896_v23 = vld [vmem:[%s2829_s20 + $0x20] sm:$0xff]  ;;  %p2017_p11 = scmp.ge.s32.totalorder %s2016_s10, %s3602_s8  ;;  %p1881_p12 = scmp.ge.s32.totalorder %s1882_s9, %s3602_s8 }
 0x189   : >> { %1893 = vst [vmem:[%s2825_s15 + $0x10] sm:$0xff] %v1892_v21  ;;  %v1898_v24 = vld [vmem:[%s2829_s20 + $0x28] sm:$0xff]  ;;  %1895 = vst [vmem:[%s2825_s15 + $0x18] sm:$0xff] %v1894_v22  ;;  %v1900_v25 = vld [vmem:[%s2829_s20 + $0x30] sm:$0xff] }
 0x18a   : >> { %1897 = vst [vmem:[%s2825_s15 + $0x20] sm:$0xff] %v1896_v23  ;;  %1899 = vst [vmem:[%s2825_s15 + $0x28] sm:$0xff] %v1898_v24  ;;  %v1902_v26 = vld [vmem:[%s2829_s20 + $0x38] sm:$0xff]  ;;  %v1904_v27 = vld [vmem:[%s2829_s20 + $0x40] sm:$0xff]  ;;  %s3811_s10 = smov (%p2017_p11, %s2016_s10), 0 }
 0x18b   : >> { %1901 = vst [vmem:[%s2825_s15 + $0x30] sm:$0xff] %v1900_v25  ;;  %1903 = vst [vmem:[%s2825_s15 + $0x38] sm:$0xff] %v1902_v26  ;;  %v1906_v28 = vld [vmem:[%s2829_s20 + $0x48] sm:$0xff]  ;;  %v1908_v29 = vld [vmem:[%s2829_s20 + $0x50] sm:$0xff]  ;;  %s2293_s11 = sshll.u32 %s3811_s10, 9  ;;  %s3804_s27 = smov %s3811_s10 }
 0x18c   : >> { %1905 = vst [vmem:[%s2825_s15 + $0x40] sm:$0xff] %v1904_v27  ;;  %v1910_v30 = vld [vmem:[%s2829_s20 + $0x58] sm:$0xff]  ;;  %1907 = vst [vmem:[%s2825_s15 + $0x48] sm:$0xff] %v1906_v28  ;;  %v1912_v31 = vld [vmem:[%s2829_s20 + $0x60] sm:$0xff]  ;;  %s3669_s14 = scalar_lea.vmem %s3207_s12, %s2293_s11 [#allocation2]   ;;  %s3672_s17 = scalar_lea.vmem %s3596_s6, %s2293_s11  }
 0x18d   : >> { %1909 = vst [vmem:[%s2825_s15 + $0x50] sm:$0xff] %v1908_v29  ;;  %1911 = vst [vmem:[%s2825_s15 + $0x58] sm:$0xff] %v1910_v30  ;;  %v1914_v32 = vld [vmem:[%s2829_s20 + $0x68] sm:$0xff]  ;;  %v1916_v33 = vld [vmem:[%s2829_s20 + $0x70] sm:$0xff] }
 0x18e   : >> { %1913 = vst [vmem:[%s2825_s15 + $0x60] sm:$0xff] %v1912_v31  ;;  %1915 = vst [vmem:[%s2825_s15 + $0x68] sm:$0xff] %v1914_v32  ;;  %v1918_v34 = vld [vmem:[%s2829_s20 + $0x78] sm:$0xff]  ;;  %v1920_v35 = vld [vmem:[%s2829_s20 + $0x80] sm:$0xff] }
 0x18f   : >> { %1917 = vst [vmem:[%s2825_s15 + $0x70] sm:$0xff] %v1916_v33  ;;  %v1922_v36 = vld [vmem:[%s2829_s20 + $0x88] sm:$0xff]  ;;  %1919 = vst [vmem:[%s2825_s15 + $0x78] sm:$0xff] %v1918_v34  ;;  %v1924_v37 = vld [vmem:[%s2829_s20 + $0x90] sm:$0xff] }
 0x190   : >> { %1921 = vst [vmem:[%s2825_s15 + $0x80] sm:$0xff] %v1920_v35  ;;  %1923 = vst [vmem:[%s2825_s15 + $0x88] sm:$0xff] %v1922_v36  ;;  %v1926_v38 = vld [vmem:[%s2829_s20 + $0x98] sm:$0xff]  ;;  %v1928_v39 = vld [vmem:[%s2829_s20 + $0xa0] sm:$0xff] }
 0x191   : >> { %1925 = vst [vmem:[%s2825_s15 + $0x90] sm:$0xff] %v1924_v37  ;;  %1927 = vst [vmem:[%s2825_s15 + $0x98] sm:$0xff] %v1926_v38  ;;  %v1930_v40 = vld [vmem:[%s2829_s20 + $0xa8] sm:$0xff]  ;;  %v1932_v41 = vld [vmem:[%s2829_s20 + $0xb0] sm:$0xff] }
 0x192   : >> { %1929 = vst [vmem:[%s2825_s15 + $0xa0] sm:$0xff] %v1928_v39  ;;  %v1934_v42 = vld [vmem:[%s2829_s20 + $0xb8] sm:$0xff]  ;;  %1931 = vst [vmem:[%s2825_s15 + $0xa8] sm:$0xff] %v1930_v40  ;;  %v1936_v43 = vld [vmem:[%s2829_s20 + $0xc0] sm:$0xff] }
 0x193   : >> { %1933 = vst [vmem:[%s2825_s15 + $0xb0] sm:$0xff] %v1932_v41  ;;  %1935 = vst [vmem:[%s2825_s15 + $0xb8] sm:$0xff] %v1934_v42  ;;  %v1938_v44 = vld [vmem:[%s2829_s20 + $0xc8] sm:$0xff]  ;;  %v1940_v45 = vld [vmem:[%s2829_s20 + $0xd0] sm:$0xff] }
 0x194   : >> { %1937 = vst [vmem:[%s2825_s15 + $0xc0] sm:$0xff] %v1936_v43  ;;  %1939 = vst [vmem:[%s2825_s15 + $0xc8] sm:$0xff] %v1938_v44  ;;  %v1942_v46 = vld [vmem:[%s2829_s20 + $0xd8] sm:$0xff]  ;;  %v1944_v47 = vld [vmem:[%s2829_s20 + $0xe0] sm:$0xff] }
 0x195   : >> { %1941 = vst [vmem:[%s2825_s15 + $0xd0] sm:$0xff] %v1940_v45  ;;  %v1946_v48 = vld [vmem:[%s2829_s20 + $0xe8] sm:$0xff]  ;;  %1943 = vst [vmem:[%s2825_s15 + $0xd8] sm:$0xff] %v1942_v46  ;;  %v1948_v49 = vld [vmem:[%s2829_s20 + $0xf0] sm:$0xff] }
 0x196   : >> { %1945 = vst [vmem:[%s2825_s15 + $0xe0] sm:$0xff] %v1944_v47  ;;  %1947 = vst [vmem:[%s2825_s15 + $0xe8] sm:$0xff] %v1946_v48  ;;  %v1950_v50 = vld [vmem:[%s2829_s20 + $0xf8] sm:$0xff]  ;;  %v1952_v51 = vld [vmem:[%s2829_s20 + $0x100] sm:$0xff] }
 0x197   : >> { %1949 = vst [vmem:[%s2825_s15 + $0xf0] sm:$0xff] %v1948_v49  ;;  %1951 = vst [vmem:[%s2825_s15 + $0xf8] sm:$0xff] %v1950_v50  ;;  %v1954_v52 = vld [vmem:[%s2829_s20 + $0x108] sm:$0xff]  ;;  %v1956_v53 = vld [vmem:[%s2829_s20 + $0x110] sm:$0xff] }
 0x198   : >> { %1953 = vst [vmem:[%s2825_s15 + $0x100] sm:$0xff] %v1952_v51  ;;  %v1958_v54 = vld [vmem:[%s2829_s20 + $0x118] sm:$0xff]  ;;  %1955 = vst [vmem:[%s2825_s15 + $0x108] sm:$0xff] %v1954_v52  ;;  %v1960_v55 = vld [vmem:[%s2829_s20 + $0x120] sm:$0xff] }
 0x199   : >> { %1957 = vst [vmem:[%s2825_s15 + $0x110] sm:$0xff] %v1956_v53  ;;  %1959 = vst [vmem:[%s2825_s15 + $0x118] sm:$0xff] %v1958_v54  ;;  %v1962_v56 = vld [vmem:[%s2829_s20 + $0x128] sm:$0xff]  ;;  %v1964_v57 = vld [vmem:[%s2829_s20 + $0x130] sm:$0xff] }
 0x19a   : >> { %1961 = vst [vmem:[%s2825_s15 + $0x120] sm:$0xff] %v1960_v55  ;;  %1963 = vst [vmem:[%s2825_s15 + $0x128] sm:$0xff] %v1962_v56  ;;  %v1966_v58 = vld [vmem:[%s2829_s20 + $0x138] sm:$0xff]  ;;  %v1968_v59 = vld [vmem:[%s2829_s20 + $0x140] sm:$0xff] }
 0x19b   : >> { %1965 = vst [vmem:[%s2825_s15 + $0x130] sm:$0xff] %v1964_v57  ;;  %v1970_v60 = vld [vmem:[%s2829_s20 + $0x148] sm:$0xff]  ;;  %1967 = vst [vmem:[%s2825_s15 + $0x138] sm:$0xff] %v1966_v58  ;;  %v1972_v61 = vld [vmem:[%s2829_s20 + $0x150] sm:$0xff] }
 0x19c   : >> { %1969 = vst [vmem:[%s2825_s15 + $0x140] sm:$0xff] %v1968_v59  ;;  %1971 = vst [vmem:[%s2825_s15 + $0x148] sm:$0xff] %v1970_v60  ;;  %v1974_v62 = vld [vmem:[%s2829_s20 + $0x158] sm:$0xff]  ;;  %v1976_v63 = vld [vmem:[%s2829_s20 + $0x160] sm:$0xff] }
 0x19d   : >> { %1973 = vst [vmem:[%s2825_s15 + $0x150] sm:$0xff] %v1972_v61  ;;  %1975 = vst [vmem:[%s2825_s15 + $0x158] sm:$0xff] %v1974_v62  ;;  %v1978_v0 = vld [vmem:[%s2829_s20 + $0x168] sm:$0xff]  ;;  %v1980_v1 = vld [vmem:[%s2829_s20 + $0x170] sm:$0xff] }
 0x19e   : >> { %1977 = vst [vmem:[%s2825_s15 + $0x160] sm:$0xff] %v1976_v63  ;;  %v1982_v2 = vld [vmem:[%s2829_s20 + $0x178] sm:$0xff]  ;;  %1979 = vst [vmem:[%s2825_s15 + $0x168] sm:$0xff] %v1978_v0  ;;  %v1984_v3 = vld [vmem:[%s2829_s20 + $0x180] sm:$0xff] }
 0x19f   : >> { %1981 = vst [vmem:[%s2825_s15 + $0x170] sm:$0xff] %v1980_v1  ;;  %1983 = vst [vmem:[%s2825_s15 + $0x178] sm:$0xff] %v1982_v2  ;;  %v1986_v4 = vld [vmem:[%s2829_s20 + $0x188] sm:$0xff]  ;;  %v1988_v5 = vld [vmem:[%s2829_s20 + $0x190] sm:$0xff] }
 0x1a0   : >> { %1985 = vst [vmem:[%s2825_s15 + $0x180] sm:$0xff] %v1984_v3  ;;  %1987 = vst [vmem:[%s2825_s15 + $0x188] sm:$0xff] %v1986_v4  ;;  %v1990_v6 = vld [vmem:[%s2829_s20 + $0x198] sm:$0xff]  ;;  %v1992_v7 = vld [vmem:[%s2829_s20 + $0x1a0] sm:$0xff] }
 0x1a1   : >> { %1989 = vst [vmem:[%s2825_s15 + $0x190] sm:$0xff] %v1988_v5  ;;  %v1994_v8 = vld [vmem:[%s2829_s20 + $0x1a8] sm:$0xff]  ;;  %1991 = vst [vmem:[%s2825_s15 + $0x198] sm:$0xff] %v1990_v6  ;;  %v1996_v9 = vld [vmem:[%s2829_s20 + $0x1b0] sm:$0xff]  ;;  %1884 = sbr.rel (!%p1881_p12) target bundleno = 391 (0x187), region = 122 }
 0x1a2   : >> { %1993 = vst [vmem:[%s2825_s15 + $0x1a0] sm:$0xff] %v1992_v7  ;;  %1995 = vst [vmem:[%s2825_s15 + $0x1a8] sm:$0xff] %v1994_v8  ;;  %v1998_v10 = vld [vmem:[%s2829_s20 + $0x1b8] sm:$0xff]  ;;  %v2000_v11 = vld [vmem:[%s2829_s20 + $0x1c0] sm:$0xff] }
 0x1a3   : >> { %1997 = vst [vmem:[%s2825_s15 + $0x1b0] sm:$0xff] %v1996_v9  ;;  %1999 = vst [vmem:[%s2825_s15 + $0x1b8] sm:$0xff] %v1998_v10  ;;  %v2002_v12 = vld [vmem:[%s2829_s20 + $0x1c8] sm:$0xff]  ;;  %v2004_v14 = vld [vmem:[%s2829_s20 + $0x1d0] sm:$0xff] }
 0x1a4   : >> { %2001 = vst [vmem:[%s2825_s15 + $0x1c0] sm:$0xff] %v2000_v11  ;;  %v2006_v15 = vld [vmem:[%s2829_s20 + $0x1d8] sm:$0xff]  ;;  %2003 = vst [vmem:[%s2825_s15 + $0x1c8] sm:$0xff] %v2002_v12  ;;  %v2008_v16 = vld [vmem:[%s2829_s20 + $0x1e0] sm:$0xff] }
 0x1a5   : >> { %2005 = vst [vmem:[%s2825_s15 + $0x1d0] sm:$0xff] %v2004_v14  ;;  %2007 = vst [vmem:[%s2825_s15 + $0x1d8] sm:$0xff] %v2006_v15  ;;  %v2010_v17 = vld [vmem:[%s2829_s20 + $0x1e8] sm:$0xff]  ;;  %v2012_v18 = vld [vmem:[%s2829_s20 + $0x1f0] sm:$0xff] }
 0x1a6   : >> { %2009 = vst [vmem:[%s2825_s15 + $0x1e0] sm:$0xff] %v2008_v16  ;;  %2011 = vst [vmem:[%s2825_s15 + $0x1e8] sm:$0xff] %v2010_v17  ;;  %v2014_v19 = vld [vmem:[%s2829_s20 + $0x1f8] sm:$0xff]  ;;  %s3803_s20 = smov %s3669_s14 }
 0x1a7   : >> { %2013 = vst [vmem:[%s2825_s15 + $0x1f0] sm:$0xff] %v2012_v18  ;;  %2015 = vst [vmem:[%s2825_s15 + $0x1f8] sm:$0xff] %v2014_v19  ;;  %s3802_s15 = smov %s3672_s17 }
 0x1a8 PF: > { %s3777_s18 = sand.u32 63, %s3809_s29   ;;  %s2304_s21 = sshll.u32 %s3602_s8, 9 }
 0x1a9   : > { %s2027_s22 = scalar_lea.vmem %s3207_s12, %s2304_s21 [#allocation2]   ;;  %s2029_s23 = scalar_lea.vmem %s3596_s6, %s2304_s21  }
 0x1aa   : > { %p2298_p13 = scmp.le.s32.totalorder %s3777_s18, 0 }
 0x1ab   : > { %s2839_s24 = smov (!%p2298_p13), %s2029_s23   ;;  %s2843_s25 = smov (!%p2298_p13), %s2027_s22  }
 0x1ac   : > { %2120 = sbr.rel (%p2298_p13) target bundleno = 445 (0x1bd), region = 127  ;;  %s2847_s26 = smov (!%p2298_p13), 0  }
 0x1ad   : > { %s2851_s28 = smov (!%p2298_p13), 0  }
 0x1b3 LB: >> { %v2039_v13 = vld [vmem:[%s2845_s25] sm:$0xff]  ;;  %s2041_s29 = sadd.s32 1, %s2849_s26  ;;  %s2033_s28 = sadd.s32 1, %s2853_s28   ;;  %s2853_s28 = sphi %s2851_s28, %s2033_s28   ;;  %s2849_s26 = sphi %s2847_s26, %s2848_s26   ;;  %s2845_s25 = sphi %s2843_s25, %s2046_s25   ;;  %s2841_s24 = sphi %s2839_s24, %s2047_s24  }
 0x1b4   : >> { %2040 = vst [vmem:[%s2841_s24] sm:$0xff] %v2039_v13  ;;  %p2042_p0 = scmp.ge.s32.totalorder %s2041_s29, %s3777_s18  ;;  %p2032_p1 = scmp.ge.s32.totalorder %s2033_s28, %s3777_s18 }
 0x1b6   : >> { %s3813_s29 = smov (%p2042_p0, %s2041_s29), 0  ;;  %2035 = sbr.rel (!%p2032_p1) target bundleno = 435 (0x1b3), region = 133 }
 0x1b7   : >> { %s2299_s12 = sshll.u32 %s3813_s29, 3  ;;  %s2848_s26 = smov %s3813_s29  }
 0x1b8   : >> { %s2046_s25 = scalar_lea.vmem %s2027_s22, %s2299_s12 [#allocation2]   ;;  %s2047_s24 = scalar_lea.vmem %s2029_s23, %s2299_s12  }
 0x1bd PF: > { %p10_p2 = scmp.ge.s32.totalorder %s2890_s16, 4   ;;  %s3805_s12 = smov %s2817_s13 }
 0x1be   : > { %s3806_s13 = smov %s2898_s19  ;;  %s3807_s14 = smov %s2890_s16 }
 0x1bf   :  { %12 = sbr.rel (!%p10_p2) target bundleno = 2 (0x2), region = 144 }

// kernel: net_forward.8
= control target key start
LH: loop header
LB: loop body
LE: loop exit
PB: predicated region body
PF: predicated region fallthrough
CT: control target
= control target key end

     0   :  { %v561_v0 = vmov 0.0|0.0   ;;  %vm101_vm0 = vcmask 130048   ;;  %vm446_vm1 = vcmask 261120   ;;  %vm477_vm2 = vcmask 254976   ;;  %s1030_s1 = inlined_call_operand.vmem [shape: f32[144,32], index: 1, kind: input, shape index: {}]   ;;  %s1031_s0 = inlined_call_operand.vmem [shape: f32[242,144], index: 0, kind: input, shape index: {}]   ;;  %s1032_s2 = inlined_call_operand.vmem [shape: f32[1,32], index: 2, kind: input, shape index: {}]   ;;  %s1033_s3 = inlined_call_operand.vmem [shape: f32[242,32], index: 3, kind: output, shape index: {}]  }
   0x1   :  { %515 = vmatprep.subr.bf16.mxu0 %v561_v0  ;;  %v76_v1 = vld [vmem:[%s1030_s1] sm:$0xff]  ;;  %v77_v2 = vld [vmem:[%s1030_s1 + $0x8] sm:$0xff]  ;;  %542 = vmatprep.subr.bf16.mxu1 %v561_v0  ;;  %v78_v3 = vld [vmem:[%s1030_s1 + $0x10] sm:$0xff] }
   0x2   :  { %v516_v4 = vpack.c.bf16 %v77_v2, %v76_v1  ;;  %v79_v5 = vld [vmem:[%s1030_s1 + $0x18] sm:$0xff]  ;;  %v80_v7 = vld [vmem:[%s1030_s1 + $0x20] sm:$0xff]  ;;  %v81_v8 = vld [vmem:[%s1030_s1 + $0x28] sm:$0xff] }
   0x3   :  { %v519_v6 = vpack.c.bf16 %v79_v5, %v78_v3  ;;  %v15_v9 = vld [vmem:[%s1031_s0 + $0x8] sm:$0xff]  ;;  %v522_v11 = vpack.c.bf16 %v81_v8, %v80_v7  ;;  %v82_v12 = vld [vmem:[%s1030_s1 + $0x30] sm:$0xff]  ;;  %v83_v13 = vld [vmem:[%s1030_s1 + $0x38] sm:$0xff] }
   0x4   :  { %517 = vmatpush1.bf16.msra.mxu0 %v516_v4  ;;  %551 = vmatpush1.bf16.msra.mxu1 %v516_v4  ;;  %v47_v10 = vld [vmem:[%s1031_s0 + $0x108] sm:$0xff]  ;;  %v525_v14 = vpack.c.bf16 %v83_v13, %v82_v12  ;;  %v84_v15 = vld [vmem:[%s1030_s1 + $0x40] sm:$0xff]  ;;  %v86_v18 = vld [vmem:[%s1030_s1 + $0x50] sm:$0xff] }
   0x5   :  { %518 = vmatprep.subr.bf16.mxu0 %v561_v0  ;;  %543 = vmatprep.subr.bf16.mxu1 %v561_v0  ;;  %v85_v16 = vld [vmem:[%s1030_s1 + $0x48] sm:$0xff]  ;;  %v87_v19 = vld [vmem:[%s1030_s1 + $0x58] sm:$0xff]  ;;  %v88_v21 = vld [vmem:[%s1030_s1 + $0x60] sm:$0xff] }
   0x6   :  { %484 = vmatprep.mubr.msk.f32.mxu0 %vm101_vm0, %v15_v9  ;;  %500 = vmatprep.mubr.msk.f32.mxu1 %vm101_vm0, %v47_v10  ;;  %v528_v17 = vpack.c.bf16 %v85_v16, %v84_v15  ;;  %v531_v20 = vpack.c.bf16 %v87_v19, %v86_v18  ;;  %v89_v22 = vld [vmem:[%s1030_s1 + $0x68] sm:$0xff]  ;;  %v90_v24 = vld [vmem:[%s1030_s1 + $0x70] sm:$0xff]  ;;  %v91_v25 = vld [vmem:[%s1030_s1 + $0x78] sm:$0xff] }
   0x7   :  { %v534_v23 = vpack.c.bf16 %v89_v22, %v88_v21  ;;  %v537_v26 = vpack.c.bf16 %v91_v25, %v90_v24  ;;  %v92_v27 = vld [vmem:[%s1030_s1 + $0x80] sm:$0xff]  ;;  %v93_v28 = vld [vmem:[%s1030_s1 + $0x88] sm:$0xff]  ;;  %v17_v32 = vld [vmem:[%s1031_s0 + $0x18] sm:$0xff] }
   0x8   :  { %520 = vmatpush1.bf16.msra.mxu0 %v519_v6  ;;  %552 = vmatpush1.bf16.msra.mxu1 %v519_v6  ;;  %v540_v29 = vpack.c.bf16 %v93_v28, %v92_v27  ;;  %v14_v30 = vld [vmem:[%s1031_s0] sm:$0xff]  ;;  %v49_v33 = vld [vmem:[%s1031_s0 + $0x118] sm:$0xff]  ;;  %v16_v34 = vld [vmem:[%s1031_s0 + $0x10] sm:$0xff] }
   0x9   :  { %521 = vmatprep.subr.bf16.mxu0 %v561_v0  ;;  %544 = vmatprep.subr.bf16.mxu1 %v561_v0  ;;  %v46_v31 = vld [vmem:[%s1031_s0 + $0x100] sm:$0xff]  ;;  %v48_v35 = vld [vmem:[%s1031_s0 + $0x110] sm:$0xff]  ;;  %v19_v36 = vld [vmem:[%s1031_s0 + $0x28] sm:$0xff] }
   0xa   :  { %v51_v37 = vld [vmem:[%s1031_s0 + $0x128] sm:$0xff]  ;;  %v18_v38 = vld [vmem:[%s1031_s0 + $0x20] sm:$0xff]  ;;  %v21_v40 = vld [vmem:[%s1031_s0 + $0x38] sm:$0xff] }
   0xb   :  { %v50_v39 = vld [vmem:[%s1031_s0 + $0x120] sm:$0xff]  ;;  %v53_v41 = vld [vmem:[%s1031_s0 + $0x138] sm:$0xff]  ;;  %v20_v42 = vld [vmem:[%s1031_s0 + $0x30] sm:$0xff] }
   0xc   :  { %523 = vmatpush1.bf16.msra.mxu0 %v522_v11  ;;  %553 = vmatpush1.bf16.msra.mxu1 %v522_v11  ;;  %v52_v43 = vld [vmem:[%s1031_s0 + $0x130] sm:$0xff]  ;;  %v23_v44 = vld [vmem:[%s1031_s0 + $0x48] sm:$0xff]  ;;  %v22_v46 = vld [vmem:[%s1031_s0 + $0x40] sm:$0xff] }
   0xd   :  { %524 = vmatprep.subr.bf16.mxu0 %v561_v0  ;;  %545 = vmatprep.subr.bf16.mxu1 %v561_v0  ;;  %v55_v45 = vld [vmem:[%s1031_s0 + $0x148] sm:$0xff]  ;;  %v54_v47 = vld [vmem:[%s1031_s0 + $0x140] sm:$0xff]  ;;  %v25_v48 = vld [vmem:[%s1031_s0 + $0x58] sm:$0xff] }
   0xe   :  { %v57_v49 = vld [vmem:[%s1031_s0 + $0x158] sm:$0xff]  ;;  %v24_v50 = vld [vmem:[%s1031_s0 + $0x50] sm:$0xff]  ;;  %v27_v52 = vld [vmem:[%s1031_s0 + $0x68] sm:$0xff] }
   0xf   :  { %v56_v51 = vld [vmem:[%s1031_s0 + $0x150] sm:$0xff]  ;;  %v59_v53 = vld [vmem:[%s1031_s0 + $0x168] sm:$0xff]  ;;  %v26_v54 = vld [vmem:[%s1031_s0 + $0x60] sm:$0xff] }
  0x10   :  { %526 = vmatpush1.bf16.msra.mxu0 %v525_v14  ;;  %554 = vmatpush1.bf16.msra.mxu1 %v525_v14  ;;  %v58_v55 = vld [vmem:[%s1031_s0 + $0x160] sm:$0xff]  ;;  %v29_v56 = vld [vmem:[%s1031_s0 + $0x78] sm:$0xff]  ;;  %v28_v58 = vld [vmem:[%s1031_s0 + $0x70] sm:$0xff] }
  0x11   :  { %527 = vmatprep.subr.bf16.mxu0 %v561_v0  ;;  %546 = vmatprep.subr.bf16.mxu1 %v561_v0  ;;  %v61_v57 = vld [vmem:[%s1031_s0 + $0x178] sm:$0xff]  ;;  %v60_v59 = vld [vmem:[%s1031_s0 + $0x170] sm:$0xff]  ;;  %v31_v60 = vld [vmem:[%s1031_s0 + $0x88] sm:$0xff] }
  0x12   :  { %v63_v61 = vld [vmem:[%s1031_s0 + $0x188] sm:$0xff]  ;;  %v30_v62 = vld [vmem:[%s1031_s0 + $0x80] sm:$0xff]  ;;  %v65_v1 = vld [vmem:[%s1031_s0 + $0x198] sm:$0xff] }
  0x13   :  { %v62_v63 = vld [vmem:[%s1031_s0 + $0x180] sm:$0xff]  ;;  %v32_v2 = vld [vmem:[%s1031_s0 + $0x90] sm:$0xff]  ;;  %v35_v4 = vld [vmem:[%s1031_s0 + $0xa8] sm:$0xff] }
  0x14   :  { %529 = vmatpush1.bf16.msra.mxu0 %v528_v17  ;;  %555 = vmatpush1.bf16.msra.mxu1 %v528_v17  ;;  %v64_v3 = vld [vmem:[%s1031_s0 + $0x190] sm:$0xff]  ;;  %v67_v5 = vld [vmem:[%s1031_s0 + $0x1a8] sm:$0xff]  ;;  %v34_v6 = vld [vmem:[%s1031_s0 + $0xa0] sm:$0xff] }
  0x15   :  { %530 = vmatprep.subr.bf16.mxu0 %v561_v0  ;;  %547 = vmatprep.subr.bf16.mxu1 %v561_v0  ;;  %v66_v7 = vld [vmem:[%s1031_s0 + $0x1a0] sm:$0xff]  ;;  %v37_v8 = vld [vmem:[%s1031_s0 + $0xb8] sm:$0xff]  ;;  %v36_v10 = vld [vmem:[%s1031_s0 + $0xb0] sm:$0xff] }
  0x16   :  { %v69_v9 = vld [vmem:[%s1031_s0 + $0x1b8] sm:$0xff]  ;;  %v68_v11 = vld [vmem:[%s1031_s0 + $0x1b0] sm:$0xff]  ;;  %v39_v12 = vld [vmem:[%s1031_s0 + $0xc8] sm:$0xff] }
  0x17   :  { %v71_v13 = vld [vmem:[%s1031_s0 + $0x1c8] sm:$0xff]  ;;  %v38_v14 = vld [vmem:[%s1031_s0 + $0xc0] sm:$0xff]  ;;  %v41_v16 = vld [vmem:[%s1031_s0 + $0xd8] sm:$0xff] }
  0x18   :  { %532 = vmatpush1.bf16.msra.mxu0 %v531_v20  ;;  %556 = vmatpush1.bf16.msra.mxu1 %v531_v20  ;;  %v70_v15 = vld [vmem:[%s1031_s0 + $0x1c0] sm:$0xff]  ;;  %v73_v17 = vld [vmem:[%s1031_s0 + $0x1d8] sm:$0xff]  ;;  %v40_v18 = vld [vmem:[%s1031_s0 + $0xd0] sm:$0xff] }
  0x19   :  { %533 = vmatprep.subr.bf16.mxu0 %v561_v0  ;;  %548 = vmatprep.subr.bf16.mxu1 %v561_v0  ;;  %v72_v19 = vld [vmem:[%s1031_s0 + $0x1d0] sm:$0xff]  ;;  %v43_v20 = vld [vmem:[%s1031_s0 + $0xe8] sm:$0xff]  ;;  %v42_v22 = vld [vmem:[%s1031_s0 + $0xe0] sm:$0xff] }
  0x1a   :  { %v75_v21 = vld [vmem:[%s1031_s0 + $0x1e8] sm:$0x3]  ;;  %v45_v24 = vld [vmem:[%s1031_s0 + $0xf8] sm:$0xff]  ;;  %v44_v25 = vld [vmem:[%s1031_s0 + $0xf0] sm:$0xff] }
  0x1c   :  { %535 = vmatpush1.bf16.msra.mxu0 %v534_v23  ;;  %557 = vmatpush1.bf16.msra.mxu1 %v534_v23  ;;  %v74_v23 = vld [vmem:[%s1031_s0 + $0x1e0] sm:$0x3] }
  0x1d   :  { %536 = vmatprep.subr.bf16.mxu0 %v561_v0  ;;  %549 = vmatprep.subr.bf16.mxu1 %v561_v0 }
  0x20   :  { %538 = vmatpush1.bf16.msra.mxu0 %v537_v26  ;;  %558 = vmatpush1.bf16.msra.mxu1 %v537_v26  ;;  %v874_v26 = vld [vmem:[%s1032_s2] ss:$0 sm:$0xff] }
  0x21   :  { %539 = vmatprep.subr.bf16.mxu0 %v561_v0  ;;  %550 = vmatprep.subr.bf16.mxu1 %v561_v0  ;;  %v33_v0 = vld [vmem:[%s1031_s0 + $0x98] sm:$0xff] }
  0x24   :  { %541 = vmatpush1.bf16.msra.mxu0 %v540_v29  ;;  %559 = vmatpush1.bf16.msra.mxu1 %v540_v29 }
  0x27   :  { %260 = vmatmul.mubr.f32.vlgmr.msra.gmra.mrb[0].mxu0 %v14_v30  ;;  %340 = vmatmul.mubr.f32.vlgmr.msra.gmra.mrb[0].mxu1 %v46_v31 }
  0x28   :  { %485 = vmatprep.mubr.msk.f32.mxu0 %vm101_vm0, %v17_v32  ;;  %501 = vmatprep.mubr.msk.f32.mxu1 %vm101_vm0, %v49_v33 }
  0x2b   :  { %265 = vmatmul.mubr.f32.gmra.mrb[2].mxu0 %v16_v34  ;;  %345 = vmatmul.mubr.f32.gmra.mrb[2].mxu1 %v48_v35 }
  0x2c   :  { %486 = vmatprep.mubr.msk.f32.mxu0 %vm101_vm0, %v19_v36  ;;  %502 = vmatprep.mubr.msk.f32.mxu1 %vm101_vm0, %v51_v37 }
  0x2f   :  { %270 = vmatmul.mubr.f32.gmra.mrb[4].mxu0 %v18_v38  ;;  %350 = vmatmul.mubr.f32.gmra.mrb[4].mxu1 %v50_v39 }
  0x30   :  { %487 = vmatprep.mubr.msk.f32.mxu0 %vm101_vm0, %v21_v40  ;;  %503 = vmatprep.mubr.msk.f32.mxu1 %vm101_vm0, %v53_v41 }
  0x33   :  { %275 = vmatmul.mubr.f32.gmra.mrb[6].mxu0 %v20_v42  ;;  %355 = vmatmul.mubr.f32.gmra.mrb[6].mxu1 %v52_v43 }
  0x34   :  { %488 = vmatprep.mubr.msk.f32.mxu0 %vm101_vm0, %v23_v44  ;;  %504 = vmatprep.mubr.msk.f32.mxu1 %vm101_vm0, %v55_v45 }
  0x37   :  { %280 = vmatmul.mubr.f32.gmra.mrb[8].mxu0 %v22_v46  ;;  %360 = vmatmul.mubr.f32.gmra.mrb[8].mxu1 %v54_v47 }
  0x38   :  { %489 = vmatprep.mubr.msk.f32.mxu0 %vm101_vm0, %v25_v48  ;;  %505 = vmatprep.mubr.msk.f32.mxu1 %vm101_vm0, %v57_v49 }
  0x3b   :  { %285 = vmatmul.mubr.f32.gmra.mrb[10].mxu0 %v24_v50  ;;  %365 = vmatmul.mubr.f32.gmra.mrb[10].mxu1 %v56_v51 }
  0x3c   :  { %490 = vmatprep.mubr.msk.f32.mxu0 %vm101_vm0, %v27_v52  ;;  %506 = vmatprep.mubr.msk.f32.mxu1 %vm101_vm0, %v59_v53 }
  0x3f   :  { %290 = vmatmul.mubr.f32.gmra.mrb[12].mxu0 %v26_v54  ;;  %370 = vmatmul.mubr.f32.gmra.mrb[12].mxu1 %v58_v55 }
  0x40   :  { %491 = vmatprep.mubr.msk.f32.mxu0 %vm101_vm0, %v29_v56  ;;  %507 = vmatprep.mubr.msk.f32.mxu1 %vm101_vm0, %v61_v57 }
  0x43   :  { %295 = vmatmul.mubr.f32.gmra.mrb[14].mxu0 %v28_v58  ;;  %375 = vmatmul.mubr.f32.gmra.mrb[14].mxu1 %v60_v59 }
  0x44   :  { %492 = vmatprep.mubr.msk.f32.mxu0 %vm101_vm0, %v31_v60  ;;  %508 = vmatprep.mubr.msk.f32.mxu1 %vm101_vm0, %v63_v61 }
  0x47   :  { %300 = vmatmul.mubr.f32.gmra.mrb[16].mxu0 %v30_v62  ;;  %380 = vmatmul.mubr.f32.gmra.mrb[16].mxu1 %v62_v63 }
  0x48   :  { %493 = vmatprep.mubr.msk.f32.mxu0 %vm101_vm0, %v33_v0  ;;  %509 = vmatprep.mubr.msk.f32.mxu1 %vm101_vm0, %v65_v1 }
  0x4b   :  { %305 = vmatmul.mubr.f32.gmra.mrb[18].mxu0 %v32_v2  ;;  %385 = vmatmul.mubr.f32.gmra.mrb[18].mxu1 %v64_v3 }
  0x4c   :  { %494 = vmatprep.mubr.msk.f32.mxu0 %vm101_vm0, %v35_v4  ;;  %510 = vmatprep.mubr.msk.f32.mxu1 %vm101_vm0, %v67_v5 }
  0x4f   :  { %310 = vmatmul.mubr.f32.gmra.mrb[20].mxu0 %v34_v6  ;;  %390 = vmatmul.mubr.f32.gmra.mrb[20].mxu1 %v66_v7 }
  0x50   :  { %495 = vmatprep.mubr.msk.f32.mxu0 %vm101_vm0, %v37_v8  ;;  %511 = vmatprep.mubr.msk.f32.mxu1 %vm101_vm0, %v69_v9 }
  0x53   :  { %315 = vmatmul.mubr.f32.gmra.mrb[22].mxu0 %v36_v10  ;;  %395 = vmatmul.mubr.f32.gmra.mrb[22].mxu1 %v68_v11 }
  0x54   :  { %496 = vmatprep.mubr.msk.f32.mxu0 %vm101_vm0, %v39_v12  ;;  %512 = vmatprep.mubr.msk.f32.mxu1 %vm101_vm0, %v71_v13 }
  0x57   :  { %320 = vmatmul.mubr.f32.gmra.mrb[24].mxu0 %v38_v14  ;;  %400 = vmatmul.mubr.f32.gmra.mrb[24].mxu1 %v70_v15 }
  0x58   :  { %497 = vmatprep.mubr.msk.f32.mxu0 %vm101_vm0, %v41_v16  ;;  %513 = vmatprep.mubr.msk.f32.mxu1 %vm101_vm0, %v73_v17 }
  0x5b   :  { %325 = vmatmul.mubr.f32.gmra.mrb[26].mxu0 %v40_v18  ;;  %405 = vmatmul.mubr.f32.gmra.mrb[26].mxu1 %v72_v19 }
  0x5c   :  { %498 = vmatprep.mubr.msk.f32.mxu0 %vm101_vm0, %v43_v20  ;;  %514 = vmatprep.mubr.msk.f32.mxu1 %vm101_vm0, %v75_v21 }
  0x5f   :  { %330 = vmatmul.mubr.f32.gmra.mrb[28].mxu0 %v42_v22  ;;  %410 = vmatmul.mubr.f32.gmra.mrb[28].mxu1 %v74_v23 }
  0x60   :  { %499 = vmatprep.mubr.msk.f32.mxu0 %vm101_vm0, %v45_v24 }
  0x63   :  { %335 = vmatmul.mubr.f32.gmra.mrb[30].mxu0 %v44_v25 }
  0xfa   :  { %v261_v27 = vpop.f32.mrb[0].mxu0  ;;  %v341_v28 = vpop.f32.mrb[0].mxu1 }
  0xfb   :  { %v262_v29 = vadd.f32 %v874_v26, %v261_v27  ;;  %v263_v30 = vpop.f32.mrb[1].mxu0  ;;  %v342_v31 = vadd.f32 %v874_v26, %v341_v28  ;;  %v343_v32 = vpop.f32.mrb[1].mxu1 }
  0xfd   :  { %v415_v33 = vmax.f32 %v262_v29, 0.0  ;;  %v431_v34 = vmax.f32 %v342_v31, 0.0 }
  0xfe   :  { %v266_v35 = vpop.f32.mrb[2].mxu0  ;;  %v346_v36 = vpop.f32.mrb[2].mxu1 }
  0xff   :  { %447 = vst.msk [vmem:[%s1033_s3] sm:$0xff] %vm446_vm1, %v415_v33  ;;  %463 = vst.msk [vmem:[%s1033_s3 + $0x80] sm:$0xff] %vm446_vm1, %v431_v34  ;;  %v267_v37 = vadd.f32 %v874_v26, %v266_v35  ;;  %v268_v38 = vpop.f32.mrb[3].mxu0  ;;  %v347_v39 = vadd.f32 %v874_v26, %v346_v36  ;;  %v348_v40 = vpop.f32.mrb[3].mxu1 }
 0x101   :  { %v416_v41 = vmax.f32 %v267_v37, 0.0  ;;  %v432_v42 = vmax.f32 %v347_v39, 0.0 }
 0x102   :  { %v271_v43 = vpop.f32.mrb[4].mxu0  ;;  %v351_v44 = vpop.f32.mrb[4].mxu1 }
 0x103   :  { %448 = vst.msk [vmem:[%s1033_s3 + $0x8] sm:$0xff] %vm446_vm1, %v416_v41  ;;  %464 = vst.msk [vmem:[%s1033_s3 + $0x88] sm:$0xff] %vm446_vm1, %v432_v42  ;;  %v272_v45 = vadd.f32 %v874_v26, %v271_v43  ;;  %v273_v46 = vpop.f32.mrb[5].mxu0  ;;  %v352_v47 = vadd.f32 %v874_v26, %v351_v44  ;;  %v353_v48 = vpop.f32.mrb[5].mxu1 }
 0x105   :  { %v417_v49 = vmax.f32 %v272_v45, 0.0  ;;  %v433_v50 = vmax.f32 %v352_v47, 0.0 }
 0x106   :  { %v276_v51 = vpop.f32.mrb[6].mxu0  ;;  %v356_v52 = vpop.f32.mrb[6].mxu1 }
 0x107   :  { %449 = vst.msk [vmem:[%s1033_s3 + $0x10] sm:$0xff] %vm446_vm1, %v417_v49  ;;  %465 = vst.msk [vmem:[%s1033_s3 + $0x90] sm:$0xff] %vm446_vm1, %v433_v50  ;;  %v277_v53 = vadd.f32 %v874_v26, %v276_v51  ;;  %v278_v54 = vpop.f32.mrb[7].mxu0  ;;  %v357_v55 = vadd.f32 %v874_v26, %v356_v52  ;;  %v358_v56 = vpop.f32.mrb[7].mxu1 }
 0x109   :  { %v418_v57 = vmax.f32 %v277_v53, 0.0  ;;  %v434_v58 = vmax.f32 %v357_v55, 0.0 }
 0x10a   :  { %v281_v59 = vpop.f32.mrb[8].mxu0  ;;  %v361_v60 = vpop.f32.mrb[8].mxu1 }
 0x10b   :  { %450 = vst.msk [vmem:[%s1033_s3 + $0x18] sm:$0xff] %vm446_vm1, %v418_v57  ;;  %466 = vst.msk [vmem:[%s1033_s3 + $0x98] sm:$0xff] %vm446_vm1, %v434_v58  ;;  %v282_v61 = vadd.f32 %v874_v26, %v281_v59  ;;  %v283_v62 = vpop.f32.mrb[9].mxu0  ;;  %v362_v63 = vadd.f32 %v874_v26, %v361_v60  ;;  %v363_v0 = vpop.f32.mrb[9].mxu1 }
 0x10d   :  { %v419_v1 = vmax.f32 %v282_v61, 0.0  ;;  %v435_v2 = vmax.f32 %v362_v63, 0.0 }
 0x10e   :  { %v286_v3 = vpop.f32.mrb[10].mxu0  ;;  %v366_v4 = vpop.f32.mrb[10].mxu1 }
 0x10f   :  { %451 = vst.msk [vmem:[%s1033_s3 + $0x20] sm:$0xff] %vm446_vm1, %v419_v1  ;;  %467 = vst.msk [vmem:[%s1033_s3 + $0xa0] sm:$0xff] %vm446_vm1, %v435_v2  ;;  %v287_v5 = vadd.f32 %v874_v26, %v286_v3  ;;  %v288_v6 = vpop.f32.mrb[11].mxu0  ;;  %v367_v7 = vadd.f32 %v874_v26, %v366_v4  ;;  %v368_v8 = vpop.f32.mrb[11].mxu1 }
 0x111   :  { %v420_v9 = vmax.f32 %v287_v5, 0.0  ;;  %v436_v10 = vmax.f32 %v367_v7, 0.0 }
 0x112   :  { %v291_v11 = vpop.f32.mrb[12].mxu0  ;;  %v371_v12 = vpop.f32.mrb[12].mxu1 }
 0x113   :  { %452 = vst.msk [vmem:[%s1033_s3 + $0x28] sm:$0xff] %vm446_vm1, %v420_v9  ;;  %468 = vst.msk [vmem:[%s1033_s3 + $0xa8] sm:$0xff] %vm446_vm1, %v436_v10  ;;  %v292_v13 = vadd.f32 %v874_v26, %v291_v11  ;;  %v293_v14 = vpop.f32.mrb[13].mxu0  ;;  %v372_v15 = vadd.f32 %v874_v26, %v371_v12  ;;  %v373_v16 = vpop.f32.mrb[13].mxu1 }
 0x115   :  { %v421_v17 = vmax.f32 %v292_v13, 0.0  ;;  %v437_v18 = vmax.f32 %v372_v15, 0.0 }
 0x116   :  { %v296_v19 = vpop.f32.mrb[14].mxu0  ;;  %v376_v20 = vpop.f32.mrb[14].mxu1 }
 0x117   :  { %453 = vst.msk [vmem:[%s1033_s3 + $0x30] sm:$0xff] %vm446_vm1, %v421_v17  ;;  %469 = vst.msk [vmem:[%s1033_s3 + $0xb0] sm:$0xff] %vm446_vm1, %v437_v18  ;;  %v297_v21 = vadd.f32 %v874_v26, %v296_v19  ;;  %v298_v22 = vpop.f32.mrb[15].mxu0  ;;  %v377_v23 = vadd.f32 %v874_v26, %v376_v20  ;;  %v378_v24 = vpop.f32.mrb[15].mxu1 }
 0x119   :  { %v422_v25 = vmax.f32 %v297_v21, 0.0  ;;  %v438_v27 = vmax.f32 %v377_v23, 0.0 }
 0x11a   :  { %v301_v28 = vpop.f32.mrb[16].mxu0  ;;  %v381_v29 = vpop.f32.mrb[16].mxu1 }
 0x11b   :  { %454 = vst.msk [vmem:[%s1033_s3 + $0x38] sm:$0xff] %vm446_vm1, %v422_v25  ;;  %470 = vst.msk [vmem:[%s1033_s3 + $0xb8] sm:$0xff] %vm446_vm1, %v438_v27  ;;  %v302_v30 = vadd.f32 %v874_v26, %v301_v28  ;;  %v303_v31 = vpop.f32.mrb[17].mxu0  ;;  %v382_v32 = vadd.f32 %v874_v26, %v381_v29  ;;  %v383_v33 = vpop.f32.mrb[17].mxu1 }
 0x11d   :  { %v423_v34 = vmax.f32 %v302_v30, 0.0  ;;  %v439_v35 = vmax.f32 %v382_v32, 0.0 }
 0x11e   :  { %v306_v36 = vpop.f32.mrb[18].mxu0  ;;  %v386_v37 = vpop.f32.mrb[18].mxu1 }
 0x11f   :  { %455 = vst.msk [vmem:[%s1033_s3 + $0x40] sm:$0xff] %vm446_vm1, %v423_v34  ;;  %471 = vst.msk [vmem:[%s1033_s3 + $0xc0] sm:$0xff] %vm446_vm1, %v439_v35  ;;  %v307_v38 = vadd.f32 %v874_v26, %v306_v36  ;;  %v308_v39 = vpop.f32.mrb[19].mxu0  ;;  %v387_v40 = vadd.f32 %v874_v26, %v386_v37  ;;  %v388_v41 = vpop.f32.mrb[19].mxu1 }
 0x121   :  { %v424_v42 = vmax.f32 %v307_v38, 0.0  ;;  %v440_v43 = vmax.f32 %v387_v40, 0.0 }
 0x122   :  { %v311_v44 = vpop.f32.mrb[20].mxu0  ;;  %v391_v45 = vpop.f32.mrb[20].mxu1 }
 0x123   :  { %456 = vst.msk [vmem:[%s1033_s3 + $0x48] sm:$0xff] %vm446_vm1, %v424_v42  ;;  %472 = vst.msk [vmem:[%s1033_s3 + $0xc8] sm:$0xff] %vm446_vm1, %v440_v43  ;;  %v312_v46 = vadd.f32 %v874_v26, %v311_v44  ;;  %v313_v47 = vpop.f32.mrb[21].mxu0  ;;  %v392_v48 = vadd.f32 %v874_v26, %v391_v45  ;;  %v393_v49 = vpop.f32.mrb[21].mxu1 }
 0x125   :  { %v425_v50 = vmax.f32 %v312_v46, 0.0  ;;  %v441_v51 = vmax.f32 %v392_v48, 0.0 }
 0x126   :  { %v316_v52 = vpop.f32.mrb[22].mxu0  ;;  %v396_v53 = vpop.f32.mrb[22].mxu1 }
 0x127   :  { %457 = vst.msk [vmem:[%s1033_s3 + $0x50] sm:$0xff] %vm446_vm1, %v425_v50  ;;  %473 = vst.msk [vmem:[%s1033_s3 + $0xd0] sm:$0xff] %vm446_vm1, %v441_v51  ;;  %v317_v54 = vadd.f32 %v874_v26, %v316_v52  ;;  %v318_v55 = vpop.f32.mrb[23].mxu0  ;;  %v397_v56 = vadd.f32 %v874_v26, %v396_v53  ;;  %v398_v57 = vpop.f32.mrb[23].mxu1 }
 0x129   :  { %v426_v58 = vmax.f32 %v317_v54, 0.0  ;;  %v442_v59 = vmax.f32 %v397_v56, 0.0 }
 0x12a   :  { %v321_v60 = vpop.f32.mrb[24].mxu0  ;;  %v401_v61 = vpop.f32.mrb[24].mxu1 }
 0x12b   :  { %458 = vst.msk [vmem:[%s1033_s3 + $0x58] sm:$0xff] %vm446_vm1, %v426_v58  ;;  %474 = vst.msk [vmem:[%s1033_s3 + $0xd8] sm:$0xff] %vm446_vm1, %v442_v59  ;;  %v322_v62 = vadd.f32 %v874_v26, %v321_v60  ;;  %v323_v63 = vpop.f32.mrb[25].mxu0  ;;  %v402_v0 = vadd.f32 %v874_v26, %v401_v61  ;;  %v403_v1 = vpop.f32.mrb[25].mxu1 }
 0x12d   :  { %v427_v2 = vmax.f32 %v322_v62, 0.0  ;;  %v443_v3 = vmax.f32 %v402_v0, 0.0 }
 0x12e   :  { %v326_v4 = vpop.f32.mrb[26].mxu0  ;;  %v406_v5 = vpop.f32.mrb[26].mxu1 }
 0x12f   :  { %459 = vst.msk [vmem:[%s1033_s3 + $0x60] sm:$0xff] %vm446_vm1, %v427_v2  ;;  %475 = vst.msk [vmem:[%s1033_s3 + $0xe0] sm:$0xff] %vm446_vm1, %v443_v3  ;;  %v327_v6 = vadd.f32 %v874_v26, %v326_v4  ;;  %v328_v7 = vpop.f32.mrb[27].mxu0  ;;  %v407_v8 = vadd.f32 %v874_v26, %v406_v5  ;;  %v408_v9 = vpop.f32.mrb[27].mxu1 }
 0x131   :  { %v428_v10 = vmax.f32 %v327_v6, 0.0  ;;  %v444_v11 = vmax.f32 %v407_v8, 0.0 }
 0x132   :  { %v331_v12 = vpop.f32.mrb[28].mxu0  ;;  %v411_v13 = vpop.f32.mrb[28].mxu1 }
 0x133   :  { %460 = vst.msk [vmem:[%s1033_s3 + $0x68] sm:$0xff] %vm446_vm1, %v428_v10  ;;  %476 = vst.msk [vmem:[%s1033_s3 + $0xe8] sm:$0xff] %vm446_vm1, %v444_v11  ;;  %v332_v14 = vadd.f32 %v874_v26, %v331_v12  ;;  %v333_v15 = vpop.f32.mrb[29].mxu0  ;;  %v412_v16 = vadd.f32 %v874_v26, %v411_v13  ;;  %v413_v17 = vpop.f32.mrb[29].mxu1 }
 0x135   :  { %v429_v18 = vmax.f32 %v332_v14, 0.0  ;;  %v445_v19 = vmax.f32 %v412_v16, 0.0 }
 0x136   :  { %v336_v20 = vpop.f32.mrb[30].mxu0 }
 0x137   :  { %461 = vst.msk [vmem:[%s1033_s3 + $0x70] sm:$0xff] %vm446_vm1, %v429_v18  ;;  %v337_v21 = vadd.f32 %v874_v26, %v336_v20  ;;  %v338_v22 = vpop.f32.mrb[31].mxu0 }
 0x138   :  { %478 = vst.msk [vmem:[%s1033_s3 + $0xf0] sm:$0x3] %vm477_vm2, %v445_v19 }
 0x139   :  { %v430_v23 = vmax.f32 %v337_v21, 0.0 }
 0x13b   :  { %462 = vst.msk [vmem:[%s1033_s3 + $0x78] sm:$0xff] %vm446_vm1, %v430_v23 }

// kernel: net_forward.9
= control target key start
LH: loop header
LB: loop body
LE: loop exit
PB: predicated region body
PF: predicated region fallthrough
CT: control target
= control target key end

     0   :  { %v462_v3 = vmov 0.0|0.0   ;;  %vm463_vm0 = vmmov 0   ;;  %v464_v4 = vmov 0.0   ;;  %vm78_vm1 = vcmask 261120   ;;  %s707_s1 = inlined_call_operand.vmem [shape: f32[288,64], index: 1, kind: input, shape index: {}]   ;;  %s708_s0 = inlined_call_operand.vmem [shape: f32[50,288], index: 0, kind: input, shape index: {}]   ;;  %s709_s2 = inlined_call_operand.vmem [shape: f32[1,64], index: 2, kind: input, shape index: {}]   ;;  %s710_s3 = inlined_call_operand.vmem [shape: f32[50,64], index: 3, kind: output, shape index: {}]  }
   0x1   :  { %v51_v0 = vld [vmem:[%s707_s1 + $0x80] sm:$0xff]  ;;  %v52_v1 = vld [vmem:[%s707_s1 + $0x88] sm:$0xff]  ;;  %453 = vmatprep.subr.bf16.mxu1 %v462_v3  ;;  %400 = vmatprep.mubr.msk.f32.mxu1 %vm463_vm0, %v464_v4  ;;  %v53_v7 = vld [vmem:[%s707_s1 + $0x90] sm:$0xff]  ;;  %vm307_vm2 = vcmask 523264   ;;  %vm314_vm3 = vcmask 517120  }
   0x2   :  { %v35_v2 = vld [vmem:[%s707_s1] sm:$0xff]  ;;  %v421_v5 = vpack.c.bf16 %v52_v1, %v51_v0  ;;  %v36_v6 = vld [vmem:[%s707_s1 + $0x8] sm:$0xff]  ;;  %v54_v8 = vld [vmem:[%s707_s1 + $0x98] sm:$0xff] }
   0x3   :  { %v423_v9 = vpack.c.bf16 %v36_v6, %v35_v2  ;;  %v425_v10 = vpack.c.bf16 %v54_v8, %v53_v7  ;;  %v37_v11 = vld [vmem:[%s707_s1 + $0x10] sm:$0xff]  ;;  %v38_v12 = vld [vmem:[%s707_s1 + $0x18] sm:$0xff]  ;;  %v55_v13 = vld [vmem:[%s707_s1 + $0xa0] sm:$0xff] }
   0x4   :  { %422 = vmatprep.subr.bf16.mxu0 %v421_v5  ;;  %v56_v14 = vld [vmem:[%s707_s1 + $0xa8] sm:$0xff]  ;;  %v427_v15 = vpack.c.bf16 %v38_v12, %v37_v11  ;;  %v39_v17 = vld [vmem:[%s707_s1 + $0x20] sm:$0xff]  ;;  %v57_v19 = vld [vmem:[%s707_s1 + $0xb0] sm:$0xff] }
   0x5   :  { %424 = vmatpush3.bf16.msra.mxu0 %v423_v9  ;;  %v429_v16 = vpack.c.bf16 %v56_v14, %v55_v13  ;;  %v40_v18 = vld [vmem:[%s707_s1 + $0x28] sm:$0xff]  ;;  %v58_v20 = vld [vmem:[%s707_s1 + $0xb8] sm:$0xff]  ;;  %v41_v23 = vld [vmem:[%s707_s1 + $0x30] sm:$0xff] }
   0x6   :  { %426 = vmatprep.subr.bf16.mxu0 %v425_v10  ;;  %v431_v21 = vpack.c.bf16 %v40_v18, %v39_v17  ;;  %v433_v22 = vpack.c.bf16 %v58_v20, %v57_v19  ;;  %v42_v24 = vld [vmem:[%s707_s1 + $0x38] sm:$0xff]  ;;  %v59_v25 = vld [vmem:[%s707_s1 + $0xc0] sm:$0xff]  ;;  %v60_v26 = vld [vmem:[%s707_s1 + $0xc8] sm:$0xff] }
   0x7   :  { %v67_v27 = vld [vmem:[%s707_s1 + $0x100] sm:$0xff]  ;;  %v68_v28 = vld [vmem:[%s707_s1 + $0x108] sm:$0xff]  ;;  %v435_v30 = vpack.c.bf16 %v42_v24, %v41_v23  ;;  %v69_v32 = vld [vmem:[%s707_s1 + $0x110] sm:$0xff]  ;;  %v437_v34 = vpack.c.bf16 %v60_v26, %v59_v25 }
   0x8   :  { %v15_v29 = vld [vmem:[%s708_s0 + $0x8] sm:$0xff]  ;;  %v454_v31 = vpack.c.bf16 %v68_v28, %v67_v27  ;;  %v70_v33 = vld [vmem:[%s707_s1 + $0x118] sm:$0xff]  ;;  %v43_v35 = vld [vmem:[%s707_s1 + $0x40] sm:$0xff] }
   0x9   :  { %428 = vmatpush3.bf16.msra.mxu0 %v427_v15  ;;  %164 = vmatprep.mubr.f32.mxu0 %v15_v29  ;;  %v44_v36 = vld [vmem:[%s707_s1 + $0x48] sm:$0xff]  ;;  %v61_v37 = vld [vmem:[%s707_s1 + $0xd0] sm:$0xff]  ;;  %v62_v38 = vld [vmem:[%s707_s1 + $0xd8] sm:$0xff]  ;;  %v457_v39 = vpack.c.bf16 %v70_v33, %v69_v32 }
   0xa   :  { %430 = vmatprep.subr.bf16.mxu0 %v429_v16  ;;  %455 = vmatpush3.bf16.msra.mxu1 %v454_v31  ;;  %v439_v40 = vpack.c.bf16 %v44_v36, %v43_v35  ;;  %v441_v41 = vpack.c.bf16 %v62_v38, %v61_v37  ;;  %v45_v42 = vld [vmem:[%s707_s1 + $0x50] sm:$0xff]  ;;  %v46_v43 = vld [vmem:[%s707_s1 + $0x58] sm:$0xff]  ;;  %v63_v44 = vld [vmem:[%s707_s1 + $0xe0] sm:$0xff] }
   0xb   :  { %456 = vmatprep.subr.bf16.mxu1 %v462_v3  ;;  %v64_v45 = vld [vmem:[%s707_s1 + $0xe8] sm:$0xff]  ;;  %v16_v46 = vld [vmem:[%s708_s0 + $0x10] sm:$0xff]  ;;  %v443_v47 = vpack.c.bf16 %v46_v43, %v45_v42  ;;  %v47_v49 = vld [vmem:[%s707_s1 + $0x60] sm:$0xff] }
   0xc   :  { %v445_v48 = vpack.c.bf16 %v64_v45, %v63_v44  ;;  %v48_v50 = vld [vmem:[%s707_s1 + $0x68] sm:$0xff]  ;;  %v65_v51 = vld [vmem:[%s707_s1 + $0xf0] sm:$0xff]  ;;  %v66_v52 = vld [vmem:[%s707_s1 + $0xf8] sm:$0xff] }
   0xd   :  { %432 = vmatpush3.bf16.msra.mxu0 %v431_v21  ;;  %v19_v53 = vld [vmem:[%s708_s0 + $0x28] sm:$0xff]  ;;  %v447_v54 = vpack.c.bf16 %v48_v50, %v47_v49  ;;  %v449_v55 = vpack.c.bf16 %v66_v52, %v65_v51  ;;  %v49_v56 = vld [vmem:[%s707_s1 + $0x70] sm:$0xff]  ;;  %v50_v57 = vld [vmem:[%s707_s1 + $0x78] sm:$0xff] }
   0xe   :  { %434 = vmatprep.subr.bf16.mxu0 %v433_v22  ;;  %458 = vmatpush3.bf16.msra.mxu1 %v457_v39  ;;  %v22_v58 = vld [vmem:[%s708_s0 + $0x40] sm:$0xff]  ;;  %v451_v59 = vpack.c.bf16 %v50_v57, %v49_v56  ;;  %v25_v60 = vld [vmem:[%s708_s0 + $0x58] sm:$0xff]  ;;  %v28_v63 = vld [vmem:[%s708_s0 + $0x70] sm:$0xff] }
   0xf   :  { %v14_v61 = vld [vmem:[%s708_s0] sm:$0xff]  ;;  %v17_v0 = vld [vmem:[%s708_s0 + $0x18] sm:$0xff]  ;;  %v31_v2 = vld [vmem:[%s708_s0 + $0x88] sm:$0xff] }
  0x10   :  { %v18_v62 = vld [vmem:[%s708_s0 + $0x20] sm:$0xff]  ;;  %v21_v1 = vld [vmem:[%s708_s0 + $0x38] sm:$0xff]  ;;  %v20_v3 = vld [vmem:[%s708_s0 + $0x30] sm:$0xff] }
  0x11   :  { %436 = vmatpush3.bf16.msra.mxu0 %v435_v30  ;;  %401 = vmatmul.mubr.msk.f32.vlgmr.msra.gmra.mrb[0].mxu1 %vm78_vm1, %v16_v46  ;;  %v24_v5 = vld [vmem:[%s708_s0 + $0x50] sm:$0xff]  ;;  %v34_v6 = vld [vmem:[%s708_s0 + $0xa0] sm:$0x3]  ;;  %v23_v7 = vld [vmem:[%s708_s0 + $0x48] sm:$0xff] }
  0x12   :  { %438 = vmatprep.subr.bf16.mxu0 %v437_v34  ;;  %403 = vmatprep.mubr.msk.f32.mxu1 %vm463_vm0, %v464_v4  ;;  %v27_v8 = vld [vmem:[%s708_s0 + $0x68] sm:$0xff]  ;;  %v30_v9 = vld [vmem:[%s708_s0 + $0x80] sm:$0xff]  ;;  %v29_v10 = vld [vmem:[%s708_s0 + $0x78] sm:$0xff] }
  0x13   :  { %v33_v11 = vld [vmem:[%s708_s0 + $0x98] sm:$0x3]  ;;  %v32_v12 = vld [vmem:[%s708_s0 + $0x90] sm:$0x3]  ;;  %v320_v23 = vld [vmem:[%s709_s2] ss:$0 sm:$0xff] }
  0x15   :  { %440 = vmatpush3.bf16.msra.mxu0 %v439_v40  ;;  %404 = vmatmul.mubr.msk.f32.gmra.mrb[2].mxu1 %vm78_vm1, %v19_v53 }
  0x16   :  { %442 = vmatprep.subr.bf16.mxu0 %v441_v41  ;;  %406 = vmatprep.mubr.msk.f32.mxu1 %vm463_vm0, %v464_v4 }
  0x19   :  { %444 = vmatpush3.bf16.msra.mxu0 %v443_v47  ;;  %407 = vmatmul.mubr.msk.f32.gmra.mrb[4].mxu1 %vm78_vm1, %v22_v58 }
  0x1a   :  { %446 = vmatprep.subr.bf16.mxu0 %v445_v48  ;;  %409 = vmatprep.mubr.msk.f32.mxu1 %vm463_vm0, %v464_v4 }
  0x1d   :  { %448 = vmatpush3.bf16.msra.mxu0 %v447_v54  ;;  %410 = vmatmul.mubr.msk.f32.gmra.mrb[6].mxu1 %vm78_vm1, %v25_v60 }
  0x1e   :  { %450 = vmatprep.subr.bf16.mxu0 %v449_v55  ;;  %412 = vmatprep.mubr.msk.f32.mxu1 %vm463_vm0, %v464_v4 }
  0x21   :  { %452 = vmatpush3.bf16.msra.mxu0 %v451_v59  ;;  %413 = vmatmul.mubr.msk.f32.gmra.mrb[8].mxu1 %vm78_vm1, %v28_v63 }
  0x22   :  { %415 = vmatprep.mubr.msk.f32.mxu1 %vm463_vm0, %v464_v4 }
  0x24   :  { %165 = vmatmul.mubr.f32.vlgmr.msra.gmra.mrb[0].mxu0 %v14_v61 }
  0x25   :  { %169 = vmatprep.mubr.f32.mxu0 %v18_v62  ;;  %416 = vmatmul.mubr.msk.f32.gmra.mrb[10].mxu1 %vm78_vm1, %v31_v2 }
  0x26   :  { %418 = vmatprep.mubr.msk.f32.mxu1 %vm463_vm0, %v464_v4  ;;  %v26_v4 = vld [vmem:[%s708_s0 + $0x60] sm:$0xff] }
  0x28   :  { %170 = vmatmul.mubr.f32.gmra.mrb[2].mxu0 %v17_v0 }
  0x29   :  { %174 = vmatprep.mubr.f32.mxu0 %v21_v1  ;;  %419 = vmatmul.mubr.msk.f32.gmra.mrb[12].mxu1 %vm78_vm1, %v34_v6 }
  0x2c   :  { %175 = vmatmul.mubr.f32.gmra.mrb[4].mxu0 %v20_v3 }
  0x2d   :  { %179 = vmatprep.mubr.f32.mxu0 %v24_v5 }
  0x30   :  { %180 = vmatmul.mubr.f32.gmra.mrb[6].mxu0 %v23_v7 }
  0x31   :  { %184 = vmatprep.mubr.f32.mxu0 %v27_v8 }
  0x34   :  { %185 = vmatmul.mubr.f32.gmra.mrb[8].mxu0 %v26_v4 }
  0x35   :  { %189 = vmatprep.mubr.f32.mxu0 %v30_v9 }
  0x38   :  { %190 = vmatmul.mubr.f32.gmra.mrb[10].mxu0 %v29_v10 }
  0x39   :  { %194 = vmatprep.mubr.f32.mxu0 %v33_v11 }
  0x3c   :  { %195 = vmatmul.mubr.f32.gmra.mrb[12].mxu0 %v32_v12 }
  0xe4   :  { %v266_v13 = vpop.f32.mrb[0].mxu1 }
  0xe5   :  { %v402_v14 = vpop.f32.mrb[1].mxu1 }
  0xe8   :  { %v271_v15 = vpop.f32.mrb[2].mxu1 }
  0xe9   :  { %v405_v16 = vpop.f32.mrb[3].mxu1 }
  0xec   :  { %v276_v17 = vpop.f32.mrb[4].mxu1 }
  0xed   :  { %v408_v18 = vpop.f32.mrb[5].mxu1 }
  0xf0   :  { %v281_v19 = vpop.f32.mrb[6].mxu1 }
  0xf1   :  { %v411_v20 = vpop.f32.mrb[7].mxu1 }
  0xf4   :  { %v286_v25 = vpop.f32.mrb[8].mxu1 }
  0xf5   :  { %v414_v26 = vpop.f32.mrb[9].mxu1 }
  0xf7   :  { %v360_v21 = vpop.f32.mrb[0].mxu0 }
  0xf8   :  { %v361_v22 = vpop.f32.mrb[1].mxu0  ;;  %v291_v32 = vpop.f32.mrb[10].mxu1 }
  0xf9   :  { %v362_v24 = vadd.f32 %v361_v22, %v360_v21  ;;  %v417_v33 = vpop.f32.mrb[11].mxu1 }
  0xfb   :  { %v363_v27 = vpop.f32.mrb[2].mxu0  ;;  %v167_v28 = vadd.f32 %v362_v24, %v320_v23 }
  0xfc   :  { %v364_v29 = vpop.f32.mrb[3].mxu0  ;;  %v296_v40 = vpop.f32.mrb[12].mxu1 }
  0xfd   :  { %v267_v30 = vadd.f32 %v266_v13, %v167_v28  ;;  %v365_v31 = vadd.f32 %v364_v29, %v363_v27  ;;  %v420_v41 = vpop.f32.mrb[13].mxu1 }
  0xff   :  { %v300_v34 = vmax.f32 %v267_v30, 0.0  ;;  %v366_v35 = vpop.f32.mrb[4].mxu0  ;;  %v172_v36 = vadd.f32 %v365_v31, %v320_v23 }
 0x100   :  { %v367_v37 = vpop.f32.mrb[5].mxu0 }
 0x101   :  { %308 = vst.msk [vmem:[%s710_s3] sm:$0xff] %vm307_vm2, %v300_v34  ;;  %v272_v38 = vadd.f32 %v271_v15, %v172_v36  ;;  %v368_v39 = vadd.f32 %v367_v37, %v366_v35 }
 0x103   :  { %v301_v42 = vmax.f32 %v272_v38, 0.0  ;;  %v369_v43 = vpop.f32.mrb[6].mxu0  ;;  %v177_v44 = vadd.f32 %v368_v39, %v320_v23 }
 0x104   :  { %v370_v45 = vpop.f32.mrb[7].mxu0 }
 0x105   :  { %309 = vst.msk [vmem:[%s710_s3 + $0x8] sm:$0xff] %vm307_vm2, %v301_v42  ;;  %v277_v46 = vadd.f32 %v276_v17, %v177_v44  ;;  %v371_v47 = vadd.f32 %v370_v45, %v369_v43 }
 0x107   :  { %v302_v48 = vmax.f32 %v277_v46, 0.0  ;;  %v372_v49 = vpop.f32.mrb[8].mxu0  ;;  %v182_v50 = vadd.f32 %v371_v47, %v320_v23 }
 0x108   :  { %v373_v51 = vpop.f32.mrb[9].mxu0 }
 0x109   :  { %310 = vst.msk [vmem:[%s710_s3 + $0x10] sm:$0xff] %vm307_vm2, %v302_v48  ;;  %v282_v52 = vadd.f32 %v281_v19, %v182_v50  ;;  %v374_v53 = vadd.f32 %v373_v51, %v372_v49 }
 0x10b   :  { %v303_v54 = vmax.f32 %v282_v52, 0.0  ;;  %v375_v55 = vpop.f32.mrb[10].mxu0  ;;  %v187_v56 = vadd.f32 %v374_v53, %v320_v23 }
 0x10c   :  { %v376_v57 = vpop.f32.mrb[11].mxu0 }
 0x10d   :  { %311 = vst.msk [vmem:[%s710_s3 + $0x18] sm:$0xff] %vm307_vm2, %v303_v54  ;;  %v287_v58 = vadd.f32 %v286_v25, %v187_v56  ;;  %v377_v59 = vadd.f32 %v376_v57, %v375_v55 }
 0x10f   :  { %v304_v60 = vmax.f32 %v287_v58, 0.0  ;;  %v378_v61 = vpop.f32.mrb[12].mxu0  ;;  %v192_v62 = vadd.f32 %v377_v59, %v320_v23 }
 0x110   :  { %v379_v63 = vpop.f32.mrb[13].mxu0 }
 0x111   :  { %312 = vst.msk [vmem:[%s710_s3 + $0x20] sm:$0xff] %vm307_vm2, %v304_v60  ;;  %v292_v0 = vadd.f32 %v291_v32, %v192_v62  ;;  %v380_v1 = vadd.f32 %v379_v63, %v378_v61 }
 0x113   :  { %v305_v2 = vmax.f32 %v292_v0, 0.0  ;;  %v197_v3 = vadd.f32 %v380_v1, %v320_v23 }
 0x115   :  { %313 = vst.msk [vmem:[%s710_s3 + $0x28] sm:$0xff] %vm307_vm2, %v305_v2  ;;  %v297_v5 = vadd.f32 %v296_v40, %v197_v3 }
 0x117   :  { %v306_v6 = vmax.f32 %v297_v5, 0.0 }
 0x119   :  { %315 = vst.msk [vmem:[%s710_s3 + $0x30] sm:$0x3] %vm314_vm3, %v306_v6 }

// kernel: net_forward.10
= control target key start
LH: loop header
LB: loop body
LE: loop exit
PB: predicated region body
PF: predicated region fallthrough
CT: control target
= control target key end

     0   :  { %vm578_vm0 = vmmov 0   ;;  %vm108_vm1 = vcmask 523264   ;;  %s873_s1 = inlined_call_operand.vmem [shape: f32[576,128], index: 1, kind: input, shape index: {}]   ;;  %s874_s0 = inlined_call_operand.vmem [shape: f32[18,576], index: 0, kind: input, shape index: {}]   ;;  %s875_s2 = inlined_call_operand.vmem [shape: f32[1,128], index: 2, kind: input, shape index: {}]   ;;  %s876_s3 = inlined_call_operand.vmem [shape: f32[18,128], index: 3, kind: output, shape index: {}]  }
   0x1   :  { %v45_v0 = vld [vmem:[%s873_s1 + $0x80] sm:$0xff]  ;;  %v46_v1 = vld [vmem:[%s873_s1 + $0x88] sm:$0xff]  ;;  %v47_v11 = vld [vmem:[%s873_s1 + $0x90] sm:$0xff] }
   0x2   :  { %v77_v2 = vld [vmem:[%s873_s1 + $0x180] sm:$0xff]  ;;  %v490_v3 = vpack.c.bf16 %v46_v1, %v45_v0  ;;  %v78_v4 = vld [vmem:[%s873_s1 + $0x188] sm:$0xff]  ;;  %v48_v13 = vld [vmem:[%s873_s1 + $0x98] sm:$0xff] }
   0x3   :  { %v29_v5 = vld [vmem:[%s873_s1] sm:$0xff]  ;;  %v30_v6 = vld [vmem:[%s873_s1 + $0x8] sm:$0xff]  ;;  %v522_v7 = vpack.c.bf16 %v78_v4, %v77_v2  ;;  %v79_v14 = vld [vmem:[%s873_s1 + $0x190] sm:$0xff]  ;;  %v494_v16 = vpack.c.bf16 %v48_v13, %v47_v11 }
   0x4   :  { %v492_v8 = vpack.c.bf16 %v30_v6, %v29_v5  ;;  %v61_v9 = vld [vmem:[%s873_s1 + $0x100] sm:$0xff]  ;;  %v62_v10 = vld [vmem:[%s873_s1 + $0x108] sm:$0xff]  ;;  %491 = vmatprep.subr.bf16.mxu0 %v490_v3  ;;  %v80_v15 = vld [vmem:[%s873_s1 + $0x198] sm:$0xff] }
   0x5   :  { %v524_v12 = vpack.c.bf16 %v62_v10, %v61_v9  ;;  %523 = vmatprep.subr.bf16.mxu1 %v522_v7  ;;  %v526_v17 = vpack.c.bf16 %v80_v15, %v79_v14  ;;  %v31_v18 = vld [vmem:[%s873_s1 + $0x10] sm:$0xff]  ;;  %v32_v19 = vld [vmem:[%s873_s1 + $0x18] sm:$0xff]  ;;  %v49_v23 = vld [vmem:[%s873_s1 + $0xa0] sm:$0xff] }
   0x6   :  { %493 = vmatpush3.bf16.msra.mxu0 %v492_v8  ;;  %v63_v20 = vld [vmem:[%s873_s1 + $0x110] sm:$0xff]  ;;  %v496_v21 = vpack.c.bf16 %v32_v19, %v31_v18  ;;  %v64_v22 = vld [vmem:[%s873_s1 + $0x118] sm:$0xff]  ;;  %v50_v24 = vld [vmem:[%s873_s1 + $0xa8] sm:$0xff] }
   0x7   :  { %525 = vmatpush3.bf16.msra.mxu1 %v524_v12  ;;  %495 = vmatprep.subr.bf16.mxu0 %v494_v16  ;;  %v528_v25 = vpack.c.bf16 %v64_v22, %v63_v20  ;;  %v498_v26 = vpack.c.bf16 %v50_v24, %v49_v23  ;;  %v81_v27 = vld [vmem:[%s873_s1 + $0x1a0] sm:$0xff]  ;;  %v82_v28 = vld [vmem:[%s873_s1 + $0x1a8] sm:$0xff]  ;;  %v51_v35 = vld [vmem:[%s873_s1 + $0xb0] sm:$0xff] }
   0x8   :  { %527 = vmatprep.subr.bf16.mxu1 %v526_v17  ;;  %v33_v29 = vld [vmem:[%s873_s1 + $0x20] sm:$0xff]  ;;  %v530_v30 = vpack.c.bf16 %v82_v28, %v81_v27  ;;  %v34_v31 = vld [vmem:[%s873_s1 + $0x28] sm:$0xff]  ;;  %v52_v36 = vld [vmem:[%s873_s1 + $0xb8] sm:$0xff] }
   0x9   :  { %v65_v32 = vld [vmem:[%s873_s1 + $0x120] sm:$0xff]  ;;  %v66_v33 = vld [vmem:[%s873_s1 + $0x128] sm:$0xff]  ;;  %v500_v34 = vpack.c.bf16 %v34_v31, %v33_v29  ;;  %v83_v37 = vld [vmem:[%s873_s1 + $0x1b0] sm:$0xff]  ;;  %v502_v39 = vpack.c.bf16 %v52_v36, %v51_v35 }
   0xa   :  { %497 = vmatpush3.bf16.msra.mxu0 %v496_v21  ;;  %v532_v38 = vpack.c.bf16 %v66_v33, %v65_v32  ;;  %v84_v40 = vld [vmem:[%s873_s1 + $0x1b8] sm:$0xff]  ;;  %v35_v41 = vld [vmem:[%s873_s1 + $0x30] sm:$0xff]  ;;  %v53_v46 = vld [vmem:[%s873_s1 + $0xc0] sm:$0xff] }
   0xb   :  { %529 = vmatpush3.bf16.msra.mxu1 %v528_v25  ;;  %499 = vmatprep.subr.bf16.mxu0 %v498_v26  ;;  %v36_v42 = vld [vmem:[%s873_s1 + $0x38] sm:$0xff]  ;;  %v534_v43 = vpack.c.bf16 %v84_v40, %v83_v37  ;;  %v67_v44 = vld [vmem:[%s873_s1 + $0x130] sm:$0xff]  ;;  %v54_v47 = vld [vmem:[%s873_s1 + $0xc8] sm:$0xff] }
   0xc   :  { %531 = vmatprep.subr.bf16.mxu1 %v530_v30  ;;  %v68_v45 = vld [vmem:[%s873_s1 + $0x138] sm:$0xff]  ;;  %v85_v48 = vld [vmem:[%s873_s1 + $0x1c0] sm:$0xff]  ;;  %v86_v49 = vld [vmem:[%s873_s1 + $0x1c8] sm:$0xff]  ;;  %v504_v50 = vpack.c.bf16 %v36_v42, %v35_v41  ;;  %v506_v52 = vpack.c.bf16 %v54_v47, %v53_v46 }
   0xd   :  { %v536_v51 = vpack.c.bf16 %v68_v45, %v67_v44  ;;  %v37_v53 = vld [vmem:[%s873_s1 + $0x40] sm:$0xff]  ;;  %v38_v54 = vld [vmem:[%s873_s1 + $0x48] sm:$0xff]  ;;  %v538_v56 = vpack.c.bf16 %v86_v49, %v85_v48  ;;  %v55_v58 = vld [vmem:[%s873_s1 + $0xd0] sm:$0xff] }
   0xe   :  { %501 = vmatpush3.bf16.msra.mxu0 %v500_v34  ;;  %v69_v55 = vld [vmem:[%s873_s1 + $0x140] sm:$0xff]  ;;  %v70_v57 = vld [vmem:[%s873_s1 + $0x148] sm:$0xff]  ;;  %v56_v59 = vld [vmem:[%s873_s1 + $0xd8] sm:$0xff]  ;;  %v508_v62 = vpack.c.bf16 %v38_v54, %v37_v53 }
   0xf   :  { %533 = vmatpush3.bf16.msra.mxu1 %v532_v38  ;;  %503 = vmatprep.subr.bf16.mxu0 %v502_v39  ;;  %v87_v60 = vld [vmem:[%s873_s1 + $0x1d0] sm:$0xff]  ;;  %v88_v61 = vld [vmem:[%s873_s1 + $0x1d8] sm:$0xff]  ;;  %v540_v63 = vpack.c.bf16 %v70_v57, %v69_v55  ;;  %v510_v0 = vpack.c.bf16 %v56_v59, %v55_v58  ;;  %v57_v6 = vld [vmem:[%s873_s1 + $0xe0] sm:$0xff]  ;;  %v577_v39 = vmov 0.0|0.0   ;;  %v579_v57 = vmov 0.0  }
  0x10   :  { %535 = vmatprep.subr.bf16.mxu1 %v534_v43  ;;  %v39_v1 = vld [vmem:[%s873_s1 + $0x50] sm:$0xff]  ;;  %v40_v2 = vld [vmem:[%s873_s1 + $0x58] sm:$0xff]  ;;  %v542_v4 = vpack.c.bf16 %v88_v61, %v87_v60  ;;  %v58_v7 = vld [vmem:[%s873_s1 + $0xe8] sm:$0xff] }
  0x11   :  { %v71_v3 = vld [vmem:[%s873_s1 + $0x150] sm:$0xff]  ;;  %v72_v5 = vld [vmem:[%s873_s1 + $0x158] sm:$0xff]  ;;  %v89_v8 = vld [vmem:[%s873_s1 + $0x1e0] sm:$0xff]  ;;  %v512_v10 = vpack.c.bf16 %v40_v2, %v39_v1  ;;  %v514_v14 = vpack.c.bf16 %v58_v7, %v57_v6 }
  0x12   :  { %505 = vmatpush3.bf16.msra.mxu0 %v504_v50  ;;  %v90_v9 = vld [vmem:[%s873_s1 + $0x1e8] sm:$0xff]  ;;  %v41_v11 = vld [vmem:[%s873_s1 + $0x60] sm:$0xff]  ;;  %v544_v13 = vpack.c.bf16 %v72_v5, %v71_v3  ;;  %v17_v17 = vld [vmem:[%s874_s0 + $0x18] sm:$0xff] }
  0x13   :  { %537 = vmatpush3.bf16.msra.mxu1 %v536_v51  ;;  %507 = vmatprep.subr.bf16.mxu0 %v506_v52  ;;  %v42_v12 = vld [vmem:[%s873_s1 + $0x68] sm:$0xff]  ;;  %v73_v15 = vld [vmem:[%s873_s1 + $0x160] sm:$0xff]  ;;  %v546_v18 = vpack.c.bf16 %v90_v9, %v89_v8  ;;  %v59_v20 = vld [vmem:[%s873_s1 + $0xf0] sm:$0xff] }
  0x14   :  { %539 = vmatprep.subr.bf16.mxu1 %v538_v56  ;;  %v15_v16 = vld [vmem:[%s874_s0 + $0x8] sm:$0xff]  ;;  %v60_v21 = vld [vmem:[%s873_s1 + $0xf8] sm:$0xff]  ;;  %v91_v22 = vld [vmem:[%s873_s1 + $0x1f0] sm:$0xff]  ;;  %262 = vmatprep.mubr.f32.mxu1 %v17_v17  ;;  %v516_v24 = vpack.c.bf16 %v42_v12, %v41_v11 }
  0x15   :  { %v74_v19 = vld [vmem:[%s873_s1 + $0x168] sm:$0xff]  ;;  %182 = vmatprep.mubr.f32.mxu0 %v15_v16  ;;  %v92_v23 = vld [vmem:[%s873_s1 + $0x1f8] sm:$0xff]  ;;  %v518_v26 = vpack.c.bf16 %v60_v21, %v59_v20  ;;  %v43_v27 = vld [vmem:[%s873_s1 + $0x70] sm:$0xff] }
  0x16   :  { %509 = vmatpush3.bf16.msra.mxu0 %v508_v62  ;;  %v548_v25 = vpack.c.bf16 %v74_v19, %v73_v15  ;;  %v44_v28 = vld [vmem:[%s873_s1 + $0x78] sm:$0xff]  ;;  %v550_v29 = vpack.c.bf16 %v92_v23, %v91_v22  ;;  %v75_v30 = vld [vmem:[%s873_s1 + $0x170] sm:$0xff]  ;;  %v93_v34 = vld [vmem:[%s873_s1 + $0x200] sm:$0xff] }
  0x17   :  { %541 = vmatpush3.bf16.msra.mxu1 %v540_v63  ;;  %511 = vmatprep.subr.bf16.mxu0 %v510_v0  ;;  %v76_v31 = vld [vmem:[%s873_s1 + $0x178] sm:$0xff]  ;;  %v520_v32 = vpack.c.bf16 %v44_v28, %v43_v27  ;;  %v94_v35 = vld [vmem:[%s873_s1 + $0x208] sm:$0xff]  ;;  %v14_v36 = vld [vmem:[%s874_s0] sm:$0xff] }
  0x18   :  { %543 = vmatprep.subr.bf16.mxu1 %v542_v4  ;;  %v552_v33 = vpack.c.bf16 %v76_v31, %v75_v30  ;;  %v555_v37 = vpack.c.bf16 %v94_v35, %v93_v34  ;;  %v16_v38 = vld [vmem:[%s874_s0 + $0x10] sm:$0xff]  ;;  %v96_v41 = vld [vmem:[%s873_s1 + $0x218] sm:$0xff]  ;;  %v19_v43 = vld [vmem:[%s874_s0 + $0x28] sm:$0xff] }
  0x19   :  { %v95_v40 = vld [vmem:[%s873_s1 + $0x210] sm:$0xff]  ;;  %v22_v45 = vld [vmem:[%s874_s0 + $0x40] sm:$0xff]  ;;  %v21_v46 = vld [vmem:[%s874_s0 + $0x38] sm:$0xff] }
  0x1a   :  { %513 = vmatpush3.bf16.msra.mxu0 %v512_v10  ;;  %v20_v42 = vld [vmem:[%s874_s0 + $0x30] sm:$0xff]  ;;  %v558_v44 = vpack.c.bf16 %v96_v41, %v95_v40  ;;  %v97_v47 = vld [vmem:[%s873_s1 + $0x220] sm:$0xff]  ;;  %v98_v48 = vld [vmem:[%s873_s1 + $0x228] sm:$0xff] }
  0x1b   :  { %545 = vmatpush3.bf16.msra.mxu1 %v544_v13  ;;  %515 = vmatprep.subr.bf16.mxu0 %v514_v14  ;;  %v25_v49 = vld [vmem:[%s874_s0 + $0x58] sm:$0x3]  ;;  %v24_v50 = vld [vmem:[%s874_s0 + $0x50] sm:$0x3]  ;;  %v561_v51 = vpack.c.bf16 %v98_v48, %v97_v47  ;;  %v27_v52 = vld [vmem:[%s874_s0 + $0x68] sm:$0x3] }
  0x1c   :  { %547 = vmatprep.subr.bf16.mxu1 %v546_v18  ;;  %v26_v53 = vld [vmem:[%s874_s0 + $0x60] sm:$0x3]  ;;  %v99_v54 = vld [vmem:[%s873_s1 + $0x230] sm:$0xff]  ;;  %v100_v55 = vld [vmem:[%s873_s1 + $0x238] sm:$0xff] }
  0x1d   :  { %v564_v56 = vpack.c.bf16 %v100_v55, %v99_v54  ;;  %v18_v58 = vld [vmem:[%s874_s0 + $0x20] sm:$0xff]  ;;  %v23_v59 = vld [vmem:[%s874_s0 + $0x48] sm:$0xff]  ;;  %v28_v60 = vld [vmem:[%s874_s0 + $0x70] sm:$0x3] }
  0x1e   :  { %517 = vmatpush3.bf16.msra.mxu0 %v516_v24  ;;  %v368_v63 = vld [vmem:[%s875_s2] ss:$0 sm:$0xff] }
  0x1f   :  { %549 = vmatpush3.bf16.msra.mxu1 %v548_v25  ;;  %519 = vmatprep.subr.bf16.mxu0 %v518_v26 }
  0x20   :  { %551 = vmatprep.subr.bf16.mxu1 %v550_v29 }
  0x22   :  { %521 = vmatpush3.bf16.msra.mxu0 %v520_v32 }
  0x23   :  { %553 = vmatpush3.bf16.msra.mxu1 %v552_v33  ;;  %554 = vmatprep.subr.bf16.mxu0 %v577_v39 }
  0x24   :  { %566 = vmatprep.subr.bf16.mxu1 %v577_v39 }
  0x25   :  { %183 = vmatmul.mubr.f32.vlgmr.msra.gmra.mrb[0].mxu0 %v14_v36 }
  0x26   :  { %263 = vmatmul.mubr.f32.vlgmr.msra.gmra.mrb[0].mxu1 %v16_v38  ;;  %556 = vmatpush3.bf16.msra.mxu0 %v555_v37 }
  0x27   :  { %570 = vmatpush3.bf16.msra.mxu1 %v555_v37  ;;  %187 = vmatprep.mubr.f32.mxu0 %v20_v42 }
  0x28   :  { %557 = vmatprep.subr.bf16.mxu0 %v577_v39  ;;  %567 = vmatprep.subr.bf16.mxu1 %v577_v39 }
  0x29   :  { %188 = vmatmul.mubr.f32.gmra.mrb[2].mxu0 %v19_v43  ;;  %267 = vmatprep.mubr.f32.mxu1 %v22_v45 }
  0x2a   :  { %559 = vmatpush3.bf16.msra.mxu0 %v558_v44  ;;  %268 = vmatmul.mubr.f32.gmra.mrb[2].mxu1 %v21_v46 }
  0x2b   :  { %571 = vmatpush3.bf16.msra.mxu1 %v558_v44  ;;  %192 = vmatprep.mubr.f32.mxu0 %v25_v49 }
  0x2c   :  { %560 = vmatprep.subr.bf16.mxu0 %v577_v39  ;;  %568 = vmatprep.subr.bf16.mxu1 %v577_v39 }
  0x2d   :  { %193 = vmatmul.mubr.f32.gmra.mrb[4].mxu0 %v24_v50  ;;  %272 = vmatprep.mubr.f32.mxu1 %v27_v52 }
  0x2e   :  { %562 = vmatpush3.bf16.msra.mxu0 %v561_v51  ;;  %273 = vmatmul.mubr.f32.gmra.mrb[4].mxu1 %v26_v53 }
  0x2f   :  { %572 = vmatpush3.bf16.msra.mxu1 %v561_v51  ;;  %563 = vmatprep.subr.bf16.mxu0 %v577_v39 }
  0x30   :  { %569 = vmatprep.subr.bf16.mxu1 %v577_v39  ;;  %481 = vmatprep.mubr.msk.f32.mxu0 %vm578_vm0, %v579_v57 }
  0x31   :  { %484 = vmatprep.mubr.msk.f32.mxu1 %vm578_vm0, %v579_v57 }
  0x32   :  { %565 = vmatpush3.bf16.msra.mxu0 %v564_v56 }
  0x33   :  { %573 = vmatpush3.bf16.msra.mxu1 %v564_v56 }
  0x35   :  { %482 = vmatmul.mubr.msk.f32.vlgmr.msra.gmra.mrb[6].mxu0 %vm108_vm1, %v18_v58 }
  0x36   :  { %485 = vmatmul.mubr.msk.f32.vlgmr.msra.gmra.mrb[6].mxu1 %vm108_vm1, %v23_v59 }
  0x37   :  { %487 = vmatprep.mubr.msk.f32.mxu1 %vm578_vm0, %v579_v57 }
  0x3a   :  { %488 = vmatmul.mubr.msk.f32.gmra.mrb[8].mxu1 %vm108_vm1, %v28_v60 }
  0xf8   :  { %v404_v61 = vpop.f32.mrb[0].mxu0 }
  0xf9   :  { %v445_v62 = vpop.f32.mrb[0].mxu1  ;;  %v405_v0 = vpop.f32.mrb[1].mxu0 }
  0xfa   :  { %v406_v1 = vadd.f32 %v405_v0, %v404_v61  ;;  %v446_v2 = vpop.f32.mrb[1].mxu1 }
  0xfb   :  { %v447_v3 = vadd.f32 %v446_v2, %v445_v62 }
  0xfc   :  { %v185_v4 = vadd.f32 %v406_v1, %v368_v63  ;;  %v407_v5 = vpop.f32.mrb[2].mxu0 }
  0xfd   :  { %v408_v6 = vpop.f32.mrb[3].mxu0  ;;  %v448_v7 = vpop.f32.mrb[2].mxu1 }
  0xfe   :  { %v409_v8 = vadd.f32 %v408_v6, %v407_v5  ;;  %v449_v9 = vpop.f32.mrb[3].mxu1  ;;  %v265_v10 = vadd.f32 %v447_v3, %v185_v4 }
  0xff   :  { %v450_v11 = vadd.f32 %v449_v9, %v448_v7 }
 0x100   :  { %v190_v12 = vadd.f32 %v409_v8, %v368_v63  ;;  %v410_v13 = vpop.f32.mrb[4].mxu0 }
 0x101   :  { %v411_v14 = vpop.f32.mrb[5].mxu0  ;;  %v451_v15 = vpop.f32.mrb[4].mxu1 }
 0x102   :  { %v412_v16 = vadd.f32 %v411_v14, %v410_v13  ;;  %v452_v17 = vpop.f32.mrb[5].mxu1  ;;  %v270_v18 = vadd.f32 %v450_v11, %v190_v12 }
 0x103   :  { %v453_v19 = vadd.f32 %v452_v17, %v451_v15 }
 0x104   :  { %v195_v20 = vadd.f32 %v412_v16, %v368_v63 }
 0x106   :  { %v275_v21 = vadd.f32 %v453_v19, %v195_v20 }
 0x108   :  { %v344_v22 = vpop.f32.mrb[6].mxu0 }
 0x109   :  { %v345_v23 = vadd.f32 %v344_v22, %v265_v10  ;;  %v349_v24 = vpop.f32.mrb[6].mxu1  ;;  %v483_v25 = vpop.f32.mrb[7].mxu0 }
 0x10a   :  { %v350_v26 = vadd.f32 %v349_v24, %v270_v18  ;;  %v486_v27 = vpop.f32.mrb[7].mxu1 }
 0x10b   :  { %v358_v28 = vmax.f32 %v345_v23, 0.0 }
 0x10c   :  { %v359_v29 = vmax.f32 %v350_v26, 0.0 }
 0x10d   :  { %361 = vst [vmem:[%s876_s3] sm:$0xff] %v358_v28  ;;  %v354_v30 = vpop.f32.mrb[8].mxu1 }
 0x10e   :  { %362 = vst [vmem:[%s876_s3 + $0x8] sm:$0xff] %v359_v29  ;;  %v355_v31 = vadd.f32 %v354_v30, %v275_v21  ;;  %v489_v32 = vpop.f32.mrb[9].mxu1 }
 0x110   :  { %v360_v33 = vmax.f32 %v355_v31, 0.0 }
 0x112   :  { %363 = vst [vmem:[%s876_s3 + $0x10] sm:$0x3] %v360_v33 }

// kernel: net_forward.11
= control target key start
LH: loop header
LB: loop body
LE: loop exit
PB: predicated region body
PF: predicated region fallthrough
CT: control target
= control target key end

     0   :  { %s2987_s0 = inlined_call_operand.vmem [shape: f32[2,1152], index: 0, kind: input, shape index: {}]   ;;  %s2988_s1 = inlined_call_operand.vmem [shape: f32[1152,256], index: 1, kind: input, shape index: {}]   ;;  %s2989_s2 = inlined_call_operand.vmem [shape: f32[1,256], index: 2, kind: input, shape index: {}]   ;;  %s2990_s3 = inlined_call_operand.vmem [shape: f32[256,256], index: 3, kind: input, shape index: {}]   ;;  %s2991_s4 = inlined_call_operand.vmem [shape: f32[1,256], index: 4, kind: input, shape index: {}]   ;;  %s2992_s5 = inlined_call_operand.vmem [shape: f32[128,1], index: 5, kind: input, shape index: {}]   ;;  %s2993_s6 = inlined_call_operand.<no memory space> [shape: f32[1,1], index: 6, kind: input, shape index: {}]   ;;  %s2994_s7 = inlined_call_operand.vmem [shape: f32[128,5], index: 7, kind: input, shape index: {}]   ;;  %s2995_s8 = inlined_call_operand.vmem [shape: f32[1,5], index: 8, kind: input, shape index: {}]   ;;  %s2996_s9 = inlined_call_operand.hbm [shape: f32[2,5], index: 9, kind: output, shape index: {0}]   ;;  %s2997_s10 = inlined_call_operand.vmem [shape: f32[2,1], index: 10, kind: output, shape index: {1}]  }
   0x1   :  { %v16_v0 = vstv %s2993_s6 }
   0x2   :  { %17 = vst [vmem:[#allocation2] sm:$0x1] %v16_v0 }
   0x3   :  { %v105_v1 = vld [vmem:[%s2988_s1 + $0x208] sm:$0xff]  ;;  %v107_v2 = vld [vmem:[%s2988_s1 + $0x218] sm:$0xff]  ;;  %v104_v3 = vld [vmem:[%s2988_s1 + $0x200] sm:$0xff]  ;;  %v330_v27 = vlaneseq  ;;  %v1670_v28 = vmov 1983009808  }
   0x4   :  { %v1289_v4 = vpack.c.bf16 %v107_v2, %v105_v1  ;;  %v106_v5 = vld [vmem:[%s2988_s1 + $0x210] sm:$0xff]  ;;  %v109_v6 = vld [vmem:[%s2988_s1 + $0x228] sm:$0xff]  ;;  %v111_v7 = vld [vmem:[%s2988_s1 + $0x238] sm:$0xff]  ;;  %v345_v29 = vunpack.c.l.s4 %v1670_v28 }
   0x5   :  { %v1291_v8 = vpack.c.bf16 %v106_v5, %v104_v3  ;;  %v1293_v9 = vpack.c.bf16 %v111_v7, %v109_v6  ;;  %v108_v10 = vld [vmem:[%s2988_s1 + $0x220] sm:$0xff]  ;;  %v110_v11 = vld [vmem:[%s2988_s1 + $0x230] sm:$0xff]  ;;  %v113_v12 = vld [vmem:[%s2988_s1 + $0x248] sm:$0xff]  ;;  %v1799_v36 = vshrl.u32 %v330_v27, 7 }
   0x6   :  { %1290 = vmatprep.subr.bf16.mxu0 %v1289_v4  ;;  %v115_v13 = vld [vmem:[%s2988_s1 + $0x258] sm:$0xff]  ;;  %v1295_v14 = vpack.c.bf16 %v110_v11, %v108_v10  ;;  %v112_v16 = vld [vmem:[%s2988_s1 + $0x240] sm:$0xff]  ;;  %v114_v17 = vld [vmem:[%s2988_s1 + $0x250] sm:$0xff]  ;;  %v346_v37 = vunpack.c.0.s8 %v345_v29 }
   0x7   :  { %1292 = vmatpush1.bf16.msra.mxu0 %v1291_v8  ;;  %v1297_v15 = vpack.c.bf16 %v115_v13, %v113_v12  ;;  %v117_v18 = vld [vmem:[%s2988_s1 + $0x268] sm:$0xff]  ;;  %v119_v19 = vld [vmem:[%s2988_s1 + $0x278] sm:$0xff]  ;;  %v1299_v20 = vpack.c.bf16 %v114_v17, %v112_v16  ;;  %v116_v22 = vld [vmem:[%s2988_s1 + $0x260] sm:$0xff] }
   0x8   :  { %1294 = vmatprep.subr.bf16.mxu0 %v1293_v9  ;;  %v1301_v21 = vpack.c.bf16 %v119_v19, %v117_v18  ;;  %v118_v23 = vld [vmem:[%s2988_s1 + $0x270] sm:$0xff]  ;;  %v121_v24 = vld [vmem:[%s2988_s1 + $0x288] sm:$0xff]  ;;  %v123_v25 = vld [vmem:[%s2988_s1 + $0x298] sm:$0xff]  ;;  %v1814_v44 = vsub.s32 %v346_v37, %v1799_v36 }
   0x9   :  { %v1303_v26 = vpack.c.bf16 %v118_v23, %v116_v22  ;;  %v1305_v30 = vpack.c.bf16 %v123_v25, %v121_v24  ;;  %v120_v31 = vld [vmem:[%s2988_s1 + $0x280] sm:$0xff]  ;;  %v122_v32 = vld [vmem:[%s2988_s1 + $0x290] sm:$0xff]  ;;  %v125_v33 = vld [vmem:[%s2988_s1 + $0x2a8] sm:$0xff] }
   0xa   :  { %v127_v34 = vld [vmem:[%s2988_s1 + $0x2b8] sm:$0xff]  ;;  %v1307_v35 = vpack.c.bf16 %v122_v32, %v120_v31  ;;  %v124_v39 = vld [vmem:[%s2988_s1 + $0x2a0] sm:$0xff]  ;;  %v126_v40 = vld [vmem:[%s2988_s1 + $0x2b0] sm:$0xff] }
   0xb   :  { %1296 = vmatpush1.bf16.msra.mxu0 %v1295_v14  ;;  %v1309_v38 = vpack.c.bf16 %v127_v34, %v125_v33  ;;  %v129_v41 = vld [vmem:[%s2988_s1 + $0x2c8] sm:$0xff]  ;;  %v131_v42 = vld [vmem:[%s2988_s1 + $0x2d8] sm:$0xff]  ;;  %v1311_v43 = vpack.c.bf16 %v126_v40, %v124_v39  ;;  %v128_v46 = vld [vmem:[%s2988_s1 + $0x2c0] sm:$0xff] }
   0xc   :  { %1298 = vmatprep.subr.bf16.mxu0 %v1297_v15  ;;  %v1313_v45 = vpack.c.bf16 %v131_v42, %v129_v41  ;;  %v130_v47 = vld [vmem:[%s2988_s1 + $0x2d0] sm:$0xff]  ;;  %v1825_v48 = vld [vmem:[%s2987_s0] sm:$0xff]  ;;  %v133_v49 = vld [vmem:[%s2988_s1 + $0x2e8] sm:$0xff] }
   0xd   :  { %v135_v50 = vld [vmem:[%s2988_s1 + $0x2f8] sm:$0xff]  ;;  %v343_v51 = vcombine.high %v1825_v48, %v1825_v48  ;;  %v1315_v52 = vpack.c.bf16 %v130_v47, %v128_v46  ;;  %v132_v55 = vld [vmem:[%s2988_s1 + $0x2e0] sm:$0xff]  ;;  %v134_v56 = vld [vmem:[%s2988_s1 + $0x2f0] sm:$0xff] }
   0xe   :  { %v1317_v54 = vpack.c.bf16 %v135_v50, %v133_v49  ;;  %v137_v57 = vld [vmem:[%s2988_s1 + $0x308] sm:$0xff]  ;;  %v139_v58 = vld [vmem:[%s2988_s1 + $0x318] sm:$0xff]  ;;  %v1319_v60 = vpack.c.bf16 %v134_v56, %v132_v55  ;;  %v136_v62 = vld [vmem:[%s2988_s1 + $0x300] sm:$0xff] }
   0xf   :  { %1300 = vmatpush1.bf16.msra.mxu0 %v1299_v20  ;;  %v1836_v53 = vrot.slane %v343_v51, %v1814_v44  ;;  %v1321_v61 = vpack.c.bf16 %v139_v58, %v137_v57  ;;  %v138_v63 = vld [vmem:[%s2988_s1 + $0x310] sm:$0xff]  ;;  %v141_v0 = vld [vmem:[%s2988_s1 + $0x328] sm:$0xff]  ;;  %v143_v1 = vld [vmem:[%s2988_s1 + $0x338] sm:$0xff] }
  0x10   :  { %1302 = vmatprep.subr.bf16.mxu0 %v1301_v21  ;;  %v1323_v2 = vpack.c.bf16 %v138_v63, %v136_v62  ;;  %v1325_v3 = vpack.c.bf16 %v143_v1, %v141_v0  ;;  %v140_v4 = vld [vmem:[%s2988_s1 + $0x320] sm:$0xff]  ;;  %v142_v5 = vld [vmem:[%s2988_s1 + $0x330] sm:$0xff]  ;;  %v145_v6 = vld [vmem:[%s2988_s1 + $0x348] sm:$0xff] }
  0x11   :  { %v359_v59 = vcombine.high %v1836_v53, %v1836_v53  ;;  %v147_v7 = vld [vmem:[%s2988_s1 + $0x358] sm:$0xff]  ;;  %v1327_v8 = vpack.c.bf16 %v142_v5, %v140_v4  ;;  %v144_v10 = vld [vmem:[%s2988_s1 + $0x340] sm:$0xff]  ;;  %v146_v11 = vld [vmem:[%s2988_s1 + $0x350] sm:$0xff] }
  0x12   :  { %v1329_v9 = vpack.c.bf16 %v147_v7, %v145_v6  ;;  %v149_v12 = vld [vmem:[%s2988_s1 + $0x368] sm:$0xff]  ;;  %v151_v13 = vld [vmem:[%s2988_s1 + $0x378] sm:$0xff]  ;;  %v1331_v14 = vpack.c.bf16 %v146_v11, %v144_v10  ;;  %v148_v16 = vld [vmem:[%s2988_s1 + $0x360] sm:$0xff] }
  0x13   :  { %1304 = vmatpush1.bf16.msra.mxu0 %v1303_v26  ;;  %528 = vmatprep.mubr.f32.mxu0 %v359_v59  ;;  %v1333_v15 = vpack.c.bf16 %v151_v13, %v149_v12  ;;  %v150_v17 = vld [vmem:[%s2988_s1 + $0x370] sm:$0xff]  ;;  %v153_v18 = vld [vmem:[%s2988_s1 + $0x388] sm:$0xff]  ;;  %v155_v19 = vld [vmem:[%s2988_s1 + $0x398] sm:$0xff] }
  0x14   :  { %1306 = vmatprep.subr.bf16.mxu0 %v1305_v30  ;;  %v1335_v20 = vpack.c.bf16 %v150_v17, %v148_v16  ;;  %v1337_v21 = vpack.c.bf16 %v155_v19, %v153_v18  ;;  %v152_v22 = vld [vmem:[%s2988_s1 + $0x380] sm:$0xff]  ;;  %v154_v23 = vld [vmem:[%s2988_s1 + $0x390] sm:$0xff]  ;;  %v157_v24 = vld [vmem:[%s2988_s1 + $0x3a8] sm:$0xff] }
  0x15   :  { %v159_v25 = vld [vmem:[%s2988_s1 + $0x3b8] sm:$0xff]  ;;  %v1339_v26 = vpack.c.bf16 %v154_v23, %v152_v22  ;;  %v156_v28 = vld [vmem:[%s2988_s1 + $0x3a0] sm:$0xff]  ;;  %v158_v29 = vld [vmem:[%s2988_s1 + $0x3b0] sm:$0xff] }
  0x16   :  { %v1341_v27 = vpack.c.bf16 %v159_v25, %v157_v24  ;;  %v161_v30 = vld [vmem:[%s2988_s1 + $0x3c8] sm:$0xff]  ;;  %v163_v31 = vld [vmem:[%s2988_s1 + $0x3d8] sm:$0xff]  ;;  %v1343_v32 = vpack.c.bf16 %v158_v29, %v156_v28  ;;  %v160_v33 = vld [vmem:[%s2988_s1 + $0x3c0] sm:$0xff] }
  0x17   :  { %1308 = vmatpush1.bf16.msra.mxu0 %v1307_v35  ;;  %v1345_v34 = vpack.c.bf16 %v163_v31, %v161_v30  ;;  %v162_v35 = vld [vmem:[%s2988_s1 + $0x3d0] sm:$0xff]  ;;  %v41_v37 = vld [vmem:[%s2988_s1 + $0x8] sm:$0xff]  ;;  %v167_v40 = vld [vmem:[%s2988_s1 + $0x3f8] sm:$0xff] }
  0x18   :  { %1310 = vmatprep.subr.bf16.mxu0 %v1309_v38  ;;  %v43_v38 = vld [vmem:[%s2988_s1 + $0x18] sm:$0xff]  ;;  %v165_v39 = vld [vmem:[%s2988_s1 + $0x3e8] sm:$0xff]  ;;  %v40_v42 = vld [vmem:[%s2988_s1] sm:$0xff]  ;;  %v1347_v46 = vpack.c.bf16 %v162_v35, %v160_v33 }
  0x19   :  { %v1225_v41 = vpack.c.bf16 %v43_v38, %v41_v37  ;;  %v166_v47 = vld [vmem:[%s2988_s1 + $0x3f0] sm:$0xff]  ;;  %v45_v50 = vld [vmem:[%s2988_s1 + $0x28] sm:$0xff]  ;;  %v47_v51 = vld [vmem:[%s2988_s1 + $0x38] sm:$0xff] }
  0x1a   :  { %v1229_v55 = vpack.c.bf16 %v47_v51, %v45_v50  ;;  %v44_v56 = vld [vmem:[%s2988_s1 + $0x20] sm:$0xff]  ;;  %v46_v57 = vld [vmem:[%s2988_s1 + $0x30] sm:$0xff]  ;;  %v169_v58 = vld [vmem:[%s2988_s1 + $0x408] sm:$0xff] }
  0x1b   :  { %1312 = vmatpush1.bf16.msra.mxu0 %v1311_v43  ;;  %v164_v43 = vld [vmem:[%s2988_s1 + $0x3e0] sm:$0xff]  ;;  %1226 = vmatprep.subr.bf16.mxu1 %v1225_v41  ;;  %v171_v59 = vld [vmem:[%s2988_s1 + $0x418] sm:$0xff]  ;;  %v50_v4 = vld [vmem:[%s2988_s1 + $0x50] sm:$0xff] }
  0x1c   :  { %1314 = vmatprep.subr.bf16.mxu0 %v1313_v45  ;;  %v42_v45 = vld [vmem:[%s2988_s1 + $0x10] sm:$0xff]  ;;  %v51_v62 = vld [vmem:[%s2988_s1 + $0x58] sm:$0xff]  ;;  %v1351_v63 = vpack.c.bf16 %v166_v47, %v164_v43  ;;  %v168_v0 = vld [vmem:[%s2988_s1 + $0x400] sm:$0xff]  ;;  %v1353_v5 = vpack.c.bf16 %v171_v59, %v169_v58 }
  0x1d   :  { %v1227_v49 = vpack.c.bf16 %v42_v45, %v40_v42  ;;  %v170_v6 = vld [vmem:[%s2988_s1 + $0x410] sm:$0xff]  ;;  %v53_v7 = vld [vmem:[%s2988_s1 + $0x68] sm:$0xff]  ;;  %v175_v10 = vld [vmem:[%s2988_s1 + $0x438] sm:$0xff] }
  0x1e   :  { %v52_v13 = vld [vmem:[%s2988_s1 + $0x60] sm:$0xff]  ;;  %v57_v17 = vld [vmem:[%s2988_s1 + $0x88] sm:$0xff]  ;;  %v59_v18 = vld [vmem:[%s2988_s1 + $0x98] sm:$0xff] }
  0x1f   :  { %1316 = vmatpush1.bf16.msra.mxu0 %v1315_v52  ;;  %v1349_v52 = vpack.c.bf16 %v167_v40, %v165_v39  ;;  %1228 = vmatpush1.bf16.msra.mxu1 %v1227_v49  ;;  %v177_v22 = vld [vmem:[%s2988_s1 + $0x448] sm:$0xff]  ;;  %v179_v23 = vld [vmem:[%s2988_s1 + $0x458] sm:$0xff]  ;;  %v1241_v25 = vpack.c.bf16 %v59_v18, %v57_v17  ;;  %v176_v31 = vld [vmem:[%s2988_s1 + $0x440] sm:$0xff] }
  0x20   :  { %1318 = vmatprep.subr.bf16.mxu0 %v1317_v54  ;;  %v1963_v54 = vld [vmem:[%s2987_s0 + $0x8] sm:$0xff]  ;;  %1230 = vmatprep.subr.bf16.mxu1 %v1229_v55  ;;  %v1361_v30 = vpack.c.bf16 %v179_v23, %v177_v22  ;;  %v60_v38 = vld [vmem:[%s2988_s1 + $0xa0] sm:$0xff]  ;;  %v62_v39 = vld [vmem:[%s2988_s1 + $0xb0] sm:$0xff] }
  0x21   :  { %v1988_v1 = vrot.slane %v1963_v54, %v1814_v44  ;;  %v61_v29 = vld [vmem:[%s2988_s1 + $0xa8] sm:$0xff]  ;;  %v67_v42 = vld [vmem:[%s2988_s1 + $0xd8] sm:$0xff]  ;;  %v180_v45 = vld [vmem:[%s2988_s1 + $0x460] sm:$0xff]  ;;  %v1247_v50 = vpack.c.bf16 %v62_v39, %v60_v38 }
  0x22   :  { %v181_v33 = vld [vmem:[%s2988_s1 + $0x468] sm:$0xff]  ;;  %v187_v49 = vld [vmem:[%s2988_s1 + $0x498] sm:$0xff]  ;;  %v66_v55 = vld [vmem:[%s2988_s1 + $0xd0] sm:$0xff] }
  0x23   :  { %1320 = vmatpush1.bf16.msra.mxu0 %v1319_v60  ;;  %v1231_v60 = vpack.c.bf16 %v46_v57, %v44_v56  ;;  %v375_v16 = vcombine.high %v1988_v1, %v1988_v1  ;;  %v65_v41 = vld [vmem:[%s2988_s1 + $0xc8] sm:$0xff]  ;;  %v71_v58 = vld [vmem:[%s2988_s1 + $0xf8] sm:$0xff]  ;;  %v194_v22 = vld [vmem:[%s2988_s1 + $0x4d0] sm:$0xff] }
  0x24   :  { %1322 = vmatprep.subr.bf16.mxu0 %v1321_v61  ;;  %v49_v61 = vld [vmem:[%s2988_s1 + $0x48] sm:$0xff]  ;;  %v1249_v51 = vpack.c.bf16 %v67_v42, %v65_v41  ;;  %v80_v39 = vld [vmem:[%s2988_s1 + $0x140] sm:$0xff]  ;;  %v2190_v41 = vrot.slane %v1825_v48, %v1814_v44  ;;  %v202_v48 = vld [vmem:[%s2988_s1 + $0x510] sm:$0xff] }
  0x25   :  { %1232 = vmatpush1.bf16.msra.mxu1 %v1231_v60  ;;  %v185_v47 = vld [vmem:[%s2988_s1 + $0x488] sm:$0xff]  ;;  %v184_v60 = vld [vmem:[%s2988_s1 + $0x480] sm:$0xff] }
  0x26   :  { %v69_v57 = vld [vmem:[%s2988_s1 + $0xe8] sm:$0xff]  ;;  %v1369_v59 = vpack.c.bf16 %v187_v49, %v185_v47  ;;  %v200_v47 = vld [vmem:[%s2988_s1 + $0x500] sm:$0xff]  ;;  %v358_v49 = vcombine.high %v2190_v41, %v2190_v41 }
  0x27   :  { %1324 = vmatpush1.bf16.msra.mxu0 %v1323_v2  ;;  %v1233_v2 = vpack.c.bf16 %v51_v62, %v49_v61  ;;  %v186_v61 = vld [vmem:[%s2988_s1 + $0x490] sm:$0xff]  ;;  %v189_v62 = vld [vmem:[%s2988_s1 + $0x4a8] sm:$0xff] }
  0x28   :  { %1326 = vmatprep.subr.bf16.mxu0 %v1325_v3  ;;  %v48_v3 = vld [vmem:[%s2988_s1 + $0x40] sm:$0xff]  ;;  %v77_v18 = vld [vmem:[%s2988_s1 + $0x128] sm:$0xff]  ;;  %457 = vmatprep.mubr.f32.mxu1 %v358_v49 }
  0x29   :  { %v1235_v11 = vpack.c.bf16 %v50_v4, %v48_v3  ;;  %1234 = vmatprep.subr.bf16.mxu1 %v1233_v2  ;;  %v1253_v2 = vpack.c.bf16 %v71_v58, %v69_v57  ;;  %v68_v3 = vld [vmem:[%s2988_s1 + $0xe0] sm:$0xff]  ;;  %v70_v4 = vld [vmem:[%s2988_s1 + $0xf0] sm:$0xff]  ;;  %v197_v23 = vld [vmem:[%s2988_s1 + $0x4e8] sm:$0xff]  ;;  %v1387_v58 = vpack.c.bf16 %v202_v48, %v200_v47 }
  0x2a   :  { %v86_v57 = vld [vmem:[%s2988_s1 + $0x170] sm:$0xff] }
  0x2b   :  { %1328 = vmatpush1.bf16.msra.mxu0 %v1327_v8  ;;  %v55_v8 = vld [vmem:[%s2988_s1 + $0x78] sm:$0xff]  ;;  %1236 = vmatpush1.bf16.msra.mxu1 %v1235_v11  ;;  %v193_v11 = vld [vmem:[%s2988_s1 + $0x4c8] sm:$0xff] }
  0x2c   :  { %1330 = vmatprep.subr.bf16.mxu0 %v1329_v9  ;;  %v173_v9 = vld [vmem:[%s2988_s1 + $0x428] sm:$0xff]  ;;  %v1237_v12 = vpack.c.bf16 %v55_v8, %v53_v7  ;;  %v75_v7 = vld [vmem:[%s2988_s1 + $0x118] sm:$0xff] }
  0x2d   :  { %v1357_v19 = vpack.c.bf16 %v175_v10, %v173_v9  ;;  %v188_v9 = vld [vmem:[%s2988_s1 + $0x4a0] sm:$0xff]  ;;  %v190_v10 = vld [vmem:[%s2988_s1 + $0x4b0] sm:$0xff] }
  0x2e   :  { %1238 = vmatprep.subr.bf16.mxu1 %v1237_v12  ;;  %v195_v12 = vld [vmem:[%s2988_s1 + $0x4d8] sm:$0xff]  ;;  %v1375_v17 = vpack.c.bf16 %v190_v10, %v188_v9 }
  0x2f   :  { %1332 = vmatpush1.bf16.msra.mxu0 %v1331_v14  ;;  %v54_v14 = vld [vmem:[%s2988_s1 + $0x70] sm:$0xff] }
  0x30   :  { %1334 = vmatprep.subr.bf16.mxu0 %v1333_v15  ;;  %v1355_v15 = vpack.c.bf16 %v170_v6, %v168_v0  ;;  %v1239_v24 = vpack.c.bf16 %v54_v14, %v52_v13  ;;  %v73_v6 = vld [vmem:[%s2988_s1 + $0x108] sm:$0xff]  ;;  %v1255_v13 = vpack.c.bf16 %v70_v4, %v68_v3 }
  0x31   :  { %v1257_v14 = vpack.c.bf16 %v75_v7, %v73_v6 }
  0x32   :  { %1240 = vmatpush1.bf16.msra.mxu1 %v1239_v24  ;;  %v199_v24 = vld [vmem:[%s2988_s1 + $0x4f8] sm:$0xff] }
  0x33   :  { %1336 = vmatpush1.bf16.msra.mxu0 %v1335_v20  ;;  %v172_v20 = vld [vmem:[%s2988_s1 + $0x420] sm:$0xff]  ;;  %1242 = vmatprep.subr.bf16.mxu1 %v1241_v25 }
  0x34   :  { %1338 = vmatprep.subr.bf16.mxu0 %v1337_v21  ;;  %v174_v21 = vld [vmem:[%s2988_s1 + $0x430] sm:$0xff] }
  0x35   :  { %v1359_v28 = vpack.c.bf16 %v174_v21, %v172_v20  ;;  %v1377_v20 = vpack.c.bf16 %v195_v12, %v193_v11  ;;  %v192_v21 = vld [vmem:[%s2988_s1 + $0x4c0] sm:$0xff] }
  0x37   :  { %1340 = vmatpush1.bf16.msra.mxu0 %v1339_v26  ;;  %v56_v26 = vld [vmem:[%s2988_s1 + $0x80] sm:$0xff] }
  0x38   :  { %1342 = vmatprep.subr.bf16.mxu0 %v1341_v27  ;;  %v58_v27 = vld [vmem:[%s2988_s1 + $0x90] sm:$0xff] }
  0x39   :  { %v1243_v35 = vpack.c.bf16 %v58_v27, %v56_v26  ;;  %v76_v27 = vld [vmem:[%s2988_s1 + $0x120] sm:$0xff] }
  0x3b   :  { %1344 = vmatpush1.bf16.msra.mxu0 %v1343_v32  ;;  %v178_v32 = vld [vmem:[%s2988_s1 + $0x450] sm:$0xff]  ;;  %1244 = vmatpush1.bf16.msra.mxu1 %v1243_v35  ;;  %v203_v35 = vld [vmem:[%s2988_s1 + $0x518] sm:$0xff] }
  0x3c   :  { %1346 = vmatprep.subr.bf16.mxu0 %v1345_v34  ;;  %v183_v34 = vld [vmem:[%s2988_s1 + $0x478] sm:$0xff]  ;;  %v1363_v40 = vpack.c.bf16 %v178_v32, %v176_v31  ;;  %v1381_v31 = vpack.c.bf16 %v199_v24, %v197_v23  ;;  %v196_v32 = vld [vmem:[%s2988_s1 + $0x4e0] sm:$0xff] }
  0x3d   :  { %v1365_v43 = vpack.c.bf16 %v183_v34, %v181_v33  ;;  %v198_v33 = vld [vmem:[%s2988_s1 + $0x4f0] sm:$0xff]  ;;  %v201_v34 = vld [vmem:[%s2988_s1 + $0x508] sm:$0xff] }
  0x3e   :  { %v1383_v42 = vpack.c.bf16 %v198_v33, %v196_v32 }
  0x3f   :  { %1348 = vmatpush1.bf16.msra.mxu0 %v1347_v46  ;;  %v182_v46 = vld [vmem:[%s2988_s1 + $0x470] sm:$0xff] }
  0x40   :  { %1350 = vmatprep.subr.bf16.mxu0 %v1349_v52  ;;  %v64_v52 = vld [vmem:[%s2988_s1 + $0xc0] sm:$0xff]  ;;  %v1367_v56 = vpack.c.bf16 %v182_v46, %v180_v45  ;;  %v87_v45 = vld [vmem:[%s2988_s1 + $0x178] sm:$0xff]  ;;  %v1385_v46 = vpack.c.bf16 %v203_v35, %v201_v34 }
  0x41   :  { %v1251_v0 = vpack.c.bf16 %v66_v55, %v64_v52 }
  0x43   :  { %1352 = vmatpush1.bf16.msra.mxu0 %v1351_v63  ;;  %v191_v63 = vld [vmem:[%s2988_s1 + $0x4b8] sm:$0xff] }
  0x44   :  { %1354 = vmatprep.subr.bf16.mxu0 %v1353_v5  ;;  %v1371_v5 = vpack.c.bf16 %v186_v61, %v184_v60  ;;  %v1373_v8 = vpack.c.bf16 %v191_v63, %v189_v62  ;;  %v91_v60 = vld [vmem:[%s2988_s1 + $0x198] sm:$0xff] }
  0x46   :  { %529 = vmatmul.mubr.f32.vlgmr.msra.gmra.mrb[0].mxu0 %v1836_v53  ;;  %v63_v53 = vld [vmem:[%s2988_s1 + $0xb8] sm:$0xff] }
  0x47   :  { %1356 = vmatpush1.bf16.msra.mxu0 %v1355_v15  ;;  %599 = vmatprep.mubr.f32.mxu0 %v375_v16  ;;  %v1245_v37 = vpack.c.bf16 %v63_v53, %v61_v29  ;;  %v72_v15 = vld [vmem:[%s2988_s1 + $0x100] sm:$0xff]  ;;  %v74_v16 = vld [vmem:[%s2988_s1 + $0x110] sm:$0xff]  ;;  %v1379_v29 = vpack.c.bf16 %v194_v22, %v192_v21  ;;  %v81_v53 = vld [vmem:[%s2988_s1 + $0x148] sm:$0xff] }
  0x48   :  { %1358 = vmatprep.subr.bf16.mxu0 %v1357_v19  ;;  %v79_v19 = vld [vmem:[%s2988_s1 + $0x138] sm:$0xff]  ;;  %v1259_v25 = vpack.c.bf16 %v74_v16, %v72_v15 }
  0x49   :  { %1246 = vmatprep.subr.bf16.mxu1 %v1245_v37  ;;  %v1261_v26 = vpack.c.bf16 %v79_v19, %v77_v18 }
  0x4a   :  { %1248 = vmatpush1.bf16.msra.mxu1 %v1247_v50  ;;  %v205_v50 = vld [vmem:[%s2988_s1 + $0x528] sm:$0xff] }
  0x4b   :  { %1360 = vmatpush1.bf16.msra.mxu0 %v1359_v28  ;;  %1250 = vmatprep.subr.bf16.mxu1 %v1249_v51  ;;  %v78_v28 = vld [vmem:[%s2988_s1 + $0x130] sm:$0xff]  ;;  %v207_v51 = vld [vmem:[%s2988_s1 + $0x538] sm:$0xff] }
  0x4c   :  { %1362 = vmatprep.subr.bf16.mxu0 %v1361_v30  ;;  %v83_v30 = vld [vmem:[%s2988_s1 + $0x158] sm:$0xff]  ;;  %v1263_v37 = vpack.c.bf16 %v78_v28, %v76_v27 }
  0x4d   :  { %v1265_v38 = vpack.c.bf16 %v83_v30, %v81_v53 }
  0x4e   :  { %1252 = vmatpush1.bf16.msra.mxu1 %v1251_v0 }
  0x4f   :  { %1364 = vmatpush1.bf16.msra.mxu0 %v1363_v40  ;;  %1254 = vmatprep.subr.bf16.mxu1 %v1253_v2  ;;  %v82_v40 = vld [vmem:[%s2988_s1 + $0x150] sm:$0xff] }
  0x50   :  { %1366 = vmatprep.subr.bf16.mxu0 %v1365_v43  ;;  %v85_v43 = vld [vmem:[%s2988_s1 + $0x168] sm:$0xff]  ;;  %v1267_v52 = vpack.c.bf16 %v82_v40, %v80_v39 }
  0x51   :  { %v1269_v55 = vpack.c.bf16 %v87_v45, %v85_v43 }
  0x52   :  { %1256 = vmatpush1.bf16.msra.mxu1 %v1255_v13 }
  0x53   :  { %1368 = vmatpush1.bf16.msra.mxu0 %v1367_v56  ;;  %1258 = vmatprep.subr.bf16.mxu1 %v1257_v14  ;;  %v84_v56 = vld [vmem:[%s2988_s1 + $0x160] sm:$0xff] }
  0x54   :  { %1370 = vmatprep.subr.bf16.mxu0 %v1369_v59  ;;  %v89_v59 = vld [vmem:[%s2988_s1 + $0x188] sm:$0xff] }
  0x56   :  { %1260 = vmatpush1.bf16.msra.mxu1 %v1259_v25 }
  0x57   :  { %1372 = vmatpush1.bf16.msra.mxu0 %v1371_v5  ;;  %1262 = vmatprep.subr.bf16.mxu1 %v1261_v26 }
  0x58   :  { %1374 = vmatprep.subr.bf16.mxu0 %v1373_v8 }
  0x5a   :  { %1264 = vmatpush1.bf16.msra.mxu1 %v1263_v37 }
  0x5b   :  { %1376 = vmatpush1.bf16.msra.mxu0 %v1375_v17  ;;  %1266 = vmatprep.subr.bf16.mxu1 %v1265_v38 }
  0x5c   :  { %1378 = vmatprep.subr.bf16.mxu0 %v1377_v20 }
  0x5f   :  { %1380 = vmatpush1.bf16.msra.mxu0 %v1379_v29 }
  0x60   :  { %1382 = vmatprep.subr.bf16.mxu0 %v1381_v31 }
  0x63   :  { %1384 = vmatpush1.bf16.msra.mxu0 %v1383_v42 }
  0x64   :  { %18 = vsyncpa [#allocation4], 0  ;;  %1386 = vmatprep.subr.bf16.mxu0 %v1385_v46  ;;  %v1389_v61 = vpack.c.bf16 %v207_v51, %v205_v50  ;;  %v204_v62 = vld [vmem:[%s2988_s1 + $0x520] sm:$0xff]  ;;  %v206_v63 = vld [vmem:[%s2988_s1 + $0x530] sm:$0xff]  ;;  %1268 = vmatpush1.bf16.msra.mxu1 %v1267_v52  ;;  %v1271_v3 = vpack.c.bf16 %v86_v57, %v84_v56  ;;  %v1273_v4 = vpack.c.bf16 %v91_v60, %v89_v59  ;;  %vm1673_vm0 = vmmov 0  }
  0x65   :  { %v209_v0 = vld [vmem:[%s2988_s1 + $0x548] sm:$0xff]  ;;  %v211_v2 = vld [vmem:[%s2988_s1 + $0x558] sm:$0xff]  ;;  %1270 = vmatprep.subr.bf16.mxu1 %v1269_v55  ;;  %v88_v5 = vld [vmem:[%s2988_s1 + $0x180] sm:$0xff]  ;;  %v1391_v7 = vpack.c.bf16 %v206_v63, %v204_v62  ;;  %vm1098_vm1 = vcmask 1024   ;;  %vm1085_vm2 = vcmask 33792  }
  0x66   :  { %v90_v6 = vld [vmem:[%s2988_s1 + $0x190] sm:$0xff]  ;;  %v93_v8 = vld [vmem:[%s2988_s1 + $0x1a8] sm:$0xff]  ;;  %v95_v9 = vld [vmem:[%s2988_s1 + $0x1b8] sm:$0xff]  ;;  %v1393_v10 = vpack.c.bf16 %v211_v2, %v209_v0 }
  0x67   :  { %1388 = vmatpush1.bf16.msra.mxu0 %v1387_v58  ;;  %v208_v11 = vld [vmem:[%s2988_s1 + $0x540] sm:$0xff]  ;;  %v210_v12 = vld [vmem:[%s2988_s1 + $0x550] sm:$0xff]  ;;  %v213_v13 = vld [vmem:[%s2988_s1 + $0x568] sm:$0xff]  ;;  %v1275_v15 = vpack.c.bf16 %v90_v6, %v88_v5  ;;  %v1277_v16 = vpack.c.bf16 %v95_v9, %v93_v8  ;;  %v360_v9 = vcombine.high %v1963_v54, %v1963_v54 }
  0x68   :  { %1390 = vmatprep.subr.bf16.mxu0 %v1389_v61  ;;  %v215_v14 = vld [vmem:[%s2988_s1 + $0x578] sm:$0xff]  ;;  %1272 = vmatpush1.bf16.msra.mxu1 %v1271_v3  ;;  %v92_v17 = vld [vmem:[%s2988_s1 + $0x1a0] sm:$0xff]  ;;  %v94_v18 = vld [vmem:[%s2988_s1 + $0x1b0] sm:$0xff]  ;;  %v1395_v19 = vpack.c.bf16 %v210_v12, %v208_v11 }
  0x69   :  { %1274 = vmatprep.subr.bf16.mxu1 %v1273_v4  ;;  %v97_v20 = vld [vmem:[%s2988_s1 + $0x1c8] sm:$0xff]  ;;  %v99_v21 = vld [vmem:[%s2988_s1 + $0x1d8] sm:$0xff]  ;;  %v1397_v22 = vpack.c.bf16 %v215_v14, %v213_v13  ;;  %v212_v23 = vld [vmem:[%s2988_s1 + $0x560] sm:$0xff]  ;;  %v1279_v27 = vpack.c.bf16 %v94_v18, %v92_v17 }
  0x6a   :  { %v214_v24 = vld [vmem:[%s2988_s1 + $0x570] sm:$0xff]  ;;  %v217_v25 = vld [vmem:[%s2988_s1 + $0x588] sm:$0xff]  ;;  %v219_v26 = vld [vmem:[%s2988_s1 + $0x598] sm:$0xff]  ;;  %v1281_v28 = vpack.c.bf16 %v99_v21, %v97_v20  ;;  %v2390_v20 = vrot.slane %v360_v9, %v1814_v44 }
  0x6b   :  { %1392 = vmatpush1.bf16.msra.mxu0 %v1391_v7  ;;  %v96_v29 = vld [vmem:[%s2988_s1 + $0x1c0] sm:$0xff]  ;;  %v98_v53 = vld [vmem:[%s2988_s1 + $0x1d0] sm:$0xff]  ;;  %v1399_v30 = vpack.c.bf16 %v214_v24, %v212_v23  ;;  %v101_v31 = vld [vmem:[%s2988_s1 + $0x1e8] sm:$0xff]  ;;  %v1401_v33 = vpack.c.bf16 %v219_v26, %v217_v25 }
  0x6c   :  { %1394 = vmatprep.subr.bf16.mxu0 %v1393_v10  ;;  %1276 = vmatpush1.bf16.msra.mxu1 %v1275_v15  ;;  %v103_v32 = vld [vmem:[%s2988_s1 + $0x1f8] sm:$0xff]  ;;  %v216_v34 = vld [vmem:[%s2988_s1 + $0x580] sm:$0xff]  ;;  %v218_v35 = vld [vmem:[%s2988_s1 + $0x590] sm:$0xff]  ;;  %v1283_v39 = vpack.c.bf16 %v98_v53, %v96_v29 }
  0x6d   :  { %1278 = vmatprep.subr.bf16.mxu1 %v1277_v16  ;;  %v221_v37 = vld [vmem:[%s2988_s1 + $0x5a8] sm:$0xff]  ;;  %v223_v38 = vld [vmem:[%s2988_s1 + $0x5b8] sm:$0xff]  ;;  %v1285_v40 = vpack.c.bf16 %v103_v32, %v101_v31  ;;  %v100_v42 = vld [vmem:[%s2988_s1 + $0x1e0] sm:$0xff]  ;;  %v1403_v45 = vpack.c.bf16 %v218_v35, %v216_v34  ;;  %v376_v31 = vcombine.high %v2390_v20, %v2390_v20 }
  0x6e   :  { %v102_v43 = vld [vmem:[%s2988_s1 + $0x1f0] sm:$0xff]  ;;  %v751_v46 = vld [vmem:[%s2990_s3 + $0x8] sm:$0xff]  ;;  %v753_v47 = vld [vmem:[%s2990_s3 + $0x18] sm:$0xff]  ;;  %v1405_v48 = vpack.c.bf16 %v223_v38, %v221_v37 }
  0x6f   :  { %1396 = vmatpush1.bf16.msra.mxu0 %v1395_v19  ;;  %v220_v49 = vld [vmem:[%s2988_s1 + $0x5a0] sm:$0xff]  ;;  %v222_v50 = vld [vmem:[%s2988_s1 + $0x5b0] sm:$0xff]  ;;  %v225_v51 = vld [vmem:[%s2988_s1 + $0x5c8] sm:$0xff]  ;;  %v1287_v55 = vpack.c.bf16 %v102_v43, %v100_v42  ;;  %v1513_v56 = vpack.c.bf16 %v753_v47, %v751_v46 }
  0x70   :  { %1398 = vmatprep.subr.bf16.mxu0 %v1397_v22  ;;  %1280 = vmatpush1.bf16.msra.mxu1 %v1279_v27  ;;  %v227_v52 = vld [vmem:[%s2988_s1 + $0x5d8] sm:$0xff]  ;;  %v750_v57 = vld [vmem:[%s2990_s3] sm:$0xff]  ;;  %v752_v58 = vld [vmem:[%s2990_s3 + $0x10] sm:$0xff]  ;;  %v1407_v59 = vpack.c.bf16 %v222_v50, %v220_v49 }
  0x71   :  { %1282 = vmatprep.subr.bf16.mxu1 %v1281_v28  ;;  %v755_v60 = vld [vmem:[%s2990_s3 + $0x28] sm:$0xff]  ;;  %v757_v61 = vld [vmem:[%s2990_s3 + $0x38] sm:$0xff]  ;;  %v1409_v62 = vpack.c.bf16 %v227_v52, %v225_v51  ;;  %v224_v63 = vld [vmem:[%s2988_s1 + $0x5c0] sm:$0xff]  ;;  %v1515_v4 = vpack.c.bf16 %v752_v58, %v750_v57 }
  0x72   :  { %v226_v0 = vld [vmem:[%s2988_s1 + $0x5d0] sm:$0xff]  ;;  %v229_v2 = vld [vmem:[%s2988_s1 + $0x5e8] sm:$0xff]  ;;  %v231_v3 = vld [vmem:[%s2988_s1 + $0x5f8] sm:$0xff]  ;;  %v1517_v5 = vpack.c.bf16 %v757_v61, %v755_v60 }
  0x73   :  { %1400 = vmatpush1.bf16.msra.mxu0 %v1399_v30  ;;  %v754_v6 = vld [vmem:[%s2990_s3 + $0x20] sm:$0xff]  ;;  %v756_v7 = vld [vmem:[%s2990_s3 + $0x30] sm:$0xff]  ;;  %v1411_v8 = vpack.c.bf16 %v226_v0, %v224_v63  ;;  %v759_v10 = vld [vmem:[%s2990_s3 + $0x48] sm:$0xff]  ;;  %v1413_v12 = vpack.c.bf16 %v231_v3, %v229_v2 }
  0x74   :  { %1402 = vmatprep.subr.bf16.mxu0 %v1401_v33  ;;  %1284 = vmatpush1.bf16.msra.mxu1 %v1283_v39  ;;  %v761_v11 = vld [vmem:[%s2990_s3 + $0x58] sm:$0xff]  ;;  %v228_v13 = vld [vmem:[%s2988_s1 + $0x5e0] sm:$0xff]  ;;  %v230_v14 = vld [vmem:[%s2988_s1 + $0x5f0] sm:$0xff]  ;;  %v1519_v16 = vpack.c.bf16 %v756_v7, %v754_v6 }
  0x75   :  { %1286 = vmatprep.subr.bf16.mxu1 %v1285_v40  ;;  %v233_v54 = vld [vmem:[%s2988_s1 + $0x608] sm:$0xff]  ;;  %v235_v15 = vld [vmem:[%s2988_s1 + $0x618] sm:$0xff]  ;;  %v1521_v17 = vpack.c.bf16 %v761_v11, %v759_v10  ;;  %v758_v18 = vld [vmem:[%s2990_s3 + $0x40] sm:$0xff]  ;;  %v1415_v19 = vpack.c.bf16 %v230_v14, %v228_v13 }
  0x76   :  { %v763_v21 = vld [vmem:[%s2990_s3 + $0x68] sm:$0xff]  ;;  %v765_v22 = vld [vmem:[%s2990_s3 + $0x78] sm:$0xff]  ;;  %v1417_v23 = vpack.c.bf16 %v235_v15, %v233_v54  ;;  %v232_v24 = vld [vmem:[%s2988_s1 + $0x600] sm:$0xff] }
  0x77   :  { %1404 = vmatpush1.bf16.msra.mxu0 %v1403_v45  ;;  %v234_v25 = vld [vmem:[%s2988_s1 + $0x610] sm:$0xff]  ;;  %v237_v44 = vld [vmem:[%s2988_s1 + $0x628] sm:$0xff]  ;;  %v239_v26 = vld [vmem:[%s2988_s1 + $0x638] sm:$0xff]  ;;  %v1525_v28 = vpack.c.bf16 %v765_v22, %v763_v21 }
  0x78   :  { %1406 = vmatprep.subr.bf16.mxu0 %v1405_v48  ;;  %1288 = vmatpush1.bf16.msra.mxu1 %v1287_v55  ;;  %v762_v29 = vld [vmem:[%s2990_s3 + $0x60] sm:$0xff]  ;;  %v764_v53 = vld [vmem:[%s2990_s3 + $0x70] sm:$0xff]  ;;  %v1419_v30 = vpack.c.bf16 %v234_v25, %v232_v24  ;;  %v767_v32 = vld [vmem:[%s2990_s3 + $0x88] sm:$0xff]  ;;  %v1421_v34 = vpack.c.bf16 %v239_v26, %v237_v44 }
  0x79   :  { %1514 = vmatprep.subr.bf16.mxu1 %v1513_v56  ;;  %v769_v33 = vld [vmem:[%s2990_s3 + $0x98] sm:$0xff]  ;;  %v236_v35 = vld [vmem:[%s2988_s1 + $0x620] sm:$0xff]  ;;  %v238_v37 = vld [vmem:[%s2988_s1 + $0x630] sm:$0xff]  ;;  %v1527_v40 = vpack.c.bf16 %v764_v53, %v762_v29 }
  0x7a   :  { %v241_v38 = vld [vmem:[%s2988_s1 + $0x648] sm:$0xff]  ;;  %v243_v39 = vld [vmem:[%s2988_s1 + $0x658] sm:$0xff]  ;;  %v1529_v42 = vpack.c.bf16 %v769_v33, %v767_v32  ;;  %v766_v43 = vld [vmem:[%s2990_s3 + $0x80] sm:$0xff]  ;;  %v1423_v46 = vpack.c.bf16 %v238_v37, %v236_v35 }
  0x7b   :  { %1408 = vmatpush1.bf16.msra.mxu0 %v1407_v59  ;;  %458 = vmatmul.mubr.f32.vlgmr.msra.gmra.mrb[0].mxu1 %v2190_v41  ;;  %v760_v41 = vld [vmem:[%s2990_s3 + $0x50] sm:$0xff]  ;;  %v771_v47 = vld [vmem:[%s2990_s3 + $0xa8] sm:$0xff]  ;;  %v1425_v48 = vpack.c.bf16 %v243_v39, %v241_v38  ;;  %v240_v49 = vld [vmem:[%s2988_s1 + $0x640] sm:$0xff] }
  0x7c   :  { %1410 = vmatprep.subr.bf16.mxu0 %v1409_v62  ;;  %1516 = vmatpush1.bf16.msra.mxu1 %v1515_v4  ;;  %v1523_v27 = vpack.c.bf16 %v760_v41, %v758_v18  ;;  %v768_v45 = vld [vmem:[%s2990_s3 + $0x90] sm:$0xff]  ;;  %v245_v51 = vld [vmem:[%s2988_s1 + $0x668] sm:$0xff]  ;;  %v247_v52 = vld [vmem:[%s2988_s1 + $0x678] sm:$0xff] }
  0x7d   :  { %1518 = vmatprep.subr.bf16.mxu1 %v1517_v5  ;;  %v242_v50 = vld [vmem:[%s2988_s1 + $0x650] sm:$0xff]  ;;  %v1531_v55 = vpack.c.bf16 %v768_v45, %v766_v43  ;;  %v770_v57 = vld [vmem:[%s2990_s3 + $0xa0] sm:$0xff]  ;;  %v775_v60 = vld [vmem:[%s2990_s3 + $0xc8] sm:$0xff]  ;;  %v1429_v62 = vpack.c.bf16 %v247_v52, %v245_v51 }
  0x7e   :  { %v772_v58 = vld [vmem:[%s2990_s3 + $0xb0] sm:$0xff]  ;;  %v1427_v59 = vpack.c.bf16 %v242_v50, %v240_v49  ;;  %v777_v61 = vld [vmem:[%s2990_s3 + $0xd8] sm:$0xff]  ;;  %v244_v63 = vld [vmem:[%s2988_s1 + $0x660] sm:$0xff] }
  0x7f   :  { %1412 = vmatpush1.bf16.msra.mxu0 %v1411_v8  ;;  %v246_v0 = vld [vmem:[%s2988_s1 + $0x670] sm:$0xff]  ;;  %v249_v2 = vld [vmem:[%s2988_s1 + $0x688] sm:$0xff]  ;;  %v251_v3 = vld [vmem:[%s2988_s1 + $0x698] sm:$0xff]  ;;  %v1535_v4 = vpack.c.bf16 %v772_v58, %v770_v57  ;;  %v1537_v5 = vpack.c.bf16 %v777_v61, %v775_v60 }
  0x80   :  { %1414 = vmatprep.subr.bf16.mxu0 %v1413_v12  ;;  %1520 = vmatpush1.bf16.msra.mxu1 %v1519_v16  ;;  %v774_v6 = vld [vmem:[%s2990_s3 + $0xc0] sm:$0xff]  ;;  %v776_v7 = vld [vmem:[%s2990_s3 + $0xd0] sm:$0xff]  ;;  %v1431_v8 = vpack.c.bf16 %v246_v0, %v244_v63  ;;  %v779_v9 = vld [vmem:[%s2990_s3 + $0xe8] sm:$0xff]  ;;  %v1433_v11 = vpack.c.bf16 %v251_v3, %v249_v2 }
  0x81   :  { %1522 = vmatprep.subr.bf16.mxu1 %v1521_v17  ;;  %v781_v10 = vld [vmem:[%s2990_s3 + $0xf8] sm:$0xff]  ;;  %v248_v12 = vld [vmem:[%s2988_s1 + $0x680] sm:$0xff]  ;;  %v250_v13 = vld [vmem:[%s2988_s1 + $0x690] sm:$0xff]  ;;  %v1539_v15 = vpack.c.bf16 %v776_v7, %v774_v6 }
  0x82   :  { %v253_v14 = vld [vmem:[%s2988_s1 + $0x6a8] sm:$0xff]  ;;  %v255_v54 = vld [vmem:[%s2988_s1 + $0x6b8] sm:$0xff]  ;;  %v1541_v16 = vpack.c.bf16 %v781_v10, %v779_v9  ;;  %v778_v17 = vld [vmem:[%s2990_s3 + $0xe0] sm:$0xff]  ;;  %v1435_v41 = vpack.c.bf16 %v250_v13, %v248_v12 }
  0x83   :  { %1416 = vmatpush1.bf16.msra.mxu0 %v1415_v19  ;;  %v780_v18 = vld [vmem:[%s2990_s3 + $0xf0] sm:$0xff]  ;;  %v783_v19 = vld [vmem:[%s2990_s3 + $0x108] sm:$0xff]  ;;  %v785_v21 = vld [vmem:[%s2990_s3 + $0x118] sm:$0xff]  ;;  %v1437_v22 = vpack.c.bf16 %v255_v54, %v253_v14 }
  0x84   :  { %1418 = vmatprep.subr.bf16.mxu0 %v1417_v23  ;;  %1524 = vmatpush1.bf16.msra.mxu1 %v1523_v27  ;;  %v252_v23 = vld [vmem:[%s2988_s1 + $0x6a0] sm:$0xff]  ;;  %v254_v24 = vld [vmem:[%s2988_s1 + $0x6b0] sm:$0xff]  ;;  %v257_v25 = vld [vmem:[%s2988_s1 + $0x6c8] sm:$0xff]  ;;  %v1543_v26 = vpack.c.bf16 %v780_v18, %v778_v17  ;;  %v1545_v27 = vpack.c.bf16 %v785_v21, %v783_v19 }
  0x85   :  { %1526 = vmatprep.subr.bf16.mxu1 %v1525_v28  ;;  %v259_v44 = vld [vmem:[%s2988_s1 + $0x6d8] sm:$0xff]  ;;  %v782_v28 = vld [vmem:[%s2990_s3 + $0x100] sm:$0xff]  ;;  %v784_v29 = vld [vmem:[%s2990_s3 + $0x110] sm:$0xff]  ;;  %v1439_v53 = vpack.c.bf16 %v254_v24, %v252_v23 }
  0x86   :  { %600 = vmatmul.mubr.f32.vlgmr.msra.gmra.mrb[0].mxu0 %v1988_v1  ;;  %v773_v1 = vld [vmem:[%s2990_s3 + $0xb8] sm:$0xff]  ;;  %v1441_v32 = vpack.c.bf16 %v259_v44, %v257_v25  ;;  %v256_v33 = vld [vmem:[%s2988_s1 + $0x6c0] sm:$0xff]  ;;  %v261_v35 = vld [vmem:[%s2988_s1 + $0x6e8] sm:$0xff]  ;;  %v1547_v38 = vpack.c.bf16 %v784_v29, %v782_v28 }
  0x87   :  { %1420 = vmatpush1.bf16.msra.mxu0 %v1419_v30  ;;  %670 = vmatprep.mubr.f32.mxu0 %v376_v31  ;;  %v1533_v56 = vpack.c.bf16 %v773_v1, %v771_v47  ;;  %v787_v30 = vld [vmem:[%s2990_s3 + $0x128] sm:$0xff]  ;;  %v789_v31 = vld [vmem:[%s2990_s3 + $0x138] sm:$0xff]  ;;  %v260_v1 = vld [vmem:[%s2988_s1 + $0x6e0] sm:$0xff] }
  0x88   :  { %1422 = vmatprep.subr.bf16.mxu0 %v1421_v34  ;;  %1528 = vmatpush1.bf16.msra.mxu1 %v1527_v40  ;;  %v258_v34 = vld [vmem:[%s2988_s1 + $0x6d0] sm:$0xff]  ;;  %v263_v37 = vld [vmem:[%s2988_s1 + $0x6f8] sm:$0xff]  ;;  %v1549_v39 = vpack.c.bf16 %v789_v31, %v787_v30  ;;  %v786_v40 = vld [vmem:[%s2990_s3 + $0x120] sm:$0xff] }
  0x89   :  { %1530 = vmatprep.subr.bf16.mxu1 %v1529_v42  ;;  %v788_v42 = vld [vmem:[%s2990_s3 + $0x130] sm:$0xff]  ;;  %v1443_v43 = vpack.c.bf16 %v258_v34, %v256_v33  ;;  %v791_v45 = vld [vmem:[%s2990_s3 + $0x148] sm:$0xff]  ;;  %v1445_v47 = vpack.c.bf16 %v263_v37, %v261_v35  ;;  %v267_v50 = vld [vmem:[%s2988_s1 + $0x718] sm:$0xff] }
  0x8a   :  { %v265_v49 = vld [vmem:[%s2988_s1 + $0x708] sm:$0xff]  ;;  %v1551_v51 = vpack.c.bf16 %v788_v42, %v786_v40  ;;  %v264_v61 = vld [vmem:[%s2988_s1 + $0x700] sm:$0xff]  ;;  %v271_v0 = vld [vmem:[%s2988_s1 + $0x738] sm:$0xff] }
  0x8b   :  { %1424 = vmatpush1.bf16.msra.mxu0 %v1423_v46  ;;  %v793_v46 = vld [vmem:[%s2990_s3 + $0x158] sm:$0xff]  ;;  %v795_v58 = vld [vmem:[%s2990_s3 + $0x168] sm:$0xff]  ;;  %v1449_v60 = vpack.c.bf16 %v267_v50, %v265_v49  ;;  %v268_v10 = vld [vmem:[%s2988_s1 + $0x720] sm:$0xff] }
  0x8c   :  { %1426 = vmatprep.subr.bf16.mxu0 %v1425_v48  ;;  %1532 = vmatpush1.bf16.msra.mxu1 %v1531_v55  ;;  %v262_v48 = vld [vmem:[%s2988_s1 + $0x6f0] sm:$0xff]  ;;  %v1553_v52 = vpack.c.bf16 %v793_v46, %v791_v45  ;;  %v790_v55 = vld [vmem:[%s2990_s3 + $0x140] sm:$0xff]  ;;  %v269_v63 = vld [vmem:[%s2988_s1 + $0x728] sm:$0xff] }
  0x8d   :  { %1534 = vmatprep.subr.bf16.mxu1 %v1533_v56  ;;  %v792_v56 = vld [vmem:[%s2990_s3 + $0x150] sm:$0xff]  ;;  %v1447_v57 = vpack.c.bf16 %v262_v48, %v260_v1  ;;  %v799_v7 = vld [vmem:[%s2990_s3 + $0x188] sm:$0xff]  ;;  %v1453_v9 = vpack.c.bf16 %v271_v0, %v269_v63  ;;  %v275_v13 = vld [vmem:[%s2988_s1 + $0x758] sm:$0xff] }
  0x8e   :  { %v1555_v2 = vpack.c.bf16 %v792_v56, %v790_v55  ;;  %v273_v12 = vld [vmem:[%s2988_s1 + $0x748] sm:$0xff]  ;;  %v272_v21 = vld [vmem:[%s2988_s1 + $0x740] sm:$0xff]  ;;  %v279_v24 = vld [vmem:[%s2988_s1 + $0x778] sm:$0xff] }
  0x8f   :  { %1428 = vmatpush1.bf16.msra.mxu0 %v1427_v59  ;;  %v797_v59 = vld [vmem:[%s2990_s3 + $0x178] sm:$0xff]  ;;  %v803_v18 = vld [vmem:[%s2990_s3 + $0x1a8] sm:$0xff]  ;;  %v1457_v19 = vpack.c.bf16 %v275_v13, %v273_v12  ;;  %v278_v30 = vld [vmem:[%s2988_s1 + $0x770] sm:$0xff]  ;;  %v1671_v12 = vmov 0.0  }
  0x90   :  { %1430 = vmatprep.subr.bf16.mxu0 %v1429_v62  ;;  %1536 = vmatpush1.bf16.msra.mxu1 %v1535_v4  ;;  %v266_v62 = vld [vmem:[%s2988_s1 + $0x710] sm:$0xff]  ;;  %v1557_v3 = vpack.c.bf16 %v797_v59, %v795_v58  ;;  %v794_v4 = vld [vmem:[%s2990_s3 + $0x160] sm:$0xff]  ;;  %v277_v23 = vld [vmem:[%s2988_s1 + $0x768] sm:$0xff] }
  0x91   :  { %1538 = vmatprep.subr.bf16.mxu1 %v1537_v5  ;;  %v796_v5 = vld [vmem:[%s2990_s3 + $0x170] sm:$0xff]  ;;  %v1451_v6 = vpack.c.bf16 %v266_v62, %v264_v61  ;;  %v1461_v29 = vpack.c.bf16 %v279_v24, %v277_v23  ;;  %v281_v31 = vld [vmem:[%s2988_s1 + $0x788] sm:$0xff]  ;;  %v280_v37 = vld [vmem:[%s2988_s1 + $0x780] sm:$0xff] }
  0x92   :  { %v1559_v14 = vpack.c.bf16 %v796_v5, %v794_v4  ;;  %v287_v40 = vld [vmem:[%s2988_s1 + $0x7b8] sm:$0xff]  ;;  %v284_v45 = vld [vmem:[%s2988_s1 + $0x7a0] sm:$0xff]  ;;  %v286_v46 = vld [vmem:[%s2988_s1 + $0x7b0] sm:$0xff] }
  0x93   :  { %1432 = vmatpush1.bf16.msra.mxu0 %v1431_v8  ;;  %v801_v8 = vld [vmem:[%s2990_s3 + $0x198] sm:$0xff]  ;;  %v1471_v48 = vpack.c.bf16 %v286_v46, %v284_v45  ;;  %v288_v50 = vld [vmem:[%s2988_s1 + $0x7c0] sm:$0xff]  ;;  %v294_v59 = vld [vmem:[%s2988_s1 + $0x7f0] sm:$0xff] }
  0x94   :  { %1434 = vmatprep.subr.bf16.mxu0 %v1433_v11  ;;  %1540 = vmatpush1.bf16.msra.mxu1 %v1539_v15  ;;  %v270_v11 = vld [vmem:[%s2988_s1 + $0x730] sm:$0xff]  ;;  %v1561_v54 = vpack.c.bf16 %v801_v8, %v799_v7  ;;  %v798_v15 = vld [vmem:[%s2990_s3 + $0x180] sm:$0xff]  ;;  %v291_v1 = vld [vmem:[%s2988_s1 + $0x7d8] sm:$0xff] }
  0x95   :  { %1542 = vmatprep.subr.bf16.mxu1 %v1541_v16  ;;  %v800_v16 = vld [vmem:[%s2990_s3 + $0x190] sm:$0xff]  ;;  %v1455_v17 = vpack.c.bf16 %v270_v11, %v268_v10  ;;  %v295_v55 = vld [vmem:[%s2988_s1 + $0x7f8] sm:$0xff]  ;;  %v292_v58 = vld [vmem:[%s2988_s1 + $0x7e0] sm:$0xff] }
  0x96   :  { %v1563_v25 = vpack.c.bf16 %v800_v16, %v798_v15  ;;  %v299_v61 = vld [vmem:[%s2988_s1 + $0x818] sm:$0xff]  ;;  %v1479_v62 = vpack.c.bf16 %v294_v59, %v292_v58  ;;  %v296_v0 = vld [vmem:[%s2988_s1 + $0x800] sm:$0xff]  ;;  %v302_v8 = vld [vmem:[%s2988_s1 + $0x830] sm:$0xff] }
  0x97   :  { %1436 = vmatpush1.bf16.msra.mxu0 %v1435_v41  ;;  %v805_v41 = vld [vmem:[%s2990_s3 + $0x1b8] sm:$0xff]  ;;  %v300_v7 = vld [vmem:[%s2988_s1 + $0x820] sm:$0xff]  ;;  %v309_v15 = vld [vmem:[%s2988_s1 + $0x868] sm:$0xff] }
  0x98   :  { %1438 = vmatprep.subr.bf16.mxu0 %v1437_v22  ;;  %1544 = vmatpush1.bf16.msra.mxu1 %v1543_v26  ;;  %v274_v22 = vld [vmem:[%s2988_s1 + $0x750] sm:$0xff]  ;;  %v1565_v44 = vpack.c.bf16 %v805_v41, %v803_v18  ;;  %v802_v26 = vld [vmem:[%s2990_s3 + $0x1a0] sm:$0xff]  ;;  %v303_v4 = vld [vmem:[%s2988_s1 + $0x838] sm:$0xff]  ;;  %v1487_v11 = vpack.c.bf16 %v302_v8, %v300_v7 }
  0x99   :  { %1546 = vmatprep.subr.bf16.mxu1 %v1545_v27  ;;  %v804_v27 = vld [vmem:[%s2990_s3 + $0x1b0] sm:$0xff]  ;;  %v1459_v28 = vpack.c.bf16 %v274_v22, %v272_v21  ;;  %v307_v10 = vld [vmem:[%s2988_s1 + $0x858] sm:$0xff]  ;;  %v308_v18 = vld [vmem:[%s2988_s1 + $0x860] sm:$0xff] }
  0x9a   :  { %v1567_v33 = vpack.c.bf16 %v804_v27, %v802_v26  ;;  %v310_v41 = vld [vmem:[%s2988_s1 + $0x870] sm:$0xff]  ;;  %v315_v21 = vld [vmem:[%s2988_s1 + $0x898] sm:$0xff]  ;;  %v312_v24 = vld [vmem:[%s2988_s1 + $0x880] sm:$0xff] }
  0x9b   :  { %1440 = vmatpush1.bf16.msra.mxu0 %v1439_v53  ;;  %v276_v53 = vld [vmem:[%s2988_s1 + $0x760] sm:$0xff]  ;;  %v1495_v22 = vpack.c.bf16 %v310_v41, %v308_v18  ;;  %v319_v26 = vld [vmem:[%s2988_s1 + $0x8b8] sm:$0xff]  ;;  %v807_v27 = vld [vmem:[%s2990_s3 + $0x1c8] sm:$0xff] }
  0x9c   :  { %1442 = vmatprep.subr.bf16.mxu0 %v1441_v32  ;;  %1548 = vmatpush1.bf16.msra.mxu1 %v1547_v38  ;;  %v283_v32 = vld [vmem:[%s2988_s1 + $0x798] sm:$0xff]  ;;  %v1463_v34 = vpack.c.bf16 %v278_v30, %v276_v53  ;;  %v282_v38 = vld [vmem:[%s2988_s1 + $0x790] sm:$0xff]  ;;  %v324_v46 = vld [vmem:[%s2988_s1 + $0x8e0] sm:$0xff] }
  0x9d   :  { %1550 = vmatprep.subr.bf16.mxu1 %v1549_v39  ;;  %v1465_v35 = vpack.c.bf16 %v283_v32, %v281_v31  ;;  %v285_v39 = vld [vmem:[%s2988_s1 + $0x7a8] sm:$0xff]  ;;  %v1467_v42 = vpack.c.bf16 %v282_v38, %v280_v37  ;;  %v316_v31 = vld [vmem:[%s2988_s1 + $0x8a0] sm:$0xff]  ;;  %v318_v32 = vld [vmem:[%s2988_s1 + $0x8b0] sm:$0xff] }
  0x9e   :  { %v320_v38 = vld [vmem:[%s2988_s1 + $0x8c0] sm:$0xff]  ;;  %v812_v58 = vld [vmem:[%s2990_s3 + $0x1f0] sm:$0xff]  ;;  %v904_v41 = vld [vmem:[%s2992_s5 + $0x28] sm:$0xff] }
  0x9f   :  { %1444 = vmatpush1.bf16.msra.mxu0 %v1443_v43  ;;  %v1469_v43 = vpack.c.bf16 %v287_v40, %v285_v39  ;;  %v322_v39 = vld [vmem:[%s2988_s1 + $0x8d0] sm:$0xff]  ;;  %v325_v40 = vld [vmem:[%s2988_s1 + $0x8e8] sm:$0xff]  ;;  %v903_v18 = vld [vmem:[%s2992_s5 + $0x20] sm:$0xff] }
  0xa0   :  { %1446 = vmatprep.subr.bf16.mxu0 %v1445_v47  ;;  %1552 = vmatpush1.bf16.msra.mxu1 %v1551_v51  ;;  %v289_v47 = vld [vmem:[%s2988_s1 + $0x7c8] sm:$0xff]  ;;  %v290_v51 = vld [vmem:[%s2988_s1 + $0x7d0] sm:$0xff] }
  0xa1   :  { %1554 = vmatprep.subr.bf16.mxu1 %v1553_v52  ;;  %v1473_v49 = vpack.c.bf16 %v291_v1, %v289_v47  ;;  %v293_v52 = vld [vmem:[%s2988_s1 + $0x7e8] sm:$0xff]  ;;  %v1475_v56 = vpack.c.bf16 %v290_v51, %v288_v50  ;;  %v326_v47 = vld [vmem:[%s2988_s1 + $0x8f0] sm:$0xff] }
  0xa2   :  { %v1511_v1 = vpack.c.bf16 %v326_v47, %v324_v46  ;;  %v808_v50 = vld [vmem:[%s2990_s3 + $0x1d0] sm:$0xff]  ;;  %v995_v47 = vld [vmem:[%s2994_s7 + $0x18] sm:$0xff] }
  0xa3   :  { %1448 = vmatpush1.bf16.msra.mxu0 %v1447_v57  ;;  %v1477_v57 = vpack.c.bf16 %v295_v55, %v293_v52  ;;  %v811_v52 = vld [vmem:[%s2990_s3 + $0x1e8] sm:$0xff]  ;;  %v813_v55 = vld [vmem:[%s2990_s3 + $0x1f8] sm:$0xff]  ;;  %v994_v46 = vld [vmem:[%s2994_s7 + $0x10] sm:$0xff] }
  0xa4   :  { %1450 = vmatprep.subr.bf16.mxu0 %v1449_v60  ;;  %1556 = vmatpush1.bf16.msra.mxu1 %v1555_v2  ;;  %v297_v60 = vld [vmem:[%s2988_s1 + $0x808] sm:$0xff]  ;;  %v298_v2 = vld [vmem:[%s2988_s1 + $0x810] sm:$0xff] }
  0xa5   :  { %1558 = vmatprep.subr.bf16.mxu1 %v1557_v3  ;;  %v1481_v63 = vpack.c.bf16 %v299_v61, %v297_v60  ;;  %v301_v3 = vld [vmem:[%s2988_s1 + $0x828] sm:$0xff]  ;;  %v1483_v5 = vpack.c.bf16 %v298_v2, %v296_v0  ;;  %v1672_v60 = vmov 0.0|0.0   ;;  %v328_v0 = vld [vmem:[%s2989_s2] sm:$0x3]  ;;  %v336_v2 = vsub.s32 1, %v1799_v36 }
  0xa7   :  { %1452 = vmatpush1.bf16.msra.mxu0 %v1451_v6  ;;  %v1485_v6 = vpack.c.bf16 %v303_v4, %v301_v3  ;;  %v337_v4 = vrot.slane %v328_v0, %v336_v2 }
  0xa8   :  { %1454 = vmatprep.subr.bf16.mxu0 %v1453_v9  ;;  %1560 = vmatpush1.bf16.msra.mxu1 %v1559_v14  ;;  %v305_v9 = vld [vmem:[%s2988_s1 + $0x848] sm:$0xff]  ;;  %v304_v14 = vld [vmem:[%s2988_s1 + $0x840] sm:$0xff] }
  0xa9   :  { %1562 = vmatprep.subr.bf16.mxu1 %v1561_v54  ;;  %v1489_v13 = vpack.c.bf16 %v307_v10, %v305_v9  ;;  %v306_v54 = vld [vmem:[%s2988_s1 + $0x850] sm:$0xff]  ;;  %v899_v10 = vld [vmem:[%s2992_s5] sm:$0xff] }
  0xaa   :  { %v1491_v16 = vpack.c.bf16 %v306_v54, %v304_v14 }
  0xab   :  { %1456 = vmatpush1.bf16.msra.mxu0 %v1455_v17 }
  0xac   :  { %1458 = vmatprep.subr.bf16.mxu0 %v1457_v19  ;;  %1564 = vmatpush1.bf16.msra.mxu1 %v1563_v25  ;;  %v313_v19 = vld [vmem:[%s2988_s1 + $0x888] sm:$0xff]  ;;  %v314_v25 = vld [vmem:[%s2988_s1 + $0x890] sm:$0xff] }
  0xad   :  { %1566 = vmatprep.subr.bf16.mxu1 %v1565_v44  ;;  %v1497_v23 = vpack.c.bf16 %v315_v21, %v313_v19  ;;  %v317_v44 = vld [vmem:[%s2988_s1 + $0x8a8] sm:$0xff]  ;;  %v1499_v53 = vpack.c.bf16 %v314_v25, %v312_v24  ;;  %v1584_v19 = vpack.c.bf16 %v904_v41, %v903_v18  ;;  %v905_v21 = vld [vmem:[%s2992_s5 + $0x30] sm:$0xff]  ;;  %v907_v24 = vld [vmem:[%s2992_s5 + $0x40] sm:$0xff] }
  0xae   :  { %v1501_v30 = vpack.c.bf16 %v319_v26, %v317_v44  ;;  %v908_v25 = vld [vmem:[%s2992_s5 + $0x48] sm:$0xff]  ;;  %v909_v26 = vld [vmem:[%s2992_s5 + $0x50] sm:$0xff] }
  0xaf   :  { %1460 = vmatpush1.bf16.msra.mxu0 %v1459_v28  ;;  %v809_v28 = vld [vmem:[%s2990_s3 + $0x1d8] sm:$0xff]  ;;  %v1590_v44 = vpack.c.bf16 %v908_v25, %v907_v24 }
  0xb0   :  { %1462 = vmatprep.subr.bf16.mxu0 %v1461_v29  ;;  %1568 = vmatpush1.bf16.msra.mxu1 %v1567_v33  ;;  %v1569_v29 = vpack.c.bf16 %v809_v28, %v807_v27  ;;  %v321_v33 = vld [vmem:[%s2988_s1 + $0x8c8] sm:$0xff]  ;;  %v910_v27 = vld [vmem:[%s2992_s5 + $0x58] sm:$0xff] }
  0xb1   :  { %v1593_v28 = vpack.c.bf16 %v910_v27, %v909_v26 }
  0xb2   :  { %1570 = vmatprep.subr.bf16.mxu1 %v1569_v29  ;;  %v911_v29 = vld [vmem:[%s2992_s5 + $0x60] sm:$0xff] }
  0xb3   :  { %1464 = vmatpush1.bf16.msra.mxu0 %v1463_v34  ;;  %v323_v34 = vld [vmem:[%s2988_s1 + $0x8d8] sm:$0xff] }
  0xb4   :  { %1466 = vmatprep.subr.bf16.mxu0 %v1465_v35  ;;  %v1503_v35 = vpack.c.bf16 %v318_v32, %v316_v31  ;;  %v1505_v37 = vpack.c.bf16 %v323_v34, %v321_v33  ;;  %v913_v31 = vld [vmem:[%s2992_s5 + $0x70] sm:$0xff]  ;;  %v914_v32 = vld [vmem:[%s2992_s5 + $0x78] sm:$0xff]  ;;  %v814_v34 = vld [vmem:[%s2991_s4] sm:$0x3] }
  0xb5   :  { %v1599_v33 = vpack.c.bf16 %v914_v32, %v913_v31 }
  0xb7   :  { %1468 = vmatpush1.bf16.msra.mxu0 %v1467_v42  ;;  %v327_v42 = vld [vmem:[%s2988_s1 + $0x8f8] sm:$0xff] }
  0xb8   :  { %1470 = vmatprep.subr.bf16.mxu0 %v1469_v43  ;;  %v1507_v43 = vpack.c.bf16 %v322_v39, %v320_v38  ;;  %v1509_v45 = vpack.c.bf16 %v327_v42, %v325_v40  ;;  %v993_v38 = vld [vmem:[%s2994_s7 + $0x8] sm:$0xff] }
  0xbb   :  { %1472 = vmatpush1.bf16.msra.mxu0 %v1471_v48  ;;  %v1118_v48 = vld.sshfl [vmem:[%s2987_s0 + $0x10] sm:$0x3 pattern:$0x76325410] }
  0xbc   :  { %1474 = vmatprep.subr.bf16.mxu0 %v1473_v49  ;;  %v806_v49 = vld [vmem:[%s2990_s3 + $0x1c0] sm:$0xff] }
  0xbd   :  { %v1571_v51 = vpack.c.bf16 %v808_v50, %v806_v49  ;;  %v997_v49 = vld [vmem:[%s2994_s7 + $0x28] sm:$0xff] }
  0xbf   :  { %1476 = vmatpush1.bf16.msra.mxu0 %v1475_v56  ;;  %1572 = vmatpush1.bf16.msra.mxu1 %v1571_v51  ;;  %v1573_v56 = vpack.c.bf16 %v813_v55, %v811_v52  ;;  %v998_v51 = vld [vmem:[%s2994_s7 + $0x30] sm:$0xff]  ;;  %v1000_v55 = vld [vmem:[%s2994_s7 + $0x40] sm:$0xff] }
  0xc0   :  { %1478 = vmatprep.subr.bf16.mxu0 %v1477_v57  ;;  %v810_v57 = vld [vmem:[%s2990_s3 + $0x1e0] sm:$0xff] }
  0xc1   :  { %v1575_v59 = vpack.c.bf16 %v812_v58, %v810_v57  ;;  %1574 = vmatprep.subr.bf16.mxu1 %v1573_v56  ;;  %v1001_v56 = vld [vmem:[%s2994_s7 + $0x48] sm:$0xff]  ;;  %v1002_v58 = vld [vmem:[%s2994_s7 + $0x50] sm:$0xff] }
  0xc2   :  { %v1614_v57 = vpack.c.bf16 %v1001_v56, %v1000_v55 }
  0xc3   :  { %1480 = vmatpush1.bf16.msra.mxu0 %v1479_v62  ;;  %1576 = vmatpush1.bf16.msra.mxu1 %v1575_v59  ;;  %v1003_v59 = vld [vmem:[%s2994_s7 + $0x58] sm:$0xff] }
  0xc4   :  { %1482 = vmatprep.subr.bf16.mxu0 %v1481_v63  ;;  %1577 = vmatprep.subr.bf16.mxu1 %v1672_v60  ;;  %v332_v63 = vsub.s32 0, %v1799_v36  ;;  %v1119_v36 = vld [vmem:[#allocation2] ss:$0 sm:$0xff] }
  0xc6   :  { %671 = vmatmul.mubr.f32.vlgmr.msra.gmra.mrb[0].mxu0 %v2390_v20  ;;  %v311_v20 = vld [vmem:[%s2988_s1 + $0x878] sm:$0xff]  ;;  %v333_v3 = vrot.slane %v328_v0, %v332_v63 }
  0xc7   :  { %1484 = vmatpush1.bf16.msra.mxu0 %v1483_v5  ;;  %741 = vmatprep.mubr.f32.mxu0 %v1671_v12  ;;  %v1493_v17 = vpack.c.bf16 %v311_v20, %v309_v15  ;;  %v901_v20 = vld [vmem:[%s2992_s5 + $0x10] sm:$0xff] }
  0xc8   :  { %1486 = vmatprep.subr.bf16.mxu0 %v1485_v6 }
  0xcb   :  { %1488 = vmatpush1.bf16.msra.mxu0 %v1487_v11  ;;  %v900_v11 = vld [vmem:[%s2992_s5 + $0x8] sm:$0xff] }
  0xcc   :  { %1490 = vmatprep.subr.bf16.mxu0 %v1489_v13  ;;  %v1578_v54 = vpack.c.bf16 %v900_v11, %v899_v10  ;;  %v1120_v11 = vld [vmem:[%s2995_s8] ss:$0 sm:$0xff] }
  0xcf   :  { %1492 = vmatpush1.bf16.msra.mxu0 %v1491_v16  ;;  %v902_v16 = vld [vmem:[%s2992_s5 + $0x18] sm:$0xff] }
  0xd0   :  { %1494 = vmatprep.subr.bf16.mxu0 %v1493_v17  ;;  %v1581_v17 = vpack.c.bf16 %v902_v16, %v901_v20 }
  0xd3   :  { %1496 = vmatpush1.bf16.msra.mxu0 %v1495_v22  ;;  %v906_v22 = vld [vmem:[%s2992_s5 + $0x38] sm:$0xff] }
  0xd4   :  { %1498 = vmatprep.subr.bf16.mxu0 %v1497_v23  ;;  %v1587_v23 = vpack.c.bf16 %v906_v22, %v905_v21 }
  0xd7   :  { %1500 = vmatpush1.bf16.msra.mxu0 %v1499_v53  ;;  %v912_v53 = vld [vmem:[%s2992_s5 + $0x68] sm:$0xff] }
  0xd8   :  { %1502 = vmatprep.subr.bf16.mxu0 %v1501_v30  ;;  %v1596_v30 = vpack.c.bf16 %v912_v53, %v911_v29 }
  0xdb   :  { %1504 = vmatpush1.bf16.msra.mxu0 %v1503_v35  ;;  %v819_v35 = vrot.slane %v814_v34, %v332_v63  ;;  %v1005_v63 = vld [vmem:[%s2994_s7 + $0x68] sm:$0xff] }
  0xdc   :  { %1506 = vmatprep.subr.bf16.mxu0 %v1505_v37  ;;  %v992_v37 = vld [vmem:[%s2994_s7] sm:$0xff] }
  0xdf   :  { %1508 = vmatpush1.bf16.msra.mxu0 %v1507_v43  ;;  %v1602_v43 = vpack.c.bf16 %v993_v38, %v992_v37 }
  0xe0   :  { %1510 = vmatprep.subr.bf16.mxu0 %v1509_v45 }
  0xe3   :  { %1512 = vmatpush1.bf16.msra.mxu0 %v1511_v1  ;;  %v1605_v1 = vpack.c.bf16 %v995_v47, %v994_v46 }
  0xe6   :  { %742 = vmatmul.mubr.f32.vlgmr.msra.gmra.mrb[0].mxu0 %v1118_v48  ;;  %v996_v48 = vld [vmem:[%s2994_s7 + $0x20] sm:$0xff] }
  0xe7   :  { %v1608_v50 = vpack.c.bf16 %v997_v49, %v996_v48 }
 0x14e   :  { %v459_v61 = vpop.f32.mrb[0].mxu1 }
 0x14f   :  { %v461_v62 = vpop.f32.mrb[1].mxu1  ;;  %v460_v5 = vadd.f32 %v459_v61, %v333_v3  ;;  %v1617_v61 = vpack.c.bf16 %v1003_v59, %v1002_v58  ;;  %v823_v3 = vrot.slane %v814_v34, %v336_v2 }
 0x150   :  { %v462_v6 = vadd.f32 %v461_v62, %v337_v4  ;;  %v1004_v62 = vld [vmem:[%s2994_s7 + $0x60] sm:$0xff]  ;;  %v1006_v4 = vld [vmem:[%s2994_s7 + $0x70] sm:$0xff] }
 0x151   :  { %v1620_v0 = vpack.c.bf16 %v1005_v63, %v1004_v62 }
 0x1b9   :  { %v743_v7 = vpop.f32.mrb[0].mxu0 }
 0x1ba   :  { %v1626_v8 = vadd.f32 %v743_v7, %v460_v5  ;;  %v745_v9 = vpop.f32.mrb[1].mxu0  ;;  %v1007_v5 = vld [vmem:[%s2994_s7 + $0x78] sm:$0xff] }
 0x1bb   :  { %v1628_v13 = vadd.f32 %v745_v9, %v462_v6  ;;  %v1623_v6 = vpack.c.bf16 %v1007_v5, %v1006_v4 }
 0x1bc   :  { %v748_v15 = vmax.f32 %v1626_v8, 0.0 }
 0x1bd   :  { %v749_v14 = vmax.f32 %v1628_v13, 0.0 }
 0x1bf   :  { %890 = vmatprep.mubr.f32.mxu1 %v749_v14 }
 0x1c0   :  { %891 = vmatmul.mubr.f32.vlgmr.msra.gmra.mrb[2].mxu1 %v748_v15 }
 0x1c1   :  { %1579 = vmatpush3.bf16.msra.mxu1 %v1578_v54  ;;  %1187 = vmatprep.mubr.msk.f32.mxu1 %vm1673_vm0, %v1671_v12 }
 0x1c2   :  { %1580 = vmatprep.subr.bf16.mxu1 %v1672_v60 }
 0x1c5   :  { %1582 = vmatpush3.bf16.msra.mxu1 %v1581_v17 }
 0x1c6   :  { %1583 = vmatprep.subr.bf16.mxu1 %v1672_v60 }
 0x1c9   :  { %1585 = vmatpush3.bf16.msra.mxu1 %v1584_v19 }
 0x1ca   :  { %1586 = vmatprep.subr.bf16.mxu1 %v1672_v60 }
 0x1cd   :  { %1588 = vmatpush3.bf16.msra.mxu1 %v1587_v23 }
 0x1ce   :  { %1589 = vmatprep.subr.bf16.mxu1 %v1672_v60 }
 0x1d1   :  { %1591 = vmatpush3.bf16.msra.mxu1 %v1590_v44 }
 0x1d2   :  { %1592 = vmatprep.subr.bf16.mxu1 %v1672_v60 }
 0x1d5   :  { %1594 = vmatpush3.bf16.msra.mxu1 %v1593_v28 }
 0x1d6   :  { %1595 = vmatprep.subr.bf16.mxu1 %v1672_v60 }
 0x1d9   :  { %1597 = vmatpush3.bf16.msra.mxu1 %v1596_v30 }
 0x1da   :  { %1598 = vmatprep.subr.bf16.mxu1 %v1672_v60 }
 0x1dd   :  { %1600 = vmatpush3.bf16.msra.mxu1 %v1599_v33 }
 0x1de   :  { %1601 = vmatprep.subr.bf16.mxu1 %v1672_v60 }
 0x293   :  { %v892_v39 = vpop.f32.mrb[2].mxu1 }
 0x294   :  { %v893_v40 = vadd.f32 %v892_v39, %v819_v35  ;;  %v894_v42 = vpop.f32.mrb[3].mxu1 }
 0x295   :  { %v895_v7 = vadd.f32 %v894_v42, %v823_v3 }
 0x296   :  { %v897_v45 = vmax.f32 %v893_v40, 0.0 }
 0x297   :  { %v898_v8 = vmax.f32 %v895_v7, 0.0 }
 0x298   :  { %1188 = vmatmul.mubr.f32.vlgmr.msra.gmra.mrb[4].mxu1 %v897_v45 }
 0x299   :  { %1603 = vmatpush3.bf16.msra.mxu1 %v1602_v43  ;;  %1222 = vmatprep.mubr.msk.f32.mxu1 %vm1673_vm0, %v1671_v12  ;;  %v999_v12 = vld [vmem:[%s2994_s7 + $0x38] sm:$0xff]  ;;  %s1674_s7 = smov [#allocation3]  }
 0x29a   :  { %1604 = vmatprep.subr.bf16.mxu1 %v1672_v60  ;;  %v1611_v52 = vpack.c.bf16 %v999_v12, %v998_v51 }
 0x29d   :  { %1606 = vmatpush3.bf16.msra.mxu1 %v1605_v1 }
 0x29e   :  { %1607 = vmatprep.subr.bf16.mxu1 %v1672_v60 }
 0x2a1   :  { %1609 = vmatpush3.bf16.msra.mxu1 %v1608_v50 }
 0x2a2   :  { %1610 = vmatprep.subr.bf16.mxu1 %v1672_v60 }
 0x2a5   :  { %1612 = vmatpush3.bf16.msra.mxu1 %v1611_v52 }
 0x2a6   :  { %1613 = vmatprep.subr.bf16.mxu1 %v1672_v60 }
 0x2a9   :  { %1615 = vmatpush3.bf16.msra.mxu1 %v1614_v57 }
 0x2aa   :  { %1616 = vmatprep.subr.bf16.mxu1 %v1672_v60 }
 0x2ad   :  { %1618 = vmatpush3.bf16.msra.mxu1 %v1617_v61 }
 0x2ae   :  { %1619 = vmatprep.subr.bf16.mxu1 %v1672_v60 }
 0x2b1   :  { %1621 = vmatpush3.bf16.msra.mxu1 %v1620_v0 }
 0x2b2   :  { %1622 = vmatprep.subr.bf16.mxu1 %v1672_v60 }
 0x2b5   :  { %1624 = vmatpush3.bf16.msra.mxu1 %v1623_v6 }
 0x2b8   :  { %1223 = vmatmul.mubr.f32.vlgmr.msra.gmra.mrb[6].mxu1 %v898_v8 }
 0x36b   :  { %v988_v2 = vpop.f32.mrb[4].mxu1 }
 0x36c   :  { %v989_v9 = vadd.f32 %v1119_v36, %v988_v2  ;;  %v1189_v10 = vpop.f32.mrb[5].mxu1 }
 0x36e   :  { %1099 = vst.msk [vmem:[%s2997_s10] sm:$0x3] %vm1098_vm1, %v989_v9  ;;  %s1106_s10 = sshll.u32 %s1674_s7, 4  ;;  %s1107_s10 = int_to_ptr.vmem [resolvable:$true] %s1106_s10 }
 0x36f   :  { %s1646_s8 = scalar_lea.vmem %s1107_s10, 32  ;;  %p1651_p1 = scmp.lt.s32.totalorder %s1107_s10, %s1107_s10 }
 0x370   :  { %p1647_p0 = scmp.ne.s32.totalorder %s1107_s10, %s1646_s8  ;;  %p1652_p2 = scmp.lt.s32.totalorder %s1646_s8, %s1646_s8 }
 0x372   :  { %p1653_p3 = por %p1652_p2, %p1651_p1 }
 0x374   :  { %p1654_p4 = pnand %p1653_p3, %p1647_p0 }
 0x38b   :  { %v1081_v13 = vpop.f32.mrb[6].mxu1 }
 0x38c   :  { %v1082_v14 = vadd.f32 %v1120_v11, %v1081_v13  ;;  %v1224_v60 = vpop.f32.mrb[7].mxu1 }
 0x38e   :  { %v1086_v54 = vsel %vm1085_vm2, %v1082_v14, -inf }
 0x38f   :  { %1087 = vmax.xlane.f32.xlu0 %v1086_v54 }
 0x41c   :  { %v1088_v15 = vpop.xlane.xlu0 %1087 }
 0x41d   :  { %v1089_v20 = vsub.f32 %v1082_v14, %v1088_v15 }
 0x41f   :  { %v1090_v16 = vmul.f32 1.442695, %v1089_v20 }
 0x421   :  { %1642 = vpow2.f32 %v1090_v16 }
 0x42b   :  { %v1643_v17 = vpop.eup %1642 }
 0x42c   :  { %v1092_v18 = vsel %vm1085_vm2, %v1643_v17, 0.0 }
 0x42d   :  { %1093 = vadd.xlane.f32.xlu0 %v1092_v18 }
 0x4ba   :  { %v1094_v41 = vpop.xlane.xlu0 %1093 }
 0x4bb   :  { %1644 = vrcp.f32 %v1094_v41 }
 0x4c5   :  { %v1645_v19 = vpop.eup %1644 }
 0x4c6   :  { %v1096_v21 = vmul.f32 %v1645_v19, %v1643_v17 }
 0x4c8   :  { %1097 = vst.msk [vmem:[#allocation3] sm:$0x3] %vm1085_vm2, %v1096_v21 }
 0x4c9   :  { %1657 = shalt.err (!%p1654_p4)
}
 0x4ca   :  { %s1658_s25 = scalar_lea.hbm %s2996_s9, 32 }
 0x4cb   :  { %p1659_p5 = scmp.ne.s32.totalorder %s2996_s9, %s1658_s25  ;;  %p1662_p6 = scmp.lt.u32.totalorder %s1658_s25, %s2996_s9 }
 0x4cd   :  { %p1664_p7 = pnand %p1662_p6, %p1659_p5 }
 0x4cf   :  { %1667 = shalt.err (!%p1664_p7)
}
 0x4d0   :  { %1109 = dma.vmem_to_hbm [thread:$0]  %s1107_s10, 32, %s2996_s9, [#allocation4]  }
 0x4d1   :  { %1668 = dma.done.wait [#allocation4], 32  }
 0x4d2   :  { %1669 = vsyncadd [#allocation4], 4294967264 }
 0x4d3   :  { %1117 = vsyncpa [#allocation4], 1 }

</bundles_post_ra>
